<compile_context>
chip_gen: v6e
topology: v6e:2x2x1
jax: 0.10.0
libtpu: 0.0.40
codegen_flags: <defaults>
</compile_context>

<pallas_src>
import numpy as np

import jax
import jax.numpy as jnp
from jax import lax
from jax.experimental import pallas as pl
from jax.experimental.pallas import tpu as pltpu

_EPS = 1e-5

# ---------------- static geometry (FeatureExtractor, length-400 input) ----------------
L_IN = 400
K1, C1 = 20, 30            # conv1: Conv1d(1, 30, 20, stride=2)
L1 = (L_IN - K1) // 2 + 1  # 191 conv1 output length
L1P = L1 // 2              # 95  after MaxPool1d(2)
K2, C2 = 10, 50            # conv2: Conv1d(30, 50, 10, stride=2)
L2 = (L1P - K2) // 2 + 1   # 43  conv2 output length
L2P = L2 // 2              # 21  after MaxPool1d(2)
ROWS = 24                  # per-sample row frame: 96 pooled conv1 positions packed
                           # 4 per row = 24 rows; also 21 valid residual rows + 3 pad
C2_PAD = 128               # conv2 output channels padded 50 -> 128 lanes
C_R1, C_R2 = 128, 256      # residual block widths


# ------------------------------------ kernel ------------------------------------------

def _fe_kernel(pe_ref, po_ref, mask_ref, avg_ref,
               w1_ref, s1_ref, w2e_ref, w2o_ref, s2_ref,
               r1w1_ref, r1s1_ref, r1w2_ref, r1s2_ref,
               r2w1_ref, r2s1_ref, r2w2_ref, r2s2_ref,
               out_ref):
    f32, bf16 = jnp.float32, jnp.bfloat16
    mask = mask_ref[...]                 # (B*24, 1): 1.0 on the 21 valid rows / sample
    m = mask.shape[0]                    # B*24 rows per grid step

    def mm(a, b):                        # MXU matmul, f32 accumulation
        return jnp.dot(a, b, preferred_element_type=f32)

    # ---- conv1 (k=20, s=2, BN1 scale folded) + MaxPool1d(2) + ReLU -------------------
    # pe/po hold the pool-even / pool-odd members of the 96 packed pooled positions,
    # so the pool is a single VPU max; shift is added after the max (scale pre-folded).
    y1e = mm(pe_ref[...], w1_ref[...])                         # (B*24, 120)
    y1o = mm(po_ref[...], w1_ref[...])
    h1 = jnp.maximum(jnp.maximum(y1e, y1o) + s1_ref[...], 0.0)

    # ---- conv2 (k=10, s=2) + BN2 + MaxPool1d(2) + ReLU -------------------------------
    # Packed layout: row i holds pooled positions 4i..4i+3 along lanes.  The stride-2
    # conv + pool only needs rows i, i+1, i+2, so the stage is 6 matmuls on h1 and its
    # +1/+2 row shifts (pltpu.roll -> XLU), with taps regrouped inside w2e/w2o.
    h1a = h1.astype(bf16)
    h1b = pltpu.roll(h1, m - 1, axis=0).astype(bf16)           # h1[i+1]
    h1c = pltpu.roll(h1, m - 2, axis=0).astype(bf16)           # h1[i+2]
    y2e = mm(h1a, w2e_ref[0]) + mm(h1b, w2e_ref[1]) + mm(h1c, w2e_ref[2])
    y2o = mm(h1a, w2o_ref[0]) + mm(h1b, w2o_ref[1]) + mm(h1c, w2o_ref[2])
    h2 = jnp.maximum(jnp.maximum(y2e, y2o) + s2_ref[...], 0.0) * mask   # (B*24, 128)

    # ---- Residual(cin, cmid, use_1x1conv=True) ---------------------------------------
    # k=3 / pad=1 convs use +-1 row shifts (zero padding comes from the masked pad
    # rows).  The 3 taps are merged into one lane-aligned concat matmul; the 1x1
    # shortcut (and its bias) rides inside the second conv's matmul.
    def res_block(x, w1r, s1r, w2r, s2r):
        x_prev = pltpu.roll(x, 1, axis=0)                      # x[i-1]
        x_next = pltpu.roll(x, m - 1, axis=0)                  # x[i+1]
        cc1 = jnp.concatenate([x_prev, x, x_next], axis=-1).astype(bf16)
        y = jnp.maximum(mm(cc1, w1r[...]) + s1r[...], 0.0) * mask
        y_prev = pltpu.roll(y, 1, axis=0)
        y_next = pltpu.roll(y, m - 1, axis=0)
        cc2 = jnp.concatenate([y_prev, y, y_next, x], axis=-1).astype(bf16)
        z = mm(cc2, w2r[...]) + s2r[...]                       # bn2(conv2)+shortcut
        return jnp.maximum(z, 0.0) * mask

    r1 = res_block(h2, r1w1_ref, r1s1_ref, r1w2_ref, r1s2_ref)   # (B*24, 128)
    r2 = res_block(r1, r2w1_ref, r2s1_ref, r2w2_ref, r2s2_ref)   # (B*24, 256)

    # ---- AdaptiveAvgPool1d(1) + Flatten: constant averaging matmul -------------------
    out_ref[...] = jnp.dot(avg_ref[...], r2, preferred_element_type=f32)  # (B, 256)


# ------------------------------------ wrapper ------------------------------------------

def _const_spec(a):
    zeros = (0,) * a.ndim
    return pl.BlockSpec(a.shape, lambda i: zeros)


def feature_extractor_forward(x, kern, *, b_tile=8):
    """x: (N, 1, 400) float32 -> (N, 256) float32."""
    n = x.shape[0]
    assert x.shape[1:] == (1, L_IN)
    n_pad = ((n + b_tile - 1) // b_tile) * b_tile
    if n_pad != n:
        x = jnp.pad(x, ((0, n_pad - n), (0, 0), (0, 0)))

    # Host-side conv1 im2col.  Per sample: 24 rows x (4 residues x 20 taps) lanes,
    # row i / residue r = pooled position 4i+r; pool-even / pool-odd members go to
    # separate operands so MaxPool1d(2) is a single in-kernel max.
    m_i = np.arange(ROWS)[:, None, None]
    r_i = np.arange(4)[None, :, None]
    t_i = np.arange(K1)[None, None, :]
    idx_e = 16 * m_i + 4 * r_i + t_i                    # max index = 399, in bounds
    idx_o = np.minimum(idx_e + 2, L_IN - 1)             # clamp the never-consumed slot
    pe = x[:, 0, idx_e].reshape(n_pad * ROWS, 4 * K1).astype(jnp.bfloat16)
    po = x[:, 0, idx_o].reshape(n_pad * ROWS, 4 * K1).astype(jnp.bfloat16)

    mrows = b_tile * ROWS
    mask = np.zeros((mrows, 1), np.float32)
    mask[np.arange(mrows) % ROWS < L2P] = 1.0           # 21 valid rows per sample
    avg = np.zeros((b_tile, mrows), np.float32)
    for b in range(b_tile):
        avg[b, b * ROWS:b * ROWS + L2P] = 1.0 / L2P

    inputs = [pe, po, jnp.asarray(mask), jnp.asarray(avg),
              kern['w1'], kern['s1'],
              kern['w2e'], kern['w2o'], kern['s2'],
              kern['r1w1'], kern['r1s1'], kern['r1w2'], kern['r1s2'],
              kern['r2w1'], kern['r2s1'], kern['r2w2'], kern['r2s2']]

    in_specs = [pl.BlockSpec((mrows, 4 * K1), lambda i: (i, 0)),
                pl.BlockSpec((mrows, 4 * K1), lambda i: (i, 0))]
    in_specs += [_const_spec(a) for a in inputs[2:]]

    grid = (n_pad // b_tile,)
    macs_per_step = mrows * (2 * 80 * 120 + 6 * 120 * C2_PAD
                             + 384 * C_R1 + 512 * C_R1
                             + 384 * C_R2 + 896 * C_R2) + b_tile * mrows * C_R2
    cost = pl.CostEstimate(
        flops=2 * macs_per_step * grid[0], transcendentals=0,
        bytes_accessed=int(pe.size + po.size) * 2 + 2_600_000 * grid[0]
                       + n_pad * C_R2 * 4)

    out = pl.pallas_call(
        _fe_kernel,
        grid=grid,
        out_shape=jax.ShapeDtypeStruct((n_pad, C_R2), jnp.float32),
        in_specs=in_specs,
        out_specs=pl.BlockSpec((b_tile, C_R2), lambda i: (i, 0)),
        compiler_params=pltpu.CompilerParams(
            dimension_semantics=("parallel",)),          # batch tiles are independent
        cost_estimate=cost,
    )(*inputs)
    return out[:n]


# ----------------------------- parameter construction ----------------------------------

def _fold_bn(b, gamma, beta, mean, var):
    scale = gamma / jnp.sqrt(var + _EPS)
    shift = beta + (b - mean) * scale
    return scale, shift


def _make_conv(key, cout, cin, k, with_bn=True):
    k1, k2, k3, k4, k5, k6 = jax.random.split(key, 6)
    w = jax.random.normal(k1, (cout, cin, k), jnp.float32) * 0.05
    b = jax.random.normal(k2, (cout,), jnp.float32) * 0.05
    if with_bn:
        gamma = jax.random.uniform(k3, (cout,), jnp.float32, 0.8, 1.2)
        beta = jax.random.normal(k4, (cout,), jnp.float32) * 0.1
        mean = jax.random.normal(k5, (cout,), jnp.float32) * 0.1
        var = jax.random.uniform(k6, (cout,), jnp.float32, 0.5, 1.5)
        scale, shift = _fold_bn(b, gamma, beta, mean, var)
    else:
        scale = jnp.ones((cout,), jnp.float32)
        shift = b
    return dict(w=w, scale=scale, shift=shift)


def make_raw_params(key):
    k1, k2, k3, k4, k5, k6, k7, k8 = jax.random.split(key, 8)
    return dict(
        conv1=_make_conv(k1, C1, 1, K1),
        conv2=_make_conv(k2, C2, C1, K2),
        res1=dict(c1=_make_conv(k3, C_R1, C2, 3),
                  c2=_make_conv(k4, C_R1, C_R1, 3),
                  c3=_make_conv(k5, C_R1, C2, 1, with_bn=False)),
        res2=dict(c1=_make_conv(k6, C_R2, C_R1, 3),
                  c2=_make_conv(k7, C_R2, C_R2, 3),
                  c3=_make_conv(k8, C_R2, C_R1, 1, with_bn=False)))


def pack_kernel_params(raw):
    """Fold BN scales into bf16 MXU weights and pre-arrange them for the kernel."""
    f32, bf16 = np.float32, jnp.bfloat16

    def npf(a):
        return np.asarray(a, f32)

    # conv1: 4x block-diagonal (residue-packed) weight, BN1 scale folded.
    w1 = npf(raw['conv1']['w'])                      # (30, 1, 20)
    s1 = npf(raw['conv1']['scale'])
    sh1 = npf(raw['conv1']['shift'])
    w1s = w1[:, 0, :].T * s1[None, :]                # (20, 30)
    w1blk = np.zeros((4 * K1, 4 * C1), f32)
    for rr in range(4):
        w1blk[K1 * rr:K1 * (rr + 1), C1 * rr:C1 * (rr + 1)] = w1s
    sh1t = np.tile(sh1, 4)[None, :]                  # (1, 120)

    # conv2: taps regrouped by (row shift a, residue r); even / odd pool members.
    w2 = npf(raw['conv2']['w'])                      # (50, 30, 10)
    s2 = npf(raw['conv2']['scale'])
    sh2 = npf(raw['conv2']['shift'])
    w2s = np.transpose(w2, (2, 1, 0)) * s2[None, None, :]    # (10, 30, 50)
    w2e = np.zeros((3, 4 * C1, C2_PAD), f32)
    w2o = np.zeros((3, 4 * C1, C2_PAD), f32)
    for tt in range(K2):
        a, rr = divmod(tt, 4)                        # even pool member: pos 4p + t
        w2e[a, C1 * rr:C1 * (rr + 1), :C2] = w2s[tt]
        a, rr = divmod(tt + 2, 4)                    # odd pool member: pos 4p + 2 + t
        w2o[a, C1 * rr:C1 * (rr + 1), :C2] = w2s[tt]
    sh2p = np.zeros((1, C2_PAD), f32)
    sh2p[0, :C2] = sh2

    def pack_res(blk, cin, cin_pad, cmid):
        c1w, c1s, c1sh = npf(blk['c1']['w']), npf(blk['c1']['scale']), npf(blk['c1']['shift'])
        c2w, c2s, c2sh = npf(blk['c2']['w']), npf(blk['c2']['scale']), npf(blk['c2']['shift'])
        c3w, c3sh = npf(blk['c3']['w']), npf(blk['c3']['shift'])
        wc1 = np.zeros((3 * cin_pad, cmid), f32)         # [x_prev | x | x_next] weights
        for kk in range(3):
            wc1[kk * cin_pad:kk * cin_pad + cin, :] = (c1w[:, :, kk] * c1s[:, None]).T
        wc2 = np.zeros((3 * cmid + cin_pad, cmid), f32)  # [y_prev | y | y_next | x]
        for kk in range(3):
            wc2[kk * cmid:(kk + 1) * cmid, :] = (c2w[:, :, kk] * c2s[:, None]).T
        wc2[3 * cmid:3 * cmid + cin, :] = c3w[:, :, 0].T  # 1x1 shortcut (no BN scale)
        return wc1, c1sh[None, :], wc2, (c2sh + c3sh)[None, :]

    r1w1, r1s1, r1w2, r1s2 = pack_res(raw['res1'], C2, C2_PAD, C_R1)
    r2w1, r2s1, r2w2, r2s2 = pack_res(raw['res2'], C_R1, C_R1, C_R2)

    return dict(
        w1=jnp.asarray(w1blk, bf16), s1=jnp.asarray(sh1t),
        w2e=jnp.asarray(w2e, bf16), w2o=jnp.asarray(w2o, bf16), s2=jnp.asarray(sh2p),
        r1w1=jnp.asarray(r1w1, bf16), r1s1=jnp.asarray(r1s1),
        r1w2=jnp.asarray(r1w2, bf16), r1s2=jnp.asarray(r1s2),
        r2w1=jnp.asarray(r2w1, bf16), r2s1=jnp.asarray(r2s1),
        r2w2=jnp.asarray(r2w2, bf16), r2s2=jnp.asarray(r2s2))


# ------------------------------ pure-JAX reference (XLA) -------------------------------

def reference_forward(x, raw):
    """f32 XLA reference of the PyTorch forward (inference-mode BN)."""
    def conv1d(v, w, stride=1, padding=0):
        return lax.conv_general_dilated(
            v, w, window_strides=(stride,), padding=[(padding, padding)],
            dimension_numbers=('NCH', 'OIH', 'NCH'))

    def affine(v, p):
        return v * p['scale'][None, :, None] + p['shift'][None, :, None]

    def maxpool2(v):
        return lax.reduce_window(v, -jnp.inf, lax.max, (1, 1, 2), (1, 1, 2), 'VALID')

    def residual(v, prm):
        y = jnp.maximum(affine(conv1d(v, prm['c1']['w'], padding=1), prm['c1']), 0.0)
        y = affine(conv1d(y, prm['c2']['w'], padding=1), prm['c2'])
        sc = conv1d(v, prm['c3']['w']) + prm['c3']['shift'][None, :, None]
        return jnp.maximum(y + sc, 0.0)

    y = jnp.maximum(maxpool2(affine(conv1d(x, raw['conv1']['w'], stride=2),
                                    raw['conv1'])), 0.0)
    y = jnp.maximum(maxpool2(affine(conv1d(y, raw['conv2']['w'], stride=2),
                                    raw['conv2'])), 0.0)
    y = residual(y, raw['res1'])
    y = residual(y, raw['res2'])
    return jnp.mean(y, axis=2)


# --------------------------------------- main ------------------------------------------

if __name__ == "__main__":
    key = jax.random.PRNGKey(0)
    k_x, k_p = jax.random.split(key)

    # batch=10, 1 input channel, length=400 (consistent with the module).
    # With B_TILE=8 this pads to 16 samples and exercises a 2-step parallel grid.
    x = jax.random.normal(k_x, (10, 1, L_IN), jnp.float32)
    raw = make_raw_params(k_p)
    kern = pack_kernel_params(raw)

    fwd = jax.jit(feature_extractor_forward)
    out = jax.block_until_ready(fwd(x, kern))

    assert out.shape == (10, C_R2), out.shape
    assert out.dtype == jnp.float32
    assert bool(jnp.all(jnp.isfinite(out)))

    # Numerical check against the pure-XLA f32 reference (kernel uses bf16 MXU
    # operands / bf16 im2col input with f32 accumulation -> loose tolerance).
    ref = reference_forward(x, raw)
    np.testing.assert_allclose(np.asarray(out), np.asarray(ref),
                               rtol=6e-2, atol=4e-2)

    print("KERNEL_OK")
</pallas_src>

<mosaic_0001>
module attributes {stable_mosaic.version = 11 : i64} {
  func.func @_fe_kernel(%arg0: i32, %arg1: memref<192x80xbf16, #tpu.memory_space<vmem>>, %arg2: memref<192x80xbf16, #tpu.memory_space<vmem>>, %arg3: memref<192x1xf32, #tpu.memory_space<vmem>>, %arg4: memref<8x192xf32, #tpu.memory_space<vmem>>, %arg5: memref<80x120xbf16, #tpu.memory_space<vmem>>, %arg6: memref<1x120xf32, #tpu.memory_space<vmem>>, %arg7: memref<3x120x128xbf16, #tpu.memory_space<vmem>>, %arg8: memref<3x120x128xbf16, #tpu.memory_space<vmem>>, %arg9: memref<1x128xf32, #tpu.memory_space<vmem>>, %arg10: memref<384x128xbf16, #tpu.memory_space<vmem>>, %arg11: memref<1x128xf32, #tpu.memory_space<vmem>>, %arg12: memref<512x128xbf16, #tpu.memory_space<vmem>>, %arg13: memref<1x128xf32, #tpu.memory_space<vmem>>, %arg14: memref<384x256xbf16, #tpu.memory_space<vmem>>, %arg15: memref<1x256xf32, #tpu.memory_space<vmem>>, %arg16: memref<896x256xbf16, #tpu.memory_space<vmem>>, %arg17: memref<1x256xf32, #tpu.memory_space<vmem>>, %arg18: memref<8x256xf32, #tpu.memory_space<vmem>>) attributes {dimension_semantics = [#tpu.dimension_semantics<parallel>], iteration_bounds = array<i64: 2>, scalar_prefetch = 0 : i64, scratch_operands = 0 : i64, tpu.core_type = #tpu.core_type<tc>, window_params = [{transform_indices = @transform_0, window_bounds = array<i64: 192, 80>}, {transform_indices = @transform_1, window_bounds = array<i64: 192, 80>}, {pipeline_mode = #tpu.pipeline_mode<synchronous>, transform_indices = @transform_2, window_bounds = array<i64: 192, 1>}, {pipeline_mode = #tpu.pipeline_mode<synchronous>, transform_indices = @transform_3, window_bounds = array<i64: 8, 192>}, {pipeline_mode = #tpu.pipeline_mode<synchronous>, transform_indices = @transform_4, window_bounds = array<i64: 80, 120>}, {pipeline_mode = #tpu.pipeline_mode<synchronous>, transform_indices = @transform_5, window_bounds = array<i64: 1, 120>}, {pipeline_mode = #tpu.pipeline_mode<synchronous>, transform_indices = @transform_6, window_bounds = array<i64: 3, 120, 128>}, {pipeline_mode = #tpu.pipeline_mode<synchronous>, transform_indices = @transform_7, window_bounds = array<i64: 3, 120, 128>}, {pipeline_mode = #tpu.pipeline_mode<synchronous>, transform_indices = @transform_8, window_bounds = array<i64: 1, 128>}, {pipeline_mode = #tpu.pipeline_mode<synchronous>, transform_indices = @transform_9, window_bounds = array<i64: 384, 128>}, {pipeline_mode = #tpu.pipeline_mode<synchronous>, transform_indices = @transform_10, window_bounds = array<i64: 1, 128>}, {pipeline_mode = #tpu.pipeline_mode<synchronous>, transform_indices = @transform_11, window_bounds = array<i64: 512, 128>}, {pipeline_mode = #tpu.pipeline_mode<synchronous>, transform_indices = @transform_12, window_bounds = array<i64: 1, 128>}, {pipeline_mode = #tpu.pipeline_mode<synchronous>, transform_indices = @transform_13, window_bounds = array<i64: 384, 256>}, {pipeline_mode = #tpu.pipeline_mode<synchronous>, transform_indices = @transform_14, window_bounds = array<i64: 1, 256>}, {pipeline_mode = #tpu.pipeline_mode<synchronous>, transform_indices = @transform_15, window_bounds = array<i64: 896, 256>}, {pipeline_mode = #tpu.pipeline_mode<synchronous>, transform_indices = @transform_16, window_bounds = array<i64: 1, 256>}, {transform_indices = @transform_17, window_bounds = array<i64: 8, 256>}]} {
    %c0 = arith.constant 0 : index
    %c0_0 = arith.constant 0 : index
    %0 = vector.load %arg3[%c0, %c0_0] : memref<192x1xf32, #tpu.memory_space<vmem>>, vector<192x1xf32>
    %c0_1 = arith.constant 0 : index
    %c0_2 = arith.constant 0 : index
    %1 = vector.load %arg1[%c0_1, %c0_2] : memref<192x80xbf16, #tpu.memory_space<vmem>>, vector<192x80xbf16>
    %c0_3 = arith.constant 0 : index
    %c0_4 = arith.constant 0 : index
    %2 = vector.load %arg5[%c0_3, %c0_4] : memref<80x120xbf16, #tpu.memory_space<vmem>>, vector<80x120xbf16>
    %cst = arith.constant dense<0.000000e+00> : vector<192x120xf32>
    %3 = tpu.matmul %1, %2, %cst {dimension_numbers = #tpu.dot_dimension_numbers<[1], [0], [0], [1], [0, 0, 1, 1], [], []>} : vector<192x80xbf16>, vector<80x120xbf16>, vector<192x120xf32> -> vector<192x120xf32>
    %c0_5 = arith.constant 0 : index
    %c0_6 = arith.constant 0 : index
    %4 = vector.load %arg2[%c0_5, %c0_6] : memref<192x80xbf16, #tpu.memory_space<vmem>>, vector<192x80xbf16>
    %c0_7 = arith.constant 0 : index
    %c0_8 = arith.constant 0 : index
    %5 = vector.load %arg5[%c0_7, %c0_8] : memref<80x120xbf16, #tpu.memory_space<vmem>>, vector<80x120xbf16>
    %cst_9 = arith.constant dense<0.000000e+00> : vector<192x120xf32>
    %6 = tpu.matmul %4, %5, %cst_9 {dimension_numbers = #tpu.dot_dimension_numbers<[1], [0], [0], [1], [0, 0, 1, 1], [], []>} : vector<192x80xbf16>, vector<80x120xbf16>, vector<192x120xf32> -> vector<192x120xf32>
    %7 = arith.maximumf %3, %6 : vector<192x120xf32>
    %c0_10 = arith.constant 0 : index
    %c0_11 = arith.constant 0 : index
    %8 = vector.load %arg6[%c0_10, %c0_11] : memref<1x120xf32, #tpu.memory_space<vmem>>, vector<1x120xf32>
    %9 = vector.broadcast %8 : vector<1x120xf32> to vector<192x120xf32>
    %10 = arith.addf %7, %9 : vector<192x120xf32>
    %cst_12 = arith.constant 0.000000e+00 : f32
    %11 = vector.broadcast %cst_12 : f32 to vector<192x120xf32>
    %12 = arith.maximumf %10, %11 : vector<192x120xf32>
    %13 = arith.truncf %12 : vector<192x120xf32> to vector<192x120xbf16>
    %c191_i32 = arith.constant 191 : i32
    %14 = tpu.dynamic_rotate %12 by %c191_i32 dim 0 : vector<192x120xf32>, i32 -> vector<192x120xf32>
    %15 = arith.truncf %14 : vector<192x120xf32> to vector<192x120xbf16>
    %c190_i32 = arith.constant 190 : i32
    %16 = tpu.dynamic_rotate %12 by %c190_i32 dim 0 : vector<192x120xf32>, i32 -> vector<192x120xf32>
    %17 = arith.truncf %16 : vector<192x120xf32> to vector<192x120xbf16>
    %c0_13 = arith.constant 0 : index
    %c0_14 = arith.constant 0 : index
    %c0_15 = arith.constant 0 : index
    %18 = vector.load %arg7[%c0_13, %c0_14, %c0_15] : memref<3x120x128xbf16, #tpu.memory_space<vmem>>, vector<1x120x128xbf16>
    %19 = vector.shape_cast %18 : vector<1x120x128xbf16> to vector<120x128xbf16>
    %cst_16 = arith.constant dense<0.000000e+00> : vector<192x128xf32>
    %20 = tpu.matmul %13, %19, %cst_16 {dimension_numbers = #tpu.dot_dimension_numbers<[1], [0], [0], [1], [0, 0, 1, 1], [], []>} : vector<192x120xbf16>, vector<120x128xbf16>, vector<192x128xf32> -> vector<192x128xf32>
    %c1 = arith.constant 1 : index
    %c0_17 = arith.constant 0 : index
    %c0_18 = arith.constant 0 : index
    %21 = vector.load %arg7[%c1, %c0_17, %c0_18] : memref<3x120x128xbf16, #tpu.memory_space<vmem>>, vector<1x120x128xbf16>
    %22 = vector.shape_cast %21 : vector<1x120x128xbf16> to vector<120x128xbf16>
    %cst_19 = arith.constant dense<0.000000e+00> : vector<192x128xf32>
    %23 = tpu.matmul %15, %22, %cst_19 {dimension_numbers = #tpu.dot_dimension_numbers<[1], [0], [0], [1], [0, 0, 1, 1], [], []>} : vector<192x120xbf16>, vector<120x128xbf16>, vector<192x128xf32> -> vector<192x128xf32>
    %24 = arith.addf %20, %23 : vector<192x128xf32>
    %c2 = arith.constant 2 : index
    %c0_20 = arith.constant 0 : index
    %c0_21 = arith.constant 0 : index
    %25 = vector.load %arg7[%c2, %c0_20, %c0_21] : memref<3x120x128xbf16, #tpu.memory_space<vmem>>, vector<1x120x128xbf16>
    %26 = vector.shape_cast %25 : vector<1x120x128xbf16> to vector<120x128xbf16>
    %cst_22 = arith.constant dense<0.000000e+00> : vector<192x128xf32>
    %27 = tpu.matmul %17, %26, %cst_22 {dimension_numbers = #tpu.dot_dimension_numbers<[1], [0], [0], [1], [0, 0, 1, 1], [], []>} : vector<192x120xbf16>, vector<120x128xbf16>, vector<192x128xf32> -> vector<192x128xf32>
    %28 = arith.addf %24, %27 : vector<192x128xf32>
    %c0_23 = arith.constant 0 : index
    %c0_24 = arith.constant 0 : index
    %c0_25 = arith.constant 0 : index
    %29 = vector.load %arg8[%c0_23, %c0_24, %c0_25] : memref<3x120x128xbf16, #tpu.memory_space<vmem>>, vector<1x120x128xbf16>
    %30 = vector.shape_cast %29 : vector<1x120x128xbf16> to vector<120x128xbf16>
    %cst_26 = arith.constant dense<0.000000e+00> : vector<192x128xf32>
    %31 = tpu.matmul %13, %30, %cst_26 {dimension_numbers = #tpu.dot_dimension_numbers<[1], [0], [0], [1], [0, 0, 1, 1], [], []>} : vector<192x120xbf16>, vector<120x128xbf16>, vector<192x128xf32> -> vector<192x128xf32>
    %c1_27 = arith.constant 1 : index
    %c0_28 = arith.constant 0 : index
    %c0_29 = arith.constant 0 : index
    %32 = vector.load %arg8[%c1_27, %c0_28, %c0_29] : memref<3x120x128xbf16, #tpu.memory_space<vmem>>, vector<1x120x128xbf16>
    %33 = vector.shape_cast %32 : vector<1x120x128xbf16> to vector<120x128xbf16>
    %cst_30 = arith.constant dense<0.000000e+00> : vector<192x128xf32>
    %34 = tpu.matmul %15, %33, %cst_30 {dimension_numbers = #tpu.dot_dimension_numbers<[1], [0], [0], [1], [0, 0, 1, 1], [], []>} : vector<192x120xbf16>, vector<120x128xbf16>, vector<192x128xf32> -> vector<192x128xf32>
    %35 = arith.addf %31, %34 : vector<192x128xf32>
    %c2_31 = arith.constant 2 : index
    %c0_32 = arith.constant 0 : index
    %c0_33 = arith.constant 0 : index
    %36 = vector.load %arg8[%c2_31, %c0_32, %c0_33] : memref<3x120x128xbf16, #tpu.memory_space<vmem>>, vector<1x120x128xbf16>
    %37 = vector.shape_cast %36 : vector<1x120x128xbf16> to vector<120x128xbf16>
    %cst_34 = arith.constant dense<0.000000e+00> : vector<192x128xf32>
    %38 = tpu.matmul %17, %37, %cst_34 {dimension_numbers = #tpu.dot_dimension_numbers<[1], [0], [0], [1], [0, 0, 1, 1], [], []>} : vector<192x120xbf16>, vector<120x128xbf16>, vector<192x128xf32> -> vector<192x128xf32>
    %39 = arith.addf %35, %38 : vector<192x128xf32>
    %40 = arith.maximumf %28, %39 : vector<192x128xf32>
    %c0_35 = arith.constant 0 : index
    %c0_36 = arith.constant 0 : index
    %41 = vector.load %arg9[%c0_35, %c0_36] : memref<1x128xf32, #tpu.memory_space<vmem>>, vector<1x128xf32>
    %42 = vector.broadcast %41 : vector<1x128xf32> to vector<192x128xf32>
    %43 = arith.addf %40, %42 : vector<192x128xf32>
    %cst_37 = arith.constant 0.000000e+00 : f32
    %44 = vector.broadcast %cst_37 : f32 to vector<192x128xf32>
    %45 = arith.maximumf %43, %44 : vector<192x128xf32>
    %46 = vector.broadcast %0 : vector<192x1xf32> to vector<192x128xf32>
    %47 = arith.mulf %45, %46 : vector<192x128xf32>
    %c1_i32 = arith.constant 1 : i32
    %48 = tpu.dynamic_rotate %47 by %c1_i32 dim 0 : vector<192x128xf32>, i32 -> vector<192x128xf32>
    %c191_i32_38 = arith.constant 191 : i32
    %49 = tpu.dynamic_rotate %47 by %c191_i32_38 dim 0 : vector<192x128xf32>, i32 -> vector<192x128xf32>
    %50 = tpu.concatenate %48, %47, %49 in 1 : vector<192x128xf32>, vector<192x128xf32>, vector<192x128xf32> -> vector<192x384xf32>
    %51 = arith.truncf %50 : vector<192x384xf32> to vector<192x384xbf16>
    %c0_39 = arith.constant 0 : index
    %c0_40 = arith.constant 0 : index
    %52 = vector.load %arg10[%c0_39, %c0_40] : memref<384x128xbf16, #tpu.memory_space<vmem>>, vector<384x128xbf16>
    %cst_41 = arith.constant dense<0.000000e+00> : vector<192x128xf32>
    %53 = tpu.matmul %51, %52, %cst_41 {dimension_numbers = #tpu.dot_dimension_numbers<[1], [0], [0], [1], [0, 0, 1, 1], [], []>} : vector<192x384xbf16>, vector<384x128xbf16>, vector<192x128xf32> -> vector<192x128xf32>
    %c0_42 = arith.constant 0 : index
    %c0_43 = arith.constant 0 : index
    %54 = vector.load %arg11[%c0_42, %c0_43] : memref<1x128xf32, #tpu.memory_space<vmem>>, vector<1x128xf32>
    %55 = vector.broadcast %54 : vector<1x128xf32> to vector<192x128xf32>
    %56 = arith.addf %53, %55 : vector<192x128xf32>
    %cst_44 = arith.constant 0.000000e+00 : f32
    %57 = vector.broadcast %cst_44 : f32 to vector<192x128xf32>
    %58 = arith.maximumf %56, %57 : vector<192x128xf32>
    %59 = vector.broadcast %0 : vector<192x1xf32> to vector<192x128xf32>
    %60 = arith.mulf %58, %59 : vector<192x128xf32>
    %c1_i32_45 = arith.constant 1 : i32
    %61 = tpu.dynamic_rotate %60 by %c1_i32_45 dim 0 : vector<192x128xf32>, i32 -> vector<192x128xf32>
    %c191_i32_46 = arith.constant 191 : i32
    %62 = tpu.dynamic_rotate %60 by %c191_i32_46 dim 0 : vector<192x128xf32>, i32 -> vector<192x128xf32>
    %63 = tpu.concatenate %61, %60, %62, %47 in 1 : vector<192x128xf32>, vector<192x128xf32>, vector<192x128xf32>, vector<192x128xf32> -> vector<192x512xf32>
    %64 = arith.truncf %63 : vector<192x512xf32> to vector<192x512xbf16>
    %c0_47 = arith.constant 0 : index
    %c0_48 = arith.constant 0 : index
    %65 = vector.load %arg12[%c0_47, %c0_48] : memref<512x128xbf16, #tpu.memory_space<vmem>>, vector<512x128xbf16>
    %cst_49 = arith.constant dense<0.000000e+00> : vector<192x128xf32>
    %66 = tpu.matmul %64, %65, %cst_49 {dimension_numbers = #tpu.dot_dimension_numbers<[1], [0], [0], [1], [0, 0, 1, 1], [], []>} : vector<192x512xbf16>, vector<512x128xbf16>, vector<192x128xf32> -> vector<192x128xf32>
    %c0_50 = arith.constant 0 : index
    %c0_51 = arith.constant 0 : index
    %67 = vector.load %arg13[%c0_50, %c0_51] : memref<1x128xf32, #tpu.memory_space<vmem>>, vector<1x128xf32>
    %68 = vector.broadcast %67 : vector<1x128xf32> to vector<192x128xf32>
    %69 = arith.addf %66, %68 : vector<192x128xf32>
    %cst_52 = arith.constant 0.000000e+00 : f32
    %70 = vector.broadcast %cst_52 : f32 to vector<192x128xf32>
    %71 = arith.maximumf %69, %70 : vector<192x128xf32>
    %72 = vector.broadcast %0 : vector<192x1xf32> to vector<192x128xf32>
    %73 = arith.mulf %71, %72 : vector<192x128xf32>
    %c1_i32_53 = arith.constant 1 : i32
    %74 = tpu.dynamic_rotate %73 by %c1_i32_53 dim 0 : vector<192x128xf32>, i32 -> vector<192x128xf32>
    %c191_i32_54 = arith.constant 191 : i32
    %75 = tpu.dynamic_rotate %73 by %c191_i32_54 dim 0 : vector<192x128xf32>, i32 -> vector<192x128xf32>
    %76 = tpu.concatenate %74, %73, %75 in 1 : vector<192x128xf32>, vector<192x128xf32>, vector<192x128xf32> -> vector<192x384xf32>
    %77 = arith.truncf %76 : vector<192x384xf32> to vector<192x384xbf16>
    %c0_55 = arith.constant 0 : index
    %c0_56 = arith.constant 0 : index
    %78 = vector.load %arg14[%c0_55, %c0_56] : memref<384x256xbf16, #tpu.memory_space<vmem>>, vector<384x256xbf16>
    %cst_57 = arith.constant dense<0.000000e+00> : vector<192x256xf32>
    %79 = tpu.matmul %77, %78, %cst_57 {dimension_numbers = #tpu.dot_dimension_numbers<[1], [0], [0], [1], [0, 0, 1, 1], [], []>} : vector<192x384xbf16>, vector<384x256xbf16>, vector<192x256xf32> -> vector<192x256xf32>
    %c0_58 = arith.constant 0 : index
    %c0_59 = arith.constant 0 : index
    %80 = vector.load %arg15[%c0_58, %c0_59] : memref<1x256xf32, #tpu.memory_space<vmem>>, vector<1x256xf32>
    %81 = vector.broadcast %80 : vector<1x256xf32> to vector<192x256xf32>
    %82 = arith.addf %79, %81 : vector<192x256xf32>
    %cst_60 = arith.constant 0.000000e+00 : f32
    %83 = vector.broadcast %cst_60 : f32 to vector<192x256xf32>
    %84 = arith.maximumf %82, %83 : vector<192x256xf32>
    %85 = vector.broadcast %0 : vector<192x1xf32> to vector<192x256xf32>
    %86 = arith.mulf %84, %85 : vector<192x256xf32>
    %c1_i32_61 = arith.constant 1 : i32
    %87 = tpu.dynamic_rotate %86 by %c1_i32_61 dim 0 : vector<192x256xf32>, i32 -> vector<192x256xf32>
    %c191_i32_62 = arith.constant 191 : i32
    %88 = tpu.dynamic_rotate %86 by %c191_i32_62 dim 0 : vector<192x256xf32>, i32 -> vector<192x256xf32>
    %89 = tpu.concatenate %87, %86, %88, %73 in 1 : vector<192x256xf32>, vector<192x256xf32>, vector<192x256xf32>, vector<192x128xf32> -> vector<192x896xf32>
    %90 = arith.truncf %89 : vector<192x896xf32> to vector<192x896xbf16>
    %c0_63 = arith.constant 0 : index
    %c0_64 = arith.constant 0 : index
    %91 = vector.load %arg16[%c0_63, %c0_64] : memref<896x256xbf16, #tpu.memory_space<vmem>>, vector<896x256xbf16>
    %cst_65 = arith.constant dense<0.000000e+00> : vector<192x256xf32>
    %92 = tpu.matmul %90, %91, %cst_65 {dimension_numbers = #tpu.dot_dimension_numbers<[1], [0], [0], [1], [0, 0, 1, 1], [], []>} : vector<192x896xbf16>, vector<896x256xbf16>, vector<192x256xf32> -> vector<192x256xf32>
    %c0_66 = arith.constant 0 : index
    %c0_67 = arith.constant 0 : index
    %93 = vector.load %arg17[%c0_66, %c0_67] : memref<1x256xf32, #tpu.memory_space<vmem>>, vector<1x256xf32>
    %94 = vector.broadcast %93 : vector<1x256xf32> to vector<192x256xf32>
    %95 = arith.addf %92, %94 : vector<192x256xf32>
    %cst_68 = arith.constant 0.000000e+00 : f32
    %96 = vector.broadcast %cst_68 : f32 to vector<192x256xf32>
    %97 = arith.maximumf %95, %96 : vector<192x256xf32>
    %98 = vector.broadcast %0 : vector<192x1xf32> to vector<192x256xf32>
    %99 = arith.mulf %97, %98 : vector<192x256xf32>
    %c0_69 = arith.constant 0 : index
    %c0_70 = arith.constant 0 : index
    %100 = vector.load %arg4[%c0_69, %c0_70] : memref<8x192xf32, #tpu.memory_space<vmem>>, vector<8x192xf32>
    %cst_71 = arith.constant dense<0.000000e+00> : vector<8x256xf32>
    %101 = tpu.matmul %100, %99, %cst_71 {dimension_numbers = #tpu.dot_dimension_numbers<[1], [0], [0], [1], [0, 0, 1, 1], [], []>} : vector<8x192xf32>, vector<192x256xf32>, vector<8x256xf32> -> vector<8x256xf32>
    %c0_72 = arith.constant 0 : index
    %c0_73 = arith.constant 0 : index
    %102 = vector.load %arg18[%c0_72, %c0_73] : memref<8x256xf32, #tpu.memory_space<vmem>>, vector<8x256xf32>
    tpu.vector_store %arg18[%c0_72, %c0_73], %101 {strides = array<i32>} : memref<8x256xf32, #tpu.memory_space<vmem>>, vector<8x256xf32>,
    return
  }
  func.func @transform_0(%arg0: i32) -> (i32, i32) {
    %c0_i32 = arith.constant 0 : i32
    %c0_i32_0 = arith.constant 0 : i32
    return %arg0, %c0_i32 : i32, i32
  }
  func.func @transform_1(%arg0: i32) -> (i32, i32) {
    %c0_i32 = arith.constant 0 : i32
    %c0_i32_0 = arith.constant 0 : i32
    return %arg0, %c0_i32 : i32, i32
  }
  func.func @transform_2(%arg0: i32) -> (i32, i32) {
    %c0_i32 = arith.constant 0 : i32
    %c0_i32_0 = arith.constant 0 : i32
    %c0_i32_1 = arith.constant 0 : i32
    return %c0_i32, %c0_i32_0 : i32, i32
  }
  func.func @transform_3(%arg0: i32) -> (i32, i32) {
    %c0_i32 = arith.constant 0 : i32
    %c0_i32_0 = arith.constant 0 : i32
    %c0_i32_1 = arith.constant 0 : i32
    return %c0_i32, %c0_i32_0 : i32, i32
  }
  func.func @transform_4(%arg0: i32) -> (i32, i32) {
    %c0_i32 = arith.constant 0 : i32
    %c0_i32_0 = arith.constant 0 : i32
    %c0_i32_1 = arith.constant 0 : i32
    return %c0_i32, %c0_i32_0 : i32, i32
  }
  func.func @transform_5(%arg0: i32) -> (i32, i32) {
    %c0_i32 = arith.constant 0 : i32
    %c0_i32_0 = arith.constant 0 : i32
    %c0_i32_1 = arith.constant 0 : i32
    return %c0_i32, %c0_i32_0 : i32, i32
  }
  func.func @transform_6(%arg0: i32) -> (i32, i32, i32) {
    %c0_i32 = arith.constant 0 : i32
    %c0_i32_0 = arith.constant 0 : i32
    %c0_i32_1 = arith.constant 0 : i32
    %c0_i32_2 = arith.constant 0 : i32
    return %c0_i32, %c0_i32_0, %c0_i32_1 : i32, i32, i32
  }
  func.func @transform_7(%arg0: i32) -> (i32, i32, i32) {
    %c0_i32 = arith.constant 0 : i32
    %c0_i32_0 = arith.constant 0 : i32
    %c0_i32_1 = arith.constant 0 : i32
    %c0_i32_2 = arith.constant 0 : i32
    return %c0_i32, %c0_i32_0, %c0_i32_1 : i32, i32, i32
  }
  func.func @transform_8(%arg0: i32) -> (i32, i32) {
    %c0_i32 = arith.constant 0 : i32
    %c0_i32_0 = arith.constant 0 : i32
    %c0_i32_1 = arith.constant 0 : i32
    return %c0_i32, %c0_i32_0 : i32, i32
  }
  func.func @transform_9(%arg0: i32) -> (i32, i32) {
    %c0_i32 = arith.constant 0 : i32
    %c0_i32_0 = arith.constant 0 : i32
    %c0_i32_1 = arith.constant 0 : i32
    return %c0_i32, %c0_i32_0 : i32, i32
  }
  func.func @transform_10(%arg0: i32) -> (i32, i32) {
    %c0_i32 = arith.constant 0 : i32
    %c0_i32_0 = arith.constant 0 : i32
    %c0_i32_1 = arith.constant 0 : i32
    return %c0_i32, %c0_i32_0 : i32, i32
  }
  func.func @transform_11(%arg0: i32) -> (i32, i32) {
    %c0_i32 = arith.constant 0 : i32
    %c0_i32_0 = arith.constant 0 : i32
    %c0_i32_1 = arith.constant 0 : i32
    return %c0_i32, %c0_i32_0 : i32, i32
  }
  func.func @transform_12(%arg0: i32) -> (i32, i32) {
    %c0_i32 = arith.constant 0 : i32
    %c0_i32_0 = arith.constant 0 : i32
    %c0_i32_1 = arith.constant 0 : i32
    return %c0_i32, %c0_i32_0 : i32, i32
  }
  func.func @transform_13(%arg0: i32) -> (i32, i32) {
    %c0_i32 = arith.constant 0 : i32
    %c0_i32_0 = arith.constant 0 : i32
    %c0_i32_1 = arith.constant 0 : i32
    return %c0_i32, %c0_i32_0 : i32, i32
  }
  func.func @transform_14(%arg0: i32) -> (i32, i32) {
    %c0_i32 = arith.constant 0 : i32
    %c0_i32_0 = arith.constant 0 : i32
    %c0_i32_1 = arith.constant 0 : i32
    return %c0_i32, %c0_i32_0 : i32, i32
  }
  func.func @transform_15(%arg0: i32) -> (i32, i32) {
    %c0_i32 = arith.constant 0 : i32
    %c0_i32_0 = arith.constant 0 : i32
    %c0_i32_1 = arith.constant 0 : i32
    return %c0_i32, %c0_i32_0 : i32, i32
  }
  func.func @transform_16(%arg0: i32) -> (i32, i32) {
    %c0_i32 = arith.constant 0 : i32
    %c0_i32_0 = arith.constant 0 : i32
    %c0_i32_1 = arith.constant 0 : i32
    return %c0_i32, %c0_i32_0 : i32, i32
  }
  func.func @transform_17(%arg0: i32) -> (i32, i32) {
    %c0_i32 = arith.constant 0 : i32
    %c0_i32_0 = arith.constant 0 : i32
    return %arg0, %c0_i32 : i32, i32
  }
}

</mosaic_0001>

<bundles_post_ra>
// kernel: feature_extractor_forward.1
= control target key start
LH: loop header
LB: loop body
LE: loop exit
PB: predicated region body
PF: predicated region fallthrough
CT: control target
= control target key end

     0   :  { %s13656_s0 = inlined_call_operand.vmem [shape: bf16[384,80], index: 0, kind: input, shape index: {}]   ;;  %s13657_s1 = inlined_call_operand.vmem [shape: bf16[384,80], index: 1, kind: input, shape index: {}]   ;;  %s13658_s2 = inlined_call_operand.vmem [shape: f32[192,1], index: 2, kind: input, shape index: {}]   ;;  %s13659_s3 = inlined_call_operand.vmem [shape: f32[8,192], index: 3, kind: input, shape index: {}]   ;;  %s13660_s4 = inlined_call_operand.vmem [shape: bf16[80,120], index: 4, kind: input, shape index: {}]   ;;  %s13661_s5 = inlined_call_operand.vmem [shape: f32[1,120], index: 5, kind: input, shape index: {}]   ;;  %s13662_s6 = inlined_call_operand.vmem [shape: bf16[3,120,128], index: 6, kind: input, shape index: {}]   ;;  %s13663_s7 = inlined_call_operand.vmem [shape: bf16[3,120,128], index: 7, kind: input, shape index: {}]   ;;  %s13664_s8 = inlined_call_operand.vmem [shape: f32[1,128], index: 8, kind: input, shape index: {}]   ;;  %s13665_s9 = inlined_call_operand.vmem [shape: bf16[384,128], index: 9, kind: input, shape index: {}]   ;;  %s13666_s10 = inlined_call_operand.vmem [shape: f32[1,128], index: 10, kind: input, shape index: {}]   ;;  %s13667_s11 = inlined_call_operand.vmem [shape: bf16[512,128], index: 11, kind: input, shape index: {}]   ;;  %s13668_s12 = inlined_call_operand.vmem [shape: f32[1,128], index: 12, kind: input, shape index: {}]   ;;  %s13669_s13 = inlined_call_operand.vmem [shape: bf16[384,256], index: 13, kind: input, shape index: {}]   ;;  %s13670_s14 = inlined_call_operand.vmem [shape: f32[1,256], index: 14, kind: input, shape index: {}]   ;;  %s13671_s15 = inlined_call_operand.vmem [shape: bf16[896,256], index: 15, kind: input, shape index: {}]   ;;  %s13672_s16 = inlined_call_operand.vmem [shape: f32[1,256], index: 16, kind: input, shape index: {}]   ;;  %s13673_s17 = inlined_call_operand.hbm [shape: f32[16,256], index: 17, kind: output, shape index: {}]  }
   0x1   :  { %13825 = sst [smem:[#allocation122_spill]] %s13656_s0 }
   0x2   :  { %13826 = sst [smem:[#allocation123_spill]] %s13657_s1 }
   0x3   :  { %13827 = sst [smem:[#allocation124_spill]] %s13658_s2 }
   0x4   :  { %13828 = sst [smem:[#allocation125_spill]] %s13659_s3 }
   0x5   :  { %22 = vsyncpa [#allocation3], 0 }
   0x6   :  { %24 = vsyncpa [#allocation3 + $0x1], 0  ;;  %s8719_s24 = smov 0   ;;  %s8721_s25 = smov 0  }
   0x7   :  { %s8723_s26 = smov 0   ;;  %s8725_s27 = smov 0  }
   0x8 LB: > { %13829 = sst [smem:[#allocation5_spill]] %s8621_s26  ;;  %s8740_s28 = sadd.s32 4294967295, %s8625_s27   ;;  %s8625_s27 = sphi %s8725_s27, %s14451_s27   ;;  %s8621_s26 = sphi %s8723_s26, %s14453_s26   ;;  %s8617_s25 = sphi %s8721_s25, %s14455_s25   ;;  %s8613_s24 = sphi %s8719_s24, %s14454_s24  }
   0x9   : > { %s6881_s29 = sadd.s32 4294967294, %s8625_s27   ;;  %s8744_s0 = sadd.s32 1, %s8625_s27  }
   0xa   : > { %13830 = sst [smem:[#allocation6_spill]] %s8744_s0  ;;  %s404_s30 = sadd.s32 1, %s8621_s26 }
   0xb   : > { %s401_s18 = ssub.s32 %s8625_s27, %s8744_s0  ;;  %p414_p0 = scmp.ne.s32.totalorder %s8621_s26, %s8617_s25 }
   0xc   : > { %p402_p1 = scmp.eq.s32.totalorder %s401_s18, 0  ;;  %p415_p2 = scmp.eq.s32.totalorder %s8740_s28, 1 }
   0xd   : > { %p420_p3 = scmp.ne.s32.totalorder %s8617_s25, %s8613_s24  ;;  %p421_p4 = scmp.eq.s32.totalorder %s6881_s29, 1 }
   0xe   : > { %s8755_s19 = scalar_select %p402_p1, %s8621_s26, %s404_s30  }
   0xf   : > { %p8757_p5 = por %p415_p2, %p414_p0  ;;  %p8761_p6 = por %p421_p4, %p420_p3 }
  0x10   : > { %13831 = sst [smem:[#allocation7_spill]] %s8755_s19  ;;  %p6884_p7 = scmp.ge.s32.totalorder %s8625_s27, 1 }
  0x11   : > { %s13833_s20 = scalar_select %p8761_p6, 1, 0 }
  0x12   : > { %p502_p8 = scmp.lt.s32.totalorder %s8625_s27, 3 }
  0x13   : > { %13834 = sst [smem:[#allocation8_spill]] %s13833_s20 }
  0x14   : > { %p503_p9 = pnand %p6884_p7, %p502_p8 }
  0x16   : > { %506 = sbr.rel (%p503_p9) target bundleno = 2165 (0x875), region = 88 }
  0x1b   : > { %v8192_v0 = vld [vmem:[%s13660_s4 + $0x20] sm:$0xff]   ;;  %s559_s23 = smul.u32 24, %s8740_s28  ;;  %v8193_v1 = vld [vmem:[%s13660_s4 + $0x18] sm:$0xff]   ;;  %vm720_vm0 = vcmask 654336   ;;  %v8194_v2 = vld [vmem:[%s13660_s4 + $0x10] sm:$0xff]   ;;  %s13835_s0 = sld [smem:[#allocation122_spill]] }
  0x1c   : > { %8134 = vmatprep.subr.bf16.mxu1 %v8192_v0  ;;  %7786 = vmatprep.subr.bf16.mxu0 %v8192_v0  ;;  %v8195_v3 = vld [vmem:[%s13660_s4 + $0x8] sm:$0xff]   ;;  %v8196_v5 = vld [vmem:[%s13660_s4] sm:$0xff]   ;;  %s13836_s21 = sld [smem:[#allocation123_spill]]  ;;  %v8221_v29 = vld [vmem:[%s13662_s6 + $0x38] ss:$0 sps:$4 sm:$0xff]   ;;  %vm1463_vm1 = vcmask 1043456  }
  0x1d   : > { %p560_p10 = scmp.lt.s32.totalorder %s559_s23, 47  ;;  %8139 = vmatpush3.bf16.msra.mxu1 %v8192_v0  ;;  %7787 = vmatpush3.bf16.msra.mxu0 %v8192_v0  ;;  %v1678_v30 = vsel %vm1463_vm1, %v8221_v29, 0  ;;  %v8222_v31 = vld [vmem:[%s13662_s6 + $0x30] sm:$0xff]   ;;  %v8224_v34 = vld [vmem:[%s13662_s6 + $0x28] sm:$0xff]   ;;  %v8226_v36 = vld [vmem:[%s13662_s6 + $0x20] sm:$0xff]   ;;  %vm1426_vm3 = vcmask 982016  }
  0x1e   : > { %8135 = vmatprep.subr.bf16.mxu1 %v8193_v1  ;;  %7788 = vmatprep.subr.bf16.mxu0 %v8193_v1  ;;  %v8223_v32 = vld [vmem:[%s13662_s6 + $0x74] ss:$0 sps:$4 sm:$0xff]   ;;  %v8225_v35 = vld [vmem:[%s13662_s6 + $0x6c] sm:$0xff]   ;;  %v8227_v37 = vld [vmem:[%s13662_s6 + $0x64] sm:$0xff]   ;;  %s13838_s2 = sld [smem:[#allocation124_spill]]  ;;  %vm6718_vm6 = vcmask 523264  }
  0x1f   : > { %s14457_s23 = smov (!%p560_p10, %s559_s23), 47  ;;  %v1465_v33 = vsel %vm1463_vm1, %v8223_v32, 0  ;;  %v8228_v38 = vld [vmem:[%s13662_s6 + $0x18] sm:$0xff]   ;;  %v8230_v40 = vld [vmem:[%s13662_s6 + $0x10] sm:$0xff]   ;;  %v8232_v42 = vld [vmem:[%s13662_s6 + $0x8] sm:$0xff]   ;;  %s14307_s3 = sld [smem:[#allocation125_spill]] }
  0x20   : > { %s6886_s26 = sshll.u32 %s14457_s23, 2  ;;  %v8229_v39 = vld [vmem:[%s13662_s6 + $0x5c] sm:$0xff]   ;;  %v8231_v41 = vld [vmem:[%s13662_s6 + $0x54] sm:$0xff]   ;;  %v8233_v43 = vld [vmem:[%s13662_s6 + $0x4c] sm:$0xff]   ;;  %s556_s29 = sand.u32 1, %s8617_s25  }
  0x21   : > { %8140 = vmatpush3.bf16.msra.mxu1 %v8193_v1  ;;  %7789 = vmatpush3.bf16.msra.mxu0 %v8193_v1  ;;  %s8783_s20 = scalar_lea.vmem %s13835_s0, %s6886_s26  ;;  %v8234_v44 = vld [vmem:[%s13662_s6] sm:$0xff]   ;;  %v8237_v47 = vld [vmem:[%s13663_s7 + $0x74] ss:$0 sps:$4 sm:$0xff]   ;;  %v8900_v48 = vld [vmem:[%s13662_s6 + $0xb0] ss:$0 sps:$4 sm:$0xff]   ;;  %s6885_s30 = sshll.u32 %s556_s29, 4 }
  0x22   : > { %8136 = vmatprep.subr.bf16.mxu1 %v8194_v2  ;;  %v8197_v4 = vld [vmem:[%s8783_s20 + $0x40] sm:$0xff]   ;;  %7790 = vmatprep.subr.bf16.mxu0 %v8194_v2  ;;  %s8794_s22 = scalar_lea.vmem %s13836_s21, %s6886_s26  ;;  %v8198_v7 = vld [vmem:[%s8783_s20 + $0x48] sm:$0xff]   ;;  %v8199_v9 = vld [vmem:[%s8783_s20 + $0x50] sm:$0xff]   ;;  %s558_s19 = scalar_lea.vmem [#allocation2], %s6885_s30 }
  0x23   : > { %7812 = vmatprep.mubr.msk.bf16.mxu1 %vm720_vm0, %v8197_v4  ;;  %v8201_v6 = vld [vmem:[%s8783_s20] sm:$0xff]   ;;  %v8202_v8 = vld [vmem:[%s8783_s20 + $0x8] sm:$0xff]   ;;  %v8205_v10 = vld [vmem:[%s8783_s20 + $0x10] sm:$0xff]   ;;  %s6810_s23 = sshll.u32 %s558_s19, 4  ;;  %s7347_s0 = sshll.u32 %s8740_s28, 8  ;;  %s13618_s23 = int_to_ptr.vmem [resolvable:$true] %s6810_s23 }
  0x24   : > { %7796 = vmatprep.mubr.msk.bf16.mxu0 %vm720_vm0, %v8201_v6  ;;  %v8200_v11 = vld [vmem:[%s8783_s20 + $0x58] sm:$0xff]   ;;  %v8203_v13 = vld [vmem:[%s8794_s22] sm:$0xff]   ;;  %v8210_v15 = vld [vmem:[%s8783_s20 + $0x28] sm:$0xff]   ;;  %s6796_s26 = scalar_lea.sflag [#allocation3], %s556_s29  ;;  %s8628_s28 = smov [#allocation2]  }
  0x25   : > { %8141 = vmatpush3.bf16.msra.mxu1 %v8194_v2  ;;  %7791 = vmatpush3.bf16.msra.mxu0 %v8194_v2  ;;  %v8206_v12 = vld [vmem:[%s8783_s20 + $0x18] sm:$0xff]   ;;  %v8209_v14 = vld [vmem:[%s8783_s20 + $0x20] sm:$0xff]   ;;  %v8213_v16 = vld [vmem:[%s8783_s20 + $0x30] sm:$0xff]   ;;  %s8569_s30 = sshll.u32 %s8628_s28, 4  ;;  %s8570_s30 = int_to_ptr.vmem [resolvable:$false] %s8569_s30 }
  0x26   : > { %8137 = vmatprep.subr.bf16.mxu1 %v8195_v3  ;;  %7792 = vmatprep.subr.bf16.mxu0 %v8195_v3  ;;  %v8204_v17 = vld [vmem:[%s8794_s22 + $0x8] sm:$0xff]   ;;  %v8207_v18 = vld [vmem:[%s8794_s22 + $0x10] sm:$0xff]   ;;  %v8214_v19 = vld [vmem:[%s8783_s20 + $0x38] sm:$0xff]   ;;  %s8565_s20 = scalar_lea.vmem %s13618_s23, 256  ;;  %p8572_p0 = scmp.lt.s32.totalorder %s13618_s23, %s8570_s30 }
  0x27   : > { %v8208_v20 = vld [vmem:[%s8794_s22 + $0x18] sm:$0xff]   ;;  %v8211_v21 = vld [vmem:[%s8794_s22 + $0x20] sm:$0xff]   ;;  %v8212_v22 = vld [vmem:[%s8794_s22 + $0x28] sm:$0xff]   ;;  %p8566_p11 = scmp.ne.s32.totalorder %s13618_s23, %s8565_s20 }
  0x28   : > { %v8215_v23 = vld [vmem:[%s8794_s22 + $0x30] sm:$0xff]   ;;  %v8216_v24 = vld [vmem:[%s8794_s22 + $0x38] sm:$0xff]   ;;  %v8217_v25 = vld [vmem:[%s8794_s22 + $0x40] sm:$0xff]  }
  0x29   : > { %8142 = vmatpush3.bf16.msra.mxu1 %v8195_v3  ;;  %7793 = vmatpush3.bf16.msra.mxu0 %v8195_v3  ;;  %v8218_v26 = vld [vmem:[%s8794_s22 + $0x48] sm:$0xff]   ;;  %v8219_v27 = vld [vmem:[%s8794_s22 + $0x50] sm:$0xff]   ;;  %v8220_v28 = vld [vmem:[%s8794_s22 + $0x58] sm:$0xff]   ;;  %s6808_s22 = scalar_lea.hbm %s13673_s17, %s7347_s0  ;;  %p8567_p12 = pnand %p8566_p11, %p8757_p5 }
  0x2a   : > { %8138 = vmatprep.subr.bf16.mxu1 %v8196_v5  ;;  %7794 = vmatprep.subr.bf16.mxu0 %v8196_v5  ;;  %v8235_v45 = vld [vmem:[%s13662_s6 + $0x44] sm:$0xff]   ;;  %v8236_v46 = vld [vmem:[%s13662_s6 + $0x3c] sm:$0xff]  }
  0x2b   : > { %p8568_p13 = pneg %p8567_p12 }
  0x2d   : > { %8143 = vmatpush3.bf16.msra.mxu1 %v8196_v5  ;;  %7795 = vmatpush3.bf16.msra.mxu0 %v8196_v5 }
  0x2e   : > { %7820 = vmatprep.subr.bf16.mxu1 %v8192_v0  ;;  %8144 = vmatprep.subr.msk.bf16.mxu0 %vm1463_vm1, %v8223_v32 }
  0x30   : > { %7813 = vmatmul.mubr.msk.bf16.vlgmr.msra.gmra.mxu1 %vm720_vm0, %v8198_v7  ;;  %7797 = vmatmul.mubr.msk.bf16.vlgmr.msra.gmra.mxu0 %vm720_vm0, %v8202_v8  ;;  %v1250_v8 = vlaneseq }
  0x31   : > { %7821 = vmatpush3.bf16.msra.mxu1 %v8192_v0  ;;  %7816 = vmatprep.mubr.msk.bf16.mxu1 %vm720_vm0, %v8199_v9 }
  0x32   : > { %7822 = vmatprep.subr.bf16.mxu1 %v8193_v1  ;;  %7800 = vmatprep.mubr.msk.bf16.mxu0 %vm720_vm0, %v8205_v10 }
  0x33   : > { %7855 = vmatpush3.bf16.msra.mxu0 %v1465_v33 }
  0x34   : > { %7856 = vmatprep.subr.bf16.mxu0 %v8225_v35 }
  0x35   : > { %7823 = vmatpush3.bf16.msra.mxu1 %v8193_v1 }
  0x36   : > { %7824 = vmatprep.subr.bf16.mxu1 %v8194_v2 }
  0x37   : > { %7857 = vmatpush3.bf16.msra.mxu0 %v8225_v35 }
  0x38   : > { %7817 = vmatmul.mubr.msk.bf16.gmra.mxu1 %vm720_vm0, %v8200_v11  ;;  %7801 = vmatmul.mubr.msk.bf16.gmra.mxu0 %vm720_vm0, %v8206_v12 }
  0x39   : > { %7825 = vmatpush3.bf16.msra.mxu1 %v8194_v2  ;;  %7830 = vmatprep.mubr.msk.bf16.mxu1 %vm720_vm0, %v8203_v13 }
  0x3a   : > { %7826 = vmatprep.subr.bf16.mxu1 %v8195_v3  ;;  %7804 = vmatprep.mubr.msk.bf16.mxu0 %vm720_vm0, %v8209_v14 }
  0x3b   : > { %7858 = vmatprep.subr.bf16.mxu0 %v8227_v37 }
  0x3c   : > { %7859 = vmatpush3.bf16.msra.mxu0 %v8227_v37 }
  0x3d   : > { %7827 = vmatpush3.bf16.msra.mxu1 %v8195_v3  ;;  %7860 = vmatprep.subr.bf16.mxu0 %v8229_v39  ;;  %v8923_v3 = vld [vmem:[%s13661_s5] ss:$0 sm:$0xff] }
  0x3e   : > { %7828 = vmatprep.subr.bf16.mxu1 %v8196_v5 }
  0x40   : > { %7805 = vmatmul.mubr.msk.bf16.gmra.mxu0 %vm720_vm0, %v8210_v15  ;;  %v8930_v15 = vshrl.u32 %v1250_v8, 7 }
  0x41   : > { %7829 = vmatpush3.bf16.msra.mxu1 %v8196_v5  ;;  %7808 = vmatprep.mubr.msk.bf16.mxu0 %vm720_vm0, %v8213_v16 }
  0x42   : > { %8145 = vmatprep.subr.msk.bf16.mxu1 %vm1463_vm1, %v8221_v29  ;;  %7861 = vmatpush3.bf16.msra.mxu0 %v8229_v39  ;;  %13837 = vst [vmem:[#allocation9_spill] sm:$0xff] %v8930_v15  ;;  %vm1252_vm2 = vcmp.lt.s32.totalorder %v8930_v15, 7  ;;  %vm1313_vm4 = vcmp.lt.s32.totalorder %v8930_v15, 6 }
  0x43   : > { %7862 = vmatprep.subr.bf16.mxu0 %v8231_v41 }
  0x44   : > { %7831 = vmatmul.mubr.msk.bf16.vlgmr.msra.gmra.mxu1 %vm720_vm0, %v8204_v17 }
  0x45   : > { %7834 = vmatprep.mubr.msk.bf16.mxu1 %vm720_vm0, %v8207_v18  ;;  %7895 = vmatpush3.bf16.msra.mxu1 %v1678_v30 }
  0x46   : > { %7896 = vmatprep.subr.bf16.mxu1 %v8222_v31  ;;  %7863 = vmatpush3.bf16.msra.mxu0 %v8231_v41  ;;  %v8238_v41 = vld [vmem:[%s13663_s7 + $0x6c] sm:$0xff]  }
  0x47   : > { %7864 = vmatprep.subr.bf16.mxu0 %v8233_v43 }
  0x48   : > { %7809 = vmatmul.mubr.msk.bf16.gmra.mxu0 %vm720_vm0, %v8214_v19 }
  0x49   : > { %7897 = vmatpush3.bf16.msra.mxu1 %v8222_v31 }
  0x4a   : > { %7898 = vmatprep.subr.bf16.mxu1 %v8224_v34  ;;  %7865 = vmatpush3.bf16.msra.mxu0 %v8233_v43 }
  0x4b   : > { %7866 = vmatprep.subr.bf16.mxu0 %v8235_v45 }
  0x4c   : > { %7835 = vmatmul.mubr.msk.bf16.gmra.mxu1 %vm720_vm0, %v8208_v20 }
  0x4d   : > { %7838 = vmatprep.mubr.msk.bf16.mxu1 %vm720_vm0, %v8211_v21  ;;  %7899 = vmatpush3.bf16.msra.mxu1 %v8224_v34 }
  0x4e   : > { %7900 = vmatprep.subr.bf16.mxu1 %v8226_v36  ;;  %7867 = vmatpush3.bf16.msra.mxu0 %v8235_v45 }
  0x4f   : > { %7868 = vmatprep.subr.bf16.mxu0 %v8236_v46 }
  0x51   : > { %7901 = vmatpush3.bf16.msra.mxu1 %v8226_v36 }
  0x52   : > { %7902 = vmatprep.subr.bf16.mxu1 %v8228_v38  ;;  %7869 = vmatpush3.bf16.msra.mxu0 %v8236_v46 }
  0x53   : > { %8146 = vmatprep.subr.msk.bf16.mxu0 %vm1463_vm1, %v8900_v48 }
  0x54   : > { %7839 = vmatmul.mubr.msk.bf16.gmra.mxu1 %vm720_vm0, %v8212_v22 }
  0x55   : > { %7842 = vmatprep.mubr.msk.bf16.mxu1 %vm720_vm0, %v8215_v23  ;;  %7903 = vmatpush3.bf16.msra.mxu1 %v8228_v38 }
  0x56   : > { %7904 = vmatprep.subr.bf16.mxu1 %v8230_v40 }
  0x59   : > { %7905 = vmatpush3.bf16.msra.mxu1 %v8230_v40  ;;  %v2139_v40 = vsel %vm1463_vm1, %v8237_v47, 0 }
  0x5a   : > { %7906 = vmatprep.subr.bf16.mxu1 %v8232_v42 }
  0x5c   : > { %7843 = vmatmul.mubr.msk.bf16.gmra.mxu1 %vm720_vm0, %v8216_v24 }
  0x5d   : > { %7846 = vmatprep.mubr.msk.bf16.mxu1 %vm720_vm0, %v8217_v25  ;;  %7907 = vmatpush3.bf16.msra.mxu1 %v8232_v42 }
  0x5e   : > { %7908 = vmatprep.subr.bf16.mxu1 %v8234_v44 }
  0x61   : > { %7909 = vmatpush3.bf16.msra.mxu1 %v8234_v44 }
  0x62   : > { %8147 = vmatprep.subr.msk.bf16.mxu1 %vm1463_vm1, %v8237_v47 }
  0x64   : > { %7847 = vmatmul.mubr.msk.bf16.gmra.mxu1 %vm720_vm0, %v8218_v26 }
  0x65   : > { %7850 = vmatprep.mubr.msk.bf16.mxu1 %vm720_vm0, %v8219_v27 }
  0x6c   : > { %7851 = vmatmul.mubr.msk.bf16.gmra.mxu1 %vm720_vm0, %v8220_v28 }
  0xf0   : > { %v8904_v49 = vpop.f32.mrf.mxu1  ;;  %v7798_v50 = vpop.f32.mrf.mxu0 }
  0xf2   : > { %v8906_v51 = vpop.f32.mrf.mxu1  ;;  %v791_v52 = vpop.f32.mrf.mxu0 }
  0xf4   : > { %v8908_v53 = vpop.f32.mrf.mxu1  ;;  %v7799_v54 = vpop.f32.mrf.mxu0 }
  0xf6   : > { %v8910_v55 = vpop.f32.mrf.mxu1  ;;  %v794_v56 = vpop.f32.mrf.mxu0 }
  0xf8   : > { %v8912_v57 = vpop.f32.mrf.mxu1  ;;  %v7802_v58 = vpop.f32.mrf.mxu0 }
  0xfa   : > { %v8914_v59 = vpop.f32.mrf.mxu1  ;;  %v807_v60 = vpop.f32.mrf.mxu0 }
  0xfc   : > { %v8916_v61 = vpop.f32.mrf.mxu1  ;;  %v7803_v62 = vpop.f32.mrf.mxu0 }
  0xfe   : > { %v8918_v63 = vpop.f32.mrf.mxu1  ;;  %v810_v0 = vpop.f32.mrf.mxu0 }
 0x100   : > { %v8925_v5 = vpop.f32.mrf.mxu0 }
 0x102   : > { %v823_v13 = vpop.f32.mrf.mxu0 }
 0x104   : > { %v7832_v1 = vpop.f32.mrf.mxu1  ;;  %v8937_v23 = vpop.f32.mrf.mxu0 }
 0x105   : > { %v1137_v2 = vmax.f32 %v7798_v50, %v7832_v1 }
 0x106   : > { %v1040_v4 = vpop.f32.mrf.mxu1  ;;  %v826_v36 = vpop.f32.mrf.mxu0 }
 0x107   : > { %v1135_v6 = vmax.f32 %v791_v52, %v1040_v4  ;;  %v1168_v9 = vadd.f32 %v8923_v3, %v1137_v2 }
 0x108   : > { %v7833_v7 = vpop.f32.mrf.mxu1 }
 0x109   : > { %v1138_v10 = vmax.f32 %v7799_v54, %v7833_v7  ;;  %v1166_v11 = vadd.f32 %v8923_v3, %v1135_v6  ;;  %v8932_v18 = vmax.f32 %v1168_v9, 0.0  ;;  %v1907_v9 = vsel %vm1463_vm1, %v8900_v48, 0  ;;  %v8241_v48 = vld [vmem:[%s13662_s6 + $0xa8] sm:$0xff]  }
 0x10a   : > { %v1043_v12 = vpop.f32.mrf.mxu1 }
 0x10b   : > { %v1169_v14 = vadd.f32 %v8923_v3, %v1138_v10  ;;  %v1136_v16 = vmax.f32 %v794_v56, %v1043_v12  ;;  %v8934_v20 = vmax.f32 %v1166_v11, 0.0  ;;  %v1228_v28 = vrot.slane %v8932_v18, 1  ;;  %v8240_v10 = vld [vmem:[%s13663_s7 + $0x64] sm:$0xff]  }
 0x10c   : > { %v7836_v17 = vpop.f32.mrf.mxu1 }
 0x10d   : > { %v1141_v19 = vmax.f32 %v7802_v58, %v7836_v17  ;;  %v1167_v21 = vadd.f32 %v8923_v3, %v1136_v16  ;;  %v8939_v24 = vmax.f32 %v1169_v14, 0.0  ;;  %v1226_v31 = vrot.slane %v8934_v20, 1  ;;  %v7810_v58 = vpop.f32.mrf.mxu0 }
 0x10e   : > { %v1056_v22 = vpop.f32.mrf.mxu1 }
 0x10f   : > { %v8942_v25 = vmax.f32 %v1167_v21, 0.0  ;;  %v1139_v26 = vmax.f32 %v807_v60, %v1056_v22  ;;  %v1172_v29 = vadd.f32 %v8923_v3, %v1141_v19  ;;  %v8955_v37 = vpack.c.bf16 %v8939_v24, %v8932_v18  ;;  %v839_v14 = vpop.f32.mrf.mxu0 }
 0x110   : > { %v7837_v27 = vpop.f32.mrf.mxu1  ;;  %v1229_v42 = vrot.slane %v8939_v24, 1 }
 0x111   : > { %v1142_v30 = vmax.f32 %v7803_v62, %v7837_v27  ;;  %v1227_v32 = vrot.slane %v8942_v25, 1  ;;  %v1170_v33 = vadd.f32 %v8923_v3, %v1139_v26  ;;  %v8951_v35 = vpack.c.bf16 %v8942_v25, %v8934_v20  ;;  %v8242_v26 = vld [vmem:[%s13663_s7 + $0x5c] sm:$0xff]  }
 0x112   : > { %v1059_v34 = vpop.f32.mrf.mxu1  ;;  %v8973_v47 = vmax.f32 %v1172_v29, 0.0  ;;  %v1273_v1 = vsel %vm1252_vm2, %v1228_v28, %v1229_v42 }
 0x113   : > { %v1173_v38 = vadd.f32 %v8923_v3, %v1142_v30  ;;  %v1140_v39 = vmax.f32 %v810_v0, %v1059_v34  ;;  %v8963_v43 = vmax.f32 %v1170_v33, 0.0  ;;  %7910 = vmatprep.mubr.msk.bf16.mxu1 %vm1426_vm3, %v8951_v35  ;;  %v1274_v45 = vsel %vm1252_vm2, %v1227_v32, %v1228_v28 }
 0x114   : > { %v7840_v44 = vpop.f32.mrf.mxu1  ;;  %v1275_v46 = vsel %vm1252_vm2, %v1226_v31, %v1227_v32  ;;  %7911 = vmatmul.mubr.msk.bf16.vlgmr.msra.gmra.mxu1 %vm1426_vm3, %v8955_v37 }
 0x115   : > { %v1171_v50 = vadd.f32 %v8923_v3, %v1140_v39  ;;  %v8978_v52 = vpack.c.bf16 %v1274_v45, %v1275_v46  ;;  %v1230_v54 = vrot.slane %v8963_v43, 1  ;;  %v1145_v56 = vmax.f32 %v8925_v5, %v7840_v44  ;;  %7975 = vmatpush3.bf16.msra.mxu1 %v2139_v40  ;;  %v7811_v40 = vpop.f32.mrf.mxu0  ;;  %v8244_v46 = vld [vmem:[%s13663_s7 + $0x54] sm:$0xff]  }
 0x116   : > { %v1072_v60 = vpop.f32.mrf.mxu1  ;;  %v8982_v62 = vmax.f32 %v1173_v38, 0.0  ;;  %7976 = vmatprep.subr.bf16.mxu1 %v8238_v41  ;;  %v1232_v5 = vrot.slane %v8973_v47, 1 }
 0x117   : > { %v8984_v0 = vmax.f32 %v1171_v50, 0.0  ;;  %7870 = vmatprep.mubr.msk.bf16.mxu0 %vm1426_vm3, %v8978_v52  ;;  %v1272_v2 = vsel %vm1252_vm2, %v1229_v42, %v1230_v54  ;;  %v1143_v4 = vmax.f32 %v823_v13, %v1072_v60  ;;  %v1176_v11 = vadd.f32 %v8923_v3, %v1145_v56 }
 0x118   : > { %v7841_v6 = vpop.f32.mrf.mxu1  ;;  %v8993_v7 = vpack.c.bf16 %v1272_v2, %v1273_v1  ;;  %v9015_v21 = vpack.c.bf16 %v8982_v62, %v8973_v47  ;;  %v1233_v30 = vrot.slane %v8982_v62, 1 }
 0x119   : > { %v1231_v8 = vrot.slane %v8984_v0, 1  ;;  %v1174_v12 = vadd.f32 %v8923_v3, %v1143_v4  ;;  %v1146_v13 = vmax.f32 %v8937_v23, %v7841_v6  ;;  %v9006_v17 = vpack.c.bf16 %v8984_v0, %v8963_v43  ;;  %7977 = vmatpush3.bf16.msra.mxu1 %v8238_v41  ;;  %v842_v4 = vpop.f32.mrf.mxu0 }
 0x11a   : > { %v1075_v16 = vpop.f32.mrf.mxu1  ;;  %7871 = vmatmul.mubr.msk.bf16.vlgmr.msra.gmra.mxu0 %vm1426_vm3, %v8993_v7  ;;  %7978 = vmatprep.subr.bf16.mxu1 %v8240_v10  ;;  %v9038_v38 = vmax.f32 %v1176_v11, 0.0  ;;  %v1269_v1 = vsel %vm1252_vm2, %v1232_v5, %v1233_v30  ;;  %v8245_v11 = vld [vmem:[%s13662_s6 + $0x98] sm:$0xff]  }
 0x11b   : > { %v1144_v19 = vmax.f32 %v826_v36, %v1075_v16  ;;  %v1270_v22 = vsel %vm1252_vm2, %v1231_v8, %v1232_v5  ;;  %v1271_v23 = vsel %vm1252_vm2, %v1230_v54, %v1231_v8  ;;  %v9024_v27 = vmax.f32 %v1174_v12, 0.0  ;;  %7914 = vmatprep.mubr.msk.bf16.mxu1 %vm1426_vm3, %v9006_v17  ;;  %7935 = vmatpush3.bf16.msra.mxu0 %v1907_v9  ;;  %v8243_v36 = vld [vmem:[%s13662_s6 + $0xa0] sm:$0xff]   ;;  %v8246_v16 = vld [vmem:[%s13663_s7 + $0x4c] sm:$0xff]  }
 0x11c   : > { %v1177_v28 = vadd.f32 %v8923_v3, %v1146_v13  ;;  %v7844_v29 = vpop.f32.mrf.mxu1  ;;  %7915 = vmatmul.mubr.msk.bf16.gmra.mxu1 %vm1426_vm3, %v9015_v21  ;;  %v9033_v34 = vpack.c.bf16 %v1270_v22, %v1271_v23  ;;  %7936 = vmatprep.subr.bf16.mxu0 %v8241_v48  ;;  %v1236_v2 = vrot.slane %v9038_v38, 1 }
 0x11d   : > { %v1175_v32 = vadd.f32 %v8923_v3, %v1144_v19  ;;  %v1149_v33 = vmax.f32 %v7810_v58, %v7844_v29  ;;  %v1234_v39 = vrot.slane %v9024_v27, 1  ;;  %7979 = vmatpush3.bf16.msra.mxu1 %v8240_v10 }
 0x11e   : > { %v1088_v41 = vpop.f32.mrf.mxu1  ;;  %v9041_v42 = vmax.f32 %v1177_v28, 0.0  ;;  %7874 = vmatprep.mubr.msk.bf16.mxu0 %vm1426_vm3, %v9033_v34  ;;  %7980 = vmatprep.subr.bf16.mxu1 %v8242_v26 }
 0x11f   : > { %v9043_v44 = vmax.f32 %v1175_v32, 0.0  ;;  %v1147_v45 = vmax.f32 %v839_v14, %v1088_v41  ;;  %v1268_v54 = vsel %vm1252_vm2, %v1233_v30, %v1234_v39  ;;  %7937 = vmatpush3.bf16.msra.mxu0 %v8241_v48  ;;  %v1180_v58 = vadd.f32 %v8923_v3, %v1149_v33  ;;  %v595_v41 = vld [vmem:[%s13838_s2 + $0xb8] sm:$0xff] }
 0x120   : > { %v7845_v50 = vpop.f32.mrf.mxu1  ;;  %7938 = vmatprep.subr.bf16.mxu0 %v8243_v36  ;;  %v9058_v9 = vpack.c.bf16 %v1268_v54, %v1269_v1  ;;  %v1237_v12 = vrot.slane %v9041_v42, 1  ;;  %v9072_v13 = vpack.c.bf16 %v9041_v42, %v9038_v38  ;;  %v13678_v54 = vmov 0  }
 0x121   : > { %v1235_v56 = vrot.slane %v9043_v44, 1  ;;  %v1178_v60 = vadd.f32 %v8923_v3, %v1147_v45  ;;  %v1150_v6 = vmax.f32 %v7811_v40, %v7845_v50  ;;  %v9062_v10 = vpack.c.bf16 %v9043_v44, %v9024_v27  ;;  %7981 = vmatpush3.bf16.msra.mxu1 %v8242_v26  ;;  %8191 = vset.pattern.permute.xlu1 %v13678_v54 }
 0x122   : > { %v1091_v8 = vpop.f32.mrf.mxu1  ;;  %7982 = vmatprep.subr.bf16.mxu1 %v8244_v46  ;;  %7875 = vmatmul.mubr.msk.bf16.gmra.mxu0 %vm1426_vm3, %v9058_v9  ;;  %v9086_v26 = vmax.f32 %v1180_v58, 0.0  ;;  %v1265_v50 = vsel %vm1252_vm2, %v1236_v2, %v1237_v12 }
 0x123   : > { %v9068_v5 = vmax.f32 %v1178_v60, 0.0  ;;  %v1148_v14 = vmax.f32 %v842_v4, %v1091_v8  ;;  %v1181_v48 = vadd.f32 %v8923_v3, %v1150_v6  ;;  %7918 = vmatprep.mubr.msk.bf16.mxu1 %vm1426_vm3, %v9062_v10  ;;  %v1266_v22 = vsel %vm1252_vm2, %v1235_v56, %v1236_v2  ;;  %7939 = vmatpush3.bf16.msra.mxu0 %v8243_v36 }
 0x124   : > { %v7848_v19 = vpop.f32.mrf.mxu1  ;;  %v1267_v23 = vsel %vm1252_vm2, %v1234_v39, %v1235_v56  ;;  %7919 = vmatmul.mubr.msk.bf16.gmra.mxu1 %vm1426_vm3, %v9072_v13  ;;  %7940 = vmatprep.subr.bf16.mxu0 %v8245_v11  ;;  %v8247_v39 = vld [vmem:[%s13662_s6 + $0x90] sm:$0xff]   ;;  %v1240_v60 = vrot.slane %v9086_v26, 1 }
 0x125   : > { %v1238_v28 = vrot.slane %v9068_v5, 1  ;;  %v1179_v29 = vadd.f32 %v8923_v3, %v1148_v14  ;;  %v9092_v30 = vmax.f32 %v1181_v48, 0.0  ;;  %v1153_v32 = vmax.f32 %v8904_v49, %v7848_v19  ;;  %7983 = vmatpush3.bf16.msra.mxu1 %v8244_v46  ;;  %v8248_v46 = vld [vmem:[%s13663_s7 + $0x44] sm:$0xff]   ;;  %8190 = vset.pattern.permute.xlu0 %v13678_v54 }
 0x126   : > { %v1104_v33 = vpop.f32.mrf.mxu1  ;;  %v9095_v40 = vpack.c.bf16 %v1266_v22, %v1267_v23  ;;  %7984 = vmatprep.subr.bf16.mxu1 %v8246_v16  ;;  %2860 = vperm.xlu1 %8191, %v595_v41   ;;  %v8249_v48 = vld [vmem:[%s13662_s6 + $0x88] sm:$0xff]  }
 0x127   : > { %v9103_v45 = vmax.f32 %v1179_v29, 0.0  ;;  %v1151_v36 = vmax.f32 %v8906_v51, %v1104_v33  ;;  %v1264_v49 = vsel %vm1252_vm2, %v1237_v12, %v1238_v28  ;;  %v572_v51 = vld [vmem:[%s13838_s2] sm:$0xff]  ;;  %7941 = vmatpush3.bf16.msra.mxu0 %v8245_v11  ;;  %v1241_v4 = vrot.slane %v9092_v30, 1 }
 0x128   : > { %7878 = vmatprep.mubr.msk.bf16.mxu0 %vm1426_vm3, %v9095_v40  ;;  %v7849_v56 = vpop.f32.mrf.mxu1  ;;  %v9116_v58 = vpack.c.bf16 %v1264_v49, %v1265_v50  ;;  %v1184_v6 = vadd.f32 %v8923_v3, %v1153_v32  ;;  %7942 = vmatprep.subr.bf16.mxu0 %v8247_v39  ;;  %v9140_v22 = vpack.c.bf16 %v9092_v30, %v9086_v26  ;;  %v574_v32 = vld [vmem:[%s13838_s2 + $0x10] sm:$0xff]  ;;  %v573_v49 = vld [vmem:[%s13838_s2 + $0x8] sm:$0xff] }
 0x129   : > { %v1239_v1 = vrot.slane %v9103_v45, 1  ;;  %v1182_v2 = vadd.f32 %v8923_v3, %v1151_v36  ;;  %v1154_v8 = vmax.f32 %v8908_v53, %v7849_v56  ;;  %v9130_v14 = vpack.c.bf16 %v9103_v45, %v9068_v5  ;;  %7985 = vmatpush3.bf16.msra.mxu1 %v8246_v16  ;;  %v8250_v53 = vld [vmem:[%s13663_s7 + $0x3c] sm:$0xff]   ;;  %2745 = vperm.xlu0 %8190, %v572_v51  }
 0x12a   : > { %v1107_v12 = vpop.f32.mrf.mxu1  ;;  %7986 = vmatprep.subr.bf16.mxu1 %v8248_v46  ;;  %7879 = vmatmul.mubr.msk.bf16.gmra.mxu0 %vm1426_vm3, %v9116_v58  ;;  %v9165_v50 = vmax.f32 %v1184_v6, 0.0  ;;  %v1261_v51 = vsel %vm1252_vm2, %v1240_v60, %v1241_v4 }
 0x12b   : > { %v9135_v19 = vmax.f32 %v1182_v2, 0.0  ;;  %v1152_v11 = vmax.f32 %v8910_v55, %v1107_v12  ;;  %v1185_v16 = vadd.f32 %v8923_v3, %v1154_v8  ;;  %7922 = vmatprep.mubr.msk.bf16.mxu1 %vm1426_vm3, %v9130_v14  ;;  %v1262_v55 = vsel %vm1252_vm2, %v1239_v1, %v1240_v60  ;;  %7943 = vmatpush3.bf16.msra.mxu0 %v8247_v39  ;;  %v9184_v60 = vld [vmem:[%s13663_s7 + $0xb0] ss:$0 sps:$4 sm:$0xff]  }
 0x12c   : > { %v7852_v23 = vpop.f32.mrf.mxu1  ;;  %v1263_v29 = vsel %vm1252_vm2, %v1238_v28, %v1239_v1  ;;  %7923 = vmatmul.mubr.msk.bf16.gmra.mxu1 %vm1426_vm3, %v9140_v22  ;;  %7944 = vmatprep.subr.bf16.mxu0 %v8249_v48 }
 0x12d   : > { %v1242_v33 = vrot.slane %v9135_v19, 1  ;;  %v1183_v41 = vadd.f32 %v8923_v3, %v1152_v11  ;;  %v1157_v36 = vmax.f32 %v8912_v57, %v7852_v23  ;;  %v9167_v56 = vpack.c.bf16 %v1262_v55, %v1263_v29  ;;  %7987 = vmatpush3.bf16.msra.mxu1 %v8248_v46  ;;  %v8251_v57 = vld [vmem:[%s13662_s6 + $0x80] sm:$0xff]   ;;  %2755 = vperm.xlu1 %8191, %v574_v32   ;;  %v8252_v32 = vld [vmem:[%s13662_s6 + $0x78] sm:$0xff]  }
 0x12e   : > { %v1120_v28 = vpop.f32.mrf.mxu1  ;;  %v9174_v1 = vmax.f32 %v1185_v16, 0.0  ;;  %7988 = vmatprep.subr.bf16.mxu1 %v8250_v53  ;;  %2750 = vperm.xlu0 %8190, %v573_v49   ;;  %v1244_v16 = vrot.slane %v9165_v50, 1 }
 0x12f   : > { %v9176_v39 = vmax.f32 %v1183_v41, 0.0  ;;  %v1155_v2 = vmax.f32 %v8914_v59, %v1120_v28  ;;  %v1260_v6 = vsel %vm1252_vm2, %v1241_v4, %v1242_v33  ;;  %7882 = vmatprep.mubr.msk.bf16.mxu0 %vm1426_vm3, %v9167_v56  ;;  %v576_v59 = vld [vmem:[%s13838_s2 + $0x20] sm:$0xff]  ;;  %v1188_v12 = vadd.f32 %v8923_v3, %v1157_v36  ;;  %7945 = vmatpush3.bf16.msra.mxu0 %v8249_v48 }
 0x130   : > { %v7853_v46 = vpop.f32.mrf.mxu1  ;;  %v9188_v8 = vpack.c.bf16 %v1260_v6, %v1261_v51  ;;  %7946 = vmatprep.subr.bf16.mxu0 %v8251_v57  ;;  %v1245_v41 = vrot.slane %v9174_v1, 1  ;;  %v578_v51 = vld [vmem:[%s13838_s2 + $0x30] sm:$0xff] }
 0x131   : > { %v1243_v4 = vrot.slane %v9176_v39, 1  ;;  %v1186_v11 = vadd.f32 %v8923_v3, %v1155_v2  ;;  %v1158_v23 = vmax.f32 %v8916_v61, %v7853_v46  ;;  %v9200_v29 = vpack.c.bf16 %v9176_v39, %v9135_v19  ;;  %7989 = vmatpush3.bf16.msra.mxu1 %v8250_v53  ;;  %2765 = vperm.xlu1 %8191, %v576_v59   ;;  %v575_v53 = vld [vmem:[%s13838_s2 + $0x18] sm:$0xff] }
 0x132   : > { %v1123_v55 = vpop.f32.mrf.mxu1  ;;  %v9211_v61 = vpack.c.bf16 %v9174_v1, %v9165_v50  ;;  %8149 = vmatprep.subr.msk.bf16.mxu1 %vm1463_vm1, %v9184_v60  ;;  %7883 = vmatmul.mubr.msk.bf16.gmra.mxu0 %vm1426_vm3, %v9188_v8  ;;  %v9230_v2 = vmax.f32 %v1188_v12, 0.0 }
 0x133   : > { %v9206_v36 = vmax.f32 %v1186_v11, 0.0  ;;  %v1156_v48 = vmax.f32 %v8918_v63, %v1123_v55  ;;  %v1189_v49 = vadd.f32 %v8923_v3, %v1158_v23  ;;  %7926 = vmatprep.mubr.msk.bf16.mxu1 %vm1426_vm3, %v9200_v29  ;;  %v1258_v63 = vsel %vm1252_vm2, %v1243_v4, %v1244_v16  ;;  %7947 = vmatpush3.bf16.msra.mxu0 %v8251_v57 }
 0x134   : > { %v1259_v28 = vsel %vm1252_vm2, %v1242_v33, %v1243_v4  ;;  %7927 = vmatmul.mubr.msk.bf16.gmra.mxu1 %vm1426_vm3, %v9211_v61  ;;  %7948 = vmatprep.subr.bf16.mxu0 %v8252_v32  ;;  %v8255_v33 = vld [vmem:[%s13663_s7 + $0x38] ss:$0 sps:$4 sm:$0xff]   ;;  %v1257_v11 = vsel %vm1252_vm2, %v1244_v16, %v1245_v41  ;;  %v1248_v23 = vrot.slane %v9230_v2, 1 }
 0x135   : > { %v1246_v6 = vrot.slane %v9206_v36, 1  ;;  %v1187_v46 = vadd.f32 %v8923_v3, %v1156_v48  ;;  %v9236_v59 = vpack.c.bf16 %v1258_v63, %v1259_v28  ;;  %2760 = vperm.xlu0 %8190, %v575_v53   ;;  %v9241_v4 = vmax.f32 %v1189_v49, 0.0  ;;  %2775 = vperm.xlu1 %8191, %v578_v51   ;;  %v577_v28 = vld [vmem:[%s13838_s2 + $0x28] sm:$0xff] }
 0x136   : > { %v1290_v63 = vrot.slane %v8942_v25, 2  ;;  %v1291_v51 = vrot.slane %v8932_v18, 2 }
 0x137   : > { %v9243_v12 = vmax.f32 %v1187_v46, 0.0  ;;  %7886 = vmatprep.mubr.msk.bf16.mxu0 %vm1426_vm3, %v9236_v59  ;;  %v1256_v3 = vsel %vm1252_vm2, %v1245_v41, %v1246_v6  ;;  %7949 = vmatpush3.bf16.msra.mxu0 %v8252_v32  ;;  %v1249_v53 = vrot.slane %v9241_v4, 1  ;;  %v9265_v16 = vpack.c.bf16 %v9241_v4, %v9230_v2 }
 0x138   : > { %v9251_v57 = vpack.c.bf16 %v1256_v3, %v1257_v11  ;;  %8148 = vmatprep.subr.msk.bf16.mxu0 %vm1463_vm1, %v8255_v33  ;;  %v1289_v46 = vrot.slane %v8934_v20, 2  ;;  %v1335_v18 = vsel %vm1313_vm4, %v1290_v63, %v1291_v51  ;;  %v1293_v11 = vrot.slane %v8963_v43, 2  ;;  %v591_v20 = vld [vmem:[%s13838_s2 + $0x98] sm:$0xff] }
 0x139   : > { %v1247_v55 = vrot.slane %v9243_v12, 1  ;;  %v9257_v48 = vpack.c.bf16 %v9243_v12, %v9206_v36  ;;  %v1253_v25 = vsel %vm1252_vm2, %v1248_v23, %v1249_v53  ;;  %2770 = vperm.xlu0 %8190, %v577_v28   ;;  %v1295_v43 = vrot.slane %v8973_v47, 2 }
 0x13a   : > { %7887 = vmatmul.mubr.msk.bf16.gmra.mxu0 %vm1426_vm3, %v9251_v57  ;;  %v2316_v28 = vsel %vm1463_vm1, %v8255_v33, 0  ;;  %v1299_v33 = vrot.slane %v9038_v38, 2  ;;  %v8260_v38 = vld [vmem:[%s13663_s7 + $0x90] sm:$0xff]  }
 0x13b   : > { %7930 = vmatprep.mubr.msk.bf16.mxu1 %vm1426_vm3, %v9257_v48  ;;  %v1254_v41 = vsel %vm1252_vm2, %v1247_v55, %v1248_v23  ;;  %v1255_v49 = vsel %vm1252_vm2, %v1246_v6, %v1247_v55  ;;  %v1276_v6 = vsel %vm1252_vm2, %v1249_v53, %v1226_v31  ;;  %v2509_v23 = vsel %vm1463_vm1, %v9184_v60, 0  ;;  %v8254_v31 = vld [vmem:[%s13663_s7 + $0xa8] sm:$0xff]  }
 0x13c   : > { %v9274_v32 = vpack.c.bf16 %v1254_v41, %v1255_v49  ;;  %7931 = vmatmul.mubr.msk.bf16.gmra.mxu1 %vm1426_vm3, %v9265_v16  ;;  %v9300_v3 = vpack.c.bf16 %v1276_v6, %v1253_v25  ;;  %v1294_v53 = vrot.slane %v8984_v0, 2  ;;  %v1292_v41 = vrot.slane %v8939_v24, 2  ;;  %v8256_v24 = vld [vmem:[%s13663_s7 + $0xa0] sm:$0xff]   ;;  %v8257_v25 = vld [vmem:[%s13663_s7 + $0x30] sm:$0xff]  }
 0x13d   : > { %7990 = vmatprep.mubr.msk.bf16.mxu1 %vm1426_vm3, %v8978_v52  ;;  %v1336_v52 = vsel %vm1313_vm4, %v1289_v46, %v1290_v63  ;;  %v1298_v6 = vrot.slane %v9043_v44, 2 }
 0x13e   : > { %7890 = vmatprep.mubr.msk.bf16.mxu0 %vm1426_vm3, %v9274_v32  ;;  %v9303_v55 = vpack.c.bf16 %v1335_v18, %v1336_v52  ;;  %v1333_v0 = vsel %vm1313_vm4, %v1292_v41, %v1293_v11  ;;  %v1331_v60 = vsel %vm1313_vm4, %v1294_v53, %v1295_v43  ;;  %v1334_v47 = vsel %vm1313_vm4, %v1291_v51, %v1292_v41  ;;  %v8258_v51 = vld [vmem:[%s13663_s7 + $0x98] sm:$0xff]   ;;  %v8262_v41 = vld [vmem:[%s13663_s7 + $0x88] sm:$0xff]  }
 0x13f   : > { %v9332_v49 = vpack.c.bf16 %v1333_v0, %v1334_v47  ;;  %v1327_v18 = vsel %vm1313_vm4, %v1298_v6, %v1299_v33  ;;  %v1305_v47 = vrot.slane %v9135_v19, 2  ;;  %v1304_v19 = vrot.slane %v9092_v30, 2  ;;  %v581_v30 = vld [vmem:[%s13838_s2 + $0x48] sm:$0xff] }
 0x142   : > { %7891 = vmatmul.mubr.msk.bf16.gmra.mxu0 %vm1426_vm3, %v9300_v3 }
 0x143   : > { %7950 = vmatprep.mubr.msk.bf16.mxu0 %vm1426_vm3, %v9303_v55 }
 0x144   : > { %7991 = vmatmul.mubr.msk.bf16.vlgmr.msra.gmra.mxu1 %vm1426_vm3, %v8993_v7  ;;  %v1332_v7 = vsel %vm1313_vm4, %v1293_v11, %v1294_v53  ;;  %v1301_v11 = vrot.slane %v9068_v5, 2  ;;  %v1302_v53 = vrot.slane %v9103_v45, 2  ;;  %v1300_v5 = vrot.slane %v9041_v42, 2  ;;  %v580_v45 = vld [vmem:[%s13838_s2 + $0x40] sm:$0xff]  ;;  %v579_v42 = vld [vmem:[%s13838_s2 + $0x38] sm:$0xff] }
 0x145   : > { %7994 = vmatprep.mubr.msk.bf16.mxu1 %vm1426_vm3, %v9033_v34  ;;  %8055 = vmatpush3.bf16.msra.mxu1 %v2509_v23  ;;  %v1297_v34 = vrot.slane %v9024_v27, 2  ;;  %v9335_v63 = vpack.c.bf16 %v1331_v60, %v1332_v7  ;;  %v1296_v27 = vrot.slane %v8982_v62, 2  ;;  %v8259_v62 = vld [vmem:[%s13663_s7 + $0x28] sm:$0xff]  }
 0x146   : > { %8056 = vmatprep.subr.bf16.mxu1 %v8254_v31  ;;  %v1325_v0 = vsel %vm1313_vm4, %v1300_v5, %v1301_v11  ;;  %2785 = vperm.xlu1 %8191, %v580_v45   ;;  %v1326_v60 = vsel %vm1313_vm4, %v1299_v33, %v1300_v5  ;;  %v1312_v45 = vrot.slane %v9241_v4, 2 }
 0x147   : > { %v1329_v44 = vsel %vm1313_vm4, %v1296_v27, %v1297_v34  ;;  %2780 = vperm.xlu0 %8190, %v579_v42   ;;  %v9411_v7 = vpack.c.bf16 %v1325_v0, %v1326_v60  ;;  %v587_v42 = vld [vmem:[%s13838_s2 + $0x78] sm:$0xff]  ;;  %v590_v0 = vld [vmem:[%s13838_s2 + $0x90] sm:$0xff] }
 0x149   : > { %8057 = vmatpush3.bf16.msra.mxu1 %v8254_v31  ;;  %v8261_v31 = vld [vmem:[%s13663_s7 + $0x20] sm:$0xff]  }
 0x14a   : > { %8058 = vmatprep.subr.bf16.mxu1 %v8256_v24  ;;  %7951 = vmatmul.mubr.msk.bf16.vlgmr.msra.gmra.mxu0 %vm1426_vm3, %v9332_v49 }
 0x14b   : > { %7954 = vmatprep.mubr.msk.bf16.mxu0 %vm1426_vm3, %v9335_v63  ;;  %8015 = vmatpush3.bf16.msra.mxu0 %v2316_v28  ;;  %v8265_v28 = vld [vmem:[%s13663_s7 + $0x10] sm:$0xff]  }
 0x14c   : > { %7995 = vmatmul.mubr.msk.bf16.gmra.mxu1 %vm1426_vm3, %v9058_v9  ;;  %8016 = vmatprep.subr.bf16.mxu0 %v8257_v25  ;;  %v1328_v9 = vsel %vm1313_vm4, %v1297_v34, %v1298_v6  ;;  %v8266_v6 = vld [vmem:[%s13663_s7 + $0x78] sm:$0xff]  }
 0x14d   : > { %7998 = vmatprep.mubr.msk.bf16.mxu1 %vm1426_vm3, %v9095_v40  ;;  %8059 = vmatpush3.bf16.msra.mxu1 %v8256_v24  ;;  %v1330_v40 = vsel %vm1313_vm4, %v1295_v43, %v1296_v27  ;;  %v9372_v23 = vpack.c.bf16 %v1327_v18, %v1328_v9  ;;  %v1303_v43 = vrot.slane %v9086_v26, 2  ;;  %v8264_v24 = vld [vmem:[%s13663_s7 + $0x80] sm:$0xff]   ;;  %v1321_v27 = vsel %vm1313_vm4, %v1304_v19, %v1305_v47 }
 0x14e   : > { %8060 = vmatprep.subr.bf16.mxu1 %v8258_v51  ;;  %v9369_v52 = vpack.c.bf16 %v1329_v44, %v1330_v40  ;;  %2790 = vperm.xlu0 %8190, %v581_v30   ;;  %v584_v44 = vld [vmem:[%s13838_s2 + $0x60] sm:$0xff]  ;;  %v1309_v18 = vrot.slane %v9206_v36, 2  ;;  %v1310_v40 = vrot.slane %v9243_v12, 2  ;;  %v1308_v36 = vrot.slane %v9174_v1, 2  ;;  %v586_v12 = vld [vmem:[%s13838_s2 + $0x70] sm:$0xff] }
 0x14f   : > { %8017 = vmatpush3.bf16.msra.mxu0 %v8257_v25  ;;  %v1323_v26 = vsel %vm1313_vm4, %v1302_v53, %v1303_v43  ;;  %v1306_v25 = vrot.slane %v9176_v39, 2  ;;  %v582_v39 = vld [vmem:[%s13838_s2 + $0x50] sm:$0xff]  ;;  %v1322_v33 = vsel %vm1313_vm4, %v1303_v43, %v1304_v19  ;;  %v8277_v19 = vld [vmem:[%s13665_s9 + $0x78] sm:$0xff]  }
 0x150   : > { %8018 = vmatprep.subr.bf16.mxu0 %v8259_v62  ;;  %2795 = vperm.xlu1 %8191, %v582_v39   ;;  %v8278_v39 = vld [vmem:[%s13665_s9 + $0x38] sm:$0xff]  }
 0x151   : > { %8061 = vmatpush3.bf16.msra.mxu1 %v8258_v51  ;;  %v1307_v51 = vrot.slane %v9165_v50, 2 }
 0x152   : > { %7955 = vmatmul.mubr.msk.bf16.gmra.mxu0 %vm1426_vm3, %v9369_v52  ;;  %8062 = vmatprep.subr.bf16.mxu1 %v8260_v38 }
 0x153   : > { %7958 = vmatprep.mubr.msk.bf16.mxu0 %vm1426_vm3, %v9372_v23  ;;  %8019 = vmatpush3.bf16.msra.mxu0 %v8259_v62  ;;  %v1319_v50 = vsel %vm1313_vm4, %v1306_v25, %v1307_v51  ;;  %v9453_v62 = vpack.c.bf16 %v1321_v27, %v1322_v33  ;;  %v8280_v33 = vld [vmem:[%s13665_s9 + $0x30] sm:$0xff]  }
 0x154   : > { %7999 = vmatmul.mubr.msk.bf16.gmra.mxu1 %vm1426_vm3, %v9116_v58  ;;  %8020 = vmatprep.subr.bf16.mxu0 %v8261_v31  ;;  %v8263_v58 = vld [vmem:[%s13663_s7 + $0x18] sm:$0xff]  }
 0x155   : > { %8002 = vmatprep.mubr.msk.bf16.mxu1 %vm1426_vm3, %v9167_v56  ;;  %8063 = vmatpush3.bf16.msra.mxu1 %v8260_v38  ;;  %v1324_v56 = vsel %vm1313_vm4, %v1301_v11, %v1302_v53  ;;  %v8268_v38 = vld [vmem:[%s13663_s7] sm:$0xff]   ;;  %v583_v11 = vld [vmem:[%s13838_s2 + $0x58] sm:$0xff]  ;;  %v1317_v53 = vsel %vm1313_vm4, %v1308_v36, %v1309_v18 }
 0x156   : > { %8064 = vmatprep.subr.bf16.mxu1 %v8262_v41  ;;  %v9414_v34 = vpack.c.bf16 %v1323_v26, %v1324_v56  ;;  %2805 = vperm.xlu1 %8191, %v584_v44   ;;  %v592_v26 = vld [vmem:[%s13838_s2 + $0xa0] sm:$0xff] }
 0x157   : > { %8021 = vmatpush3.bf16.msra.mxu0 %v8261_v31  ;;  %v1311_v31 = vrot.slane %v9230_v2, 2  ;;  %2800 = vperm.xlu0 %8190, %v583_v11   ;;  %v585_v2 = vld [vmem:[%s13838_s2 + $0x68] sm:$0xff] }
 0x158   : > { %8022 = vmatprep.subr.bf16.mxu0 %v8263_v58  ;;  %v8282_v11 = vld [vmem:[%s13665_s9 + $0x28] sm:$0xff]  }
 0x159   : > { %8065 = vmatpush3.bf16.msra.mxu1 %v8262_v41  ;;  %v1315_v1 = vsel %vm1313_vm4, %v1310_v40, %v1311_v31  ;;  %v588_v41 = vld [vmem:[%s13838_s2 + $0x80] sm:$0xff]  ;;  %v1314_v4 = vsel %vm1313_vm4, %v1311_v31, %v1312_v45 }
 0x15a   : > { %7959 = vmatmul.mubr.msk.bf16.gmra.mxu0 %vm1426_vm3, %v9411_v7  ;;  %8066 = vmatprep.subr.bf16.mxu1 %v8264_v24 }
 0x15b   : > { %7962 = vmatprep.mubr.msk.bf16.mxu0 %vm1426_vm3, %v9414_v34  ;;  %8023 = vmatpush3.bf16.msra.mxu0 %v8263_v58  ;;  %v1337_v58 = vsel %vm1313_vm4, %v1312_v45, %v1289_v46  ;;  %v594_v46 = vld [vmem:[%s13838_s2 + $0xb0] sm:$0xff] }
 0x15c   : > { %8003 = vmatmul.mubr.msk.bf16.gmra.mxu1 %vm1426_vm3, %v9188_v8  ;;  %8024 = vmatprep.subr.bf16.mxu0 %v8265_v28  ;;  %v8267_v8 = vld [vmem:[%s13663_s7 + $0x8] sm:$0xff]   ;;  %v1349_v56 = vpack.c.bf16 %v1337_v58, %v1314_v4 }
 0x15d   : > { %8006 = vmatprep.mubr.msk.bf16.mxu1 %vm1426_vm3, %v9236_v59  ;;  %8067 = vmatpush3.bf16.msra.mxu1 %v8264_v24  ;;  %v1320_v59 = vsel %vm1313_vm4, %v1305_v47, %v1306_v25 }
 0x15e   : > { %8068 = vmatprep.subr.bf16.mxu1 %v8266_v6  ;;  %v9456_v9 = vpack.c.bf16 %v1319_v50, %v1320_v59  ;;  %2815 = vperm.xlu1 %8191, %v586_v12   ;;  %v8279_v59 = vld [vmem:[%s13665_s9 + $0x70] sm:$0xff]  }
 0x15f   : > { %8025 = vmatpush3.bf16.msra.mxu0 %v8265_v28  ;;  %2810 = vperm.xlu0 %8190, %v585_v2  }
 0x160   : > { %8026 = vmatprep.subr.bf16.mxu0 %v8267_v8 }
 0x161   : > { %8069 = vmatpush3.bf16.msra.mxu1 %v8266_v6 }
 0x162   : > { %7963 = vmatmul.mubr.msk.bf16.gmra.mxu0 %vm1426_vm3, %v9453_v62  ;;  %2825 = vperm.xlu1 %8191, %v588_v41   ;;  %v8284_v41 = vld [vmem:[%s13665_s9 + $0x20] sm:$0xff]  }
 0x163   : > { %7966 = vmatprep.mubr.msk.bf16.mxu0 %vm1426_vm3, %v9456_v9  ;;  %8027 = vmatpush3.bf16.msra.mxu0 %v8267_v8 }
 0x164   : > { %8007 = vmatmul.mubr.msk.bf16.gmra.mxu1 %vm1426_vm3, %v9251_v57  ;;  %8028 = vmatprep.subr.bf16.mxu0 %v8268_v38  ;;  %v1316_v57 = vsel %vm1313_vm4, %v1309_v18, %v1310_v40  ;;  %v8281_v40 = vld [vmem:[%s13665_s9 + $0x68] sm:$0xff]  }
 0x165   : > { %8010 = vmatprep.mubr.msk.bf16.mxu1 %vm1426_vm3, %v9274_v32  ;;  %v1318_v32 = vsel %vm1313_vm4, %v1307_v51, %v1308_v36  ;;  %v1348_v43 = vpack.c.bf16 %v1315_v1, %v1316_v57  ;;  %2820 = vperm.xlu0 %8190, %v587_v42  }
 0x166   : > { %v1347_v5 = vpack.c.bf16 %v1317_v53, %v1318_v32  ;;  %2835 = vperm.xlu1 %8191, %v590_v0   ;;  %v8283_v32 = vld [vmem:[%s13665_s9 + $0x60] sm:$0xff]  }
 0x167   : > { %8029 = vmatpush3.bf16.msra.mxu0 %v8268_v38 }
 0x168   : > { %7502 = vmatprep.subr.bf16.mxu0 %v8277_v19 }
 0x16a   : > { %7967 = vmatmul.mubr.msk.bf16.gmra.mxu0 %vm1426_vm3, %v1347_v5  ;;  %2845 = vperm.xlu1 %8191, %v592_v26   ;;  %v8286_v26 = vld [vmem:[%s13665_s9 + $0x18] sm:$0xff]  }
 0x16b   : > { %7970 = vmatprep.mubr.msk.bf16.mxu0 %vm1426_vm3, %v1348_v43 }
 0x16c   : > { %8011 = vmatmul.mubr.msk.bf16.gmra.mxu1 %vm1426_vm3, %v9300_v3  ;;  %v589_v3 = vld [vmem:[%s13838_s2 + $0x88] sm:$0xff] }
 0x16d   : > { %8070 = vmatprep.mubr.msk.bf16.mxu1 %vm1426_vm3, %v9303_v55  ;;  %2830 = vperm.xlu0 %8190, %v589_v3   ;;  %v593_v55 = vld [vmem:[%s13838_s2 + $0xa8] sm:$0xff]  ;;  %v8285_v3 = vld [vmem:[%s13665_s9 + $0x58] sm:$0xff]   ;;  %s8571_s2 = scalar_lea.vmem %s8570_s30, 512 }
 0x16e   : > { %2855 = vperm.xlu1 %8191, %v594_v46   ;;  %p8573_p1 = scmp.lt.s32.totalorder %s8571_s2, %s8565_s20 }
 0x170   : > { %p8574_p2 = por %p8573_p1, %p8572_p0 }
 0x171   : > { %2840 = vperm.xlu0 %8190, %v591_v20  }
 0x172   : > { %7971 = vmatmul.mubr.msk.bf16.gmra.mxu0 %vm1426_vm3, %v1349_v56  ;;  %p8575_p3 = pnand %p8574_p2, %p8568_p13 }
 0x173   : > { %8030 = vmatprep.mubr.msk.bf16.mxu0 %vm1426_vm3, %v8951_v35  ;;  %v8269_v35 = vld [vmem:[%s13665_s9 + $0xb8] sm:$0xff]  }
 0x174   : > { %8071 = vmatmul.mubr.msk.bf16.vlgmr.msra.gmra.mxu1 %vm1426_vm3, %v9332_v49  ;;  %8094 = vmatprep.subr.bf16.mxu1 %v8269_v35 }
 0x175   : > { %8074 = vmatprep.mubr.msk.bf16.mxu1 %vm1426_vm3, %v9335_v63  ;;  %2850 = vperm.xlu0 %8190, %v593_v55  }
 0x176   : > { %8095 = vmatpush3.bf16.msra.mxu1 %v8269_v35 }
 0x17a   : > { %8031 = vmatmul.mubr.msk.bf16.vlgmr.msra.gmra.mxu0 %vm1426_vm3, %v8955_v37  ;;  %v8270_v37 = vld [vmem:[%s13665_s9 + $0xb0] sm:$0xff]  }
 0x17b   : > { %8034 = vmatprep.mubr.msk.bf16.mxu0 %vm1426_vm3, %v9006_v17  ;;  %8096 = vmatprep.subr.bf16.mxu1 %v8270_v37  ;;  %v8271_v17 = vld [vmem:[%s13665_s9 + $0xa8] sm:$0xff]  }
 0x17c   : > { %8075 = vmatmul.mubr.msk.bf16.gmra.mxu1 %vm1426_vm3, %v9369_v52  ;;  %7503 = vmatpush3.bf16.msra.mxu0 %v8278_v39 }
 0x17d   : > { %8078 = vmatprep.mubr.msk.bf16.mxu1 %vm1426_vm3, %v9372_v23  ;;  %8097 = vmatpush3.bf16.msra.mxu1 %v8270_v37  ;;  %v8276_v23 = vld [vmem:[%s13665_s9 + $0x80] sm:$0xff]   ;;  %v8288_v37 = vld [vmem:[%s13665_s9 + $0x10] sm:$0xff]  }
 0x17e   : > { %8098 = vmatprep.subr.bf16.mxu1 %v8271_v17  ;;  %7504 = vmatprep.subr.bf16.mxu0 %v8279_v59 }
 0x180   : > { %7505 = vmatpush3.bf16.msra.mxu0 %v8280_v33 }
 0x181   : > { %8099 = vmatpush3.bf16.msra.mxu1 %v8271_v17  ;;  %7506 = vmatprep.subr.bf16.mxu0 %v8281_v40 }
 0x182   : > { %8035 = vmatmul.mubr.msk.bf16.gmra.mxu0 %vm1426_vm3, %v9015_v21  ;;  %v8272_v21 = vld [vmem:[%s13665_s9 + $0xa0] sm:$0xff]  }
 0x183   : > { %8038 = vmatprep.mubr.msk.bf16.mxu0 %vm1426_vm3, %v9062_v10  ;;  %8100 = vmatprep.subr.bf16.mxu1 %v8272_v21  ;;  %v8273_v10 = vld [vmem:[%s13665_s9 + $0x98] sm:$0xff]  }
 0x184   : > { %8079 = vmatmul.mubr.msk.bf16.gmra.mxu1 %vm1426_vm3, %v9411_v7  ;;  %7507 = vmatpush3.bf16.msra.mxu0 %v8282_v11 }
 0x185   : > { %8082 = vmatprep.mubr.msk.bf16.mxu1 %vm1426_vm3, %v9414_v34  ;;  %8101 = vmatpush3.bf16.msra.mxu1 %v8272_v21 }
 0x186   : > { %8102 = vmatprep.subr.bf16.mxu1 %v8273_v10  ;;  %7508 = vmatprep.subr.bf16.mxu0 %v8283_v32 }
 0x188   : > { %7509 = vmatpush3.bf16.msra.mxu0 %v8284_v41 }
 0x189   : > { %8103 = vmatpush3.bf16.msra.mxu1 %v8273_v10  ;;  %7510 = vmatprep.subr.bf16.mxu0 %v8285_v3  ;;  %v8289_v10 = vld [vmem:[%s13665_s9 + $0x48] sm:$0xff]  }
 0x18a   : > { %8039 = vmatmul.mubr.msk.bf16.gmra.mxu0 %vm1426_vm3, %v9072_v13 }
 0x18b   : > { %8042 = vmatprep.mubr.msk.bf16.mxu0 %vm1426_vm3, %v9130_v14  ;;  %v8274_v14 = vld [vmem:[%s13665_s9 + $0x90] sm:$0xff]  }
 0x18c   : > { %8083 = vmatmul.mubr.msk.bf16.gmra.mxu1 %vm1426_vm3, %v9453_v62  ;;  %8104 = vmatprep.subr.bf16.mxu1 %v8274_v14 }
 0x18d   : > { %8086 = vmatprep.mubr.msk.bf16.mxu1 %vm1426_vm3, %v9456_v9  ;;  %8105 = vmatpush3.bf16.msra.mxu1 %v8274_v14 }
 0x18e   : > { %7511 = vmatpush3.bf16.msra.mxu0 %v8286_v26 }
 0x192   : > { %8043 = vmatmul.mubr.msk.bf16.gmra.mxu0 %vm1426_vm3, %v9140_v22 }
 0x193   : > { %8046 = vmatprep.mubr.msk.bf16.mxu0 %vm1426_vm3, %v9200_v29 }
 0x194   : > { %8087 = vmatmul.mubr.msk.bf16.gmra.mxu1 %vm1426_vm3, %v1347_v5 }
 0x195   : > { %8090 = vmatprep.mubr.msk.bf16.mxu1 %vm1426_vm3, %v1348_v43 }
 0x19a   : > { %8047 = vmatmul.mubr.msk.bf16.gmra.mxu0 %vm1426_vm3, %v9211_v61  ;;  %v8275_v61 = vld [vmem:[%s13665_s9 + $0x88] sm:$0xff]  }
 0x19b   : > { %8050 = vmatprep.mubr.msk.bf16.mxu0 %vm1426_vm3, %v9257_v48  ;;  %8106 = vmatprep.subr.bf16.mxu1 %v8275_v61 }
 0x19c   : > { %8091 = vmatmul.mubr.msk.bf16.gmra.mxu1 %vm1426_vm3, %v1349_v56  ;;  %v8287_v56 = vld [vmem:[%s13665_s9 + $0x50] sm:$0xff]  }
 0x19d   : > { %8107 = vmatpush3.bf16.msra.mxu1 %v8275_v61  ;;  %7512 = vmatprep.subr.bf16.mxu0 %v8287_v56 }
 0x19e   : > { %8108 = vmatprep.subr.bf16.mxu1 %v8276_v23  ;;  %7513 = vmatpush3.bf16.msra.mxu0 %v8288_v37 }
 0x19f   : > { %7514 = vmatprep.subr.bf16.mxu0 %v8289_v10 }
 0x1a1   : > { %8109 = vmatpush3.bf16.msra.mxu1 %v8276_v23 }
 0x1a2   : > { %8051 = vmatmul.mubr.msk.bf16.gmra.mxu0 %vm1426_vm3, %v9265_v16 }
 0x1d4   : > { %v7912_v13 = vpop.f32.mrf.mxu1 }
 0x1d6   : > { %v1714_v22 = vpop.f32.mrf.mxu1 }
 0x1d8   : > { %v7913_v29 = vpop.f32.mrf.mxu1 }
 0x1da   : > { %v7872_v48 = vpop.f32.mrf.mxu0  ;;  %v9591_v16 = vpop.f32.mrf.mxu1 }
 0x1db   : > { %v9593_v49 = vadd.f32 %v7912_v13, %v7872_v48 }
 0x1dc   : > { %v1501_v63 = vpop.f32.mrf.mxu0  ;;  %v7916_v52 = vpop.f32.mrf.mxu1 }
 0x1dd   : > { %v9598_v24 = vadd.f32 %v1714_v22, %v1501_v63  ;;  %v8291_v63 = vld [vmem:[%s13665_s9 + $0x40] sm:$0xff]  }
 0x1de   : > { %v7873_v60 = vpop.f32.mrf.mxu0  ;;  %v1730_v7 = vpop.f32.mrf.mxu1 }
 0x1df   : > { %v9600_v47 = vadd.f32 %v7913_v29, %v7873_v60  ;;  %v8290_v29 = vld [vmem:[%s13665_s9 + $0x8] sm:$0xff]  }
 0x1e0   : > { %v9602_v34 = vpop.f32.mrf.mxu0  ;;  %v7917_v28 = vpop.f32.mrf.mxu1  ;;  %7515 = vmatpush3.bf16.msra.mxu0 %v8290_v29 }
 0x1e1   : > { %7516 = vmatprep.subr.bf16.mxu0 %v8291_v63 }
 0x1e2   : > { %v9604_v25 = vpop.f32.mrf.mxu1  ;;  %v7876_v6 = vpop.f32.mrf.mxu0 }
 0x1e3   : > { %v9612_v51 = vadd.f32 %v7916_v52, %v7876_v6 }
 0x1e4   : > { %v7920_v30 = vpop.f32.mrf.mxu1  ;;  %v1517_v27 = vpop.f32.mrf.mxu0 }
 0x1e5   : > { %v9614_v8 = vadd.f32 %v1730_v7, %v1517_v27 }
 0x1e6   : > { %v1746_v50 = vpop.f32.mrf.mxu1  ;;  %v7877_v44 = vpop.f32.mrf.mxu0 }
 0x1e7   : > { %v9622_v62 = vadd.f32 %v7917_v28, %v7877_v44  ;;  %v8292_v28 = vld [vmem:[%s13665_s9] sm:$0xff]  }
 0x1e8   : > { %v7921_v18 = vpop.f32.mrf.mxu1  ;;  %v9624_v9 = vpop.f32.mrf.mxu0  ;;  %7517 = vmatpush3.bf16.msra.mxu0 %v8292_v28 }
 0x1ea   : > { %v9626_v38 = vpop.f32.mrf.mxu1  ;;  %v7880_v36 = vpop.f32.mrf.mxu0 }
 0x1eb   : > { %v9634_v12 = vadd.f32 %v7920_v30, %v7880_v36 }
 0x1ec   : > { %v7924_v31 = vpop.f32.mrf.mxu1  ;;  %v1533_v53 = vpop.f32.mrf.mxu0 }
 0x1ed   : > { %v9636_v1 = vadd.f32 %v1746_v50, %v1533_v53 }
 0x1ee   : > { %v1762_v57 = vpop.f32.mrf.mxu1  ;;  %v7881_v2 = vpop.f32.mrf.mxu0 }
 0x1ef   : > { %v9644_v5 = vadd.f32 %v7921_v18, %v7881_v2 }
 0x1f0   : > { %v7925_v45 = vpop.f32.mrf.mxu1  ;;  %v9646_v43 = vpop.f32.mrf.mxu0 }
 0x1f2   : > { %v9648_v42 = vpop.f32.mrf.mxu1  ;;  %v7884_v0 = vpop.f32.mrf.mxu0 }
 0x1f3   : > { %v9650_v4 = vadd.f32 %v7924_v31, %v7884_v0 }
 0x1f4   : > { %v7928_v58 = vpop.f32.mrf.mxu1  ;;  %v1549_v20 = vpop.f32.mrf.mxu0 }
 0x1f5   : > { %v9661_v46 = vadd.f32 %v1762_v57, %v1549_v20 }
 0x1f6   : > { %v1778_v55 = vpop.f32.mrf.mxu1  ;;  %v7885_v35 = vpop.f32.mrf.mxu0 }
 0x1f7   : > { %v9666_v17 = vadd.f32 %v7925_v45, %v7885_v35 }
 0x1f8   : > { %v7929_v21 = vpop.f32.mrf.mxu1  ;;  %v9671_v13 = vpop.f32.mrf.mxu0 }
 0x1fa   : > { %v9673_v14 = vpop.f32.mrf.mxu1  ;;  %v7888_v22 = vpop.f32.mrf.mxu0 }
 0x1fb   : > { %v9678_v61 = vadd.f32 %v7928_v58, %v7888_v22 }
 0x1fc   : > { %v7932_v48 = vpop.f32.mrf.mxu1  ;;  %v1565_v52 = vpop.f32.mrf.mxu0 }
 0x1fd   : > { %v9683_v23 = vadd.f32 %v1778_v55, %v1565_v52 }
 0x1fe   : > { %v1794_v60 = vpop.f32.mrf.mxu1  ;;  %v7889_v7 = vpop.f32.mrf.mxu0 }
 0x1ff   : > { %v9688_v6 = vadd.f32 %v7929_v21, %v7889_v7 }
 0x200   : > { %v7933_v19 = vpop.f32.mrf.mxu1  ;;  %v9690_v39 = vpop.f32.mrf.mxu0 }
 0x202   : > { %v9692_v30 = vpop.f32.mrf.mxu1  ;;  %v7892_v27 = vpop.f32.mrf.mxu0 }
 0x203   : > { %v9694_v50 = vadd.f32 %v7932_v48, %v7892_v27 }
 0x204   : > { %v9696_v59 = vpop.f32.mrf.mxu1  ;;  %v1581_v33 = vpop.f32.mrf.mxu0 }
 0x205   : > { %13839 = vst [vmem:[#allocation10_spill] sm:$0xff] %v9694_v50  ;;  %v9698_v44 = vadd.f32 %v1794_v60, %v1581_v33 }
 0x206   : > { %v9700_v18 = vpop.f32.mrf.mxu1  ;;  %v7893_v40 = vpop.f32.mrf.mxu0 }
 0x207   : > { %13840 = vst [vmem:[#allocation11_spill] sm:$0xff] %v9698_v44  ;;  %v9702_v11 = vadd.f32 %v7933_v19, %v7893_v40 }
 0x208   : > { %v9704_v36 = vpop.f32.mrf.mxu1  ;;  %v9706_v31 = vpop.f32.mrf.mxu0 }
 0x209   : > { %13841 = vst [vmem:[#allocation12_spill] sm:$0xff] %v9702_v11 }
 0x20a   : > { %v9708_v53 = vpop.f32.mrf.mxu1  ;;  %v9710_v57 = vpop.f32.mrf.mxu0 }
 0x20c   : > { %v9712_v2 = vpop.f32.mrf.mxu1  ;;  %v9714_v32 = vpop.f32.mrf.mxu0 }
 0x20d   : > { %13842 = vst [vmem:[#allocation13_spill] sm:$0xff] %v9712_v2 }
 0x20e   : > { %v9716_v41 = vpop.f32.mrf.mxu1  ;;  %v7953_v45 = vpop.f32.mrf.mxu0 }
 0x20f   : > { %13843 = vst [vmem:[#allocation14_spill] sm:$0xff] %v9716_v41 }
 0x210   : > { %v9718_v0 = vpop.f32.mrf.mxu1  ;;  %v1946_v58 = vpop.f32.mrf.mxu0 }
 0x211   : > { %13844 = vst [vmem:[#allocation15_spill] sm:$0xff] %v9718_v0 }
 0x212   : > { %v9720_v3 = vpop.f32.mrf.mxu1  ;;  %v7956_v26 = vpop.f32.mrf.mxu0 }
 0x213   : > { %13845 = vst [vmem:[#allocation16_spill] sm:$0xff] %v9720_v3 }
 0x214   : > { %v9722_v56 = vpop.f32.mrf.mxu1  ;;  %v1959_v20 = vpop.f32.mrf.mxu0 }
 0x215   : > { %13846 = vst [vmem:[#allocation17_spill] sm:$0xff] %v9722_v56 }
 0x216   : > { %v9724_v55 = vpop.f32.mrf.mxu1  ;;  %v9726_v35 = vpop.f32.mrf.mxu0 }
 0x217   : > { %13847 = vst [vmem:[#allocation18_spill] sm:$0xff] %v9724_v55 }
 0x218   : > { %v9728_v37 = vpop.f32.mrf.mxu1  ;;  %v1962_v21 = vpop.f32.mrf.mxu0 }
 0x219   : > { %13848 = vst [vmem:[#allocation19_spill] sm:$0xff] %v9728_v37  ;;  %v9762_v37 = vpop.permute.xlu0 %2745 }
 0x21a   : > { %v9730_v10 = vpop.f32.mrf.mxu1  ;;  %v7960_v22 = vpop.f32.mrf.mxu0  ;;  %13860 = vst [vmem:[#allocation31_spill] sm:$0xff] %v9762_v37 }
 0x21b   : > { %13849 = vst [vmem:[#allocation20_spill] sm:$0xff] %v9730_v10  ;;  %v9752_v10 = vpop.permute.xlu1 %2860 }
 0x21c   : > { %v9732_v29 = vpop.f32.mrf.mxu1  ;;  %v1975_v48 = vpop.f32.mrf.mxu0  ;;  %13857 = vst [vmem:[#allocation28_spill] sm:$0xff] %v9752_v10 }
 0x21d   : > { %13850 = vst [vmem:[#allocation21_spill] sm:$0xff] %v9732_v29 }
 0x21e   : > { %v9734_v63 = vpop.f32.mrf.mxu1  ;;  %v7961_v52 = vpop.f32.mrf.mxu0 }
 0x21f   : > { %13851 = vst [vmem:[#allocation22_spill] sm:$0xff] %v9734_v63 }
 0x220   : > { %v9736_v60 = vpop.f32.mrf.mxu1  ;;  %v9738_v7 = vpop.f32.mrf.mxu0 }
 0x221   : > { %13852 = vst [vmem:[#allocation23_spill] sm:$0xff] %v9736_v60 }
 0x222   : > { %v9740_v28 = vpop.f32.mrf.mxu1  ;;  %v9742_v19 = vpop.f32.mrf.mxu0 }
 0x223   : > { %13853 = vst [vmem:[#allocation24_spill] sm:$0xff] %v9740_v28 }
 0x224   : > { %v9744_v27 = vpop.f32.mrf.mxu1  ;;  %v9746_v33 = vpop.f32.mrf.mxu0 }
 0x225   : > { %13854 = vst [vmem:[#allocation25_spill] sm:$0xff] %v9744_v27 }
 0x226   : > { %v9748_v40 = vpop.f32.mrf.mxu1  ;;  %v7965_v54 = vpop.f32.mrf.mxu0 }
 0x227   : > { %13855 = vst [vmem:[#allocation26_spill] sm:$0xff] %v9748_v40  ;;  %v9768_v40 = vpop.permute.xlu1 %2755 }
 0x228   : > { %v9750_v29 = vpop.f32.mrf.mxu1  ;;  %v9754_v63 = vpop.f32.mrf.mxu0  ;;  %13862 = vst [vmem:[#allocation33_spill] sm:$0xff] %v9768_v40 }
 0x229   : > { %13856 = vst [vmem:[#allocation27_spill] sm:$0xff] %v9750_v29 }
 0x22a   : > { %v9756_v60 = vpop.f32.mrf.mxu1  ;;  %v9758_v15 = vpop.f32.mrf.mxu0 }
 0x22b   : > { %13858 = vst [vmem:[#allocation29_spill] sm:$0xff] %v9756_v60  ;;  %v9776_v60 = vpop.permute.xlu0 %2750  ;;  %v9780_v11 = vpop.permute.xlu1 %2765 }
 0x22c   : > { %v9760_v28 = vpop.f32.mrf.mxu1  ;;  %v9764_v27 = vpop.f32.mrf.mxu0  ;;  %13865 = vst [vmem:[#allocation36_spill] sm:$0xff] %v9776_v60  ;;  %13867 = vst [vmem:[#allocation38_spill] sm:$0xff] %v9780_v11  ;;  %v1734_v60 = vadd.f32 %v9604_v25, %v9624_v9  ;;  %v1750_v11 = vadd.f32 %v9626_v38, %v9646_v43  ;;  %v2041_v25 = vadd.f32 %v7953_v45, %v9600_v47 }
 0x22d   : > { %13859 = vst [vmem:[#allocation30_spill] sm:$0xff] %v9760_v28  ;;  %v9811_v43 = vadd.f32 %v7956_v26, %v9612_v51  ;;  %v9826_v47 = vadd.f32 %v7960_v22, %v9634_v12  ;;  %v9829_v51 = vadd.f32 %v1975_v48, %v9636_v1  ;;  %v9847_v1 = vadd.f32 %v9742_v19, %v9650_v4 }
 0x22e   : > { %v9766_v55 = vpop.f32.mrf.mxu1  ;;  %v7969_v56 = vpop.f32.mrf.mxu0  ;;  %v9843_v12 = vadd.f32 %v9738_v7, %v1750_v11  ;;  %v9851_v45 = vadd.f32 %v9746_v33, %v9661_v46  ;;  %v9863_v4 = vadd.f32 %v9758_v15, %v9678_v61  ;;  %v9867_v46 = vadd.f32 %v9764_v27, %v9683_v23  ;;  %v13876_v15 = vld [vmem:[#allocation10_spill] sm:$0xff]  ;;  %v13878_v23 = vld [vmem:[#allocation11_spill] sm:$0xff] }
 0x22f   : > { %13861 = vst [vmem:[#allocation32_spill] sm:$0xff] %v9766_v55  ;;  %v9786_v2 = vpop.permute.xlu0 %2760  ;;  %v9790_v50 = vpop.permute.xlu1 %2775  ;;  %v13881_v27 = vld [vmem:[#allocation14_spill] sm:$0xff] }
 0x230   : > { %v9770_v29 = vpop.f32.mrf.mxu1  ;;  %v9772_v10 = vpop.f32.mrf.mxu0  ;;  %13870 = vst [vmem:[#allocation41_spill] sm:$0xff] %v9786_v2  ;;  %13872 = vst [vmem:[#allocation43_spill] sm:$0xff] %v9790_v50  ;;  %v1782_v2 = vadd.f32 %v9673_v14, %v9690_v39 }
 0x231   : > { %13863 = vst [vmem:[#allocation34_spill] sm:$0xff] %v9770_v29 }
 0x232   : > { %v9774_v3 = vpop.f32.mrf.mxu1  ;;  %v9778_v0 = vpop.f32.mrf.mxu0  ;;  %v9876_v48 = vadd.f32 %v9772_v10, %v1782_v2  ;;  %v13883_v10 = vld [vmem:[#allocation12_spill] sm:$0xff] }
 0x233   : > { %13864 = vst [vmem:[#allocation35_spill] sm:$0xff] %v9774_v3  ;;  %13866 = vst [vmem:[#allocation37_spill] sm:$0xff] %v9778_v0  ;;  %v1718_v3 = vadd.f32 %v9591_v16, %v9602_v34  ;;  %v2040_v16 = vadd.f32 %v9710_v57, %v9593_v49  ;;  %v2038_v34 = vadd.f32 %v9714_v32, %v9598_v24  ;;  %v9840_v32 = vpop.permute.xlu1 %2785 }
 0x234   : > { %v8072_v28 = vpop.f32.mrf.mxu1  ;;  %v9782_v37 = vpop.f32.mrf.mxu0  ;;  %v9821_v49 = vadd.f32 %v9726_v35, %v9622_v62  ;;  %v9823_v24 = vadd.f32 %v1962_v21, %v1734_v60  ;;  %13874 = vst [vmem:[#allocation45_spill] sm:$0xff] %v9840_v32 }
 0x235   : > { %13868 = vst [vmem:[#allocation39_spill] sm:$0xff] %v9782_v37  ;;  %v2039_v9 = vadd.f32 %v1946_v58, %v1718_v3 }
 0x236   : > { %v2545_v41 = vpop.f32.mrf.mxu1  ;;  %v9784_v55 = vpop.f32.mrf.mxu0 }
 0x237   : > { %13869 = vst [vmem:[#allocation40_spill] sm:$0xff] %v9784_v55  ;;  %v1766_v55 = vadd.f32 %v9648_v42, %v9671_v13  ;;  %v9814_v42 = vadd.f32 %v1959_v20, %v9614_v8  ;;  %v9834_v8 = vld [vmem:[%s13664_s8] ss:$0 sm:$0xff]  ;;  %v9889_v2 = vpop.permute.xlu1 %2795 }
 0x238   : > { %v8073_v40 = vpop.f32.mrf.mxu1  ;;  %v9788_v29 = vpop.f32.mrf.mxu0  ;;  %13882 = vst [vmem:[#allocation10_spill] sm:$0xff] %v9889_v2 }
 0x239   : > { %13871 = vst [vmem:[#allocation42_spill] sm:$0xff] %v9788_v29  ;;  %v1798_v29 = vadd.f32 %v9692_v30, %v9706_v31  ;;  %v9817_v30 = vpop.permute.xlu0 %2770  ;;  %v9859_v20 = vadd.f32 %v9754_v63, %v1766_v55 }
 0x23a   : > { %v2548_v44 = vpop.f32.mrf.mxu1  ;;  %v8032_v37 = vpop.f32.mrf.mxu0  ;;  %13873 = vst [vmem:[#allocation44_spill] sm:$0xff] %v9817_v30  ;;  %v13877_v61 = vld [vmem:[#allocation37_spill] sm:$0xff] }
 0x23b   : > { %v2361_v50 = vadd.f32 %v8032_v37, %v9696_v59  ;;  %v9837_v59 = vadd.f32 %v7961_v52, %v9644_v5  ;;  %v9854_v5 = vadd.f32 %v7965_v54, %v9666_v17  ;;  %v9870_v54 = vadd.f32 %v7969_v56, %v9688_v6  ;;  %v13880_v56 = vld [vmem:[#allocation13_spill] sm:$0xff] }
 0x23c   : > { %v8076_v0 = vpop.f32.mrf.mxu1  ;;  %v2352_v38 = vpop.f32.mrf.mxu0  ;;  %v9880_v63 = vadd.f32 %v13877_v61, %v13876_v15  ;;  %v13879_v52 = vld [vmem:[#allocation39_spill] sm:$0xff]  ;;  %v13889_v15 = vld [vmem:[#allocation41_spill] sm:$0xff] }
 0x23d   : > { %v2642_v13 = vadd.f32 %v8072_v28, %v2361_v50  ;;  %v2353_v14 = vadd.f32 %v2352_v38, %v9700_v18  ;;  %v9873_v55 = vpop.permute.xlu0 %2780  ;;  %v9884_v6 = vadd.f32 %v13879_v52, %v13878_v23  ;;  %v13891_v52 = vld [vmem:[#allocation16_spill] sm:$0xff] }
 0x23e   : > { %v2561_v39 = vpop.f32.mrf.mxu1  ;;  %v8033_v50 = vpop.f32.mrf.mxu0  ;;  %13875 = vst [vmem:[#allocation46_spill] sm:$0xff] %v9873_v55 }
 0x23f   : > { %v2666_v18 = vmax.f32 %v2040_v16, %v2642_v13  ;;  %v2640_v62 = vadd.f32 %v2545_v41, %v2353_v14  ;;  %v2364_v31 = vadd.f32 %v8033_v50, %v9704_v36  ;;  %v13884_v16 = vld [vmem:[#allocation40_spill] sm:$0xff]  ;;  %v13886_v50 = vld [vmem:[#allocation33_spill] sm:$0xff] }
 0x240   : > { %v8077_v57 = vpop.f32.mrf.mxu1  ;;  %v2355_v41 = vpop.f32.mrf.mxu0 }
 0x241   : > { %v2697_v36 = vadd.f32 %v9834_v8, %v2666_v18  ;;  %v2664_v58 = vmax.f32 %v2038_v34, %v2640_v62  ;;  %v2643_v3 = vadd.f32 %v8073_v40, %v2364_v31  ;;  %v2356_v26 = vadd.f32 %v2355_v41, %v9708_v53  ;;  %v13887_v41 = vld [vmem:[#allocation15_spill] sm:$0xff]  ;;  %v9913_v23 = vpop.permute.xlu0 %2790 }
 0x242   : > { %v2564_v11 = vpop.f32.mrf.mxu1  ;;  %v8036_v17 = vpop.f32.mrf.mxu0  ;;  %v9893_v34 = vadd.f32 %v13884_v16, %v13883_v10  ;;  %13890 = vst [vmem:[#allocation37_spill] sm:$0xff] %v9913_v23 }
 0x243   : > { %v2721_v35 = vmax.f32 %v2697_v36, 0.0  ;;  %v2695_v37 = vadd.f32 %v9834_v8, %v2664_v58  ;;  %v2667_v53 = vmax.f32 %v2041_v25, %v2643_v3  ;;  %v2641_v21 = vadd.f32 %v2548_v44, %v2356_v26  ;;  %v13885_v25 = vld [vmem:[#allocation42_spill] sm:$0xff]  ;;  %v9925_v16 = vpop.permute.xlu1 %2805 }
 0x244   : > { %v8080_v22 = vpop.f32.mrf.mxu1  ;;  %v2377_v60 = vadd.f32 %v8036_v17, %v13880_v56  ;;  %v2368_v7 = vpop.f32.mrf.mxu0  ;;  %v9896_v38 = vadd.f32 %v13885_v25, %v1798_v29  ;;  %v13888_v17 = vld [vmem:[#allocation31_spill] sm:$0xff]  ;;  %13894 = vst [vmem:[#allocation11_spill] sm:$0xff] %v9925_v16 }
 0x245   : > { %v2719_v28 = vmax.f32 %v2695_v37, 0.0  ;;  %v2698_v44 = vadd.f32 %v9834_v8, %v2667_v53  ;;  %v2665_v19 = vmax.f32 %v2039_v9, %v2641_v21  ;;  %v2369_v33 = vadd.f32 %v2368_v7, %v13881_v27 }
 0x246   : > { %v2577_v40 = vpop.f32.mrf.mxu1  ;;  %v2646_v13 = vadd.f32 %v8076_v0, %v2377_v60  ;;  %v8037_v14 = vpop.f32.mrf.mxu0  ;;  %v9899_v18 = vmul.f32 %v13886_v50, %v2721_v35 }
 0x247   : > { %v2722_v62 = vmax.f32 %v2698_v44, 0.0  ;;  %v2696_v9 = vadd.f32 %v9834_v8, %v2665_v19  ;;  %v2644_v31 = vadd.f32 %v2561_v39, %v2369_v33  ;;  %v2380_v36 = vadd.f32 %v8037_v14, %v13887_v41  ;;  %v13893_v33 = vld [vmem:[#allocation36_spill] sm:$0xff] }
 0x248   : > { %v8081_v58 = vpop.f32.mrf.mxu1  ;;  %v2670_v3 = vmax.f32 %v9811_v43, %v2646_v13  ;;  %v2371_v26 = vpop.f32.mrf.mxu0  ;;  %v9905_v37 = vmul.f32 %v13888_v17, %v2719_v28  ;;  %v2938_v29 = vrot.slane %v9899_v18, 1 }
 0x249   : > { %v2720_v53 = vmax.f32 %v2696_v9, 0.0  ;;  %v2668_v35 = vmax.f32 %v9814_v42, %v2644_v31  ;;  %v2647_v21 = vadd.f32 %v8077_v57, %v2380_v36  ;;  %v9911_v61 = vmul.f32 %v13889_v15, %v2722_v62  ;;  %v13892_v57 = vld [vmem:[#allocation17_spill] sm:$0xff]  ;;  %v13895_v36 = vld [vmem:[#allocation18_spill] sm:$0xff] }
 0x24a   : > { %v2580_v39 = vpop.f32.mrf.mxu1  ;;  %v2701_v43 = vadd.f32 %v9834_v8, %v2670_v3  ;;  %v2372_v56 = vadd.f32 %v2371_v26, %v13891_v52  ;;  %v8040_v60 = vpop.f32.mrf.mxu0  ;;  %v13689_v28 = vrot.slane %v9905_v37, 1 }
 0x24b   : > { %v2699_v44 = vadd.f32 %v9834_v8, %v2668_v35  ;;  %v2671_v42 = vmax.f32 %v9821_v49, %v2647_v21  ;;  %v2393_v19 = vadd.f32 %v8040_v60, %v13892_v57  ;;  %v9923_v10 = vmul.f32 %v13893_v33, %v2720_v53  ;;  %v9948_v57 = vpop.permute.xlu0 %2800 }
 0x24c   : > { %v8084_v27 = vpop.f32.mrf.mxu1  ;;  %v2725_v25 = vmax.f32 %v2701_v43, 0.0  ;;  %v2645_v13 = vadd.f32 %v2564_v11, %v2372_v56  ;;  %v2384_v14 = vpop.f32.mrf.mxu0  ;;  %v2939_v62 = vrot.slane %v9911_v61, 1  ;;  %v9930_v9 = vpack.c.bf16 %v9911_v61, %v9899_v18  ;;  %v13896_v56 = vld [vmem:[#allocation38_spill] sm:$0xff]  ;;  %13897 = vst [vmem:[#allocation39_spill] sm:$0xff] %v9948_v57 }
 0x24d   : > { %v2723_v31 = vmax.f32 %v2699_v44, 0.0  ;;  %v9933_v49 = vadd.f32 %v9834_v8, %v2671_v42  ;;  %v2650_v41 = vadd.f32 %v8080_v22, %v2393_v19  ;;  %v2385_v3 = vadd.f32 %v2384_v14, %v13895_v36  ;;  %v13898_v19 = vld [vmem:[#allocation19_spill] sm:$0xff]  ;;  %v13899_v36 = vld [vmem:[#allocation9_spill] sm:$0xff] }
 0x24e   : > { %v2593_v26 = vpop.f32.mrf.mxu1  ;;  %v2669_v53 = vmax.f32 %v9823_v24, %v2645_v13  ;;  %v8041_v35 = vpop.f32.mrf.mxu0  ;;  %v9940_v21 = vpack.c.bf16 %v9923_v10, %v9905_v37  ;;  %v2937_v43 = vrot.slane %v9923_v10, 1  ;;  %v2980_v15 = vsel %vm1252_vm2, %v2938_v29, %v2939_v62 }
 0x24f   : > { %v2726_v52 = vmax.f32 %v9933_v49, 0.0  ;;  %v9945_v60 = vmul.f32 %v13896_v56, %v2723_v31  ;;  %v2674_v22 = vmax.f32 %v9826_v47, %v2650_v41  ;;  %v2648_v44 = vadd.f32 %v2577_v40, %v2385_v3  ;;  %v13900_v49 = vld [vmem:[#allocation20_spill] sm:$0xff] }
 0x250   : > { %v8085_v42 = vpop.f32.mrf.mxu1  ;;  %v2700_v24 = vadd.f32 %v9834_v8, %v2669_v53  ;;  %v2396_v13 = vadd.f32 %v8041_v35, %v13898_v19  ;;  %3251 = vmatprep.mubr.bf16.mxu0 %v9940_v21  ;;  %v2387_v14 = vpop.f32.mrf.mxu0  ;;  %v2981_v0 = vsel %vm1252_vm2, %v2937_v43, %v2938_v29  ;;  %v2982_v31 = vsel %vm1252_vm2, %v13689_v28, %v2937_v43 }
 0x251   : > { %v9960_v47 = vadd.f32 %v9834_v8, %v2674_v22  ;;  %v2672_v40 = vmax.f32 %v9829_v51, %v2648_v44  ;;  %v2388_v41 = vadd.f32 %v2387_v14, %v13900_v49  ;;  %v2986_v53 = vpack.c.bf16 %v2981_v0, %v2982_v31  ;;  %v9964_v35 = vpop.permute.xlu1 %2815  ;;  %v13902_v51 = vld [vmem:[#allocation21_spill] sm:$0xff] }
 0x252   : > { %v2596_v3 = vpop.f32.mrf.mxu1  ;;  %13901 = vst [vmem:[#allocation13_spill] sm:$0xff] %v9964_v35  ;;  %v2724_v19 = vmax.f32 %v2700_v24, 0.0  ;;  %v2651_v7 = vadd.f32 %v8081_v58, %v2396_v13  ;;  %v8044_v11 = vpop.f32.mrf.mxu0  ;;  %v2940_v56 = vrot.slane %v9945_v60, 1  ;;  %v13903_v13 = vld [vmem:[#allocation43_spill] sm:$0xff]  ;;  %vm2911_vm5 = vcmp.lt.s32.totalorder %v13899_v36, 1 }
 0x253   : > { %v2703_v22 = vadd.f32 %v9834_v8, %v2672_v40  ;;  %v2649_v28 = vadd.f32 %v2580_v39, %v2388_v41  ;;  %v2409_v44 = vadd.f32 %v8044_v11, %v13902_v51  ;;  %8110 = vmatprep.mubr.bf16.mxu1 %v2986_v53  ;;  %v9979_v29 = vmul.f32 %v13903_v13, %v2725_v25  ;;  %v13904_v41 = vld [vmem:[#allocation22_spill] sm:$0xff]  ;;  %v9983_v51 = vpop.permute.xlu0 %2810 }
 0x254   : > { %v8088_v14 = vpop.f32.mrf.mxu1  ;;  %v2675_v0 = vmax.f32 %v9837_v59, %v2651_v7  ;;  %v2400_v31 = vpop.f32.mrf.mxu0  ;;  %v2979_v58 = vsel %vm1252_vm2, %v2939_v62, %v2940_v56  ;;  %v9976_v24 = vmul.f32 %v9817_v30, %v2724_v19  ;;  %13905 = vst [vmem:[#allocation14_spill] sm:$0xff] %v9983_v51 }
 0x255   : > { %v2727_v49 = vmax.f32 %v2703_v22, 0.0  ;;  %v2673_v40 = vmax.f32 %v9843_v12, %v2649_v28  ;;  %v2654_v39 = vadd.f32 %v8084_v27, %v2409_v44  ;;  %v2401_v11 = vadd.f32 %v2400_v31, %v13904_v41  ;;  %v13906_v12 = vld [vmem:[#allocation23_spill] sm:$0xff]  ;;  %v9991_v44 = vpop.permute.xlu1 %2825 }
 0x256   : > { %v2609_v53 = vpop.f32.mrf.mxu1  ;;  %v2706_v59 = vadd.f32 %v9834_v8, %v2675_v0  ;;  %v8045_v7 = vpop.f32.mrf.mxu0  ;;  %v2989_v43 = vpack.c.bf16 %v2979_v58, %v2980_v15  ;;  %v2941_v62 = vrot.slane %v9976_v24, 1  ;;  %v2942_v19 = vrot.slane %v9979_v29, 1  ;;  %13907 = vst [vmem:[#allocation12_spill] sm:$0xff] %v9991_v44 }
 0x257   : > { %v2704_v25 = vadd.f32 %v9834_v8, %v2673_v40  ;;  %v2678_v22 = vmax.f32 %v9847_v1, %v2654_v39  ;;  %v2652_v13 = vadd.f32 %v2593_v26, %v2401_v11  ;;  %v2412_v28 = vadd.f32 %v8045_v7, %v13906_v12 }
 0x258   : > { %v8089_v27 = vpop.f32.mrf.mxu1  ;;  %v2730_v31 = vmax.f32 %v2706_v59, 0.0  ;;  %8111 = vmatmul.mubr.bf16.vlgmr.msra.gmra.mxu1 %v2989_v43  ;;  %v2403_v41 = vpop.f32.mrf.mxu0  ;;  %v2977_v15 = vsel %vm1252_vm2, %v2941_v62, %v2942_v19  ;;  %v2978_v0 = vsel %vm1252_vm2, %v2940_v56, %v2941_v62  ;;  %v9998_v58 = vmul.f32 %v9873_v55, %v2726_v52  ;;  %v13908_v43 = vld [vmem:[#allocation24_spill] sm:$0xff] }
 0x259   : > { %v2728_v40 = vmax.f32 %v2704_v25, 0.0  ;;  %v10001_v1 = vadd.f32 %v9834_v8, %v2678_v22  ;;  %v2676_v26 = vmax.f32 %v9851_v45, %v2652_v13  ;;  %v2655_v39 = vadd.f32 %v8085_v42, %v2412_v28  ;;  %v13909_v22 = vld [vmem:[#allocation25_spill] sm:$0xff]  ;;  %v10015_v42 = vpop.permute.xlu0 %2820 }
 0x25a   : > { %v10005_v11 = vmul.f32 %v9948_v57, %v2730_v31  ;;  %v2404_v59 = vadd.f32 %v2403_v41, %v13908_v43  ;;  %v8048_v7 = vpop.f32.mrf.mxu0  ;;  %v2612_v12 = vpop.f32.mrf.mxu1  ;;  %v2992_v30 = vpack.c.bf16 %v2977_v15, %v2978_v0  ;;  %v10009_v56 = vmul.f32 %v9840_v32, %v2727_v49  ;;  %13910 = vst [vmem:[#allocation40_spill] sm:$0xff] %v10015_v42  ;;  %v13911_v43 = vld [vmem:[#allocation26_spill] sm:$0xff] }
 0x25b   : > { %v2707_v62 = vadd.f32 %v9834_v8, %v2676_v26  ;;  %v2679_v25 = vmax.f32 %v9854_v5, %v2655_v39  ;;  %v2425_v45 = vadd.f32 %v8048_v7, %v13909_v22  ;;  %v2943_v31 = vrot.slane %v9998_v58, 1  ;;  %v10024_v39 = vpop.permute.xlu1 %2835 }
 0x25c   : > { %v2653_v13 = vadd.f32 %v2596_v3, %v2404_v59  ;;  %8114 = vmatprep.mubr.bf16.mxu1 %v2992_v30  ;;  %v2416_v28 = vpop.f32.mrf.mxu0  ;;  %v2944_v41 = vrot.slane %v10009_v56, 1  ;;  %v10020_v49 = vmul.f32 %v9913_v23, %v2728_v40  ;;  %13912 = vst [vmem:[#allocation42_spill] sm:$0xff] %v10024_v39  ;;  %v8092_v3 = vpop.f32.mrf.mxu1  ;;  %v13913_v40 = vmax.f32 %v9960_v47, 0.0 }
 0x25d   : > { %v2731_v15 = vmax.f32 %v2707_v62, 0.0  ;;  %v2710_v0 = vadd.f32 %v9834_v8, %v2679_v25  ;;  %v2658_v26 = vadd.f32 %v8088_v14, %v2425_v45  ;;  %v2417_v5 = vadd.f32 %v2416_v28, %v13911_v43  ;;  %v13914_v28 = vld [vmem:[#allocation27_spill] sm:$0xff] }
 0x25e   : > { %v2677_v7 = vmax.f32 %v9859_v20, %v2653_v13  ;;  %v8049_v30 = vpop.f32.mrf.mxu0  ;;  %v2975_v59 = vsel %vm1252_vm2, %v2943_v31, %v2944_v41  ;;  %v2976_v22 = vsel %vm1252_vm2, %v2942_v19, %v2943_v31  ;;  %v10034_v62 = vmul.f32 %v9889_v2, %v13913_v40 }
 0x25f   : > { %v2734_v14 = vmax.f32 %v2710_v0, 0.0  ;;  %v10037_v25 = vmul.f32 %v9925_v16, %v2731_v15  ;;  %v2682_v45 = vmax.f32 %v9863_v4, %v2658_v26  ;;  %v2656_v20 = vadd.f32 %v2609_v53, %v2417_v5  ;;  %v13915_v15 = vld [vmem:[#allocation29_spill] sm:$0xff]  ;;  %v10051_v4 = vpop.permute.xlu0 %2830  ;;  %v2625_v5 = vpop.f32.mrf.mxu1 }
 0x260   : > { %v2708_v13 = vadd.f32 %v9834_v8, %v2677_v7  ;;  %v2428_v43 = vadd.f32 %v8049_v30, %v13914_v28  ;;  %v2995_v52 = vpack.c.bf16 %v2975_v59, %v2976_v22  ;;  %v2419_v57 = vpop.f32.mrf.mxu0  ;;  %v2945_v19 = vrot.slane %v10020_v49, 1  ;;  %13916 = vst [vmem:[#allocation15_spill] sm:$0xff] %v10051_v4 }
 0x261   : > { %v10044_v47 = vadd.f32 %v9834_v8, %v2682_v45  ;;  %v2680_v31 = vmax.f32 %v9867_v46, %v2656_v20  ;;  %v10048_v0 = vmul.f32 %v10015_v42, %v2734_v14  ;;  %v2420_v40 = vadd.f32 %v2419_v57, %v13915_v15  ;;  %v13917_v45 = vld [vmem:[#allocation30_spill] sm:$0xff] }
 0x262   : > { %v2732_v53 = vmax.f32 %v2708_v13, 0.0  ;;  %v2659_v26 = vadd.f32 %v8089_v27, %v2428_v43  ;;  %8115 = vmatmul.mubr.bf16.gmra.mxu1 %v2995_v52  ;;  %v8052_v7 = vpop.f32.mrf.mxu0  ;;  %v2946_v30 = vrot.slane %v10034_v62, 1  ;;  %v2974_v59 = vsel %vm1252_vm2, %v2944_v41, %v2945_v19  ;;  %v10064_v43 = vpop.permute.xlu1 %2845 }
 0x263   : > { %v2711_v46 = vadd.f32 %v9834_v8, %v2680_v31  ;;  %v2657_v14 = vadd.f32 %v2612_v12, %v2420_v40  ;;  %v2441_v20 = vadd.f32 %v8052_v7, %v13917_v45  ;;  %v2947_v52 = vrot.slane %v10005_v11, 1  ;;  %13918 = vst [vmem:[#allocation16_spill] sm:$0xff] %v10064_v43  ;;  %v8093_v40 = vpop.f32.mrf.mxu1  ;;  %v13919_v7 = vld [vmem:[#allocation32_spill] sm:$0xff] }
 0x264   : > { %v2683_v57 = vmax.f32 %v9870_v54, %v2659_v26  ;;  %v2973_v27 = vsel %vm1252_vm2, %v2945_v19, %v2946_v30  ;;  %v2432_v13 = vpop.f32.mrf.mxu0  ;;  %v2948_v28 = vrot.slane %v10037_v25, 1 }
 0x265   : > { %v2735_v41 = vmax.f32 %v2711_v46, 0.0  ;;  %v2681_v15 = vmax.f32 %v9876_v48, %v2657_v14  ;;  %v2662_v22 = vadd.f32 %v8092_v3, %v2441_v20  ;;  %v2998_v31 = vpack.c.bf16 %v2973_v27, %v2974_v59  ;;  %v13920_v3 = vld [vmem:[#allocation34_spill] sm:$0xff]  ;;  %v10079_v14 = vpop.permute.xlu0 %2840 }
 0x266   : > { %v2714_v12 = vadd.f32 %v9834_v8, %v2683_v57  ;;  %v2433_v54 = vadd.f32 %v2432_v13, %v13919_v7  ;;  %v8053_v26 = vpop.f32.mrf.mxu0  ;;  %v2971_v19 = vsel %vm1252_vm2, %v2947_v52, %v2948_v28  ;;  %v2972_v45 = vsel %vm1252_vm2, %v2946_v30, %v2947_v52  ;;  %13921 = vst [vmem:[#allocation17_spill] sm:$0xff] %v10079_v14  ;;  %v13922_v7 = vld [vmem:[#allocation35_spill] sm:$0xff] }
 0x267   : > { %v10074_v42 = vmul.f32 %v9991_v44, %v2735_v41  ;;  %v2712_v46 = vadd.f32 %v9834_v8, %v2681_v15  ;;  %v2686_v48 = vmax.f32 %v9880_v63, %v2662_v22  ;;  %8118 = vmatprep.mubr.bf16.mxu1 %v2998_v31  ;;  %v2444_v59 = vadd.f32 %v8053_v26, %v13920_v3  ;;  %v2628_v22 = vpop.f32.mrf.mxu1 }
 0x268   : > { %v2738_v20 = vmax.f32 %v2714_v12, 0.0  ;;  %v2660_v57 = vadd.f32 %v2625_v5, %v2433_v54  ;;  %v3001_v27 = vpack.c.bf16 %v2971_v19, %v2972_v45  ;;  %v2435_v13 = vpop.f32.mrf.mxu0  ;;  %v10083_v30 = vmul.f32 %v9983_v51, %v2732_v53  ;;  %v10097_v54 = vpop.permute.xlu1 %2855 }
 0x269   : > { %v2736_v52 = vmax.f32 %v2712_v46, 0.0  ;;  %v2717_v41 = vadd.f32 %v9834_v8, %v2686_v48  ;;  %v2663_v15 = vadd.f32 %v8093_v40, %v2444_v59  ;;  %v2436_v63 = vadd.f32 %v2435_v13, %v13922_v7  ;;  %13924 = vst [vmem:[#allocation18_spill] sm:$0xff] %v10097_v54 }
 0x26a   : > { %v2684_v31 = vmax.f32 %v9884_v6, %v2660_v57  ;;  %8119 = vmatmul.mubr.bf16.gmra.mxu1 %v3001_v27  ;;  %v10089_v26 = vmul.f32 %v10079_v14, %v2738_v20  ;;  %v13923_v5 = vmax.f32 %v10001_v1, 0.0  ;;  %v2949_v53 = vrot.slane %v10083_v30, 1 }
 0x26b   : > { %v2741_v19 = vmax.f32 %v2717_v41, 0.0  ;;  %v2687_v40 = vmax.f32 %v9893_v34, %v2663_v15  ;;  %v2661_v45 = vadd.f32 %v2628_v22, %v2436_v63  ;;  %v2951_v46 = vrot.slane %v10048_v0, 1 }
 0x26c   : > { %v10094_v12 = vmul.f32 %v9964_v35, %v13923_v5  ;;  %v2715_v6 = vadd.f32 %v9834_v8, %v2684_v31  ;;  %v2970_v1 = vsel %vm1252_vm2, %v2948_v28, %v2949_v53  ;;  %v2952_v3 = vrot.slane %v10074_v42, 1 }
 0x26d   : > { %v2718_v59 = vadd.f32 %v9834_v8, %v2687_v40  ;;  %v2685_v20 = vmax.f32 %v9896_v38, %v2661_v45  ;;  %v10109_v57 = vmul.f32 %v10097_v54, %v2741_v19  ;;  %v10112_v34 = vmul.f32 %v10051_v4, %v2736_v52  ;;  %v13926_v19 = vld [vmem:[#allocation28_spill] sm:$0xff] }
 0x26e   : > { %v2950_v48 = vrot.slane %v10094_v12, 1  ;;  %v2739_v27 = vmax.f32 %v2715_v6, 0.0  ;;  %v2967_v41 = vsel %vm1252_vm2, %v2951_v46, %v2952_v3  ;;  %v13925_v52 = vmax.f32 %v10044_v47, 0.0 }
 0x26f   : > { %v2742_v15 = vmax.f32 %v2718_v59, 0.0  ;;  %v2716_v7 = vadd.f32 %v9834_v8, %v2685_v20  ;;  %v2953_v5 = vrot.slane %v10112_v34, 1  ;;  %v13927_v8 = vrot.slane %v9923_v10, 7 }
 0x270   : > { %v2969_v13 = vsel %vm1252_vm2, %v2949_v53, %v2950_v48  ;;  %v2968_v28 = vsel %vm1252_vm2, %v2950_v48, %v2951_v46  ;;  %v10122_v22 = vmul.f32 %v10064_v43, %v2739_v27  ;;  %v10127_v31 = vmul.f32 %v10024_v39, %v13925_v52  ;;  %v10141_v48 = vpop.permute.xlu0 %2850 }
 0x271   : > { %v3004_v38 = vpack.c.bf16 %v2969_v13, %v2970_v1  ;;  %v3007_v63 = vpack.c.bf16 %v2967_v41, %v2968_v28  ;;  %v2955_v53 = vrot.slane %v10089_v26, 1  ;;  %v10132_v40 = vmul.f32 %v13926_v19, %v2742_v15  ;;  %13929 = vst [vmem:[#allocation19_spill] sm:$0xff] %v10141_v48 }
 0x272   : > { %v2740_v45 = vmax.f32 %v2716_v7, 0.0  ;;  %v13928_v46 = vrot.slane %v9905_v37, 7  ;;  %v2958_v47 = vrot.slane %v10109_v57, 1  ;;  %v2954_v1 = vrot.slane %v10127_v31, 1 }
 0x273   : > { %8122 = vmatprep.mubr.bf16.mxu1 %v3004_v38  ;;  %v2966_v59 = vsel %vm1252_vm2, %v2952_v3, %v2953_v5  ;;  %v2956_v20 = vrot.slane %v10122_v22, 1  ;;  %v2890_v27 = vrot.slane %v9911_v61, 7  ;;  %v2910_v13 = vrot.slane %v10132_v40, 7 }
 0x274   : > { %v2934_v6 = vsel %vm2911_vm5, %v13928_v46, %v13927_v8  ;;  %8123 = vmatmul.mubr.bf16.gmra.mxu1 %v3007_v63  ;;  %v10150_v41 = vmul.f32 %v10141_v48, %v2740_v45  ;;  %v2959_v28 = vrot.slane %v10132_v40, 1  ;;  %v13930_v15 = vrot.slane %v9899_v18, 7 }
 0x275   : > { %v13931_v7 = vmov %v13927_v8  ;;  %v2965_v3 = vsel %vm1252_vm2, %v2953_v5, %v2954_v1  ;;  %v2963_v61 = vsel %vm1252_vm2, %v2955_v53, %v2956_v20  ;;  %v2964_v63 = vsel %vm1252_vm2, %v2954_v1, %v2955_v53 }
 0x276   : > { %v2933_v38 = vsel %vm2911_vm5, %v13931_v7, %v13930_v15  ;;  %v13932_v52 = vmov %v13930_v15  ;;  %v3010_v8 = vpack.c.bf16 %v2965_v3, %v2966_v59  ;;  %v3013_v46 = vpack.c.bf16 %v2963_v61, %v2964_v63 }
 0x277   : > { %v2932_v45 = vsel %vm2911_vm5, %v13932_v52, %v2890_v27  ;;  %v13933_v10 = vrot.slane %v9905_v37, 7  ;;  %v2957_v15 = vrot.slane %v10150_v41, 1  ;;  %v2960_v53 = vsel %vm1252_vm2, %v2958_v47, %v2959_v28 }
 0x278   : > { %v13934_v18 = vrot.slane %v9905_v37, 1  ;;  %v2987_v59 = vpack.c.bf16 %v2932_v45, %v2933_v38  ;;  %8126 = vmatprep.mubr.bf16.mxu1 %v3010_v8  ;;  %v10190_v37 = vpack.c.bf16 %v9998_v58, %v9979_v29  ;;  %v2895_v38 = vrot.slane %v10009_v56, 7 }
 0x279   : > { %v2935_v5 = vsel %vm2911_vm5, %v2910_v13, %v13933_v10  ;;  %v2961_v3 = vsel %vm1252_vm2, %v2957_v15, %v2958_v47  ;;  %v2962_v61 = vsel %vm1252_vm2, %v2956_v20, %v2957_v15  ;;  %v2892_v10 = vrot.slane %v9976_v24, 7 }
 0x27a   : > { %v2984_v7 = vpack.c.bf16 %v2934_v6, %v2935_v5  ;;  %v2983_v1 = vsel %vm1252_vm2, %v2959_v28, %v13934_v18  ;;  %v3016_v52 = vpack.c.bf16 %v2961_v3, %v2962_v61  ;;  %v2891_v6 = vrot.slane %v9945_v60, 7 }
 0x27b   : > { %v3019_v63 = vpack.c.bf16 %v2983_v1, %v2960_v53  ;;  %v2893_v28 = vrot.slane %v9979_v29, 7  ;;  %v2894_v47 = vrot.slane %v9998_v58, 7  ;;  %v2896_v8 = vrot.slane %v10020_v49, 7 }
 0x27c   : > { %3252 = vmatmul.mubr.bf16.vlgmr.msra.gmra.mxu0 %v2984_v7  ;;  %8127 = vmatmul.mubr.bf16.gmra.mxu1 %v3013_v46  ;;  %v2930_v20 = vsel %vm2911_vm5, %v2891_v6, %v2892_v10  ;;  %v2931_v45 = vsel %vm2911_vm5, %v2890_v27, %v2891_v6  ;;  %v10203_v5 = vpack.c.bf16 %v10005_v11, %v10034_v62  ;;  %v2897_v53 = vrot.slane %v10034_v62, 7 }
 0x27d   : > { %3259 = vmatprep.mubr.bf16.mxu0 %v9930_v9  ;;  %8130 = vmatprep.mubr.bf16.mxu1 %v3016_v52  ;;  %v2990_v15 = vpack.c.bf16 %v2930_v20, %v2931_v45  ;;  %v2928_v29 = vsel %vm2911_vm5, %v2893_v28, %v2894_v47  ;;  %v2929_v58 = vsel %vm2911_vm5, %v2892_v10, %v2893_v28  ;;  %v2898_v18 = vrot.slane %v10005_v11, 7 }
 0x27e   : > { %v2927_v46 = vsel %vm2911_vm5, %v2894_v47, %v2895_v38  ;;  %v2993_v7 = vpack.c.bf16 %v2928_v29, %v2929_v58  ;;  %v2926_v27 = vsel %vm2911_vm5, %v2895_v38, %v2896_v8  ;;  %v10217_v1 = vpack.c.bf16 %v9976_v24, %v9945_v60 }
 0x27f   : > { %v2996_v3 = vpack.c.bf16 %v2926_v27, %v2927_v46  ;;  %v2899_v61 = vrot.slane %v10037_v25, 7  ;;  %v2900_v52 = vrot.slane %v10083_v30, 7  ;;  %v2924_v6 = vsel %vm2911_vm5, %v2897_v53, %v2898_v18 }
 0x280   : > { %v2925_v10 = vsel %vm2911_vm5, %v2896_v8, %v2897_v53  ;;  %v10227_v62 = vpack.c.bf16 %v10048_v0, %v10094_v12  ;;  %v2901_v11 = vrot.slane %v10094_v12, 7  ;;  %v2902_v47 = vrot.slane %v10048_v0, 7 }
 0x281   : > { %v2999_v28 = vpack.c.bf16 %v2924_v6, %v2925_v10  ;;  %v2922_v60 = vsel %vm2911_vm5, %v2899_v61, %v2900_v52  ;;  %v2923_v24 = vsel %vm2911_vm5, %v2898_v18, %v2899_v61  ;;  %v2903_v45 = vrot.slane %v10074_v42, 7 }
 0x282   : > { %v3002_v38 = vpack.c.bf16 %v2922_v60, %v2923_v24  ;;  %v2921_v20 = vsel %vm2911_vm5, %v2900_v52, %v2901_v11  ;;  %v2920_v12 = vsel %vm2911_vm5, %v2901_v11, %v2902_v47  ;;  %v2904_v8 = vrot.slane %v10112_v34, 7 }
 0x283   : > { %v10244_v29 = vpack.c.bf16 %v10089_v26, %v10127_v31  ;;  %v2905_v0 = vrot.slane %v10127_v31, 7  ;;  %v2919_v58 = vsel %vm2911_vm5, %v2902_v47, %v2903_v45  ;;  %v2906_v46 = vrot.slane %v10089_v26, 7 }
 0x284   : > { %3260 = vmatmul.mubr.bf16.gmra.mxu0 %v2987_v59  ;;  %8131 = vmatmul.mubr.bf16.gmra.mxu1 %v3019_v63  ;;  %v3005_v59 = vpack.c.bf16 %v2920_v12, %v2921_v20  ;;  %v10252_v27 = vpack.c.bf16 %v10150_v41, %v10122_v22  ;;  %v2918_v53 = vsel %vm2911_vm5, %v2903_v45, %v2904_v8  ;;  %v2907_v61 = vrot.slane %v10122_v22, 7  ;;  %v8304_v20 = vld [vmem:[%s13667_s11 + $0x90] sm:$0xff]   ;;  %v8305_v45 = vld [vmem:[%s13667_s11 + $0xc8] sm:$0xff]   ;;  %v8307_v12 = vld [vmem:[%s13667_s11 + $0xc0] sm:$0xff]  }
 0x285   : > { %3267 = vmatprep.mubr.bf16.mxu0 %v10217_v1  ;;  %v2917_v18 = vsel %vm2911_vm5, %v2904_v8, %v2905_v0  ;;  %v2908_v31 = vrot.slane %v10150_v41, 7  ;;  %v3008_v63 = vpack.c.bf16 %v2918_v53, %v2919_v58  ;;  %v2916_v52 = vsel %vm2911_vm5, %v2905_v0, %v2906_v46  ;;  %v8308_v8 = vld [vmem:[%s13667_s11 + $0x80] sm:$0xff]   ;;  %v8309_v0 = vld [vmem:[%s13667_s11 + $0x78] sm:$0xff]   ;;  %v8311_v58 = vld [vmem:[%s13667_s11 + $0x70] sm:$0xff]  }
 0x286   : > { %v10264_v26 = vpack.c.bf16 %v10132_v40, %v10109_v57  ;;  %v2909_v6 = vrot.slane %v10109_v57, 7  ;;  %v3011_v10 = vpack.c.bf16 %v2916_v52, %v2917_v18  ;;  %v2915_v60 = vsel %vm2911_vm5, %v2906_v46, %v2907_v61  ;;  %7610 = vmatprep.subr.bf16.mxu1 %v8309_v0  ;;  %v8312_v46 = vld [vmem:[%s13667_s11 + $0x30] sm:$0xff]   ;;  %v8313_v53 = vld [vmem:[%s13667_s11 + $0x68] sm:$0xff]   ;;  %v8318_v52 = vld [vmem:[%s13667_s11 + $0x18] sm:$0xff]  }
 0x287   : > { %v2914_v11 = vsel %vm2911_vm5, %v2907_v61, %v2908_v31  ;;  %v10280_v57 = vpack.c.bf16 %v10020_v49, %v10009_v56  ;;  %v10286_v40 = vpack.c.bf16 %v10083_v30, %v10037_v25  ;;  %v10292_v56 = vpack.c.bf16 %v10112_v34, %v10074_v42  ;;  %v8293_v49 = vld [vmem:[%s13667_s11 + $0xf8] sm:$0xff]   ;;  %v8295_v42 = vld [vmem:[%s13667_s11 + $0xf0] sm:$0xff]   ;;  %v8297_v34 = vld [vmem:[%s13667_s11 + $0xe8] sm:$0xff]  }
 0x288   : > { %v3014_v22 = vpack.c.bf16 %v2914_v11, %v2915_v60  ;;  %v2912_v41 = vsel %vm2911_vm5, %v2909_v6, %v2910_v13  ;;  %v2913_v24 = vsel %vm2911_vm5, %v2908_v31, %v2909_v6  ;;  %v8294_v25 = vld [vmem:[%s13667_s11 + $0xb8] sm:$0xff]   ;;  %7698 = vmatprep.subr.bf16.mxu0 %v8293_v49  ;;  %v8296_v30 = vld [vmem:[%s13667_s11 + $0xb0] sm:$0xff]   ;;  %v8298_v13 = vld [vmem:[%s13667_s11 + $0xa8] sm:$0xff]  }
 0x289   : > { %v3017_v47 = vpack.c.bf16 %v2912_v41, %v2913_v24  ;;  %7699 = vmatpush3.bf16.msra.mxu0 %v8294_v25  ;;  %v8314_v18 = vld [vmem:[%s13667_s11 + $0x28] sm:$0xff]   ;;  %v8315_v61 = vld [vmem:[%s13667_s11 + $0x60] sm:$0xff]   ;;  %v8319_v6 = vld [vmem:[%s13667_s11 + $0x50] sm:$0xff]  }
 0x28a   : > { %7700 = vmatprep.subr.bf16.mxu0 %v8295_v42  ;;  %v8316_v31 = vld [vmem:[%s13667_s11 + $0x20] sm:$0xff]   ;;  %v8321_v11 = vld [vmem:[%s13667_s11 + $0x48] sm:$0xff]  }
 0x28b   : > { %v8322_v60 = vld [vmem:[%s13667_s11 + $0x8] sm:$0xff]   ;;  %v8324_v41 = vld [vmem:[%s13667_s11] sm:$0xff]  }
 0x28c   : > { %3268 = vmatmul.mubr.bf16.gmra.mxu0 %v2990_v15  ;;  %v8299_v15 = vld [vmem:[%s13667_s11 + $0xe0] sm:$0xff]  }
 0x28d   : > { %3275 = vmatprep.mubr.bf16.mxu0 %v10190_v37  ;;  %7701 = vmatpush3.bf16.msra.mxu0 %v8296_v30  ;;  %v10398_v25 = vld [vmem:[%s13666_s10] ss:$0 sm:$0xff] }
 0x28e   : > { %7702 = vmatprep.subr.bf16.mxu0 %v8297_v34 }
 0x291   : > { %7703 = vmatpush3.bf16.msra.mxu0 %v8298_v13 }
 0x292   : > { %7704 = vmatprep.subr.bf16.mxu0 %v8299_v15 }
 0x294   : > { %3276 = vmatmul.mubr.bf16.gmra.mxu0 %v2993_v7  ;;  %v8300_v7 = vld [vmem:[%s13667_s11 + $0xa0] sm:$0xff]  }
 0x295   : > { %3283 = vmatprep.mubr.bf16.mxu0 %v10280_v57  ;;  %7705 = vmatpush3.bf16.msra.mxu0 %v8300_v7 }
 0x29c   : > { %3284 = vmatmul.mubr.bf16.gmra.mxu0 %v2996_v3  ;;  %v8301_v3 = vld [vmem:[%s13667_s11 + $0xd8] sm:$0xff]  }
 0x29d   : > { %3291 = vmatprep.mubr.bf16.mxu0 %v10203_v5  ;;  %7706 = vmatprep.subr.bf16.mxu0 %v8301_v3 }
 0x2a4   : > { %3292 = vmatmul.mubr.bf16.gmra.mxu0 %v2999_v28  ;;  %v8302_v28 = vld [vmem:[%s13667_s11 + $0x98] sm:$0xff]  }
 0x2a5   : > { %3299 = vmatprep.mubr.bf16.mxu0 %v10286_v40  ;;  %7707 = vmatpush3.bf16.msra.mxu0 %v8302_v28 }
 0x2ac   : > { %3300 = vmatmul.mubr.bf16.gmra.mxu0 %v3002_v38  ;;  %v8303_v38 = vld [vmem:[%s13667_s11 + $0xd0] sm:$0xff]  }
 0x2ad   : > { %3307 = vmatprep.mubr.bf16.mxu0 %v10227_v62  ;;  %7708 = vmatprep.subr.bf16.mxu0 %v8303_v38 }
 0x2ae   : > { %7709 = vmatpush3.bf16.msra.mxu0 %v8304_v20 }
 0x2af   : > { %7710 = vmatprep.subr.bf16.mxu0 %v8305_v45 }
 0x2b4   : > { %3308 = vmatmul.mubr.bf16.gmra.mxu0 %v3005_v59  ;;  %v8310_v59 = vld [vmem:[%s13667_s11 + $0x38] sm:$0xff]  }
 0x2b5   : > { %3315 = vmatprep.mubr.bf16.mxu0 %v10292_v56  ;;  %7611 = vmatpush3.bf16.msra.mxu1 %v8310_v59 }
 0x2b6   : > { %7612 = vmatprep.subr.bf16.mxu1 %v8311_v58 }
 0x2b9   : > { %7613 = vmatpush3.bf16.msra.mxu1 %v8312_v46 }
 0x2ba   : > { %7614 = vmatprep.subr.bf16.mxu1 %v8313_v53 }
 0x2bc   : > { %3316 = vmatmul.mubr.bf16.gmra.mxu0 %v3008_v63  ;;  %v8317_v63 = vld [vmem:[%s13667_s11 + $0x58] sm:$0xff]  }
 0x2bd   : > { %3323 = vmatprep.mubr.bf16.mxu0 %v10244_v29  ;;  %7615 = vmatpush3.bf16.msra.mxu1 %v8314_v18 }
 0x2be   : > { %7616 = vmatprep.subr.bf16.mxu1 %v8315_v61 }
 0x2c1   : > { %7617 = vmatpush3.bf16.msra.mxu1 %v8316_v31 }
 0x2c2   : > { %7618 = vmatprep.subr.bf16.mxu1 %v8317_v63 }
 0x2c4   : > { %3324 = vmatmul.mubr.bf16.gmra.mxu0 %v3011_v10  ;;  %v8320_v10 = vld [vmem:[%s13667_s11 + $0x10] sm:$0xff]  }
 0x2c5   : > { %3331 = vmatprep.mubr.bf16.mxu0 %v10252_v27  ;;  %7619 = vmatpush3.bf16.msra.mxu1 %v8318_v52 }
 0x2c6   : > { %7620 = vmatprep.subr.bf16.mxu1 %v8319_v6 }
 0x2c9   : > { %7621 = vmatpush3.bf16.msra.mxu1 %v8320_v10 }
 0x2ca   : > { %7622 = vmatprep.subr.bf16.mxu1 %v8321_v11 }
 0x2cc   : > { %3332 = vmatmul.mubr.bf16.gmra.mxu0 %v3014_v22  ;;  %v8323_v22 = vld [vmem:[%s13667_s11 + $0x40] sm:$0xff]  }
 0x2cd   : > { %3339 = vmatprep.mubr.bf16.mxu0 %v10264_v26  ;;  %7623 = vmatpush3.bf16.msra.mxu1 %v8322_v60 }
 0x2ce   : > { %7624 = vmatprep.subr.bf16.mxu1 %v8323_v22 }
 0x2d1   : > { %7625 = vmatpush3.bf16.msra.mxu1 %v8324_v41 }
 0x2d4   : > { %3340 = vmatmul.mubr.bf16.gmra.mxu0 %v3017_v47 }
 0x2d5   : > { %4081 = vmatprep.mubr.bf16.mxu0 %v9940_v21  ;;  %v8306_v21 = vld [vmem:[%s13667_s11 + $0x88] sm:$0xff]  }
 0x2d6   : > { %7711 = vmatpush3.bf16.msra.mxu0 %v8306_v21 }
 0x2d7   : > { %7712 = vmatprep.subr.bf16.mxu0 %v8307_v12 }
 0x2da   : > { %7713 = vmatpush3.bf16.msra.mxu0 %v8308_v8 }
 0x318   : > { %v8112_v24 = vpop.f32.mrf.mxu1 }
 0x31a   : > { %v3382_v49 = vpop.f32.mrf.mxu1 }
 0x31c   : > { %v8113_v15 = vpop.f32.mrf.mxu1 }
 0x31e   : > { %v3385_v21 = vpop.f32.mrf.mxu1 }
 0x322   : > { %v8116_v18 = vpop.f32.mrf.mxu1 }
 0x324   : > { %v3398_v41 = vpop.f32.mrf.mxu1 }
 0x33c   : > { %v7518_v47 = vpop.f32.mrf.mxu0 }
 0x33e   : > { %v7519_v42 = vpop.f32.mrf.mxu0 }
 0x33f   : > { %v7520_v30 = vadd.f32 %v7519_v42, %v7518_v47 }
 0x340   : > { %v7521_v34 = vpop.f32.mrf.mxu0 }
 0x341   : > { %v3254_v13 = vadd.f32 %v7520_v30, %v10398_v25 }
 0x342   : > { %v7522_v7 = vpop.f32.mrf.mxu0 }
 0x343   : > { %v3383_v3 = vadd.f32 %v3382_v49, %v3254_v13  ;;  %v7523_v28 = vadd.f32 %v7522_v7, %v7521_v34 }
 0x344   : > { %v7524_v38 = vpop.f32.mrf.mxu0 }
 0x345   : > { %v3477_v20 = vmax.f32 %v3383_v3, 0.0  ;;  %v3257_v45 = vadd.f32 %v7523_v28, %v10398_v25 }
 0x346   : > { %v7525_v12 = vpop.f32.mrf.mxu0 }
 0x347   : > { %v3386_v8 = vadd.f32 %v3385_v21, %v3257_v45  ;;  %v7526_v0 = vadd.f32 %v7525_v12, %v7524_v38  ;;  %v10403_v58 = vmul.f32 %v3477_v20, %v13888_v17  ;;  %v8117_v45 = vpop.f32.mrf.mxu1 }
 0x348   : > { %v7527_v59 = vpop.f32.mrf.mxu0 }
 0x349   : > { %v3478_v46 = vmax.f32 %v3386_v8, 0.0  ;;  %v3262_v53 = vadd.f32 %v7526_v0, %v10398_v25  ;;  %v13697_v10 = vrot.slane %v10403_v58, 7  ;;  %v13696_v13 = vrot.slane %v10403_v58, 1  ;;  %v13935_v0 = vld [vmem:[#allocation41_spill] sm:$0xff] }
 0x34a   : > { %v7528_v61 = vpop.f32.mrf.mxu0 }
 0x34b   : > { %v3502_v31 = vmul.f32 %v3478_v46, %v13893_v33  ;;  %v3391_v63 = vadd.f32 %v8112_v24, %v3262_v53  ;;  %v7529_v52 = vadd.f32 %v7528_v61, %v7527_v59 }
 0x34c   : > { %v7530_v6 = vpop.f32.mrf.mxu0 }
 0x34d   : > { %v3526_v11 = vrot.slane %v3502_v31, 7  ;;  %v3479_v60 = vmax.f32 %v3391_v63, 0.0  ;;  %v3265_v22 = vadd.f32 %v7529_v52, %v10398_v25  ;;  %v3574_v47 = vrot.slane %v3502_v31, 1 }
 0x34e   : > { %v7531_v49 = vpop.f32.mrf.mxu0  ;;  %v3622_v42 = vpack.c.bf16 %v3502_v31, %v10403_v58 }
 0x34f   : > { %v10414_v30 = vsel %vm2911_vm5, %v13697_v10, %v3526_v11  ;;  %v10417_v24 = vmul.f32 %v3479_v60, %v13886_v50  ;;  %v3394_v34 = vadd.f32 %v8113_v15, %v3265_v22  ;;  %v7532_v7 = vadd.f32 %v7531_v49, %v7530_v6  ;;  %v3401_v22 = vpop.f32.mrf.mxu1  ;;  %v13938_v60 = vld [vmem:[#allocation43_spill] sm:$0xff] }
 0x350   : > { %3952 = vmatprep.mubr.bf16.mxu1 %v3622_v42  ;;  %v7533_v3 = vpop.f32.mrf.mxu0  ;;  %v3619_v21 = vsel %vm1252_vm2, %v13696_v13, %v3574_v47 }
 0x351   : > { %v3527_v28 = vrot.slane %v10417_v24, 7  ;;  %v3575_v38 = vrot.slane %v10417_v24, 1  ;;  %v3480_v20 = vmax.f32 %v3394_v34, 0.0  ;;  %v3270_v12 = vadd.f32 %v7532_v7, %v10398_v25 }
 0x352   : > { %v7534_v8 = vpop.f32.mrf.mxu0 }
 0x353   : > { %v3618_v15 = vsel %vm1252_vm2, %v3574_v47, %v3575_v38  ;;  %v10430_v59 = vmul.f32 %v3480_v20, %v13935_v0  ;;  %v7535_v46 = vadd.f32 %v7534_v8, %v7533_v3  ;;  %v10434_v53 = vsel %vm2911_vm5, %v3526_v11, %v3527_v28 }
 0x354   : > { %v3623_v61 = vpack.c.bf16 %v3618_v15, %v3619_v21  ;;  %v3399_v31 = vadd.f32 %v3398_v41, %v3270_v12  ;;  %v7536_v63 = vpop.f32.mrf.mxu0  ;;  %v13936_v41 = vld [vmem:[#allocation38_spill] sm:$0xff]  ;;  %v10452_v15 = vpop.f32.mrf.mxu1 }
 0x355   : > { %v3528_v52 = vrot.slane %v10430_v59, 7  ;;  %v3273_v6 = vadd.f32 %v7535_v46, %v10398_v25  ;;  %v3576_v21 = vrot.slane %v10430_v59, 1 }
 0x356   : > { %v3481_v47 = vmax.f32 %v3399_v31, 0.0  ;;  %v7537_v49 = vpop.f32.mrf.mxu0  ;;  %4082 = vmatmul.mubr.bf16.vlgmr.msra.gmra.mxu0 %v3623_v61  ;;  %v13937_v61 = vld [vmem:[#allocation44_spill] sm:$0xff] }
 0x357   : > { %v3402_v42 = vadd.f32 %v3401_v22, %v3273_v6  ;;  %v7538_v34 = vadd.f32 %v7537_v49, %v7536_v63  ;;  %4089 = vmatprep.mubr.bf16.mxu0 %v9930_v9  ;;  %v10443_v11 = vsel %vm2911_vm5, %v3527_v28, %v3528_v52  ;;  %v3617_v13 = vsel %vm1252_vm2, %v3575_v38, %v3576_v21 }
 0x358   : > { %v10446_v7 = vmul.f32 %v3481_v47, %v13936_v41  ;;  %v7539_v3 = vpop.f32.mrf.mxu0 }
 0x359   : > { %v3482_v12 = vmax.f32 %v3402_v42, 0.0  ;;  %v3278_v8 = vadd.f32 %v7538_v34, %v10398_v25 }
 0x35a   : > { %v3529_v9 = vrot.slane %v10446_v7, 7  ;;  %v3577_v46 = vrot.slane %v10446_v7, 1  ;;  %v7540_v28 = vpop.f32.mrf.mxu0 }
 0x35b   : > { %v10457_v31 = vmul.f32 %v3482_v12, %v13937_v61  ;;  %v3407_v63 = vadd.f32 %v8116_v18, %v3278_v8  ;;  %v7541_v6 = vadd.f32 %v7540_v28, %v7539_v3  ;;  %v3414_v12 = vpop.f32.mrf.mxu1 }
 0x35c   : > { %v7542_v22 = vpop.f32.mrf.mxu0  ;;  %v3616_v47 = vsel %vm1252_vm2, %v3576_v21, %v3577_v46  ;;  %v10463_v49 = vsel %vm2911_vm5, %v3528_v52, %v3529_v9 }
 0x35d   : > { %v3530_v42 = vrot.slane %v10457_v31, 7  ;;  %v3483_v34 = vmax.f32 %v3407_v63, 0.0  ;;  %v3281_v20 = vadd.f32 %v7541_v6, %v10398_v25  ;;  %v3578_v18 = vrot.slane %v10457_v31, 1 }
 0x35e   : > { %v7543_v3 = vpop.f32.mrf.mxu0  ;;  %v3626_v8 = vpack.c.bf16 %v3616_v47, %v3617_v13  ;;  %v8121_v47 = vpop.f32.mrf.mxu1 }
 0x35f   : > { %v10473_v10 = vmul.f32 %v3483_v34, %v13938_v60  ;;  %v3410_v52 = vadd.f32 %v8117_v45, %v3281_v20  ;;  %v7544_v61 = vadd.f32 %v7543_v3, %v7542_v22  ;;  %v10477_v6 = vsel %vm2911_vm5, %v3529_v9, %v3530_v42 }
 0x360   : > { %4090 = vmatmul.mubr.bf16.gmra.mxu0 %v3626_v8  ;;  %v7545_v63 = vpop.f32.mrf.mxu0  ;;  %v3615_v45 = vsel %vm1252_vm2, %v3577_v46, %v3578_v18  ;;  %v3417_v20 = vpop.f32.mrf.mxu1 }
 0x361   : > { %v3531_v38 = vrot.slane %v10473_v10, 7  ;;  %v3579_v21 = vrot.slane %v10473_v10, 1  ;;  %v3484_v41 = vmax.f32 %v3410_v52, 0.0  ;;  %v3286_v13 = vadd.f32 %v7544_v61, %v10398_v25  ;;  %4097 = vmatprep.mubr.bf16.mxu0 %v10217_v1 }
 0x362   : > { %v7546_v34 = vpop.f32.mrf.mxu0 }
 0x363   : > { %v10488_v9 = vmul.f32 %v3484_v41, %v9873_v55  ;;  %v3415_v22 = vadd.f32 %v3414_v12, %v3286_v13  ;;  %v7547_v3 = vadd.f32 %v7546_v34, %v7545_v63  ;;  %v3614_v8 = vsel %vm1252_vm2, %v3578_v18, %v3579_v21  ;;  %v10512_v12 = vpop.f32.mrf.mxu1 }
 0x364   : > { %v7548_v52 = vpop.f32.mrf.mxu0  ;;  %v3629_v61 = vpack.c.bf16 %v3614_v8, %v3615_v45  ;;  %v10494_v1 = vsel %vm2911_vm5, %v3530_v42, %v3531_v38 }
 0x365   : > { %v3532_v28 = vrot.slane %v10488_v9, 7  ;;  %v3485_v46 = vmax.f32 %v3415_v22, 0.0  ;;  %v3289_v60 = vadd.f32 %v7547_v3, %v10398_v25  ;;  %v3580_v41 = vrot.slane %v10488_v9, 1  ;;  %v3430_v0 = vpop.f32.mrf.mxu1 }
 0x366   : > { %v7549_v55 = vpop.f32.mrf.mxu0 }
 0x367   : > { %v10502_v18 = vmul.f32 %v3485_v46, %v9840_v32  ;;  %v3418_v63 = vadd.f32 %v3417_v20, %v3289_v60  ;;  %v7550_v13 = vadd.f32 %v7549_v55, %v7548_v52  ;;  %v10506_v34 = vsel %vm2911_vm5, %v3531_v38, %v3532_v28 }
 0x368   : > { %4098 = vmatmul.mubr.bf16.gmra.mxu0 %v3629_v61  ;;  %v7551_v42 = vpop.f32.mrf.mxu0  ;;  %v3613_v55 = vsel %vm1252_vm2, %v3579_v21, %v3580_v41 }
 0x369   : > { %v3533_v45 = vrot.slane %v10502_v18, 7  ;;  %v3581_v22 = vrot.slane %v10502_v18, 1  ;;  %v3486_v3 = vmax.f32 %v3418_v63, 0.0  ;;  %v3294_v8 = vadd.f32 %v7550_v13, %v10398_v25  ;;  %4105 = vmatprep.mubr.bf16.mxu0 %v10190_v37 }
 0x36a   : > { %v7552_v46 = vpop.f32.mrf.mxu0 }
 0x36b   : > { %v10519_v38 = vmul.f32 %v3486_v3, %v9913_v23  ;;  %v3423_v20 = vadd.f32 %v10452_v15, %v3294_v8  ;;  %v7553_v52 = vadd.f32 %v7552_v46, %v7551_v42  ;;  %v3612_v61 = vsel %vm1252_vm2, %v3580_v41, %v3581_v22  ;;  %v8125_v15 = vpop.f32.mrf.mxu1 }
 0x36c   : > { %v7554_v63 = vpop.f32.mrf.mxu0  ;;  %v3632_v37 = vpack.c.bf16 %v3612_v61, %v3613_v55  ;;  %v10526_v13 = vsel %vm2911_vm5, %v3532_v28, %v3533_v45 }
 0x36d   : > { %v3534_v21 = vrot.slane %v10519_v38, 7  ;;  %v3487_v32 = vmax.f32 %v3423_v20, 0.0  ;;  %v3297_v60 = vadd.f32 %v7553_v52, %v10398_v25  ;;  %v3582_v3 = vrot.slane %v10519_v38, 1 }
 0x36e   : > { %v7555_v23 = vpop.f32.mrf.mxu0 }
 0x36f   : > { %v10534_v41 = vmul.f32 %v3487_v32, %v9889_v2  ;;  %v3426_v42 = vadd.f32 %v8121_v47, %v3297_v60  ;;  %v7556_v8 = vadd.f32 %v7555_v23, %v7554_v63  ;;  %v10538_v46 = vsel %vm2911_vm5, %v3533_v45, %v3534_v21  ;;  %v13939_v60 = vld [vmem:[#allocation39_spill] sm:$0xff]  ;;  %v3433_v47 = vpop.f32.mrf.mxu1 }
 0x370   : > { %4106 = vmatmul.mubr.bf16.gmra.mxu0 %v3632_v37  ;;  %v7557_v28 = vpop.f32.mrf.mxu0  ;;  %v3611_v23 = vsel %vm1252_vm2, %v3581_v22, %v3582_v3 }
 0x371   : > { %v3535_v55 = vrot.slane %v10534_v41, 7  ;;  %v3583_v20 = vrot.slane %v10534_v41, 1  ;;  %v3488_v52 = vmax.f32 %v3426_v42, 0.0  ;;  %v3302_v61 = vadd.f32 %v7556_v8, %v10398_v25  ;;  %4113 = vmatprep.mubr.bf16.mxu0 %v10280_v57 }
 0x372   : > { %v7558_v32 = vpop.f32.mrf.mxu0 }
 0x373   : > { %v10549_v45 = vmul.f32 %v3488_v52, %v13939_v60  ;;  %v3431_v63 = vadd.f32 %v3430_v0, %v3302_v61  ;;  %v7559_v37 = vadd.f32 %v7558_v32, %v7557_v28  ;;  %v3610_v42 = vsel %vm1252_vm2, %v3582_v3, %v3583_v20  ;;  %v10573_v0 = vpop.f32.mrf.mxu1 }
 0x374   : > { %v7560_v2 = vpop.f32.mrf.mxu0  ;;  %v3635_v8 = vpack.c.bf16 %v3610_v42, %v3611_v23  ;;  %v10555_v57 = vsel %vm2911_vm5, %v3534_v21, %v3535_v55 }
 0x375   : > { %v3536_v50 = vrot.slane %v10549_v45, 7  ;;  %v3489_v22 = vmax.f32 %v3431_v63, 0.0  ;;  %v3305_v33 = vadd.f32 %v7559_v37, %v10398_v25  ;;  %v3584_v52 = vrot.slane %v10549_v45, 1  ;;  %v3446_v17 = vpop.f32.mrf.mxu1 }
 0x376   : > { %v7561_v60 = vpop.f32.mrf.mxu0 }
 0x377   : > { %v10563_v3 = vmul.f32 %v3489_v22, %v9925_v16  ;;  %v3434_v28 = vadd.f32 %v3433_v47, %v3305_v33  ;;  %v7562_v61 = vadd.f32 %v7561_v60, %v7560_v2  ;;  %v10567_v32 = vsel %vm2911_vm5, %v3535_v55, %v3536_v50 }
 0x378   : > { %4114 = vmatmul.mubr.bf16.gmra.mxu0 %v3635_v8  ;;  %v7563_v21 = vpop.f32.mrf.mxu0  ;;  %v3609_v2 = vsel %vm1252_vm2, %v3583_v20, %v3584_v52 }
 0x379   : > { %13940 = vst [vmem:[#allocation9_spill] sm:$0xff] %v10563_v3  ;;  %v3537_v23 = vrot.slane %v10563_v3, 7  ;;  %v3585_v63 = vrot.slane %v10563_v3, 1  ;;  %v3490_v37 = vmax.f32 %v3434_v28, 0.0  ;;  %v3310_v42 = vadd.f32 %v7562_v61, %v10398_v25  ;;  %4121 = vmatprep.mubr.bf16.mxu0 %v10203_v5 }
 0x37a   : > { %v7564_v22 = vpop.f32.mrf.mxu0 }
 0x37b   : > { %v10580_v55 = vmul.f32 %v3490_v37, %v9983_v51  ;;  %v3439_v47 = vadd.f32 %v10512_v12, %v3310_v42  ;;  %v7565_v60 = vadd.f32 %v7564_v22, %v7563_v21  ;;  %v3608_v8 = vsel %vm1252_vm2, %v3584_v52, %v3585_v63  ;;  %v8129_v12 = vpop.f32.mrf.mxu1 }
 0x37c   : > { %v7566_v28 = vpop.f32.mrf.mxu0  ;;  %v3638_v5 = vpack.c.bf16 %v3608_v8, %v3609_v2  ;;  %v10587_v61 = vsel %vm2911_vm5, %v3536_v50, %v3537_v23 }
 0x37d   : > { %13941 = vst [vmem:[#allocation20_spill] sm:$0xff] %v10580_v55  ;;  %v3538_v20 = vrot.slane %v10580_v55, 7  ;;  %v3491_v16 = vmax.f32 %v3439_v47, 0.0  ;;  %v3313_v33 = vadd.f32 %v7565_v60, %v10398_v25  ;;  %v3586_v37 = vrot.slane %v10580_v55, 1 }
 0x37e   : > { %v7567_v51 = vpop.f32.mrf.mxu0 }
 0x37f   : > { %v10595_v52 = vmul.f32 %v3491_v16, %v9964_v35  ;;  %v3442_v21 = vadd.f32 %v8125_v15, %v3313_v33  ;;  %v7568_v42 = vadd.f32 %v7567_v51, %v7566_v28  ;;  %v10599_v22 = vsel %vm2911_vm5, %v3537_v23, %v3538_v20  ;;  %v13942_v33 = vld [vmem:[#allocation40_spill] sm:$0xff]  ;;  %v3449_v15 = vpop.f32.mrf.mxu1 }
 0x380   : > { %4122 = vmatmul.mubr.bf16.gmra.mxu0 %v3638_v5  ;;  %v7569_v50 = vpop.f32.mrf.mxu0  ;;  %v3607_v51 = vsel %vm1252_vm2, %v3585_v63, %v3586_v37 }
 0x381   : > { %v3539_v2 = vrot.slane %v10595_v52, 7  ;;  %v3587_v47 = vrot.slane %v10595_v52, 1  ;;  %v3492_v60 = vmax.f32 %v3442_v21, 0.0  ;;  %v3318_v8 = vadd.f32 %v7568_v42, %v10398_v25  ;;  %4129 = vmatprep.mubr.bf16.mxu0 %v10286_v40 }
 0x382   : > { %v7570_v16 = vpop.f32.mrf.mxu0 }
 0x383   : > { %v10610_v23 = vmul.f32 %v3492_v60, %v13942_v33  ;;  %v3447_v28 = vadd.f32 %v3446_v17, %v3318_v8  ;;  %v7571_v5 = vadd.f32 %v7570_v16, %v7569_v50  ;;  %v3606_v21 = vsel %vm1252_vm2, %v3586_v37, %v3587_v47  ;;  %v8132_v17 = vpop.f32.mrf.mxu1 }
 0x384   : > { %v7572_v35 = vpop.f32.mrf.mxu0  ;;  %v3641_v42 = vpack.c.bf16 %v3606_v21, %v3607_v51  ;;  %v10616_v40 = vsel %vm2911_vm5, %v3538_v20, %v3539_v2 }
 0x385   : > { %13943 = vst [vmem:[#allocation21_spill] sm:$0xff] %v10616_v40  ;;  %v3540_v3 = vrot.slane %v10610_v23, 7  ;;  %v3493_v63 = vmax.f32 %v3447_v28, 0.0  ;;  %v3321_v55 = vadd.f32 %v7571_v5, %v10398_v25  ;;  %v3588_v60 = vrot.slane %v10610_v23, 1  ;;  %v3462_v40 = vpop.f32.mrf.mxu1 }
 0x386   : > { %v7573_v33 = vpop.f32.mrf.mxu0 }
 0x387   : > { %v10624_v37 = vmul.f32 %v3493_v63, %v9991_v44  ;;  %v3450_v50 = vadd.f32 %v3449_v15, %v3321_v55  ;;  %v7574_v8 = vadd.f32 %v7573_v33, %v7572_v35  ;;  %v10628_v16 = vsel %vm2911_vm5, %v3539_v2, %v3540_v3 }
 0x388   : > { %4130 = vmatmul.mubr.bf16.gmra.mxu0 %v3641_v42  ;;  %v7575_v20 = vpop.f32.mrf.mxu0  ;;  %v3605_v35 = vsel %vm1252_vm2, %v3587_v47, %v3588_v60 }
 0x389   : > { %13944 = vst [vmem:[#allocation22_spill] sm:$0xff] %v10624_v37  ;;  %v3541_v51 = vrot.slane %v10624_v37, 7  ;;  %v3589_v28 = vrot.slane %v10624_v37, 1  ;;  %v3494_v5 = vmax.f32 %v3450_v50, 0.0  ;;  %v3326_v21 = vadd.f32 %v7574_v8, %v10398_v25  ;;  %4137 = vmatprep.mubr.bf16.mxu0 %v10227_v62 }
 0x38a   : > { %v7576_v63 = vpop.f32.mrf.mxu0 }
 0x38b   : > { %v10639_v2 = vmul.f32 %v3494_v5, %v10051_v4  ;;  %v3455_v15 = vadd.f32 %v10573_v0, %v3326_v21  ;;  %v7577_v33 = vadd.f32 %v7576_v63, %v7575_v20  ;;  %v3604_v42 = vsel %vm1252_vm2, %v3588_v60, %v3589_v28  ;;  %v8133_v0 = vpop.f32.mrf.mxu1 }
 0x38c   : > { %v7578_v50 = vpop.f32.mrf.mxu0  ;;  %v3644_v8 = vpack.c.bf16 %v3604_v42, %v3605_v35  ;;  %v10646_v62 = vsel %vm2911_vm5, %v3540_v3, %v3541_v51 }
 0x38d   : > { %v3542_v47 = vrot.slane %v10639_v2, 7  ;;  %v3495_v44 = vmax.f32 %v3455_v15, 0.0  ;;  %v3329_v55 = vadd.f32 %v7577_v33, %v10398_v25  ;;  %v3590_v5 = vrot.slane %v10639_v2, 1 }
 0x38e   : > { %v7579_v4 = vpop.f32.mrf.mxu0 }
 0x38f   : > { %v10654_v60 = vmul.f32 %v3495_v44, %v10024_v39  ;;  %v3458_v20 = vadd.f32 %v8129_v12, %v3329_v55  ;;  %v7580_v21 = vadd.f32 %v7579_v4, %v7578_v50  ;;  %v10658_v63 = vsel %vm2911_vm5, %v3541_v51, %v3542_v47  ;;  %v3465_v12 = vpop.f32.mrf.mxu1 }
 0x390   : > { %4138 = vmatmul.mubr.bf16.gmra.mxu0 %v3644_v8  ;;  %v7581_v3 = vpop.f32.mrf.mxu0  ;;  %v3603_v4 = vsel %vm1252_vm2, %v3589_v28, %v3590_v5 }
 0x391   : > { %v3543_v35 = vrot.slane %v10654_v60, 7  ;;  %v3591_v15 = vrot.slane %v10654_v60, 1  ;;  %v3496_v33 = vmax.f32 %v3458_v20, 0.0  ;;  %v3334_v42 = vadd.f32 %v7580_v21, %v10398_v25  ;;  %4145 = vmatprep.mubr.bf16.mxu0 %v10292_v56 }
 0x392   : > { %v7582_v44 = vpop.f32.mrf.mxu0 }
 0x393   : > { %v10669_v51 = vmul.f32 %v3496_v33, %v10079_v14  ;;  %v3463_v55 = vadd.f32 %v3462_v40, %v3334_v42  ;;  %v7583_v50 = vadd.f32 %v7582_v44, %v7581_v3  ;;  %v3602_v8 = vsel %vm1252_vm2, %v3590_v5, %v3591_v15 }
 0x394   : > { %v7584_v20 = vpop.f32.mrf.mxu0  ;;  %v3647_v21 = vpack.c.bf16 %v3602_v8, %v3603_v4  ;;  %v10675_v56 = vsel %vm2911_vm5, %v3542_v47, %v3543_v35 }
 0x395   : > { %v3544_v39 = vrot.slane %v10669_v51, 7  ;;  %v3497_v28 = vmax.f32 %v3463_v55, 0.0  ;;  %v3337_v37 = vadd.f32 %v7583_v50, %v10398_v25  ;;  %v3592_v33 = vrot.slane %v10669_v51, 1 }
 0x396   : > { %v7585_v14 = vpop.f32.mrf.mxu0 }
 0x397   : > { %v10683_v5 = vmul.f32 %v3497_v28, %v10064_v43  ;;  %v3466_v3 = vadd.f32 %v3465_v12, %v3337_v37  ;;  %v7586_v42 = vadd.f32 %v7585_v14, %v7584_v20  ;;  %v10687_v44 = vsel %vm2911_vm5, %v3543_v35, %v3544_v39 }
 0x398   : > { %4146 = vmatmul.mubr.bf16.gmra.mxu0 %v3647_v21  ;;  %v7587_v47 = vpop.f32.mrf.mxu0  ;;  %v3601_v37 = vsel %vm1252_vm2, %v3591_v15, %v3592_v33 }
 0x399   : > { %v3545_v4 = vrot.slane %v10683_v5, 7  ;;  %v3593_v55 = vrot.slane %v10683_v5, 1  ;;  %v3498_v50 = vmax.f32 %v3466_v3, 0.0  ;;  %v3342_v8 = vadd.f32 %v7586_v42, %v10398_v25  ;;  %4153 = vmatprep.mubr.bf16.mxu0 %v10244_v29 }
 0x39a   : > { %v7588_v40 = vpop.f32.mrf.mxu0 }
 0x39b   : > { %v10698_v12 = vmul.f32 %v3498_v50, %v10141_v48  ;;  %v3471_v35 = vadd.f32 %v8132_v17, %v3342_v8  ;;  %v7589_v20 = vadd.f32 %v7588_v40, %v7587_v47  ;;  %v3600_v21 = vsel %vm1252_vm2, %v3592_v33, %v3593_v55 }
 0x39c   : > { %v3650_v28 = vpack.c.bf16 %v3600_v21, %v3601_v37  ;;  %v10704_v3 = vsel %vm2911_vm5, %v3544_v39, %v3545_v4  ;;  %v13945_v21 = vrot.slane %v10403_v58, 7 }
 0x39d   : > { %v3546_v29 = vrot.slane %v10698_v12, 7  ;;  %v3499_v42 = vmax.f32 %v3471_v35, 0.0  ;;  %v3345_v15 = vadd.f32 %v7589_v20, %v10398_v25  ;;  %v3652_v14 = vpack.c.bf16 %v10698_v12, %v10683_v5 }
 0x39e   : > { %v3594_v50 = vrot.slane %v10698_v12, 1 }
 0x39f   : > { %v3523_v17 = vmul.f32 %v3499_v42, %v10097_v54  ;;  %v3474_v40 = vadd.f32 %v8133_v0, %v3345_v15  ;;  %v3551_v33 = vsel %vm2911_vm5, %v3545_v4, %v3546_v29 }
 0x3a0   : > { %4154 = vmatmul.mubr.bf16.gmra.mxu0 %v3650_v28  ;;  %v3651_v39 = vpack.c.bf16 %v3551_v33, %v10704_v3  ;;  %v3599_v12 = vsel %vm1252_vm2, %v3593_v55, %v3594_v50  ;;  %v13946_v55 = vpack.c.bf16 %v10430_v59, %v10417_v24  ;;  %v13948_v33 = vmov 0  }
 0x3a1   : > { %v3547_v47 = vrot.slane %v3523_v17, 7  ;;  %v3595_v8 = vrot.slane %v3523_v17, 1  ;;  %v3500_v37 = vmax.f32 %v3474_v40, 0.0  ;;  %4161 = vmatprep.mubr.bf16.mxu0 %v10252_v27  ;;  %v13951_v24 = vpack.c.bf16 %v10477_v6, %v10463_v49  ;;  %v13959_v49 = vld [vmem:[#allocation9_spill] sm:$0xff] }
 0x3a2   : > { %v13953_v59 = vpack.c.bf16 %v10506_v34, %v10494_v1  ;;  %v13962_v1 = vpack.c.bf16 %v10610_v23, %v10595_v52  ;;  %v13969_v52 = vpack.c.bf16 %v10687_v44, %v10675_v56  ;;  %v8333_v23 = vld [vmem:[%s13669_s13 + $0x154] ss:$8 sps:$4 sm:$0xff]   ;;  %v8343_v44 = vld [vmem:[%s13669_s13 + $0x110] ss:$8 sps:$4 sm:$0xff]  }
 0x3a3   : > { %v3524_v25 = vmul.f32 %v3500_v37, %v13926_v19  ;;  %v3598_v5 = vsel %vm1252_vm2, %v3594_v50, %v3595_v8  ;;  %v3550_v0 = vsel %vm2911_vm5, %v3546_v29, %v3547_v47  ;;  %v13947_v50 = vrot.slane %v10403_v58, 1  ;;  %v8345_v56 = vld [vmem:[%s13669_s13 + $0x114] ss:$8 sps:$4 sm:$0xff]  }
 0x3a4   : > { %v3653_v4 = vpack.c.bf16 %v3598_v5, %v3599_v12  ;;  %v13952_v58 = vpack.c.bf16 %v10488_v9, %v10473_v10  ;;  %v13957_v10 = vpack.c.bf16 %v10567_v32, %v10555_v57  ;;  %v13961_v9 = vpack.c.bf16 %v10599_v22, %v10587_v61  ;;  %v8328_v32 = vld [vmem:[%s13669_s13 + $0x160] ss:$8 sps:$4 sm:$0xff]   ;;  %v8330_v61 = vld [vmem:[%s13669_s13 + $0x164] ss:$8 sps:$4 sm:$0xff]   ;;  %v8331_v22 = vld [vmem:[%s13669_s13 + $0x150] ss:$8 sps:$4 sm:$0xff]  }
 0x3a5   : > { %v3548_v35 = vrot.slane %v3524_v25, 7  ;;  %v3655_v20 = vpack.c.bf16 %v3524_v25, %v3523_v17  ;;  %v3596_v27 = vrot.slane %v3524_v25, 1  ;;  %v13968_v57 = vpack.c.bf16 %v10669_v51, %v10654_v60  ;;  %v8339_v60 = vld [vmem:[%s13669_s13 + $0x134] ss:$8 sps:$4 sm:$0xff]   ;;  %v8340_v51 = vld [vmem:[%s13669_s13 + $0x120] ss:$8 sps:$4 sm:$0xff]  }
 0x3a7   : > { %v3572_v28 = vsel %vm2911_vm5, %v3548_v35, %v13945_v21  ;;  %v3549_v3 = vsel %vm2911_vm5, %v3547_v47, %v3548_v35  ;;  %v3597_v29 = vsel %vm1252_vm2, %v3595_v8, %v3596_v27  ;;  %v3620_v17 = vsel %vm1252_vm2, %v3596_v27, %v13947_v50  ;;  %v8354_v21 = vld [vmem:[%s13669_s13 + $0x64] ss:$8 sps:$4 sm:$0xff]   ;;  %v8355_v27 = vld [vmem:[%s13669_s13 + $0x50] ss:$8 sps:$4 sm:$0xff]  }
 0x3a8   : > { %4162 = vmatmul.mubr.bf16.gmra.mxu0 %v3653_v4  ;;  %v3621_v42 = vpack.c.bf16 %v10414_v30, %v3572_v28  ;;  %v3654_v15 = vpack.c.bf16 %v3549_v3, %v3550_v0  ;;  %v3656_v40 = vpack.c.bf16 %v3620_v17, %v3597_v29  ;;  %v13950_v30 = vpack.c.bf16 %v10457_v31, %v10446_v7  ;;  %v13958_v31 = vld [vmem:[#allocation20_spill] sm:$0xff] }
 0x3a9   : > { %4169 = vmatprep.mubr.bf16.mxu0 %v10264_v26  ;;  %v13949_v26 = vpack.c.bf16 %v10443_v11, %v10434_v53  ;;  %v13954_v53 = vpack.c.bf16 %v10519_v38, %v10502_v18  ;;  %v13955_v11 = vpack.c.bf16 %v10538_v46, %v10526_v13  ;;  %v13956_v7 = vpack.c.bf16 %v10549_v45, %v10534_v41  ;;  %v13963_v18 = vld [vmem:[#allocation21_spill] sm:$0xff]  ;;  %v13965_v38 = vld [vmem:[#allocation22_spill] sm:$0xff]  ;;  %v8325_v41 = vld [vmem:[%s13669_s13 + $0x170] ss:$8 sps:$4 sm:$0xff]  }
 0x3aa   : > { %3953 = vmatmul.mubr.bf16.vlgmr.msra.gmra.mxu1 %v3621_v42  ;;  %v13960_v6 = vpack.c.bf16 %v13958_v31, %v13959_v49  ;;  %v13964_v34 = vpack.c.bf16 %v10628_v16, %v13963_v18  ;;  %v13966_v13 = vpack.c.bf16 %v10639_v2, %v13965_v38  ;;  %v8327_v46 = vld [vmem:[%s13669_s13 + $0x174] ss:$8 sps:$4 sm:$0xff]   ;;  %v13967_v45 = vpack.c.bf16 %v10658_v63, %v10646_v62  ;;  %v8334_v16 = vld [vmem:[%s13669_s13 + $0x140] ss:$8 sps:$4 sm:$0xff]   ;;  %v8336_v2 = vld [vmem:[%s13669_s13 + $0x144] ss:$8 sps:$4 sm:$0xff]  }
 0x3ab   : > { %3960 = vmatprep.mubr.bf16.mxu1 %v13946_v55  ;;  %4811 = vmatprep.subr.bf16.mxu0 %v8327_v46  ;;  %v8337_v62 = vld [vmem:[%s13669_s13 + $0x130] ss:$8 sps:$4 sm:$0xff]   ;;  %v8342_v63 = vld [vmem:[%s13669_s13 + $0x124] ss:$8 sps:$4 sm:$0xff]   ;;  %v8351_v4 = vld [vmem:[%s13669_s13 + $0x74] ss:$8 sps:$4 sm:$0xff]  }
 0x3ac   : > { %4812 = vmatpush1.bf16.msra.mxu0 %v8325_v41  ;;  %v8349_v0 = vld [vmem:[%s13669_s13 + $0x70] ss:$8 sps:$4 sm:$0xff]   ;;  %4658 = vmatprep.subr.bf16.mxu1 %v8351_v4  ;;  %v8357_v3 = vld [vmem:[%s13669_s13 + $0x54] ss:$8 sps:$4 sm:$0xff]   ;;  %v8360_v55 = vld [vmem:[%s13669_s13 + $0x44] ss:$8 sps:$4 sm:$0xff]  }
 0x3ad   : > { %4813 = vmatprep.subr.bf16.mxu0 %v8330_v61  ;;  %4659 = vmatpush1.bf16.msra.mxu1 %v8349_v0  ;;  %v8361_v50 = vld [vmem:[%s13669_s13 + $0x30] ss:$8 sps:$4 sm:$0xff]   ;;  %v8363_v17 = vld [vmem:[%s13669_s13 + $0x34] ss:$8 sps:$4 sm:$0xff]   ;;  %v8382_v41 = vld [vmem:[%s13669_s13 + $0xc0] ss:$8 sps:$4 sm:$0xff]  }
 0x3ae   : > { %4660 = vmatprep.subr.bf16.mxu1 %v8354_v21  ;;  %v8373_v31 = vld [vmem:[%s13669_s13 + $0xf0] ss:$8 sps:$4 sm:$0xff]   ;;  %v8375_v49 = vld [vmem:[%s13669_s13 + $0xf4] ss:$8 sps:$4 sm:$0xff]   ;;  %v8384_v46 = vld [vmem:[%s13669_s13 + $0xc4] ss:$8 sps:$4 sm:$0xff]  }
 0x3af   : > { %v8381_v38 = vld [vmem:[%s13669_s13 + $0xd4] ss:$8 sps:$4 sm:$0xff]   ;;  %v10989_v0 = vld [vmem:[%s13668_s12] ss:$0 sm:$0xff] }
 0x3b0   : > { %4170 = vmatmul.mubr.bf16.gmra.mxu0 %v3656_v40  ;;  %v8387_v61 = vld [vmem:[%s13669_s13 + $0xb4] ss:$8 sps:$4 sm:$0xff]  }
 0x3b1   : > { %4843 = vmatprep.mubr.bf16.mxu0 %v13948_v33  ;;  %4814 = vmatpush1.bf16.msra.mxu0 %v8328_v32  ;;  %v8385_v32 = vld [vmem:[%s13669_s13 + $0xb0] ss:$8 sps:$4 sm:$0xff]  }
 0x3b2   : > { %3961 = vmatmul.mubr.bf16.gmra.mxu1 %v13949_v26  ;;  %4815 = vmatprep.subr.bf16.mxu0 %v8333_v23  ;;  %v8364_v26 = vld [vmem:[%s13669_s13 + $0x20] ss:$8 sps:$4 sm:$0xff]  }
 0x3b3   : > { %3968 = vmatprep.mubr.bf16.mxu1 %v13950_v30  ;;  %v8366_v30 = vld [vmem:[%s13669_s13 + $0x24] ss:$8 sps:$4 sm:$0xff]   ;;  %v8388_v23 = vld [vmem:[%s13669_s13 + $0xa0] ss:$8 sps:$4 sm:$0xff]  }
 0x3b5   : > { %4816 = vmatpush1.bf16.msra.mxu0 %v8331_v22 }
 0x3b6   : > { %4817 = vmatprep.subr.bf16.mxu0 %v8336_v2 }
 0x3b9   : > { %4818 = vmatpush1.bf16.msra.mxu0 %v8334_v16  ;;  %v8393_v16 = vld [vmem:[%s13669_s13 + $0x94] ss:$8 sps:$4 sm:$0xff]  }
 0x3ba   : > { %3969 = vmatmul.mubr.bf16.gmra.mxu1 %v13951_v24  ;;  %4819 = vmatprep.subr.bf16.mxu0 %v8339_v60  ;;  %v8396_v60 = vld [vmem:[%s13669_s13 + $0x84] ss:$8 sps:$4 sm:$0xff]  }
 0x3bb   : > { %3976 = vmatprep.mubr.bf16.mxu1 %v13952_v58  ;;  %v8367_v58 = vld [vmem:[%s13669_s13 + $0x10] ss:$8 sps:$4 sm:$0xff]  }
 0x3bd   : > { %4820 = vmatpush1.bf16.msra.mxu0 %v8337_v62  ;;  %v8391_v62 = vld [vmem:[%s13669_s13 + $0x90] ss:$8 sps:$4 sm:$0xff]  }
 0x3be   : > { %4821 = vmatprep.subr.bf16.mxu0 %v8342_v63 }
 0x3c1   : > { %4822 = vmatpush1.bf16.msra.mxu0 %v8340_v51  ;;  %v8394_v51 = vld [vmem:[%s13669_s13 + $0x80] ss:$8 sps:$4 sm:$0xff]  }
 0x3c2   : > { %3977 = vmatmul.mubr.bf16.gmra.mxu1 %v13953_v59  ;;  %4823 = vmatprep.subr.bf16.mxu0 %v8345_v56  ;;  %v8369_v59 = vld [vmem:[%s13669_s13 + $0x14] ss:$8 sps:$4 sm:$0xff]  }
 0x3c3   : > { %3984 = vmatprep.mubr.bf16.mxu1 %v13954_v53 }
 0x3c5   : > { %4824 = vmatpush1.bf16.msra.mxu0 %v8343_v44 }
 0x3ca   : > { %3985 = vmatmul.mubr.bf16.gmra.mxu1 %v13955_v11  ;;  %v8370_v11 = vld [vmem:[%s13669_s13] ss:$8 sps:$4 sm:$0xff]  }
 0x3cb   : > { %3992 = vmatprep.mubr.bf16.mxu1 %v13956_v7  ;;  %v8372_v7 = vld [vmem:[%s13669_s13 + $0x4] ss:$8 sps:$4 sm:$0xff]  }
 0x3d2   : > { %3993 = vmatmul.mubr.bf16.gmra.mxu1 %v13957_v10 }
 0x3d3   : > { %4000 = vmatprep.mubr.bf16.mxu1 %v13960_v6 }
 0x3da   : > { %4001 = vmatmul.mubr.bf16.gmra.mxu1 %v13961_v9  ;;  %v8376_v9 = vld [vmem:[%s13669_s13 + $0xe0] ss:$8 sps:$4 sm:$0xff]  }
 0x3db   : > { %4008 = vmatprep.mubr.bf16.mxu1 %v13962_v1  ;;  %v8378_v1 = vld [vmem:[%s13669_s13 + $0xe4] ss:$8 sps:$4 sm:$0xff]  }
 0x3e2   : > { %4009 = vmatmul.mubr.bf16.gmra.mxu1 %v13964_v34  ;;  %v8379_v34 = vld [vmem:[%s13669_s13 + $0xd0] ss:$8 sps:$4 sm:$0xff]  }
 0x3e3   : > { %4016 = vmatprep.mubr.bf16.mxu1 %v13966_v13 }
 0x3ea   : > { %4017 = vmatmul.mubr.bf16.gmra.mxu1 %v13967_v45 }
 0x3eb   : > { %4024 = vmatprep.mubr.bf16.mxu1 %v13968_v57 }
 0x3f2   : > { %4025 = vmatmul.mubr.bf16.gmra.mxu1 %v13969_v52  ;;  %v8390_v52 = vld [vmem:[%s13669_s13 + $0xa4] ss:$8 sps:$4 sm:$0xff]  }
 0x3f3   : > { %4032 = vmatprep.mubr.bf16.mxu1 %v3652_v14  ;;  %v8348_v14 = vld [vmem:[%s13669_s13 + $0x104] ss:$8 sps:$4 sm:$0xff]  }
 0x3f4   : > { %4825 = vmatprep.subr.bf16.mxu0 %v8348_v14 }
 0x3fa   : > { %4033 = vmatmul.mubr.bf16.gmra.mxu1 %v3651_v39  ;;  %v8346_v39 = vld [vmem:[%s13669_s13 + $0x100] ss:$8 sps:$4 sm:$0xff]  }
 0x3fb   : > { %4040 = vmatprep.mubr.bf16.mxu1 %v3655_v20  ;;  %4826 = vmatpush1.bf16.msra.mxu0 %v8346_v39  ;;  %v8352_v20 = vld [vmem:[%s13669_s13 + $0x60] ss:$8 sps:$4 sm:$0xff]  }
 0x3fc   : > { %4661 = vmatpush1.bf16.msra.mxu1 %v8352_v20 }
 0x3fd   : > { %4662 = vmatprep.subr.bf16.mxu1 %v8357_v3 }
 0x400   : > { %4663 = vmatpush1.bf16.msra.mxu1 %v8355_v27 }
 0x401   : > { %4664 = vmatprep.subr.bf16.mxu1 %v8360_v55 }
 0x402   : > { %4041 = vmatmul.mubr.bf16.gmra.mxu1 %v3654_v15  ;;  %v8358_v15 = vld [vmem:[%s13669_s13 + $0x40] ss:$8 sps:$4 sm:$0xff]  }
 0x404   : > { %4665 = vmatpush1.bf16.msra.mxu1 %v8358_v15 }
 0x405   : > { %4666 = vmatprep.subr.bf16.mxu1 %v8363_v17 }
 0x408   : > { %4667 = vmatpush1.bf16.msra.mxu1 %v8361_v50 }
 0x409   : > { %4668 = vmatprep.subr.bf16.mxu1 %v8366_v30 }
 0x40c   : > { %4669 = vmatpush1.bf16.msra.mxu1 %v8364_v26 }
 0x40d   : > { %4670 = vmatprep.subr.bf16.mxu1 %v8369_v59 }
 0x410   : > { %4671 = vmatpush1.bf16.msra.mxu1 %v8367_v58 }
 0x411   : > { %4672 = vmatprep.subr.bf16.mxu1 %v8372_v7 }
 0x414   : > { %4673 = vmatpush1.bf16.msra.mxu1 %v8370_v11 }
 0x415   : > { %4674 = vmatprep.subr.bf16.mxu1 %v8375_v49 }
 0x416   : > { %v10840_v47 = vpop.f32.mrf.mxu0 }
 0x418   : > { %v10842_v8 = vpop.f32.mrf.mxu0  ;;  %4675 = vmatpush2.bf16.msra.mxu1 %v8373_v31 }
 0x419   : > { %4676 = vmatprep.subr.bf16.mxu1 %v8378_v1  ;;  %v7716_v27 = vadd.f32 %v10842_v8, %v10840_v47 }
 0x41a   : > { %v10844_v37 = vpop.f32.mrf.mxu0 }
 0x41c   : > { %v10846_v25 = vpop.f32.mrf.mxu0  ;;  %4677 = vmatpush2.bf16.msra.mxu1 %v8376_v9  ;;  %v13970_v9 = vld [vmem:[#allocation31_spill] sm:$0xff] }
 0x41d   : > { %4678 = vmatprep.subr.bf16.mxu1 %v8381_v38  ;;  %v7719_v30 = vadd.f32 %v10846_v25, %v10844_v37  ;;  %v13971_v25 = vld [vmem:[#allocation36_spill] sm:$0xff] }
 0x420   : > { %v10848_v5 = vpop.f32.mrf.mxu0  ;;  %4679 = vmatpush2.bf16.msra.mxu1 %v8379_v34 }
 0x421   : > { %4680 = vmatprep.subr.bf16.mxu1 %v8384_v46 }
 0x422   : > { %v10850_v12 = vpop.f32.mrf.mxu0 }
 0x423   : > { %v7722_v8 = vadd.f32 %v10850_v12, %v10848_v5 }
 0x424   : > { %v10858_v35 = vpop.f32.mrf.mxu0  ;;  %4681 = vmatpush2.bf16.msra.mxu1 %v8382_v41 }
 0x425   : > { %4682 = vmatprep.subr.bf16.mxu1 %v8387_v61 }
 0x426   : > { %v10866_v28 = vpop.f32.mrf.mxu0 }
 0x428   : > { %v10874_v42 = vpop.f32.mrf.mxu0  ;;  %4683 = vmatpush2.bf16.msra.mxu1 %v8385_v32 }
 0x429   : > { %4684 = vmatprep.subr.bf16.mxu1 %v8390_v52  ;;  %v7725_v52 = vadd.f32 %v10866_v28, %v10858_v35  ;;  %v13973_v35 = vld [vmem:[#allocation33_spill] sm:$0xff] }
 0x42a   : > { %v10882_v29 = vpop.f32.mrf.mxu0 }
 0x42c   : > { %v10890_v40 = vpop.f32.mrf.mxu0  ;;  %4685 = vmatpush2.bf16.msra.mxu1 %v8388_v23 }
 0x42d   : > { %4686 = vmatprep.subr.bf16.mxu1 %v8393_v16 }
 0x42e   : > { %v10898_v24 = vpop.f32.mrf.mxu0 }
 0x430   : > { %v10906_v53 = vpop.f32.mrf.mxu0  ;;  %4687 = vmatpush2.bf16.msra.mxu1 %v8391_v62 }
 0x431   : > { %4688 = vmatprep.subr.bf16.mxu1 %v8396_v60 }
 0x432   : > { %v10914_v10 = vpop.f32.mrf.mxu0 }
 0x434   : > { %v10922_v6 = vpop.f32.mrf.mxu0  ;;  %4689 = vmatpush2.bf16.msra.mxu1 %v8394_v51 }
 0x436   : > { %v10930_v18 = vpop.f32.mrf.mxu0 }
 0x438   : > { %v10938_v13 = vpop.f32.mrf.mxu0 }
 0x43a   : > { %v10946_v45 = vpop.f32.mrf.mxu0 }
 0x43c   : > { %v10948_v57 = vpop.f32.mrf.mxu0 }
 0x43e   : > { %v10959_v22 = vpop.f32.mrf.mxu0 }
 0x440   : > { %v10967_v2 = vpop.f32.mrf.mxu0 }
 0x442   : > { %v10975_v63 = vpop.f32.mrf.mxu0 }
 0x444   : > { %v10980_v56 = vpop.f32.mrf.mxu0 }
 0x446   : > { %v10982_v44 = vpop.f32.mrf.mxu0 }
 0x448   : > { %v10984_v39 = vpop.f32.mrf.mxu0 }
 0x44a   : > { %v10994_v15 = vpop.f32.mrf.mxu0 }
 0x44c   : > { %v10999_v11 = vpop.f32.mrf.mxu0 }
 0x44e   : > { %v11007_v41 = vpop.f32.mrf.mxu0 }
 0x450   : > { %v11014_v60 = vpop.f32.mrf.mxu0 }
 0x46a   : > { %v7626_v14 = vpop.f32.mrf.mxu1 }
 0x46c   : > { %v7627_v4 = vpop.f32.mrf.mxu1 }
 0x46d   : > { %v7628_v20 = vadd.f32 %v7627_v4, %v7626_v14 }
 0x46e   : > { %v7629_v21 = vpop.f32.mrf.mxu1 }
 0x46f   : > { %v3955_v3 = vadd.f32 %v7628_v20, %v10989_v0 }
 0x470   : > { %v7630_v55 = vpop.f32.mrf.mxu1 }
 0x471   : > { %v4084_v50 = vadd.f32 %v7716_v27, %v3955_v3  ;;  %v7631_v17 = vadd.f32 %v7630_v55, %v7629_v21 }
 0x472   : > { %v7632_v26 = vpop.f32.mrf.mxu1 }
 0x473   : > { %v4178_v58 = vmax.f32 %v4084_v50, 0.0  ;;  %v3958_v59 = vadd.f32 %v7631_v17, %v10989_v0 }
 0x474   : > { %v7633_v7 = vpop.f32.mrf.mxu1 }
 0x475   : > { %v4087_v31 = vadd.f32 %v7719_v30, %v3958_v59  ;;  %v7634_v49 = vadd.f32 %v7633_v7, %v7632_v26  ;;  %v11004_v1 = vmul.f32 %v4178_v58, %v13970_v9  ;;  %v7728_v30 = vadd.f32 %v10882_v29, %v10874_v42  ;;  %v11030_v58 = vpop.f32.mrf.mxu0 }
 0x476   : > { %v7635_v47 = vpop.f32.mrf.mxu1 }
 0x477   : > { %v4179_v34 = vmax.f32 %v4087_v31, 0.0  ;;  %v3963_v38 = vadd.f32 %v7634_v49, %v10989_v0  ;;  %v13728_v16 = vrot.slane %v11004_v1, 7  ;;  %v13727_v27 = vrot.slane %v11004_v1, 1 }
 0x478   : > { %v7636_v37 = vpop.f32.mrf.mxu1 }
 0x479   : > { %v4203_v46 = vmul.f32 %v4179_v34, %v13971_v25  ;;  %v4092_v32 = vadd.f32 %v7722_v8, %v3963_v38  ;;  %v7637_v61 = vadd.f32 %v7636_v37, %v7635_v47  ;;  %v13974_v47 = vld [vmem:[#allocation41_spill] sm:$0xff] }
 0x47a   : > { %v7638_v23 = vpop.f32.mrf.mxu1 }
 0x47b   : > { %v4227_v5 = vrot.slane %v4203_v46, 7  ;;  %v4180_v12 = vmax.f32 %v4092_v32, 0.0  ;;  %v3966_v62 = vadd.f32 %v7637_v61, %v10989_v0  ;;  %v4275_v51 = vrot.slane %v4203_v46, 1 }
 0x47c   : > { %v7639_v14 = vpop.f32.mrf.mxu1  ;;  %v11017_v4 = vpack.c.bf16 %v4203_v46, %v11004_v1  ;;  %v7731_v46 = vadd.f32 %v10898_v24, %v10890_v40 }
 0x47d   : > { %v11023_v20 = vsel %vm2911_vm5, %v13728_v16, %v4227_v5  ;;  %v4204_v28 = vmul.f32 %v4180_v12, %v13973_v35  ;;  %v4095_v21 = vadd.f32 %v7725_v52, %v3966_v62  ;;  %v7640_v3 = vadd.f32 %v7639_v14, %v7638_v23  ;;  %v11049_v23 = vpop.f32.mrf.mxu0 }
 0x47e   : > { %13972 = vst [vmem:[#allocation23_spill] sm:$0xff] %v11017_v4  ;;  %4690 = vmatprep.mubr.bf16.mxu1 %v11017_v4  ;;  %v7641_v55 = vpop.f32.mrf.mxu1  ;;  %v4320_v59 = vsel %vm1252_vm2, %v13727_v27, %v4275_v51 }
 0x47f   : > { %v4228_v50 = vrot.slane %v4204_v28, 7  ;;  %v4276_v17 = vrot.slane %v4204_v28, 1  ;;  %v4181_v26 = vmax.f32 %v4095_v21, 0.0  ;;  %v3971_v7 = vadd.f32 %v7640_v3, %v10989_v0  ;;  %v13976_v21 = vld [vmem:[#allocation38_spill] sm:$0xff] }
 0x480   : > { %v7642_v31 = vpop.f32.mrf.mxu1  ;;  %v7734_v3 = vadd.f32 %v10914_v10, %v10906_v53 }
 0x481   : > { %v4319_v49 = vsel %vm1252_vm2, %v4275_v51, %v4276_v17  ;;  %v4205_v8 = vmul.f32 %v4181_v26, %v13974_v47  ;;  %v7643_v34 = vadd.f32 %v7642_v31, %v7641_v55  ;;  %v11042_v38 = vsel %vm2911_vm5, %v4227_v5, %v4228_v50 }
 0x482   : > { %v4324_v42 = vpack.c.bf16 %v4319_v49, %v4320_v59  ;;  %v4100_v29 = vadd.f32 %v7728_v30, %v3971_v7  ;;  %v7644_v37 = vpop.f32.mrf.mxu1  ;;  %v11062_v59 = vpop.f32.mrf.mxu0 }
 0x483   : > { %v4229_v32 = vrot.slane %v4205_v8, 7  ;;  %v3974_v61 = vadd.f32 %v7643_v34, %v10989_v0  ;;  %v11047_v52 = vpack.c.bf16 %v4205_v8, %v4204_v28  ;;  %v4277_v55 = vrot.slane %v4205_v8, 1 }
 0x484   : > { %v4182_v12 = vmax.f32 %v4100_v29, 0.0  ;;  %v7645_v62 = vpop.f32.mrf.mxu1  ;;  %4844 = vmatmul.mubr.bf16.vlgmr.msra.gmra.mxu0 %v4324_v42 }
 0x485   : > { %13975 = vst [vmem:[#allocation24_spill] sm:$0xff] %v11047_v52  ;;  %v4103_v51 = vadd.f32 %v7731_v46, %v3974_v61  ;;  %v7646_v14 = vadd.f32 %v7645_v62, %v7644_v37  ;;  %4853 = vmatprep.mubr.bf16.mxu0 %v13948_v33  ;;  %v11054_v5 = vsel %vm2911_vm5, %v4228_v50, %v4229_v32  ;;  %v13977_v50 = vld [vmem:[#allocation44_spill] sm:$0xff] }
 0x486   : > { %v4206_v40 = vmul.f32 %v4182_v12, %v13976_v21  ;;  %v7647_v24 = vpop.f32.mrf.mxu1  ;;  %v7737_v37 = vadd.f32 %v10930_v18, %v10922_v6  ;;  %v4318_v62 = vsel %vm1252_vm2, %v4276_v17, %v4277_v55 }
 0x487   : > { %v4183_v26 = vmax.f32 %v4103_v51, 0.0  ;;  %v3979_v30 = vadd.f32 %v7646_v14, %v10989_v0  ;;  %v11076_v51 = vpop.f32.mrf.mxu0 }
 0x488   : > { %v4230_v7 = vrot.slane %v4206_v40, 7  ;;  %v4278_v31 = vrot.slane %v4206_v40, 1  ;;  %v7648_v49 = vpop.f32.mrf.mxu1 }
 0x489   : > { %v4207_v34 = vmul.f32 %v4183_v26, %v13977_v50  ;;  %v4108_v42 = vadd.f32 %v7734_v3, %v3979_v30  ;;  %v7649_v29 = vadd.f32 %v7648_v49, %v7647_v24  ;;  %v13979_v3 = vld [vmem:[#allocation43_spill] sm:$0xff] }
 0x48a   : > { %v7650_v46 = vpop.f32.mrf.mxu1  ;;  %v4317_v53 = vsel %vm1252_vm2, %v4277_v55, %v4278_v31  ;;  %v11071_v10 = vsel %vm2911_vm5, %v4229_v32, %v4230_v7  ;;  %v7740_v32 = vadd.f32 %v10946_v45, %v10938_v13  ;;  %v13980_v45 = vld [vmem:[#allocation46_spill] sm:$0xff] }
 0x48b   : > { %v4231_v8 = vrot.slane %v4207_v34, 7  ;;  %v4184_v61 = vmax.f32 %v4108_v42, 0.0  ;;  %v3982_v12 = vadd.f32 %v7649_v29, %v10989_v0  ;;  %v4279_v14 = vrot.slane %v4207_v34, 1 }
 0x48c   : > { %v7651_v24 = vpop.f32.mrf.mxu1  ;;  %v4327_v6 = vpack.c.bf16 %v4317_v53, %v4318_v62  ;;  %v11078_v18 = vpack.c.bf16 %v4207_v34, %v4206_v40  ;;  %v11089_v40 = vpop.f32.mrf.mxu0 }
 0x48d   : > { %v4208_v26 = vmul.f32 %v4184_v61, %v13979_v3  ;;  %v4111_v30 = vadd.f32 %v7737_v37, %v3982_v12  ;;  %v7652_v49 = vadd.f32 %v7651_v24, %v7650_v46  ;;  %v11085_v29 = vsel %vm2911_vm5, %v4230_v7, %v4231_v8 }
 0x48e   : > { %13978 = vst [vmem:[#allocation25_spill] sm:$0xff] %v11078_v18  ;;  %4854 = vmatmul.mubr.bf16.gmra.mxu0 %v4327_v6  ;;  %v7653_v42 = vpop.f32.mrf.mxu1  ;;  %v4316_v37 = vsel %vm1252_vm2, %v4278_v31, %v4279_v14  ;;  %v11105_v27 = vpop.f32.mrf.mxu0 }
 0x48f   : > { %v4232_v17 = vrot.slane %v4208_v26, 7  ;;  %v4280_v55 = vrot.slane %v4208_v26, 1  ;;  %v4185_v28 = vmax.f32 %v4111_v30, 0.0  ;;  %v3987_v53 = vadd.f32 %v7652_v49, %v10989_v0  ;;  %4863 = vmatprep.mubr.bf16.mxu0 %v13948_v33 }
 0x490   : > { %v7654_v34 = vpop.f32.mrf.mxu1  ;;  %v7743_v30 = vadd.f32 %v10959_v22, %v10948_v57 }
 0x491   : > { %v4209_v46 = vmul.f32 %v4185_v28, %v13980_v45  ;;  %v4116_v7 = vadd.f32 %v7740_v32, %v3987_v53  ;;  %v7655_v61 = vadd.f32 %v7654_v34, %v7653_v42  ;;  %v4315_v12 = vsel %vm1252_vm2, %v4279_v14, %v4280_v55  ;;  %v13982_v14 = vld [vmem:[#allocation45_spill] sm:$0xff] }
 0x492   : > { %v7656_v62 = vpop.f32.mrf.mxu1  ;;  %v4330_v24 = vpack.c.bf16 %v4315_v12, %v4316_v37  ;;  %v11100_v6 = vsel %vm2911_vm5, %v4231_v8, %v4232_v17  ;;  %v7746_v8 = vadd.f32 %v10975_v63, %v10967_v2  ;;  %v13983_v63 = vld [vmem:[#allocation37_spill] sm:$0xff] }
 0x493   : > { %v4233_v31 = vrot.slane %v4209_v46, 7  ;;  %v4186_v49 = vmax.f32 %v4116_v7, 0.0  ;;  %v3990_v13 = vadd.f32 %v7655_v61, %v10989_v0  ;;  %v4281_v28 = vrot.slane %v4209_v46, 1 }
 0x494   : > { %v7657_v32 = vpop.f32.mrf.mxu1  ;;  %v11107_v42 = vpack.c.bf16 %v4209_v46, %v4208_v26  ;;  %v11118_v26 = vpop.f32.mrf.mxu0 }
 0x495   : > { %v4210_v53 = vmul.f32 %v4186_v49, %v13982_v14  ;;  %v4119_v34 = vadd.f32 %v7743_v30, %v3990_v13  ;;  %v7658_v37 = vadd.f32 %v7657_v32, %v7656_v62  ;;  %v11114_v57 = vsel %vm2911_vm5, %v4232_v17, %v4233_v31 }
 0x496   : > { %13981 = vst [vmem:[#allocation26_spill] sm:$0xff] %v11107_v42  ;;  %4864 = vmatmul.mubr.bf16.gmra.mxu0 %v4330_v24  ;;  %v7659_v12 = vpop.f32.mrf.mxu1  ;;  %v4314_v46 = vsel %vm1252_vm2, %v4280_v55, %v4281_v28  ;;  %v11134_v14 = vpop.f32.mrf.mxu0 }
 0x497   : > { %v4234_v22 = vrot.slane %v4210_v53, 7  ;;  %v4282_v7 = vrot.slane %v4210_v53, 1  ;;  %v4187_v61 = vmax.f32 %v4119_v34, 0.0  ;;  %v3995_v16 = vadd.f32 %v7658_v37, %v10989_v0  ;;  %4873 = vmatprep.mubr.bf16.mxu0 %v13948_v33 }
 0x498   : > { %v7660_v13 = vpop.f32.mrf.mxu1  ;;  %v7749_v37 = vadd.f32 %v10982_v44, %v10980_v56 }
 0x499   : > { %v4211_v62 = vmul.f32 %v4187_v61, %v13983_v63  ;;  %v4124_v17 = vadd.f32 %v7746_v8, %v3995_v16  ;;  %v7661_v24 = vadd.f32 %v7660_v13, %v7659_v12  ;;  %v4313_v30 = vsel %vm1252_vm2, %v4281_v28, %v4282_v7  ;;  %v13985_v28 = vld [vmem:[#allocation10_spill] sm:$0xff] }
 0x49a   : > { %v7662_v49 = vpop.f32.mrf.mxu1  ;;  %v4333_v32 = vpack.c.bf16 %v4313_v30, %v4314_v46  ;;  %v11129_v34 = vsel %vm2911_vm5, %v4233_v31, %v4234_v22  ;;  %v7752_v31 = vadd.f32 %v10994_v15, %v10984_v39  ;;  %v13986_v15 = vld [vmem:[#allocation39_spill] sm:$0xff] }
 0x49b   : > { %v4235_v55 = vrot.slane %v4211_v62, 7  ;;  %v4188_v4 = vmax.f32 %v4124_v17, 0.0  ;;  %v3998_v2 = vadd.f32 %v7661_v24, %v10989_v0  ;;  %v4283_v16 = vrot.slane %v4211_v62, 1 }
 0x49c   : > { %v7663_v8 = vpop.f32.mrf.mxu1  ;;  %v11136_v12 = vpack.c.bf16 %v4211_v62, %v4210_v53  ;;  %v11147_v53 = vpop.f32.mrf.mxu0 }
 0x49d   : > { %v4212_v61 = vmul.f32 %v4188_v4, %v13985_v28  ;;  %v4127_v13 = vadd.f32 %v7749_v37, %v3998_v2  ;;  %v7664_v46 = vadd.f32 %v7663_v8, %v7662_v49  ;;  %v11143_v56 = vsel %vm2911_vm5, %v4234_v22, %v4235_v55 }
 0x49e   : > { %13984 = vst [vmem:[#allocation27_spill] sm:$0xff] %v11136_v12  ;;  %4874 = vmatmul.mubr.bf16.gmra.mxu0 %v4333_v32  ;;  %v7665_v30 = vpop.f32.mrf.mxu1  ;;  %v4312_v2 = vsel %vm1252_vm2, %v4282_v7, %v4283_v16  ;;  %v11163_v45 = vpop.f32.mrf.mxu0 }
 0x49f   : > { %v4236_v44 = vrot.slane %v4212_v61, 7  ;;  %v4284_v17 = vrot.slane %v4212_v61, 1  ;;  %v4189_v24 = vmax.f32 %v4127_v13, 0.0  ;;  %v4003_v63 = vadd.f32 %v7664_v46, %v10989_v0  ;;  %4883 = vmatprep.mubr.bf16.mxu0 %v13948_v33 }
 0x4a0   : > { %v7666_v4 = vpop.f32.mrf.mxu1  ;;  %v7755_v46 = vadd.f32 %v11007_v41, %v10999_v11 }
 0x4a1   : > { %v4213_v62 = vmul.f32 %v4189_v24, %v13986_v15  ;;  %v4132_v22 = vadd.f32 %v7752_v31, %v4003_v63  ;;  %v7667_v49 = vadd.f32 %v7666_v4, %v7665_v30  ;;  %v4311_v32 = vsel %vm1252_vm2, %v4283_v16, %v4284_v17  ;;  %v13988_v16 = vld [vmem:[#allocation11_spill] sm:$0xff] }
 0x4a2   : > { %v7668_v37 = vpop.f32.mrf.mxu1  ;;  %v4336_v8 = vpack.c.bf16 %v4311_v32, %v4312_v2  ;;  %v11158_v13 = vsel %vm2911_vm5, %v4235_v55, %v4236_v44  ;;  %v7758_v55 = vadd.f32 %v11030_v58, %v11014_v60  ;;  %v13989_v58 = vld [vmem:[#allocation14_spill] sm:$0xff] }
 0x4a3   : > { %v4237_v7 = vrot.slane %v4213_v62, 7  ;;  %v4190_v28 = vmax.f32 %v4132_v22, 0.0  ;;  %v4006_v39 = vadd.f32 %v7667_v49, %v10989_v0  ;;  %v4285_v63 = vrot.slane %v4213_v62, 1 }
 0x4a4   : > { %v7669_v31 = vpop.f32.mrf.mxu1  ;;  %v11165_v30 = vpack.c.bf16 %v4213_v62, %v4212_v61  ;;  %v11176_v61 = vpop.f32.mrf.mxu0 }
 0x4a5   : > { %v4214_v24 = vmul.f32 %v4190_v28, %v13988_v16  ;;  %v4135_v4 = vadd.f32 %v7755_v46, %v4006_v39  ;;  %v7670_v2 = vadd.f32 %v7669_v31, %v7668_v37  ;;  %v11172_v11 = vsel %vm2911_vm5, %v4236_v44, %v4237_v7 }
 0x4a6   : > { %13987 = vst [vmem:[#allocation29_spill] sm:$0xff] %v11165_v30  ;;  %4884 = vmatmul.mubr.bf16.gmra.mxu0 %v4336_v8  ;;  %v7671_v32 = vpop.f32.mrf.mxu1  ;;  %v4310_v39 = vsel %vm1252_vm2, %v4284_v17, %v4285_v63  ;;  %v11192_v3 = vpop.f32.mrf.mxu0 }
 0x4a7   : > { %v4238_v41 = vrot.slane %v4214_v24, 7  ;;  %v4286_v22 = vrot.slane %v4214_v24, 1  ;;  %v4191_v49 = vmax.f32 %v4135_v4, 0.0  ;;  %v4011_v15 = vadd.f32 %v7670_v2, %v10989_v0  ;;  %4893 = vmatprep.mubr.bf16.mxu0 %v13948_v33 }
 0x4a8   : > { %v7672_v28 = vpop.f32.mrf.mxu1  ;;  %v7761_v2 = vadd.f32 %v11062_v59, %v11049_v23 }
 0x4a9   : > { %v4215_v62 = vmul.f32 %v4191_v49, %v13989_v58  ;;  %v4140_v44 = vadd.f32 %v7758_v55, %v4011_v15  ;;  %v7673_v37 = vadd.f32 %v7672_v28, %v7671_v32  ;;  %v4309_v8 = vsel %vm1252_vm2, %v4285_v63, %v4286_v22  ;;  %v13991_v63 = vld [vmem:[#allocation13_spill] sm:$0xff] }
 0x4aa   : > { %v7674_v46 = vpop.f32.mrf.mxu1  ;;  %v4339_v31 = vpack.c.bf16 %v4309_v8, %v4310_v39  ;;  %v11187_v4 = vsel %vm2911_vm5, %v4237_v7, %v4238_v41  ;;  %v7764_v7 = vadd.f32 %v11089_v40, %v11076_v51  ;;  %v13992_v40 = vld [vmem:[#allocation40_spill] sm:$0xff] }
 0x4ab   : > { %v4239_v17 = vrot.slane %v4215_v62, 7  ;;  %v4192_v16 = vmax.f32 %v4140_v44, 0.0  ;;  %v4014_v60 = vadd.f32 %v7673_v37, %v10989_v0  ;;  %v4287_v15 = vrot.slane %v4215_v62, 1 }
 0x4ac   : > { %v7675_v55 = vpop.f32.mrf.mxu1  ;;  %v11194_v32 = vpack.c.bf16 %v4215_v62, %v4214_v24  ;;  %v7775_v24 = vpop.f32.mrf.mxu0 }
 0x4ad   : > { %v4216_v49 = vmul.f32 %v4192_v16, %v13991_v63  ;;  %v4143_v28 = vadd.f32 %v7761_v2, %v4014_v60  ;;  %v7676_v39 = vadd.f32 %v7675_v55, %v7674_v46  ;;  %v11201_v23 = vsel %vm2911_vm5, %v4238_v41, %v4239_v17 }
 0x4ae   : > { %13990 = vst [vmem:[#allocation30_spill] sm:$0xff] %v11194_v32  ;;  %4894 = vmatmul.mubr.bf16.gmra.mxu0 %v4339_v31  ;;  %v7677_v8 = vpop.f32.mrf.mxu1  ;;  %v4308_v60 = vsel %vm1252_vm2, %v4286_v22, %v4287_v15  ;;  %v7777_v50 = vpop.f32.mrf.mxu0 }
 0x4af   : > { %v4240_v59 = vrot.slane %v4216_v49, 7  ;;  %v4288_v44 = vrot.slane %v4216_v49, 1  ;;  %v4193_v37 = vmax.f32 %v4143_v28, 0.0  ;;  %v4019_v58 = vadd.f32 %v7676_v39, %v10989_v0  ;;  %4903 = vmatprep.mubr.bf16.mxu0 %v13948_v33 }
 0x4b0   : > { %v7678_v16 = vpop.f32.mrf.mxu1  ;;  %v7767_v39 = vadd.f32 %v11118_v26, %v11105_v27 }
 0x4b1   : > { %v4217_v62 = vmul.f32 %v4193_v37, %v13992_v40  ;;  %v4148_v46 = vadd.f32 %v7764_v7, %v4019_v58  ;;  %v7679_v41 = vadd.f32 %v7678_v16, %v7677_v8  ;;  %v4307_v31 = vsel %vm1252_vm2, %v4287_v15, %v4288_v44  ;;  %v13994_v8 = vld [vmem:[#allocation12_spill] sm:$0xff] }
 0x4b2   : > { %v7680_v2 = vpop.f32.mrf.mxu1  ;;  %v4342_v55 = vpack.c.bf16 %v4307_v31, %v4308_v60  ;;  %v11214_v28 = vsel %vm2911_vm5, %v4239_v17, %v4240_v59  ;;  %v7770_v17 = vadd.f32 %v11147_v53, %v11134_v14  ;;  %v13995_v53 = vld [vmem:[#allocation15_spill] sm:$0xff] }
 0x4b3   : > { %v4241_v22 = vrot.slane %v4217_v62, 7  ;;  %v4194_v63 = vmax.f32 %v4148_v46, 0.0  ;;  %v4022_v51 = vadd.f32 %v7679_v41, %v10989_v0  ;;  %v4289_v37 = vrot.slane %v4217_v62, 1 }
 0x4b4   : > { %v7681_v58 = vpop.f32.mrf.mxu1  ;;  %v11219_v7 = vpack.c.bf16 %v4217_v62, %v4216_v49  ;;  %v7778_v49 = vpop.f32.mrf.mxu0 }
 0x4b5   : > { %v4218_v15 = vmul.f32 %v4194_v63, %v13994_v8  ;;  %v4151_v16 = vadd.f32 %v7767_v39, %v4022_v51  ;;  %v7682_v60 = vadd.f32 %v7681_v58, %v7680_v2  ;;  %v11226_v27 = vsel %vm2911_vm5, %v4240_v59, %v4241_v22 }
 0x4b6   : > { %13993 = vst [vmem:[#allocation32_spill] sm:$0xff] %v11219_v7  ;;  %4904 = vmatmul.mubr.bf16.gmra.mxu0 %v4342_v55  ;;  %v7683_v31 = vpop.f32.mrf.mxu1  ;;  %v4306_v51 = vsel %vm1252_vm2, %v4288_v44, %v4289_v37  ;;  %v7780_v21 = vpop.f32.mrf.mxu0 }
 0x4b7   : > { %v4242_v26 = vrot.slane %v4218_v15, 7  ;;  %v4290_v46 = vrot.slane %v4218_v15, 1  ;;  %v4195_v41 = vmax.f32 %v4151_v16, 0.0  ;;  %v4027_v40 = vadd.f32 %v7682_v60, %v10989_v0  ;;  %4913 = vmatprep.mubr.bf16.mxu0 %v13948_v33 }
 0x4b8   : > { %v7684_v63 = vpop.f32.mrf.mxu1  ;;  %v7773_v60 = vadd.f32 %v11176_v61, %v11163_v45 }
 0x4b9   : > { %v4219_v62 = vmul.f32 %v4195_v41, %v13995_v53  ;;  %v4156_v2 = vadd.f32 %v7770_v17, %v4027_v40  ;;  %v7685_v59 = vadd.f32 %v7684_v63, %v7683_v31  ;;  %v4305_v55 = vsel %vm1252_vm2, %v4289_v37, %v4290_v46  ;;  %v13997_v31 = vld [vmem:[#allocation42_spill] sm:$0xff] }
 0x4ba   : > { %v7686_v39 = vpop.f32.mrf.mxu1  ;;  %v4345_v58 = vpack.c.bf16 %v4305_v55, %v4306_v51  ;;  %v11239_v16 = vsel %vm2911_vm5, %v4241_v22, %v4242_v26  ;;  %v7776_v55 = vadd.f32 %v7775_v24, %v11192_v3  ;;  %v13998_v24 = vld [vmem:[#allocation17_spill] sm:$0xff] }
 0x4bb   : > { %v4243_v44 = vrot.slane %v4219_v62, 7  ;;  %v4196_v8 = vmax.f32 %v4156_v2, 0.0  ;;  %v4030_v14 = vadd.f32 %v7685_v59, %v10989_v0  ;;  %v4291_v41 = vrot.slane %v4219_v62, 1 }
 0x4bc   : > { %v7687_v40 = vpop.f32.mrf.mxu1  ;;  %v11244_v17 = vpack.c.bf16 %v4219_v62, %v4218_v15  ;;  %v7781_v15 = vpop.f32.mrf.mxu0 }
 0x4bd   : > { %v4220_v37 = vmul.f32 %v4196_v8, %v13997_v31  ;;  %v4159_v63 = vadd.f32 %v7773_v60, %v4030_v14  ;;  %v7688_v51 = vadd.f32 %v7687_v40, %v7686_v39  ;;  %v11250_v45 = vsel %vm2911_vm5, %v4242_v26, %v4243_v44 }
 0x4be   : > { %13996 = vst [vmem:[#allocation34_spill] sm:$0xff] %v11244_v17  ;;  %4914 = vmatmul.mubr.bf16.gmra.mxu0 %v4345_v58  ;;  %v7689_v22 = vpop.f32.mrf.mxu1  ;;  %v4304_v8 = vsel %vm1252_vm2, %v4290_v46, %v4291_v41  ;;  %v7783_v35 = vpop.f32.mrf.mxu0 }
 0x4bf   : > { %v4244_v61 = vrot.slane %v4220_v37, 7  ;;  %v4292_v2 = vrot.slane %v4220_v37, 1  ;;  %v4197_v59 = vmax.f32 %v4159_v63, 0.0  ;;  %v4035_v53 = vadd.f32 %v7688_v51, %v10989_v0  ;;  %4923 = vmatprep.mubr.bf16.mxu0 %v13948_v33 }
 0x4c0   : > { %v7690_v62 = vpop.f32.mrf.mxu1  ;;  %v7779_v51 = vadd.f32 %v7778_v49, %v7777_v50 }
 0x4c1   : > { %v4221_v14 = vmul.f32 %v4197_v59, %v13998_v24  ;;  %v4164_v39 = vadd.f32 %v7776_v55, %v4035_v53  ;;  %v7691_v26 = vadd.f32 %v7690_v62, %v7689_v22  ;;  %v4303_v58 = vsel %vm1252_vm2, %v4291_v41, %v4292_v2 }
 0x4c2   : > { %v7692_v60 = vpop.f32.mrf.mxu1  ;;  %v4348_v40 = vpack.c.bf16 %v4303_v58, %v4304_v8  ;;  %v11263_v63 = vsel %vm2911_vm5, %v4243_v44, %v4244_v61  ;;  %v7782_v22 = vadd.f32 %v7781_v15, %v7780_v21 }
 0x4c3   : > { %v4245_v31 = vrot.slane %v4221_v14, 7  ;;  %v4198_v47 = vmax.f32 %v4164_v39, 0.0  ;;  %v4038_v46 = vadd.f32 %v7691_v26, %v10989_v0  ;;  %v4293_v3 = vrot.slane %v4221_v14, 1 }
 0x4c4   : > { %v7693_v25 = vpop.f32.mrf.mxu1  ;;  %v11266_v59 = vpack.c.bf16 %v4221_v14, %v4220_v37  ;;  %v7784_v37 = vpop.f32.mrf.mxu0 }
 0x4c5   : > { %v4222_v53 = vmul.f32 %v4198_v47, %v10064_v43  ;;  %v4167_v55 = vadd.f32 %v7779_v51, %v4038_v46  ;;  %v7694_v41 = vadd.f32 %v7693_v25, %v7692_v60  ;;  %v11271_v44 = vsel %vm2911_vm5, %v4244_v61, %v4245_v31 }
 0x4c6   : > { %13999 = vst [vmem:[#allocation35_spill] sm:$0xff] %v11266_v59  ;;  %4924 = vmatmul.mubr.bf16.gmra.mxu0 %v4348_v40  ;;  %v7695_v62 = vpop.f32.mrf.mxu1  ;;  %v4302_v47 = vsel %vm1252_vm2, %v4292_v2, %v4293_v3  ;;  %v4349_v25 = vpack.c.bf16 %v11271_v44, %v11263_v63  ;;  %v7785_v40 = vadd.f32 %v7784_v37, %v7783_v35  ;;  %v8438_v63 = vld [vmem:[%s13671_s15 + $0x1a4] ss:$8 sps:$4 sm:$0xff]   ;;  %v8439_v44 = vld [vmem:[%s13671_s15 + $0x190] ss:$8 sps:$4 sm:$0xff]  }
 0x4c7   : > { %v4246_v50 = vrot.slane %v4222_v53, 7  ;;  %v4294_v49 = vrot.slane %v4222_v53, 1  ;;  %v4199_v8 = vmax.f32 %v4167_v55, 0.0  ;;  %v4043_v39 = vadd.f32 %v7694_v41, %v10989_v0  ;;  %4933 = vmatprep.mubr.bf16.mxu0 %v13948_v33 }
 0x4c8   : > { %v7696_v14 = vpop.f32.mrf.mxu1 }
 0x4c9   : > { %v4223_v21 = vmul.f32 %v4199_v8, %v10141_v48  ;;  %v4172_v15 = vadd.f32 %v7782_v22, %v4043_v39  ;;  %v7697_v61 = vadd.f32 %v7696_v14, %v7695_v62  ;;  %v4301_v26 = vsel %vm1252_vm2, %v4293_v3, %v4294_v49 }
 0x4ca   : > { %v4351_v58 = vpack.c.bf16 %v4301_v26, %v4302_v47  ;;  %v11284_v60 = vsel %vm2911_vm5, %v4245_v31, %v4246_v50 }
 0x4cb   : > { %v4247_v51 = vrot.slane %v4223_v21, 7  ;;  %v4200_v46 = vmax.f32 %v4172_v15, 0.0  ;;  %v4046_v2 = vadd.f32 %v7697_v61, %v10989_v0  ;;  %v11287_v55 = vpack.c.bf16 %v4223_v21, %v4222_v53 }
 0x4cc   : > { %v4295_v41 = vrot.slane %v4223_v21, 1  ;;  %v14002_v15 = vrot.slane %v11004_v1, 7 }
 0x4cd   : > { %14000 = vst [vmem:[#allocation20_spill] sm:$0xff] %v11287_v55  ;;  %v4224_v8 = vmul.f32 %v4200_v46, %v10097_v54  ;;  %v4175_v22 = vadd.f32 %v7785_v40, %v4046_v2  ;;  %v11292_v62 = vsel %vm2911_vm5, %v4246_v50, %v4247_v51  ;;  %v14003_v46 = vrot.slane %v11004_v1, 1  ;;  %v8397_v1 = vld [vmem:[%s13671_s15 + $0x170] ss:$8 sps:$4 sm:$0xff]  }
 0x4ce   : > { %4934 = vmatmul.mubr.bf16.gmra.mxu0 %v4351_v58  ;;  %v4352_v31 = vpack.c.bf16 %v11292_v62, %v11284_v60  ;;  %v4300_v37 = vsel %vm1252_vm2, %v4294_v49, %v4295_v41  ;;  %v8442_v60 = vld [vmem:[%s13671_s15 + $0x180] ss:$8 sps:$4 sm:$0xff]  }
 0x4cf   : > { %v4248_v3 = vrot.slane %v4224_v8, 7  ;;  %v4296_v35 = vrot.slane %v4224_v8, 1  ;;  %v4201_v39 = vmax.f32 %v4175_v22, 0.0  ;;  %4943 = vmatprep.mubr.bf16.mxu0 %v13948_v33  ;;  %v8399_v22 = vld [vmem:[%s13671_s15 + $0x174] ss:$8 sps:$4 sm:$0xff]  }
 0x4d0   : > { %6161 = vmatprep.subr.bf16.mxu0 %v8399_v22  ;;  %v8448_v22 = vld [vmem:[%s13671_s15 + $0x60] ss:$8 sps:$4 sm:$0xff]  }
 0x4d1   : > { %v4225_v0 = vmul.f32 %v4201_v39, %v13926_v19  ;;  %v4299_v53 = vsel %vm1252_vm2, %v4295_v41, %v4296_v35  ;;  %v11304_v50 = vsel %vm2911_vm5, %v4247_v51, %v4248_v3  ;;  %6162 = vmatpush1.bf16.msra.mxu0 %v8397_v1  ;;  %v8409_v39 = vld [vmem:[%s13671_s15 + $0x130] ss:$8 sps:$4 sm:$0xff]  }
 0x4d2   : > { %v4354_v14 = vpack.c.bf16 %v4299_v53, %v4300_v37  ;;  %v8414_v53 = vld [vmem:[%s13671_s15 + $0x124] ss:$8 sps:$4 sm:$0xff]   ;;  %v8415_v37 = vld [vmem:[%s13671_s15 + $0x110] ss:$8 sps:$4 sm:$0xff]  }
 0x4d3   : > { %v4249_v47 = vrot.slane %v4225_v0, 7  ;;  %v11306_v21 = vpack.c.bf16 %v4225_v0, %v4224_v8  ;;  %v4297_v26 = vrot.slane %v4225_v0, 1  ;;  %v14005_v8 = vpack.c.bf16 %v11085_v29, %v11071_v10  ;;  %v8402_v10 = vld [vmem:[%s13671_s15 + $0x164] ss:$8 sps:$4 sm:$0xff]   ;;  %v8403_v29 = vld [vmem:[%s13671_s15 + $0x150] ss:$8 sps:$4 sm:$0xff]  }
 0x4d4   : > { %6163 = vmatprep.subr.bf16.mxu0 %v8402_v10  ;;  %v8412_v0 = vld [vmem:[%s13671_s15 + $0x120] ss:$8 sps:$4 sm:$0xff]   ;;  %v8451_v10 = vld [vmem:[%s13671_s15 + $0x50] ss:$8 sps:$4 sm:$0xff]  }
 0x4d5   : > { %14001 = vst [vmem:[#allocation9_spill] sm:$0xff] %v11306_v21  ;;  %v4273_v61 = vsel %vm2911_vm5, %v4249_v47, %v14002_v15  ;;  %v11314_v58 = vsel %vm2911_vm5, %v4248_v3, %v4249_v47  ;;  %v4298_v51 = vsel %vm1252_vm2, %v4296_v35, %v4297_v26  ;;  %v4321_v2 = vsel %vm1252_vm2, %v4297_v26, %v14003_v46  ;;  %v8406_v3 = vld [vmem:[%s13671_s15 + $0x140] ss:$8 sps:$4 sm:$0xff]   ;;  %v8408_v35 = vld [vmem:[%s13671_s15 + $0x144] ss:$8 sps:$4 sm:$0xff]  }
 0x4d6   : > { %4944 = vmatmul.mubr.bf16.gmra.mxu0 %v4354_v14  ;;  %v4322_v49 = vpack.c.bf16 %v11023_v20, %v4273_v61  ;;  %v4355_v40 = vpack.c.bf16 %v11314_v58, %v11304_v50  ;;  %v4357_v41 = vpack.c.bf16 %v4321_v2, %v4298_v51  ;;  %v14004_v20 = vpack.c.bf16 %v11054_v5, %v11042_v38  ;;  %v8400_v5 = vld [vmem:[%s13671_s15 + $0x160] ss:$8 sps:$4 sm:$0xff]   ;;  %v8420_v47 = vld [vmem:[%s13671_s15 + $0x104] ss:$8 sps:$4 sm:$0xff]   ;;  %v8421_v15 = vld [vmem:[%s13671_s15 + $0x1f0] ss:$8 sps:$4 sm:$0xff]  }
 0x4d7   : > { %4953 = vmatprep.mubr.bf16.mxu0 %v13948_v33  ;;  %v14006_v38 = vpack.c.bf16 %v11114_v57, %v11100_v6  ;;  %6164 = vmatpush1.bf16.msra.mxu0 %v8400_v5  ;;  %v8405_v6 = vld [vmem:[%s13671_s15 + $0x154] ss:$8 sps:$4 sm:$0xff]   ;;  %v14007_v57 = vpack.c.bf16 %v11143_v56, %v11129_v34  ;;  %v14008_v56 = vpack.c.bf16 %v11172_v11, %v11158_v13  ;;  %v8418_v14 = vld [vmem:[%s13671_s15 + $0x100] ss:$8 sps:$4 sm:$0xff]   ;;  %v8426_v26 = vld [vmem:[%s13671_s15 + $0x1e4] ss:$8 sps:$4 sm:$0xff]  }
 0x4d8   : > { %4691 = vmatmul.mubr.bf16.vlgmr.msra.gmra.mxu1 %v4322_v49  ;;  %6165 = vmatprep.subr.bf16.mxu0 %v8405_v6  ;;  %v8411_v34 = vld [vmem:[%s13671_s15 + $0x134] ss:$8 sps:$4 sm:$0xff]   ;;  %v14009_v11 = vpack.c.bf16 %v11201_v23, %v11187_v4  ;;  %v14010_v23 = vpack.c.bf16 %v11226_v27, %v11214_v28  ;;  %v8424_v61 = vld [vmem:[%s13671_s15 + $0x1e0] ss:$8 sps:$4 sm:$0xff]   ;;  %v8427_v49 = vld [vmem:[%s13671_s15 + $0x1d0] ss:$8 sps:$4 sm:$0xff]   ;;  %v14011_v27 = vpack.c.bf16 %v11250_v45, %v11239_v16 }
 0x4d9   : > { %4700 = vmatprep.mubr.bf16.mxu1 %v11047_v52  ;;  %v8417_v13 = vld [vmem:[%s13671_s15 + $0x114] ss:$8 sps:$4 sm:$0xff]   ;;  %v8430_v51 = vld [vmem:[%s13671_s15 + $0x1c0] ss:$8 sps:$4 sm:$0xff]   ;;  %v8432_v46 = vld [vmem:[%s13671_s15 + $0x1c4] ss:$8 sps:$4 sm:$0xff]  }
 0x4da   : > { %v8423_v4 = vld [vmem:[%s13671_s15 + $0x1f4] ss:$8 sps:$4 sm:$0xff]   ;;  %v8433_v16 = vld [vmem:[%s13671_s15 + $0x1b0] ss:$8 sps:$4 sm:$0xff]   ;;  %v8436_v2 = vld [vmem:[%s13671_s15 + $0x1a0] ss:$8 sps:$4 sm:$0xff]  }
 0x4db   : > { %6166 = vmatpush1.bf16.msra.mxu0 %v8403_v29  ;;  %v8429_v28 = vld [vmem:[%s13671_s15 + $0x1d4] ss:$8 sps:$4 sm:$0xff]   ;;  %v8445_v50 = vld [vmem:[%s13671_s15 + $0x70] ss:$8 sps:$4 sm:$0xff]  }
 0x4dc   : > { %6167 = vmatprep.subr.bf16.mxu0 %v8408_v35  ;;  %v8435_v45 = vld [vmem:[%s13671_s15 + $0x1b4] ss:$8 sps:$4 sm:$0xff]  }
 0x4dd   : > { %v8447_v58 = vld [vmem:[%s13671_s15 + $0x74] ss:$8 sps:$4 sm:$0xff]  }
 0x4de   : > { %4954 = vmatmul.mubr.bf16.gmra.mxu0 %v4357_v41  ;;  %v8444_v41 = vld [vmem:[%s13671_s15 + $0x184] ss:$8 sps:$4 sm:$0xff]   ;;  %6008 = vmatprep.subr.bf16.mxu1 %v8447_v58  ;;  %v8453_v29 = vld [vmem:[%s13671_s15 + $0x54] ss:$8 sps:$4 sm:$0xff]   ;;  %v8496_v58 = vld [vmem:[%s13671_s15 + $0xa0] ss:$8 sps:$4 sm:$0xff]  }
 0x4df   : > { %6168 = vmatpush1.bf16.msra.mxu0 %v8406_v3  ;;  %6009 = vmatpush1.bf16.msra.mxu1 %v8445_v50  ;;  %v8456_v3 = vld [vmem:[%s13671_s15 + $0x44] ss:$8 sps:$4 sm:$0xff]   ;;  %v14031_v52 = vld [vmem:[#allocation43_spill] sm:$0xff] }
 0x4e0   : > { %4701 = vmatmul.mubr.bf16.gmra.mxu1 %v14004_v20  ;;  %6169 = vmatprep.subr.bf16.mxu0 %v8411_v34  ;;  %v8459_v34 = vld [vmem:[%s13671_s15 + $0x34] ss:$8 sps:$4 sm:$0xff]   ;;  %v8498_v50 = vld [vmem:[%s13671_s15 + $0xa4] ss:$8 sps:$4 sm:$0xff]  }
 0x4e1   : > { %4710 = vmatprep.mubr.bf16.mxu1 %v11078_v18 }
 0x4e3   : > { %6170 = vmatpush1.bf16.msra.mxu0 %v8409_v39  ;;  %v8457_v39 = vld [vmem:[%s13671_s15 + $0x30] ss:$8 sps:$4 sm:$0xff]  }
 0x4e4   : > { %6171 = vmatprep.subr.bf16.mxu0 %v8414_v53  ;;  %v8462_v53 = vld [vmem:[%s13671_s15 + $0x24] ss:$8 sps:$4 sm:$0xff]  }
 0x4e7   : > { %6172 = vmatpush1.bf16.msra.mxu0 %v8412_v0  ;;  %v8460_v0 = vld [vmem:[%s13671_s15 + $0x20] ss:$8 sps:$4 sm:$0xff]  }
 0x4e8   : > { %4711 = vmatmul.mubr.bf16.gmra.mxu1 %v14005_v8  ;;  %6173 = vmatprep.subr.bf16.mxu0 %v8417_v13  ;;  %v8463_v13 = vld [vmem:[%s13671_s15 + $0x10] ss:$8 sps:$4 sm:$0xff]  }
 0x4e9   : > { %4720 = vmatprep.mubr.bf16.mxu1 %v11107_v42 }
 0x4eb   : > { %6174 = vmatpush1.bf16.msra.mxu0 %v8415_v37 }
 0x4ec   : > { %6175 = vmatprep.subr.bf16.mxu0 %v8420_v47  ;;  %v8466_v47 = vld [vmem:[%s13671_s15] ss:$8 sps:$4 sm:$0xff]  }
 0x4ef   : > { %6176 = vmatpush1.bf16.msra.mxu0 %v8418_v14 }
 0x4f0   : > { %4721 = vmatmul.mubr.bf16.gmra.mxu1 %v14006_v38  ;;  %6177 = vmatprep.subr.bf16.mxu0 %v8423_v4  ;;  %v8450_v38 = vld [vmem:[%s13671_s15 + $0x64] ss:$8 sps:$4 sm:$0xff]  }
 0x4f1   : > { %4730 = vmatprep.mubr.bf16.mxu1 %v11136_v12  ;;  %6010 = vmatprep.subr.bf16.mxu1 %v8450_v38 }
 0x4f2   : > { %6011 = vmatpush1.bf16.msra.mxu1 %v8448_v22  ;;  %v8504_v22 = vld [vmem:[%s13671_s15 + $0x94] ss:$8 sps:$4 sm:$0xff]  }
 0x4f3   : > { %6178 = vmatpush2.bf16.msra.mxu0 %v8421_v15  ;;  %6012 = vmatprep.subr.bf16.mxu1 %v8453_v29  ;;  %v8468_v15 = vld [vmem:[%s13671_s15 + $0x4] ss:$8 sps:$4 sm:$0xff]  }
 0x4f4   : > { %6179 = vmatprep.subr.bf16.mxu0 %v8426_v26  ;;  %v8510_v29 = vld [vmem:[%s13671_s15 + $0x84] ss:$8 sps:$4 sm:$0xff]  }
 0x4f6   : > { %6013 = vmatpush1.bf16.msra.mxu1 %v8451_v10  ;;  %v8502_v10 = vld [vmem:[%s13671_s15 + $0x90] ss:$8 sps:$4 sm:$0xff]  }
 0x4f7   : > { %6180 = vmatpush2.bf16.msra.mxu0 %v8424_v61  ;;  %6014 = vmatprep.subr.bf16.mxu1 %v8456_v3  ;;  %v8471_v61 = vld [vmem:[%s13671_s15 + $0xf4] ss:$8 sps:$4 sm:$0xff]   ;;  %v8508_v3 = vld [vmem:[%s13671_s15 + $0x80] ss:$8 sps:$4 sm:$0xff]  }
 0x4f8   : > { %4731 = vmatmul.mubr.bf16.gmra.mxu1 %v14007_v57  ;;  %6181 = vmatprep.subr.bf16.mxu0 %v8429_v28  ;;  %v8454_v57 = vld [vmem:[%s13671_s15 + $0x40] ss:$8 sps:$4 sm:$0xff]   ;;  %v8474_v28 = vld [vmem:[%s13671_s15 + $0xe4] ss:$8 sps:$4 sm:$0xff]  }
 0x4f9   : > { %4740 = vmatprep.mubr.bf16.mxu1 %v11165_v30 }
 0x4fa   : > { %6015 = vmatpush1.bf16.msra.mxu1 %v8454_v57 }
 0x4fb   : > { %6182 = vmatpush2.bf16.msra.mxu0 %v8427_v49  ;;  %6016 = vmatprep.subr.bf16.mxu1 %v8459_v34  ;;  %v8472_v49 = vld [vmem:[%s13671_s15 + $0xe0] ss:$8 sps:$4 sm:$0xff]   ;;  %v13731_v34 = vsub.s32 0, %v13899_v36 }
 0x4fc   : > { %6183 = vmatprep.subr.bf16.mxu0 %v8432_v46  ;;  %v8478_v46 = vld [vmem:[%s13671_s15 + $0xd0] ss:$8 sps:$4 sm:$0xff]  }
 0x4fe   : > { %6017 = vmatpush1.bf16.msra.mxu1 %v8457_v39 }
 0x4ff   : > { %6184 = vmatpush2.bf16.msra.mxu0 %v8430_v51  ;;  %6018 = vmatprep.subr.bf16.mxu1 %v8462_v53  ;;  %v4406_v53 = vld [vmem:[%s13670_s14] sm:$0x3] }
 0x500   : > { %4741 = vmatmul.mubr.bf16.gmra.mxu1 %v14008_v56  ;;  %6185 = vmatprep.subr.bf16.mxu0 %v8435_v45 }
 0x501   : > { %4750 = vmatprep.mubr.bf16.mxu1 %v11194_v32 }
 0x502   : > { %6019 = vmatpush1.bf16.msra.mxu1 %v8460_v0 }
 0x503   : > { %6186 = vmatpush2.bf16.msra.mxu0 %v8433_v16  ;;  %v8480_v16 = vld [vmem:[%s13671_s15 + $0xd4] ss:$8 sps:$4 sm:$0xff]  }
 0x504   : > { %6187 = vmatprep.subr.bf16.mxu0 %v8438_v63  ;;  %v8486_v63 = vld [vmem:[%s13671_s15 + $0xc4] ss:$8 sps:$4 sm:$0xff]  }
 0x507   : > { %6188 = vmatpush2.bf16.msra.mxu0 %v8436_v2  ;;  %v8484_v2 = vld [vmem:[%s13671_s15 + $0xc0] ss:$8 sps:$4 sm:$0xff]  }
 0x508   : > { %4751 = vmatmul.mubr.bf16.gmra.mxu1 %v14009_v11  ;;  %v8465_v11 = vld [vmem:[%s13671_s15 + $0x14] ss:$8 sps:$4 sm:$0xff]  }
 0x509   : > { %4760 = vmatprep.mubr.bf16.mxu1 %v11219_v7  ;;  %6020 = vmatprep.subr.bf16.mxu1 %v8465_v11  ;;  %v11616_v11 = vrot.slane %v4406_v53, %v13731_v34 }
 0x50a   : > { %6021 = vmatpush1.bf16.msra.mxu1 %v8463_v13  ;;  %v13730_v13 = vsub.s32 1, %v13899_v36 }
 0x50b   : > { %6022 = vmatprep.subr.bf16.mxu1 %v8468_v15 }
 0x50c   : > { %v11622_v15 = vrot.slane %v4406_v53, %v13730_v13 }
 0x50e   : > { %6023 = vmatpush1.bf16.msra.mxu1 %v8466_v47 }
 0x50f   : > { %6024 = vmatprep.subr.bf16.mxu1 %v8471_v61 }
 0x510   : > { %4761 = vmatmul.mubr.bf16.gmra.mxu1 %v14010_v23  ;;  %v8469_v23 = vld [vmem:[%s13671_s15 + $0xf0] ss:$8 sps:$4 sm:$0xff]  }
 0x511   : > { %4770 = vmatprep.mubr.bf16.mxu1 %v11244_v17 }
 0x512   : > { %6025 = vmatpush2.bf16.msra.mxu1 %v8469_v23 }
 0x513   : > { %6026 = vmatprep.subr.bf16.mxu1 %v8474_v28 }
 0x516   : > { %6027 = vmatpush2.bf16.msra.mxu1 %v8472_v49 }
 0x517   : > { %6028 = vmatprep.subr.bf16.mxu1 %v8480_v16 }
 0x518   : > { %4771 = vmatmul.mubr.bf16.gmra.mxu1 %v14011_v27  ;;  %v8477_v27 = vld [vmem:[%s13671_s15 + $0x374] ss:$8 sps:$4 sm:$0xff]  }
 0x519   : > { %4780 = vmatprep.mubr.bf16.mxu1 %v11266_v59 }
 0x51a   : > { %6029 = vmatpush2.bf16.msra.mxu1 %v8478_v46 }
 0x51b   : > { %6030 = vmatprep.subr.bf16.mxu1 %v8486_v63 }
 0x51e   : > { %6031 = vmatpush2.bf16.msra.mxu1 %v8484_v2 }
 0x520   : > { %4781 = vmatmul.mubr.bf16.gmra.mxu1 %v4349_v25  ;;  %v8441_v25 = vld [vmem:[%s13671_s15 + $0x194] ss:$8 sps:$4 sm:$0xff]  }
 0x521   : > { %4790 = vmatprep.mubr.bf16.mxu1 %v11287_v55  ;;  %6189 = vmatprep.subr.bf16.mxu0 %v8441_v25  ;;  %v8490_v25 = vld [vmem:[%s13671_s15 + $0xb0] ss:$8 sps:$4 sm:$0xff]  }
 0x522   : > { %6190 = vmatpush2.bf16.msra.mxu0 %v8439_v44 }
 0x523   : > { %6191 = vmatprep.subr.bf16.mxu0 %v8444_v41  ;;  %v8492_v41 = vld [vmem:[%s13671_s15 + $0xb4] ss:$8 sps:$4 sm:$0xff]  }
 0x524   : > { %6032 = vmatprep.subr.bf16.mxu1 %v8492_v41 }
 0x525   : > { %6033 = vmatpush2.bf16.msra.mxu1 %v8490_v25 }
 0x526   : > { %6192 = vmatpush2.bf16.msra.mxu0 %v8442_v60  ;;  %6034 = vmatprep.subr.bf16.mxu1 %v8498_v50 }
 0x527   : > { %6467 = vmatprep.subr.bf16.mxu0 %v8477_v27 }
 0x528   : > { %4791 = vmatmul.mubr.bf16.gmra.mxu1 %v4352_v31 }
 0x529   : > { %4800 = vmatprep.mubr.bf16.mxu1 %v11306_v21  ;;  %6035 = vmatpush2.bf16.msra.mxu1 %v8496_v58 }
 0x52a   : > { %6036 = vmatprep.subr.bf16.mxu1 %v8504_v22 }
 0x52d   : > { %6037 = vmatpush2.bf16.msra.mxu1 %v8502_v10 }
 0x52e   : > { %6038 = vmatprep.subr.bf16.mxu1 %v8510_v29 }
 0x530   : > { %4801 = vmatmul.mubr.bf16.gmra.mxu1 %v4355_v40 }
 0x531   : > { %6039 = vmatpush2.bf16.msra.mxu1 %v8508_v3 }
 0x544   : > { %v11466_v62 = vpop.f32.mrf.mxu0 }
 0x546   : > { %v11468_v31 = vpop.f32.mrf.mxu0 }
 0x548   : > { %v11470_v20 = vpop.f32.mrf.mxu0 }
 0x54a   : > { %v11472_v8 = vpop.f32.mrf.mxu0 }
 0x54e   : > { %v11480_v40 = vpop.f32.mrf.mxu0 }
 0x550   : > { %v11482_v1 = vpop.f32.mrf.mxu0 }
 0x552   : > { %v11490_v5 = vpop.f32.mrf.mxu0 }
 0x554   : > { %v11498_v6 = vpop.f32.mrf.mxu0 }
 0x556   : > { %v11506_v35 = vpop.f32.mrf.mxu0 }
 0x558   : > { %v11514_v56 = vpop.f32.mrf.mxu0 }
 0x55a   : > { %v11522_v37 = vpop.f32.mrf.mxu0 }
 0x55c   : > { %v11530_v14 = vpop.f32.mrf.mxu0 }
 0x55e   : > { %v11538_v4 = vpop.f32.mrf.mxu0 }
 0x560   : > { %v11546_v26 = vpop.f32.mrf.mxu0 }
 0x562   : > { %v11557_v51 = vpop.f32.mrf.mxu0 }
 0x564   : > { %v11565_v45 = vpop.f32.mrf.mxu0 }
 0x566   : > { %v11573_v44 = vpop.f32.mrf.mxu0 }
 0x568   : > { %v11581_v60 = vpop.f32.mrf.mxu0 }
 0x56a   : > { %v11592_v38 = vpop.f32.mrf.mxu0 }
 0x56c   : > { %v11600_v57 = vpop.f32.mrf.mxu0 }
 0x56e   : > { %v11605_v39 = vpop.f32.mrf.mxu0 }
 0x570   : > { %v11608_v0 = vpop.f32.mrf.mxu0 }
 0x572   : > { %v11618_v47 = vpop.f32.mrf.mxu0 }
 0x574   : > { %v11624_v61 = vpop.f32.mrf.mxu0 }
 0x576   : > { %v11629_v2 = vpop.f32.mrf.mxu0 }
 0x578   : > { %v11638_v3 = vpop.f32.mrf.mxu0 }
 0x598   : > { %v4692_v23 = vpop.f32.mrf.mxu1 }
 0x599   : > { %v4693_v49 = vadd.f32 %v4692_v23, %v11616_v11 }
 0x59a   : > { %v4694_v28 = vpop.f32.mrf.mxu1 }
 0x59b   : > { %v4846_v27 = vadd.f32 %v11466_v62, %v4693_v49  ;;  %v4695_v46 = vadd.f32 %v4694_v28, %v11622_v15 }
 0x59c   : > { %v4696_v16 = vpop.f32.mrf.mxu1 }
 0x59d   : > { %v4964_v63 = vmax.f32 %v4846_v27, 0.0  ;;  %v4848_v25 = vadd.f32 %v11468_v31, %v4695_v46  ;;  %v4697_v41 = vadd.f32 %v4696_v16, %v11616_v11  ;;  %v14013_v46 = vld [vmem:[#allocation36_spill] sm:$0xff] }
 0x59e   : > { %v4698_v50 = vpop.f32.mrf.mxu1 }
 0x59f   : > { %v11634_v58 = vmul.f32 %v4964_v63, %v13970_v9  ;;  %v4965_v22 = vmax.f32 %v4848_v25, 0.0  ;;  %v4850_v10 = vadd.f32 %v11470_v20, %v4697_v41  ;;  %v4699_v29 = vadd.f32 %v4698_v50, %v11622_v15 }
 0x5a0   : > { %v4702_v62 = vpop.f32.mrf.mxu1 }
 0x5a1   : > { %v11641_v53 = vmul.f32 %v4965_v22, %v13970_v9  ;;  %v4966_v23 = vmax.f32 %v4850_v10, 0.0  ;;  %v4852_v31 = vadd.f32 %v11472_v8, %v4699_v29  ;;  %v4703_v49 = vadd.f32 %v4702_v62, %v11616_v11  ;;  %v11651_v10 = vpop.f32.mrf.mxu0 }
 0x5a2   : > { %v4704_v28 = vpop.f32.mrf.mxu1  ;;  %v13733_v27 = vrot.slane %v11634_v58, 7  ;;  %v13735_v63 = vrot.slane %v11634_v58, 1 }
 0x5a3   : > { %14012 = vst [vmem:[#allocation21_spill] sm:$0xff] %v11641_v53  ;;  %v5014_v16 = vmul.f32 %v4966_v23, %v14013_v46  ;;  %v4705_v20 = vadd.f32 %v4704_v28, %v11622_v15  ;;  %v4967_v25 = vmax.f32 %v4852_v31, 0.0  ;;  %v4856_v41 = vadd.f32 %v11480_v40, %v4703_v49  ;;  %v8519_v49 = vld [vmem:[%s13671_s15 + $0x274] ss:$8 sps:$4 sm:$0xff]  }
 0x5a4   : > { %v4706_v50 = vpop.f32.mrf.mxu1  ;;  %6314 = vmatprep.subr.bf16.mxu1 %v8519_v49 }
 0x5a5   : > { %v5062_v8 = vrot.slane %v5014_v16, 7  ;;  %v5158_v29 = vrot.slane %v5014_v16, 1  ;;  %v4858_v62 = vadd.f32 %v11482_v1, %v4705_v20  ;;  %v5254_v23 = vpack.c.bf16 %v5014_v16, %v11634_v58 }
 0x5a6   : > { %v11657_v28 = vmul.f32 %v4967_v25, %v14013_v46  ;;  %v4968_v34 = vmax.f32 %v4856_v41, 0.0  ;;  %v4707_v31 = vadd.f32 %v4706_v50, %v11616_v11  ;;  %v4708_v40 = vpop.f32.mrf.mxu1  ;;  %v14015_v41 = vld [vmem:[#allocation33_spill] sm:$0xff] }
 0x5a7   : > { %v11667_v1 = vsel %vm2911_vm5, %v13733_v27, %v5062_v8  ;;  %v11673_v16 = vsel %vm1252_vm2, %v13735_v63, %v5158_v29  ;;  %v4969_v20 = vmax.f32 %v4858_v62, 0.0  ;;  %v4709_v25 = vadd.f32 %v4708_v40, %v11622_v15  ;;  %v8475_v27 = vld [vmem:[%s13671_s15 + $0x370] ss:$8 sps:$4 sm:$0xff]   ;;  %v11686_v63 = vpop.f32.mrf.mxu0 }
 0x5a8   : > { %14014 = vst [vmem:[#allocation22_spill] sm:$0xff] %v11673_v16  ;;  %v11677_v50 = vmul.f32 %v4968_v34, %v14015_v41  ;;  %v4860_v13 = vadd.f32 %v11490_v5, %v4707_v31  ;;  %v4712_v22 = vpop.f32.mrf.mxu1  ;;  %v5255_v46 = vpack.c.bf16 %v11657_v28, %v11641_v53  ;;  %v5063_v9 = vrot.slane %v11657_v28, 7  ;;  %v8483_v31 = vld [vmem:[%s13671_s15 + $0x364] ss:$8 sps:$4 sm:$0xff]  }
 0x5a9   : > { %v11689_v62 = vmul.f32 %v4969_v20, %v14015_v41  ;;  %v4862_v34 = vadd.f32 %v11498_v6, %v4709_v25  ;;  %v4713_v5 = vadd.f32 %v4712_v22, %v11616_v11  ;;  %v14016_v20 = vrot.slane %v11641_v53, 7 }
 0x5aa   : > { %v5064_v21 = vrot.slane %v11677_v50, 7  ;;  %v13742_v55 = vrot.slane %v11677_v50, 1  ;;  %v4970_v49 = vmax.f32 %v4860_v13, 0.0  ;;  %6193 = vmatprep.mubr.bf16.mxu0 %v5255_v46  ;;  %v4714_v59 = vpop.f32.mrf.mxu1  ;;  %v14019_v46 = vld [vmem:[#allocation41_spill] sm:$0xff] }
 0x5ab   : > { %v11703_v6 = vsel %vm2911_vm5, %v14016_v20, %v5063_v9  ;;  %v4971_v22 = vmax.f32 %v4862_v34, 0.0  ;;  %v4866_v25 = vadd.f32 %v11506_v35, %v4713_v5  ;;  %v4715_v41 = vadd.f32 %v4714_v59, %v11622_v15  ;;  %6194 = vmatmul.mubr.bf16.vlgmr.msra.gmra.mxu0 %v5254_v23  ;;  %v8481_v35 = vld [vmem:[%s13671_s15 + $0x360] ss:$8 sps:$4 sm:$0xff]   ;;  %v11725_v34 = vpop.f32.mrf.mxu0  ;;  %v8489_v20 = vld [vmem:[%s13671_s15 + $0x354] ss:$8 sps:$4 sm:$0xff]  }
 0x5ac   : > { %14017 = vst [vmem:[#allocation47_spill] sm:$0xff] %v11703_v6  ;;  %v5065_v40 = vrot.slane %v11689_v62, 7  ;;  %v11712_v13 = vsel %vm1252_vm2, %v5158_v29, %v13742_v55  ;;  %v11715_v17 = vmul.f32 %v4970_v49, %v14019_v46  ;;  %v4716_v7 = vpop.f32.mrf.mxu1  ;;  %6468 = vmatpush1.bf16.msra.mxu0 %v8475_v27  ;;  %v11722_v59 = vsel %vm2911_vm5, %v5062_v8, %v5064_v21 }
 0x5ad   : > { %14018 = vst [vmem:[#allocation48_spill] sm:$0xff] %v11712_v13  ;;  %14020 = vst [vmem:[#allocation49_spill] sm:$0xff] %v11722_v59  ;;  %v11730_v5 = vmul.f32 %v4971_v22, %v14019_v46  ;;  %v4972_v49 = vmax.f32 %v4866_v25, 0.0  ;;  %v4868_v27 = vadd.f32 %v11514_v56, %v4715_v41  ;;  %6469 = vmatprep.subr.bf16.mxu0 %v8483_v31  ;;  %v14021_v22 = vld [vmem:[#allocation38_spill] sm:$0xff] }
 0x5ae   : > { %v5066_v8 = vrot.slane %v11715_v17, 7  ;;  %v4717_v23 = vadd.f32 %v4716_v7, %v11616_v11  ;;  %v4718_v32 = vpop.f32.mrf.mxu1  ;;  %v5260_v29 = vpack.c.bf16 %v11715_v17, %v11677_v50  ;;  %v8487_v7 = vld [vmem:[%s13671_s15 + $0x350] ss:$8 sps:$4 sm:$0xff]  }
 0x5af   : > { %v11742_v46 = vmul.f32 %v4972_v49, %v14021_v22  ;;  %v4973_v25 = vmax.f32 %v4868_v27, 0.0  ;;  %v4719_v56 = vadd.f32 %v4718_v32, %v11622_v15  ;;  %v5261_v41 = vpack.c.bf16 %v11730_v5, %v11689_v62  ;;  %v11760_v27 = vpop.f32.mrf.mxu0 }
 0x5b0   : > { %v4870_v31 = vadd.f32 %v11522_v37, %v4717_v23  ;;  %v4722_v16 = vpop.f32.mrf.mxu1  ;;  %6470 = vmatpush1.bf16.msra.mxu0 %v8481_v35  ;;  %v5067_v55 = vrot.slane %v11730_v5, 7  ;;  %v11754_v49 = vsel %vm2911_vm5, %v5063_v9, %v5065_v40  ;;  %v11758_v32 = vsel %vm2911_vm5, %v5064_v21, %v5066_v8  ;;  %v8495_v9 = vld [vmem:[%s13671_s15 + $0x344] ss:$8 sps:$4 sm:$0xff]  }
 0x5b1   : > { %14022 = vst [vmem:[#allocation50_spill] sm:$0xff] %v11754_v49  ;;  %14023 = vst [vmem:[#allocation51_spill] sm:$0xff] %v11758_v32  ;;  %v5068_v37 = vrot.slane %v11742_v46, 7  ;;  %v11765_v23 = vmul.f32 %v4973_v25, %v14021_v22  ;;  %v4872_v13 = vadd.f32 %v11530_v14, %v4719_v56  ;;  %6203 = vmatprep.mubr.bf16.mxu0 %v5261_v41  ;;  %6471 = vmatprep.subr.bf16.mxu0 %v8489_v20  ;;  %v14025_v41 = vld [vmem:[#allocation44_spill] sm:$0xff]  ;;  %v11801_v25 = vpop.f32.mrf.mxu0 }
 0x5b2   : > { %v4974_v30 = vmax.f32 %v4870_v31, 0.0  ;;  %v4723_v21 = vadd.f32 %v4722_v16, %v11616_v11  ;;  %v4724_v12 = vpop.f32.mrf.mxu1  ;;  %v11774_v42 = vsel %vm2911_vm5, %v5065_v40, %v5067_v55  ;;  %v8493_v40 = vld [vmem:[%s13671_s15 + $0x340] ss:$8 sps:$4 sm:$0xff]  }
 0x5b3   : > { %14024 = vst [vmem:[#allocation52_spill] sm:$0xff] %v11774_v42  ;;  %v4975_v35 = vmax.f32 %v4872_v13, 0.0  ;;  %v4725_v14 = vadd.f32 %v4724_v12, %v11622_v15  ;;  %6204 = vmatmul.mubr.bf16.gmra.mxu0 %v5260_v29  ;;  %v5069_v56 = vrot.slane %v11765_v23, 7  ;;  %v11791_v12 = vsel %vm2911_vm5, %v5066_v8, %v5068_v37  ;;  %v8501_v8 = vld [vmem:[%s13671_s15 + $0x334] ss:$8 sps:$4 sm:$0xff]  }
 0x5b4   : > { %v11783_v31 = vmul.f32 %v4974_v30, %v14025_v41  ;;  %v4876_v16 = vadd.f32 %v11538_v4, %v4723_v21  ;;  %v4726_v22 = vpop.f32.mrf.mxu1  ;;  %6472 = vmatpush1.bf16.msra.mxu0 %v8487_v7  ;;  %14026 = vst [vmem:[#allocation53_spill] sm:$0xff] %v11791_v12  ;;  %v14027_v13 = vrot.slane %v11689_v62, 1  ;;  %v14028_v29 = vrot.slane %v11657_v28, 1 }
 0x5b5   : > { %v11804_v4 = vmul.f32 %v4975_v35, %v14025_v41  ;;  %v4878_v7 = vadd.f32 %v11546_v26, %v4725_v14  ;;  %v4727_v21 = vadd.f32 %v4726_v22, %v11616_v11  ;;  %6473 = vmatprep.subr.bf16.mxu0 %v8495_v9  ;;  %v11813_v20 = vsel %vm2911_vm5, %v5067_v55, %v5069_v56 }
 0x5b6   : > { %v11799_v30 = vsel %vm1252_vm2, %v14028_v29, %v14027_v13  ;;  %14030 = vst [vmem:[#allocation55_spill] sm:$0xff] %v11813_v20  ;;  %v5070_v13 = vrot.slane %v11783_v31, 7  ;;  %v4976_v18 = vmax.f32 %v4876_v16, 0.0  ;;  %v4728_v35 = vpop.f32.mrf.mxu1  ;;  %v5266_v26 = vpack.c.bf16 %v11783_v31, %v11742_v46  ;;  %v8499_v16 = vld [vmem:[%s13671_s15 + $0x330] ss:$8 sps:$4 sm:$0xff]  }
 0x5b7   : > { %14029 = vst [vmem:[#allocation54_spill] sm:$0xff] %v11799_v30  ;;  %v4977_v14 = vmax.f32 %v4878_v7, 0.0  ;;  %v4880_v22 = vadd.f32 %v11557_v51, %v4727_v21  ;;  %v4729_v9 = vadd.f32 %v4728_v35, %v11622_v15  ;;  %v5267_v41 = vpack.c.bf16 %v11804_v4, %v11765_v23  ;;  %v11842_v35 = vpop.f32.mrf.mxu0 }
 0x5b8   : > { %v11824_v55 = vmul.f32 %v4976_v18, %v14031_v52  ;;  %v4732_v59 = vpop.f32.mrf.mxu1  ;;  %6474 = vmatpush1.bf16.msra.mxu0 %v8493_v40  ;;  %v5071_v29 = vrot.slane %v11804_v4, 7  ;;  %v11832_v7 = vsel %vm2911_vm5, %v5068_v37, %v5070_v13  ;;  %v14033_v51 = vrot.slane %v11657_v28, 1  ;;  %v8507_v28 = vld [vmem:[%s13671_s15 + $0x324] ss:$8 sps:$4 sm:$0xff]  }
 0x5b9   : > { %14032 = vst [vmem:[#allocation56_spill] sm:$0xff] %v11832_v7  ;;  %v14034_v21 = vrot.slane %v11641_v53, 1  ;;  %v11845_v40 = vmul.f32 %v4977_v14, %v14031_v52  ;;  %v4978_v32 = vmax.f32 %v4880_v22, 0.0  ;;  %v4882_v49 = vadd.f32 %v11565_v45, %v4729_v9  ;;  %6213 = vmatprep.mubr.bf16.mxu0 %v5267_v41  ;;  %6475 = vmatprep.subr.bf16.mxu0 %v8501_v8  ;;  %v14037_v22 = vld [vmem:[#allocation46_spill] sm:$0xff]  ;;  %v14053_v53 = vld [vmem:[#allocation39_spill] sm:$0xff] }
 0x5ba   : > { %v4733_v42 = vadd.f32 %v4732_v59, %v11616_v11  ;;  %v5072_v37 = vrot.slane %v11824_v55, 7  ;;  %v11856_v14 = vsel %vm2911_vm5, %v5069_v56, %v5071_v29  ;;  %v8513_v56 = vld [vmem:[%s13671_s15 + $0x314] ss:$8 sps:$4 sm:$0xff]  }
 0x5bb   : > { %v11840_v18 = vsel %vm1252_vm2, %v14034_v21, %v14033_v51  ;;  %v4734_v21 = vpop.f32.mrf.mxu1  ;;  %14036 = vst [vmem:[#allocation58_spill] sm:$0xff] %v11856_v14  ;;  %v11861_v59 = vmul.f32 %v4978_v32, %v14037_v22  ;;  %v4979_v41 = vmax.f32 %v4882_v49, 0.0  ;;  %6214 = vmatmul.mubr.bf16.gmra.mxu0 %v5266_v26  ;;  %v8505_v51 = vld [vmem:[%s13671_s15 + $0x320] ss:$8 sps:$4 sm:$0xff]   ;;  %v5073_v45 = vrot.slane %v11845_v40, 7 }
 0x5bc   : > { %14035 = vst [vmem:[#allocation57_spill] sm:$0xff] %v11840_v18  ;;  %v4886_v8 = vadd.f32 %v11573_v44, %v4733_v42  ;;  %v4735_v9 = vadd.f32 %v4734_v21, %v11622_v15  ;;  %6476 = vmatpush1.bf16.msra.mxu0 %v8499_v16  ;;  %v11873_v32 = vsel %vm2911_vm5, %v5070_v13, %v5072_v37  ;;  %v11877_v44 = vpop.f32.mrf.mxu0 }
 0x5bd   : > { %v4736_v52 = vpop.f32.mrf.mxu1  ;;  %14038 = vst [vmem:[#allocation59_spill] sm:$0xff] %v11873_v32  ;;  %v5074_v49 = vrot.slane %v11861_v59, 7  ;;  %v11882_v16 = vmul.f32 %v4979_v41, %v14037_v22  ;;  %6477 = vmatprep.subr.bf16.mxu0 %v8507_v28  ;;  %v5272_v18 = vpack.c.bf16 %v11861_v59, %v11824_v55  ;;  %v11893_v26 = vsel %vm2911_vm5, %v5071_v29, %v5073_v45  ;;  %v14040_v41 = vld [vmem:[#allocation45_spill] sm:$0xff]  ;;  %v8511_v29 = vld [vmem:[%s13671_s15 + $0x310] ss:$8 sps:$4 sm:$0xff]  }
 0x5be   : > { %v4980_v21 = vmax.f32 %v4886_v8, 0.0  ;;  %v4888_v13 = vadd.f32 %v11581_v60, %v4735_v9  ;;  %v4737_v12 = vadd.f32 %v4736_v52, %v11616_v11  ;;  %14039 = vst [vmem:[#allocation60_spill] sm:$0xff] %v11893_v26  ;;  %v11911_v7 = vpop.f32.mrf.mxu0 }
 0x5bf   : > { %v4738_v42 = vpop.f32.mrf.mxu1  ;;  %v5273_v8 = vpack.c.bf16 %v11882_v16, %v11845_v40  ;;  %v5075_v60 = vrot.slane %v11882_v16, 7 }
 0x5c0   : > { %v11896_v22 = vmul.f32 %v4980_v21, %v14040_v41  ;;  %v4739_v28 = vadd.f32 %v4738_v42, %v11622_v15  ;;  %v4981_v9 = vmax.f32 %v4888_v13, 0.0  ;;  %v4890_v52 = vadd.f32 %v11592_v38, %v4737_v12  ;;  %6478 = vmatpush1.bf16.msra.mxu0 %v8505_v51  ;;  %v8516_v51 = vld [vmem:[%s13671_s15 + $0x304] ss:$8 sps:$4 sm:$0xff]  }
 0x5c1   : > { %v4742_v30 = vpop.f32.mrf.mxu1  ;;  %v11908_v21 = vsel %vm2911_vm5, %v5072_v37, %v5074_v49  ;;  %6223 = vmatprep.mubr.bf16.mxu0 %v5273_v8  ;;  %6479 = vmatprep.subr.bf16.mxu0 %v8513_v56  ;;  %v11925_v33 = vsel %vm2911_vm5, %v5073_v45, %v5075_v60  ;;  %v8514_v45 = vld [vmem:[%s13671_s15 + $0x300] ss:$8 sps:$4 sm:$0xff]  }
 0x5c2   : > { %14041 = vst [vmem:[#allocation61_spill] sm:$0xff] %v11908_v21  ;;  %v5076_v20 = vrot.slane %v11896_v22, 7  ;;  %v4892_v38 = vadd.f32 %v11600_v57, %v4739_v28  ;;  %v4743_v12 = vadd.f32 %v4742_v30, %v11616_v11  ;;  %v11921_v37 = vmul.f32 %v4981_v9, %v14040_v41  ;;  %14042 = vst [vmem:[#allocation62_spill] sm:$0xff] %v11925_v33  ;;  %v14043_v9 = vld [vmem:[#allocation37_spill] sm:$0xff] }
 0x5c3   : > { %v4982_v42 = vmax.f32 %v4890_v52, 0.0  ;;  %v4744_v14 = vpop.f32.mrf.mxu1  ;;  %6224 = vmatmul.mubr.bf16.gmra.mxu0 %v5272_v18 }
 0x5c4   : > { %v4983_v28 = vmax.f32 %v4892_v38, 0.0  ;;  %v4896_v30 = vadd.f32 %v11605_v39, %v4743_v12  ;;  %v4745_v56 = vadd.f32 %v4744_v14, %v11622_v15  ;;  %6480 = vmatpush1.bf16.msra.mxu0 %v8511_v29  ;;  %v5077_v57 = vrot.slane %v11921_v37, 7  ;;  %v11945_v14 = vpop.f32.mrf.mxu0 }
 0x5c5   : > { %v11934_v13 = vmul.f32 %v4982_v42, %v14043_v9  ;;  %v4746_v52 = vpop.f32.mrf.mxu1  ;;  %v11942_v39 = vsel %vm2911_vm5, %v5074_v49, %v5076_v20  ;;  %6481 = vmatprep.subr.bf16.mxu0 %v8516_v51 }
 0x5c6   : > { %14045 = vst [vmem:[#allocation64_spill] sm:$0xff] %v11942_v39  ;;  %v11948_v38 = vmul.f32 %v4983_v28, %v14043_v9  ;;  %v4984_v42 = vmax.f32 %v4896_v30, 0.0  ;;  %v4898_v29 = vadd.f32 %v11608_v0, %v4745_v56  ;;  %v4747_v12 = vadd.f32 %v4746_v52, %v11616_v11  ;;  %v14047_v28 = vld [vmem:[#allocation10_spill] sm:$0xff] }
 0x5c7   : > { %14044 = vst [vmem:[#allocation63_spill] sm:$0xff] %v11934_v13  ;;  %v5078_v8 = vrot.slane %v11934_v13, 7  ;;  %v4748_v32 = vpop.f32.mrf.mxu1  ;;  %v5278_v49 = vpack.c.bf16 %v11934_v13, %v11896_v22  ;;  %v11958_v18 = vsel %vm2911_vm5, %v5075_v60, %v5077_v57  ;;  %v14049_v60 = vrot.slane %v11765_v23, 1 }
 0x5c8   : > { %14046 = vst [vmem:[#allocation65_spill] sm:$0xff] %v11958_v18  ;;  %v11961_v9 = vmul.f32 %v4984_v42, %v14047_v28  ;;  %v4985_v30 = vmax.f32 %v4898_v29, 0.0  ;;  %v4900_v0 = vadd.f32 %v11618_v47, %v4747_v12  ;;  %v4749_v51 = vadd.f32 %v4748_v32, %v11622_v15  ;;  %6482 = vmatpush1.bf16.msra.mxu0 %v8514_v45  ;;  %v11980_v32 = vpop.f32.mrf.mxu0 }
 0x5c9   : > { %v4752_v56 = vpop.f32.mrf.mxu1  ;;  %v5279_v52 = vpack.c.bf16 %v11948_v38, %v11921_v37  ;;  %v5079_v41 = vrot.slane %v11948_v38, 7  ;;  %v11970_v21 = vsel %vm2911_vm5, %v5076_v20, %v5078_v8  ;;  %v14050_v42 = vrot.slane %v11730_v5, 1 }
 0x5ca   : > { %14048 = vst [vmem:[#allocation66_spill] sm:$0xff] %v11970_v21  ;;  %v5080_v29 = vrot.slane %v11961_v9, 7  ;;  %v11985_v12 = vmul.f32 %v4985_v30, %v14047_v28  ;;  %v4986_v26 = vmax.f32 %v4900_v0, 0.0  ;;  %v4902_v20 = vadd.f32 %v11624_v61, %v4749_v51 }
 0x5cb   : > { %v11978_v47 = vsel %vm1252_vm2, %v14050_v42, %v14049_v60  ;;  %v4753_v33 = vadd.f32 %v4752_v56, %v11616_v11  ;;  %6233 = vmatprep.mubr.bf16.mxu0 %v5279_v52  ;;  %v4754_v6 = vpop.f32.mrf.mxu1  ;;  %v11991_v60 = vsel %vm2911_vm5, %v5077_v57, %v5079_v41 }
 0x5cc   : > { %14051 = vst [vmem:[#allocation67_spill] sm:$0xff] %v11978_v47  ;;  %14052 = vst [vmem:[#allocation68_spill] sm:$0xff] %v11991_v60  ;;  %v11996_v13 = vmul.f32 %v4986_v26, %v14053_v53  ;;  %v4755_v30 = vadd.f32 %v4754_v6, %v11622_v15  ;;  %6234 = vmatmul.mubr.bf16.gmra.mxu0 %v5278_v49  ;;  %v5081_v0 = vrot.slane %v11985_v12, 7  ;;  %v4987_v51 = vmax.f32 %v4902_v20, 0.0  ;;  %v12015_v49 = vpop.f32.mrf.mxu0 }
 0x5cd   : > { %v4906_v56 = vadd.f32 %v11629_v2, %v4753_v33  ;;  %v4756_v52 = vpop.f32.mrf.mxu1  ;;  %v12005_v57 = vsel %vm2911_vm5, %v5078_v8, %v5080_v29  ;;  %v14055_v26 = vrot.slane %v11689_v62, 1 }
 0x5ce   : > { %14054 = vst [vmem:[#allocation69_spill] sm:$0xff] %v12005_v57  ;;  %v5082_v61 = vrot.slane %v11996_v13, 7  ;;  %v4908_v33 = vadd.f32 %v11638_v3, %v4755_v30  ;;  %v4757_v2 = vadd.f32 %v4756_v52, %v11616_v11  ;;  %v12022_v8 = vmul.f32 %v4987_v51, %v14053_v53  ;;  %v14059_v30 = vld [vmem:[#allocation11_spill] sm:$0xff] }
 0x5cf   : > { %v12013_v6 = vsel %vm1252_vm2, %v14055_v26, %v14050_v42  ;;  %v4988_v5 = vmax.f32 %v4906_v56, 0.0  ;;  %v4758_v45 = vpop.f32.mrf.mxu1  ;;  %v5284_v62 = vpack.c.bf16 %v11996_v13, %v11961_v9  ;;  %v12028_v42 = vsel %vm2911_vm5, %v5079_v41, %v5081_v0 }
 0x5d0   : > { %14056 = vst [vmem:[#allocation70_spill] sm:$0xff] %v12013_v6  ;;  %14057 = vst [vmem:[#allocation71_spill] sm:$0xff] %v12028_v42  ;;  %v4989_v26 = vmax.f32 %v4908_v33, 0.0  ;;  %v4910_v28 = vadd.f32 %v11651_v10, %v4757_v2  ;;  %v4759_v20 = vadd.f32 %v4758_v45, %v11622_v15  ;;  %v12034_v3 = vsel %vm2911_vm5, %v5080_v29, %v5082_v61  ;;  %v12044_v33 = vpop.f32.mrf.mxu0 }
 0x5d1   : > { %14058 = vst [vmem:[#allocation72_spill] sm:$0xff] %v12034_v3  ;;  %v12037_v51 = vmul.f32 %v4988_v5, %v14059_v30  ;;  %v4762_v56 = vpop.f32.mrf.mxu1  ;;  %v5285_v52 = vpack.c.bf16 %v12022_v8, %v11985_v12  ;;  %v5083_v53 = vrot.slane %v12022_v8, 7  ;;  %v14063_v41 = vrot.slane %v11742_v46, 1 }
 0x5d2   : > { %v12047_v10 = vmul.f32 %v4989_v26, %v14059_v30  ;;  %v4990_v45 = vmax.f32 %v4910_v28, 0.0  ;;  %v4912_v29 = vadd.f32 %v11686_v63, %v4759_v20  ;;  %v4763_v2 = vadd.f32 %v4762_v56, %v11616_v11  ;;  %v14061_v26 = vld [vmem:[#allocation14_spill] sm:$0xff] }
 0x5d3   : > { %v5084_v5 = vrot.slane %v12037_v51, 7  ;;  %6243 = vmatprep.mubr.bf16.mxu0 %v5285_v52  ;;  %v4764_v21 = vpop.f32.mrf.mxu1  ;;  %v12055_v18 = vsel %vm2911_vm5, %v5081_v0, %v5083_v53 }
 0x5d4   : > { %14060 = vst [vmem:[#allocation73_spill] sm:$0xff] %v12055_v18  ;;  %v12060_v30 = vmul.f32 %v4990_v45, %v14061_v26  ;;  %v4991_v28 = vmax.f32 %v4912_v29, 0.0  ;;  %v4916_v63 = vadd.f32 %v11725_v34, %v4763_v2  ;;  %v4765_v20 = vadd.f32 %v4764_v21, %v11622_v15  ;;  %6244 = vmatmul.mubr.bf16.gmra.mxu0 %v5284_v62  ;;  %v12079_v21 = vpop.f32.mrf.mxu0 }
 0x5d5   : > { %v4766_v56 = vpop.f32.mrf.mxu1  ;;  %v5085_v39 = vrot.slane %v12047_v10, 7  ;;  %v12069_v0 = vsel %vm2911_vm5, %v5082_v61, %v5084_v5  ;;  %v14064_v45 = vrot.slane %v11715_v17, 1 }
 0x5d6   : > { %14062 = vst [vmem:[#allocation74_spill] sm:$0xff] %v12069_v0  ;;  %v5086_v62 = vrot.slane %v12060_v30, 7  ;;  %v12084_v2 = vmul.f32 %v4991_v28, %v14061_v26  ;;  %v4992_v52 = vmax.f32 %v4916_v63, 0.0  ;;  %v4918_v61 = vadd.f32 %v11760_v27, %v4765_v20  ;;  %v12114_v42 = vpop.f32.mrf.mxu0 }
 0x5d7   : > { %v12077_v34 = vsel %vm1252_vm2, %v14064_v45, %v14063_v41  ;;  %v4767_v6 = vadd.f32 %v4766_v56, %v11616_v11  ;;  %v4768_v47 = vpop.f32.mrf.mxu1  ;;  %v5290_v57 = vpack.c.bf16 %v12060_v30, %v12037_v51  ;;  %v12092_v41 = vsel %vm2911_vm5, %v5083_v53, %v5085_v39  ;;  %v14067_v45 = vld [vmem:[#allocation13_spill] sm:$0xff] }
 0x5d8   : > { %14065 = vst [vmem:[#allocation75_spill] sm:$0xff] %v12077_v34  ;;  %14066 = vst [vmem:[#allocation76_spill] sm:$0xff] %v12092_v41  ;;  %v12095_v3 = vmul.f32 %v4992_v52, %v14067_v45  ;;  %v4769_v29 = vadd.f32 %v4768_v47, %v11622_v15  ;;  %v5291_v28 = vpack.c.bf16 %v12084_v2, %v12047_v10  ;;  %v5087_v27 = vrot.slane %v12084_v2, 7 }
 0x5d9   : > { %v4993_v63 = vmax.f32 %v4918_v61, 0.0  ;;  %v4920_v20 = vadd.f32 %v11801_v25, %v4767_v6  ;;  %v4772_v56 = vpop.f32.mrf.mxu1  ;;  %v12104_v26 = vsel %vm2911_vm5, %v5084_v5, %v5086_v62  ;;  %v14069_v53 = vrot.slane %v11715_v17, 1 }
 0x5da   : > { %14068 = vst [vmem:[#allocation77_spill] sm:$0xff] %v12104_v26  ;;  %v14070_v52 = vrot.slane %v11677_v50, 1  ;;  %v5088_v18 = vrot.slane %v12095_v3, 7  ;;  %v4922_v25 = vadd.f32 %v11842_v35, %v4769_v29  ;;  %v4773_v6 = vadd.f32 %v4772_v56, %v11616_v11  ;;  %6253 = vmatprep.mubr.bf16.mxu0 %v5291_v28  ;;  %v14073_v28 = vld [vmem:[#allocation40_spill] sm:$0xff] }
 0x5db   : > { %v12121_v5 = vmul.f32 %v4993_v63, %v14067_v45  ;;  %v4994_v17 = vmax.f32 %v4920_v20, 0.0  ;;  %v4774_v50 = vpop.f32.mrf.mxu1 }
 0x5dc   : > { %v12112_v47 = vsel %vm1252_vm2, %v14070_v52, %v14069_v53  ;;  %v12125_v53 = vsel %vm2911_vm5, %v5085_v39, %v5087_v27  ;;  %v4995_v60 = vmax.f32 %v4922_v25, 0.0  ;;  %v4926_v61 = vadd.f32 %v11877_v44, %v4773_v6  ;;  %6254 = vmatmul.mubr.bf16.gmra.mxu0 %v5290_v57  ;;  %v12143_v44 = vpop.f32.mrf.mxu0 }
 0x5dd   : > { %14071 = vst [vmem:[#allocation78_spill] sm:$0xff] %v12112_v47  ;;  %14072 = vst [vmem:[#allocation79_spill] sm:$0xff] %v12125_v53  ;;  %v4775_v35 = vadd.f32 %v4774_v50, %v11622_v15  ;;  %v12134_v63 = vmul.f32 %v4994_v17, %v14073_v28  ;;  %v4776_v20 = vpop.f32.mrf.mxu1  ;;  %v5089_v56 = vrot.slane %v12121_v5, 7  ;;  %v12139_v39 = vsel %vm2911_vm5, %v5086_v62, %v5088_v18  ;;  %v14077_v47 = vld [vmem:[#allocation12_spill] sm:$0xff]  ;;  %v14080_v53 = vld [vmem:[#allocation15_spill] sm:$0xff] }
 0x5de   : > { %14075 = vst [vmem:[#allocation81_spill] sm:$0xff] %v12139_v39  ;;  %v12146_v57 = vmul.f32 %v4995_v60, %v14073_v28  ;;  %v4996_v6 = vmax.f32 %v4926_v61, 0.0  ;;  %v4777_v17 = vadd.f32 %v4776_v20, %v11616_v11  ;;  %v12171_v0 = vpop.f32.mrf.mxu0 }
 0x5df   : > { %14074 = vst [vmem:[#allocation80_spill] sm:$0xff] %v12134_v63  ;;  %v4928_v50 = vadd.f32 %v11911_v7, %v4775_v35  ;;  %v5090_v52 = vrot.slane %v12134_v63, 7  ;;  %v4778_v45 = vpop.f32.mrf.mxu1  ;;  %v5296_v62 = vpack.c.bf16 %v12134_v63, %v12095_v3  ;;  %v12156_v25 = vsel %vm2911_vm5, %v5087_v27, %v5089_v56 }
 0x5e0   : > { %14076 = vst [vmem:[#allocation82_spill] sm:$0xff] %v12156_v25  ;;  %v12159_v60 = vmul.f32 %v4996_v6, %v14077_v47  ;;  %v4930_v7 = vadd.f32 %v11945_v14, %v4777_v17  ;;  %v4779_v35 = vadd.f32 %v4778_v45, %v11622_v15  ;;  %v5297_v29 = vpack.c.bf16 %v12146_v57, %v12121_v5 }
 0x5e1   : > { %v4997_v61 = vmax.f32 %v4928_v50, 0.0  ;;  %v4782_v20 = vpop.f32.mrf.mxu1  ;;  %v5091_v28 = vrot.slane %v12146_v57, 7  ;;  %v12168_v34 = vsel %vm2911_vm5, %v5088_v18, %v5090_v52  ;;  %v5167_v27 = vrot.slane %v11804_v4, 1 }
 0x5e2   : > { %14078 = vst [vmem:[#allocation83_spill] sm:$0xff] %v12168_v34  ;;  %v5092_v6 = vrot.slane %v12159_v60, 7  ;;  %v4998_v50 = vmax.f32 %v4930_v7, 0.0  ;;  %v4932_v17 = vadd.f32 %v11980_v32, %v4779_v35  ;;  %v4783_v26 = vadd.f32 %v4782_v20, %v11616_v11  ;;  %6263 = vmatprep.mubr.bf16.mxu0 %v5297_v29 }
 0x5e3   : > { %v12176_v45 = vmul.f32 %v4997_v61, %v14077_v47  ;;  %v4784_v41 = vpop.f32.mrf.mxu1  ;;  %v12182_v18 = vsel %vm2911_vm5, %v5089_v56, %v5091_v28 }
 0x5e4   : > { %14079 = vst [vmem:[#allocation84_spill] sm:$0xff] %v12182_v18  ;;  %v12187_v63 = vmul.f32 %v4998_v50, %v14080_v53  ;;  %v4785_v61 = vadd.f32 %v4784_v41, %v11622_v15  ;;  %6264 = vmatmul.mubr.bf16.gmra.mxu0 %v5296_v62  ;;  %v4999_v29 = vmax.f32 %v4932_v17, 0.0  ;;  %v4936_v35 = vadd.f32 %v12015_v49, %v4783_v26  ;;  %v4949_v50 = vpop.f32.mrf.mxu0 }
 0x5e5   : > { %v5093_v7 = vrot.slane %v12176_v45, 7  ;;  %v4786_v20 = vpop.f32.mrf.mxu1  ;;  %v12196_v56 = vsel %vm2911_vm5, %v5090_v52, %v5092_v6 }
 0x5e6   : > { %14081 = vst [vmem:[#allocation85_spill] sm:$0xff] %v12196_v56  ;;  %v5094_v14 = vrot.slane %v12187_v63, 7  ;;  %v4938_v62 = vadd.f32 %v12044_v33, %v4785_v61  ;;  %v4787_v32 = vadd.f32 %v4786_v20, %v11616_v11  ;;  %v12204_v17 = vmul.f32 %v4999_v29, %v14080_v53  ;;  %v14084_v61 = vld [vmem:[#allocation42_spill] sm:$0xff] }
 0x5e7   : > { %v5000_v49 = vmax.f32 %v4936_v35, 0.0  ;;  %v4788_v26 = vpop.f32.mrf.mxu1  ;;  %v5302_v52 = vpack.c.bf16 %v12187_v63, %v12159_v60  ;;  %v12210_v4 = vsel %vm2911_vm5, %v5091_v28, %v5093_v7  ;;  %v14086_v28 = vrot.slane %v11845_v40, 1 }
 0x5e8   : > { %14082 = vst [vmem:[#allocation86_spill] sm:$0xff] %v12210_v4  ;;  %v5001_v47 = vmax.f32 %v4938_v62, 0.0  ;;  %v4940_v39 = vadd.f32 %v12079_v21, %v4787_v32  ;;  %v4789_v41 = vadd.f32 %v4788_v26, %v11622_v15  ;;  %v12216_v33 = vsel %vm2911_vm5, %v5092_v6, %v5094_v14  ;;  %v4951_v62 = vpop.f32.mrf.mxu0 }
 0x5e9   : > { %14083 = vst [vmem:[#allocation87_spill] sm:$0xff] %v12216_v33  ;;  %v12219_v29 = vmul.f32 %v5000_v49, %v14084_v61  ;;  %v4792_v35 = vpop.f32.mrf.mxu1  ;;  %v5303_v20 = vpack.c.bf16 %v12204_v17, %v12176_v45  ;;  %v5095_v53 = vrot.slane %v12204_v17, 7 }
 0x5ea   : > { %v12227_v21 = vmul.f32 %v5001_v47, %v14084_v61  ;;  %v5002_v32 = vmax.f32 %v4940_v39, 0.0  ;;  %v4942_v6 = vadd.f32 %v12114_v42, %v4789_v41  ;;  %v4793_v26 = vadd.f32 %v4792_v35, %v11616_v11 }
 0x5eb   : > { %v5096_v49 = vrot.slane %v12219_v29, 7  ;;  %6273 = vmatprep.mubr.bf16.mxu0 %v5303_v20  ;;  %v4794_v25 = vpop.f32.mrf.mxu1  ;;  %v12235_v18 = vsel %vm2911_vm5, %v5093_v7, %v5095_v53  ;;  %v12241_v47 = vsel %vm1252_vm2, %v5167_v27, %v14086_v28  ;;  %v14088_v28 = vrot.slane %v11765_v23, 1 }
 0x5ec   : > { %14085 = vst [vmem:[#allocation88_spill] sm:$0xff] %v12235_v18  ;;  %14087 = vst [vmem:[#allocation89_spill] sm:$0xff] %v12241_v47  ;;  %v12244_v42 = vmul.f32 %v5002_v32, %v13998_v24  ;;  %v5003_v39 = vmax.f32 %v4942_v6, 0.0  ;;  %v4946_v41 = vadd.f32 %v12143_v44, %v4793_v26  ;;  %v4795_v35 = vadd.f32 %v4794_v25, %v11622_v15  ;;  %v4955_v44 = vpop.f32.mrf.mxu0 }
 0x5ed   : > { %6274 = vmatmul.mubr.bf16.gmra.mxu0 %v5302_v52  ;;  %v4796_v20 = vpop.f32.mrf.mxu1  ;;  %v5097_v34 = vrot.slane %v12227_v21, 7  ;;  %v12253_v61 = vsel %vm2911_vm5, %v5094_v14, %v5096_v49  ;;  %v12259_v32 = vsel %vm1252_vm2, %v14088_v28, %v5167_v27 }
 0x5ee   : > { %14089 = vst [vmem:[#allocation90_spill] sm:$0xff] %v12259_v32  ;;  %v5098_v25 = vrot.slane %v12244_v42, 7  ;;  %v12264_v6 = vmul.f32 %v5003_v39, %v13998_v24  ;;  %v5004_v26 = vmax.f32 %v4946_v41, 0.0  ;;  %v4948_v7 = vadd.f32 %v12171_v0, %v4795_v35  ;;  %v4957_v33 = vpop.f32.mrf.mxu0 }
 0x5ef   : > { %v4797_v14 = vadd.f32 %v4796_v20, %v11616_v11  ;;  %v4798_v56 = vpop.f32.mrf.mxu1  ;;  %v5308_v23 = vpack.c.bf16 %v12244_v42, %v12219_v29  ;;  %v12272_v27 = vsel %vm2911_vm5, %v5095_v53, %v5097_v34 }
 0x5f0   : > { %v12275_v28 = vmul.f32 %v5004_v26, %v10064_v43  ;;  %v4799_v52 = vadd.f32 %v4798_v56, %v11622_v15  ;;  %v5309_v39 = vpack.c.bf16 %v12264_v6, %v12227_v21  ;;  %v5099_v0 = vrot.slane %v12264_v6, 7 }
 0x5f1   : > { %v5005_v41 = vmax.f32 %v4948_v7, 0.0  ;;  %v4950_v35 = vadd.f32 %v4949_v50, %v4797_v14  ;;  %v4802_v20 = vpop.f32.mrf.mxu1  ;;  %v12283_v24 = vsel %vm2911_vm5, %v5096_v49, %v5098_v25 }
 0x5f2   : > { %v5100_v26 = vrot.slane %v12275_v28, 7  ;;  %v4952_v4 = vadd.f32 %v4951_v62, %v4799_v52  ;;  %v4803_v18 = vadd.f32 %v4802_v20, %v11616_v11  ;;  %6283 = vmatprep.mubr.bf16.mxu0 %v5309_v39  ;;  %v12295_v49 = vsel %vm2911_vm5, %v5097_v34, %v5099_v0 }
 0x5f3   : > { %v12291_v7 = vmul.f32 %v5005_v41, %v10064_v43  ;;  %v5006_v50 = vmax.f32 %v4950_v35, 0.0  ;;  %v4804_v14 = vpop.f32.mrf.mxu1  ;;  %v14090_v35 = vrot.slane %v11824_v55, 1 }
 0x5f4   : > { %v5007_v32 = vmax.f32 %v4952_v4, 0.0  ;;  %v4956_v47 = vadd.f32 %v4955_v44, %v4803_v18  ;;  %v4805_v56 = vadd.f32 %v4804_v14, %v11622_v15  ;;  %v12308_v34 = vsel %vm2911_vm5, %v5098_v25, %v5100_v26  ;;  %v4959_v44 = vpop.f32.mrf.mxu0 }
 0x5f5   : > { %6284 = vmatmul.mubr.bf16.gmra.mxu0 %v5308_v23  ;;  %v12303_v52 = vmul.f32 %v5006_v50, %v10141_v48  ;;  %v4806_v39 = vpop.f32.mrf.mxu1  ;;  %v5101_v41 = vrot.slane %v12291_v7, 7  ;;  %v14091_v18 = vrot.slane %v11783_v31, 1  ;;  %v14092_v25 = vrot.slane %v11783_v31, 1 }
 0x5f6   : > { %v12319_v23 = vmul.f32 %v5007_v32, %v10141_v48  ;;  %v5008_v20 = vmax.f32 %v4956_v47, 0.0  ;;  %v4958_v50 = vadd.f32 %v4957_v33, %v4805_v56  ;;  %v4807_v14 = vadd.f32 %v4806_v39, %v11616_v11 }
 0x5f7   : > { %v12316_v4 = vsel %vm1252_vm2, %v14091_v18, %v14090_v35  ;;  %v5102_v53 = vrot.slane %v12303_v52, 7  ;;  %v4808_v62 = vpop.f32.mrf.mxu1  ;;  %v5314_v43 = vpack.c.bf16 %v12303_v52, %v12275_v28  ;;  %v12328_v35 = vsel %vm2911_vm5, %v5099_v0, %v5101_v41 }
 0x5f8   : > { %v12331_v18 = vmul.f32 %v5008_v20, %v10097_v54  ;;  %v5009_v32 = vmax.f32 %v4958_v50, 0.0  ;;  %v4960_v47 = vadd.f32 %v4959_v44, %v4807_v14  ;;  %v4809_v33 = vadd.f32 %v4808_v62, %v11622_v15  ;;  %v4961_v44 = vpop.f32.mrf.mxu0 }
 0x5f9   : > { %v5315_v11 = vpack.c.bf16 %v12319_v23, %v12291_v7  ;;  %v5103_v56 = vrot.slane %v12319_v23, 7  ;;  %v12339_v39 = vsel %vm2911_vm5, %v5100_v26, %v5102_v53  ;;  %v14093_v0 = vrot.slane %v11742_v46, 1 }
 0x5fa   : > { %v5104_v15 = vrot.slane %v12331_v18, 7  ;;  %v12352_v50 = vmul.f32 %v5009_v32, %v10097_v54  ;;  %v5010_v14 = vmax.f32 %v4960_v47, 0.0  ;;  %v4962_v48 = vadd.f32 %v4961_v44, %v4809_v33 }
 0x5fb   : > { %v12347_v20 = vsel %vm1252_vm2, %v14093_v0, %v14092_v25  ;;  %6293 = vmatprep.mubr.bf16.mxu0 %v5315_v11  ;;  %v12356_v31 = vsel %vm2911_vm5, %v5101_v41, %v5103_v56  ;;  %v5171_v11 = vrot.slane %v11882_v16, 1  ;;  %v5173_v0 = vrot.slane %v11921_v37, 1 }
 0x5fc   : > { %v12363_v25 = vmul.f32 %v5010_v14, %v13926_v19  ;;  %v5105_v47 = vrot.slane %v12352_v50, 7  ;;  %v12370_v33 = vsel %vm2911_vm5, %v5102_v53, %v5104_v15  ;;  %v5011_v41 = vmax.f32 %v4962_v48, 0.0 }
 0x5fd   : > { %6294 = vmatmul.mubr.bf16.gmra.mxu0 %v5314_v43  ;;  %v14094_v44 = vrot.slane %v11896_v22, 1  ;;  %v14095_v14 = vrot.slane %v11861_v59, 1  ;;  %v12395_v37 = vsel %vm1252_vm2, %v5171_v11, %v5173_v0  ;;  %v14097_v32 = vrot.slane %v11861_v59, 1 }
 0x5fe   : > { %v5106_v26 = vrot.slane %v12363_v25, 7  ;;  %v5320_v53 = vpack.c.bf16 %v12363_v25, %v12331_v18  ;;  %v12388_v48 = vsel %vm2911_vm5, %v5103_v56, %v5105_v47  ;;  %v12391_v16 = vmul.f32 %v5011_v41, %v13926_v19 }
 0x5ff   : > { %v12380_v43 = vsel %vm1252_vm2, %v14095_v14, %v14094_v44  ;;  %v14096_v44 = vrot.slane %v11845_v40, 1  ;;  %v14098_v46 = vrot.slane %v11824_v55, 1  ;;  %v14100_v41 = vrot.slane %v11634_v58, 7 }
 0x600   : > { %v12417_v40 = vsel %vm2911_vm5, %v5104_v15, %v5106_v26  ;;  %v5177_v15 = vrot.slane %v11985_v12, 1 }
 0x601   : > { %v12401_v14 = vsel %vm1252_vm2, %v14096_v44, %v5171_v11  ;;  %v12409_v56 = vsel %vm1252_vm2, %v14098_v46, %v14097_v32  ;;  %v5154_v62 = vsel %vm2911_vm5, %v5106_v26, %v14100_v41  ;;  %v5321_v46 = vpack.c.bf16 %v12391_v16, %v12352_v50  ;;  %v14102_v11 = vld [vmem:[#allocation63_spill] sm:$0xff] }
 0x602   : > { %14099 = vst [vmem:[#allocation91_spill] sm:$0xff] %v12409_v56  ;;  %v5252_v55 = vpack.c.bf16 %v11667_v1, %v5154_v62  ;;  %v5107_v32 = vrot.slane %v12391_v16, 7  ;;  %v5175_v41 = vrot.slane %v11948_v38, 1  ;;  %v14101_v26 = vrot.slane %v11961_v9, 1  ;;  %v14108_v38 = vld [vmem:[#allocation21_spill] sm:$0xff] }
 0x603   : > { %v14103_v54 = vrot.slane %v14102_v11, 1  ;;  %v14106_v62 = vrot.slane %v11896_v22, 1  ;;  %6303 = vmatprep.mubr.bf16.mxu0 %v5321_v46  ;;  %v14109_v44 = vrot.slane %v14108_v38, 7  ;;  %v5179_v11 = vrot.slane %v12022_v8, 1  ;;  %v14110_v22 = vld [vmem:[#allocation47_spill] sm:$0xff] }
 0x604   : > { %v12453_v56 = vsel %vm2911_vm5, %v5105_v47, %v5107_v32  ;;  %v8517_v46 = vld [vmem:[%s13671_s15 + $0x270] ss:$8 sps:$4 sm:$0xff]   ;;  %v12470_v47 = vsel %vm1252_vm2, %v5173_v0, %v5175_v41  ;;  %v8522_v8 = vld [vmem:[%s13671_s15 + $0x264] ss:$8 sps:$4 sm:$0xff]   ;;  %v14113_v0 = vrot.slane %v11996_v13, 1 }
 0x605   : > { %v12437_v59 = vsel %vm1252_vm2, %v14103_v54, %v14101_v26  ;;  %v14105_v1 = vmov %v14103_v54  ;;  %v5155_v12 = vsel %vm2911_vm5, %v5107_v32, %v14109_v44  ;;  %6304 = vmatmul.mubr.bf16.gmra.mxu0 %v5320_v53  ;;  %v12466_v44 = vsel %vm1252_vm2, %v5175_v41, %v5177_v15 }
 0x606   : > { %14104 = vst [vmem:[#allocation63_spill] sm:$0xff] %v12437_v59  ;;  %v12445_v19 = vsel %vm1252_vm2, %v14106_v62, %v14105_v1  ;;  %v5253_v26 = vpack.c.bf16 %v14110_v22, %v5155_v12  ;;  %v14111_v32 = vmov 0   ;;  %v5181_v62 = vrot.slane %v12047_v10, 1 }
 0x607   : > { %14107 = vst [vmem:[#allocation92_spill] sm:$0xff] %v12445_v19  ;;  %6499 = vmatprep.mubr.bf16.mxu0 %v14111_v32  ;;  %v12481_v12 = vsel %vm1252_vm2, %v5177_v15, %v5179_v11  ;;  %v14112_v22 = vrot.slane %v12037_v51, 1  ;;  %v14114_v54 = vmov %v14113_v0  ;;  %v14115_v1 = vrot.slane %v11961_v9, 1  ;;  %v14138_v9 = vld [vmem:[#allocation49_spill] sm:$0xff] }
 0x608   : > { %6040 = vmatprep.mubr.bf16.mxu1 %v5253_v26  ;;  %v5183_v15 = vrot.slane %v12084_v2, 1  ;;  %v5185_v53 = vrot.slane %v12121_v5, 1  ;;  %v14116_v19 = vrot.slane %v12095_v3, 1  ;;  %v14117_v59 = vrot.slane %v12060_v30, 1 }
 0x609   : > { %v12489_v41 = vsel %vm1252_vm2, %v14113_v0, %v14112_v22  ;;  %v12497_v10 = vsel %vm1252_vm2, %v14115_v1, %v14114_v54  ;;  %6041 = vmatmul.mubr.bf16.vlgmr.msra.gmra.mxu1 %v5252_v55  ;;  %v12511_v13 = vsel %vm1252_vm2, %v5179_v11, %v5181_v62  ;;  %v14119_v5 = vrot.slane %v12037_v51, 1  ;;  %v8520_v11 = vld [vmem:[%s13671_s15 + $0x260] ss:$8 sps:$4 sm:$0xff]  }
 0x60a   : > { %v12507_v22 = vsel %vm1252_vm2, %v14117_v59, %v14116_v19  ;;  %v14118_v2 = vmov %v14117_v59  ;;  %v5187_v26 = vrot.slane %v12146_v57, 1  ;;  %v14120_v19 = vld [vmem:[#allocation52_spill] sm:$0xff]  ;;  %v14121_v59 = vld [vmem:[#allocation50_spill] sm:$0xff]  ;;  %6315 = vmatpush1.bf16.msra.mxu1 %v8517_v46  ;;  %v5287_v30 = vpack.c.bf16 %v12511_v13, %v12481_v12 }
 0x60b   : > { %v12521_v54 = vsel %vm1252_vm2, %v14119_v5, %v14118_v2  ;;  %v14122_v55 = vpack.c.bf16 %v14120_v19, %v14121_v59  ;;  %v12534_v51 = vsel %vm1252_vm2, %v5183_v15, %v5185_v53  ;;  %v12538_v1 = vsel %vm1252_vm2, %v5181_v62, %v5183_v15  ;;  %6316 = vmatprep.subr.bf16.mxu1 %v8522_v8  ;;  %v8525_v46 = vld [vmem:[%s13671_s15 + $0x254] ss:$8 sps:$4 sm:$0xff]  }
 0x60c   : > { %v5189_v57 = vrot.slane %v12176_v45, 1  ;;  %v12550_v5 = vsel %vm1252_vm2, %v5185_v53, %v5187_v26  ;;  %v14123_v62 = vrot.slane %v12159_v60, 1  ;;  %v14124_v15 = vld [vmem:[#allocation80_spill] sm:$0xff]  ;;  %v5191_v2 = vrot.slane %v12204_v17, 1 }
 0x60d   : > { %6050 = vmatprep.mubr.bf16.mxu1 %v14122_v55  ;;  %v14125_v19 = vrot.slane %v14124_v15, 1  ;;  %v14127_v55 = vrot.slane %v12095_v3, 1  ;;  %v5193_v0 = vrot.slane %v12227_v21, 1  ;;  %v14129_v15 = vrot.slane %v12187_v63, 1 }
 0x60e   : > { %v12562_v8 = vsel %vm1252_vm2, %v5187_v26, %v5189_v57  ;;  %v14128_v26 = vrot.slane %v12219_v29, 1  ;;  %v14131_v17 = vmov %v14123_v62  ;;  %6317 = vmatpush1.bf16.msra.mxu1 %v8520_v11  ;;  %v12604_v63 = vsel %vm1252_vm2, %v5189_v57, %v5191_v2  ;;  %v8528_v11 = vld [vmem:[%s13671_s15 + $0x244] ss:$8 sps:$4 sm:$0xff]  }
 0x60f   : > { %v12558_v45 = vsel %vm1252_vm2, %v14125_v19, %v14123_v62  ;;  %v14126_v59 = vmov %v14125_v19  ;;  %v8523_v19 = vld [vmem:[%s13671_s15 + $0x250] ss:$8 sps:$4 sm:$0xff]   ;;  %v12600_v62 = vsel %vm1252_vm2, %v5191_v2, %v5193_v0  ;;  %6318 = vmatprep.subr.bf16.mxu1 %v8525_v46  ;;  %v14133_v57 = vrot.slane %v12275_v28, 1 }
 0x610   : > { %v12570_v53 = vsel %vm1252_vm2, %v14127_v55, %v14126_v59  ;;  %v12584_v3 = vsel %vm1252_vm2, %v14129_v15, %v14128_v26  ;;  %v14130_v59 = vmov %v14129_v15  ;;  %v14132_v55 = vld [vmem:[#allocation23_spill] sm:$0xff]  ;;  %v5195_v26 = vrot.slane %v12264_v6, 1 }
 0x611   : > { %v12592_v21 = vsel %vm1252_vm2, %v14131_v17, %v14130_v59  ;;  %6500 = vmatmul.mubr.bf16.vlgmr.msra.gmra.mxu0 %v14132_v55  ;;  %v5197_v59 = vrot.slane %v12291_v7, 1  ;;  %v14134_v2 = vrot.slane %v12244_v42, 1  ;;  %v14136_v46 = vrot.slane %v12219_v29, 1 }
 0x612   : > { %6509 = vmatprep.mubr.bf16.mxu0 %v14111_v32  ;;  %v12634_v60 = vsel %vm1252_vm2, %v5193_v0, %v5195_v26  ;;  %v5199_v15 = vrot.slane %v12319_v23, 1  ;;  %v14141_v0 = vrot.slane %v12303_v52, 1  ;;  %6319 = vmatpush1.bf16.msra.mxu1 %v8523_v19 }
 0x613   : > { %v12622_v17 = vsel %vm1252_vm2, %v14134_v2, %v14133_v57  ;;  %v14135_v6 = vmov %v14134_v2  ;;  %v5201_v57 = vrot.slane %v12352_v50, 1  ;;  %v14137_v2 = vld [vmem:[#allocation51_spill] sm:$0xff]  ;;  %v12645_v29 = vsel %vm1252_vm2, %v5195_v26, %v5197_v59  ;;  %v14144_v26 = vld [vmem:[#allocation58_spill] sm:$0xff]  ;;  %6320 = vmatprep.subr.bf16.mxu1 %v8528_v11  ;;  %v14196_v11 = vld [vmem:[#allocation85_spill] sm:$0xff] }
 0x614   : > { %v12630_v55 = vsel %vm1252_vm2, %v14136_v46, %v14135_v6  ;;  %v14139_v42 = vpack.c.bf16 %v14137_v2, %v14138_v9  ;;  %v14140_v6 = vrot.slane %v12331_v18, 1  ;;  %v14142_v23 = vmov %v14141_v0 }
 0x615   : > { %v14143_v50 = vrot.slane %v12275_v28, 1  ;;  %v5203_v2 = vrot.slane %v12391_v16, 1  ;;  %v5311_v52 = vpack.c.bf16 %v12645_v29, %v12634_v60  ;;  %v12674_v28 = vsel %vm1252_vm2, %v5199_v15, %v5201_v57  ;;  %v8531_v16 = vld [vmem:[%s13671_s15 + $0x234] ss:$8 sps:$4 sm:$0xff]  }
 0x616   : > { %6051 = vmatmul.mubr.bf16.gmra.mxu1 %v14139_v42  ;;  %v12653_v46 = vsel %vm1252_vm2, %v14141_v0, %v14140_v6  ;;  %v14145_v42 = vld [vmem:[#allocation55_spill] sm:$0xff]  ;;  %v8526_v6 = vld [vmem:[%s13671_s15 + $0x240] ss:$8 sps:$4 sm:$0xff]   ;;  %v12678_v0 = vsel %vm1252_vm2, %v5197_v59, %v5199_v15  ;;  %v14148_v59 = vrot.slane %v12363_v25, 1  ;;  %v14153_v25 = vld [vmem:[#allocation56_spill] sm:$0xff] }
 0x617   : > { %v12661_v9 = vsel %vm1252_vm2, %v14143_v50, %v14142_v23  ;;  %v14146_v7 = vpack.c.bf16 %v14144_v26, %v14145_v42  ;;  %v12689_v23 = vsel %vm1252_vm2, %v5201_v57, %v5203_v2  ;;  %v14147_v50 = vrot.slane %v14108_v38, 1  ;;  %6321 = vmatpush1.bf16.msra.mxu1 %v8526_v6  ;;  %v8532_v6 = vld [vmem:[%s13671_s15 + $0x220] ss:$8 sps:$4 sm:$0xff]  }
 0x618   : > { %v14149_v26 = vrot.slane %v12331_v18, 1  ;;  %v14150_v57 = vrot.slane %v11634_v58, 1  ;;  %v8529_v18 = vld [vmem:[%s13671_s15 + $0x230] ss:$8 sps:$4 sm:$0xff]   ;;  %6322 = vmatprep.subr.bf16.mxu1 %v8531_v16  ;;  %v8534_v58 = vld [vmem:[%s13671_s15 + $0x224] ss:$8 sps:$4 sm:$0xff]  }
 0x619   : > { %6060 = vmatprep.mubr.bf16.mxu1 %v14146_v7  ;;  %v12695_v15 = vsel %vm1252_vm2, %v5203_v2, %v14147_v50  ;;  %v14151_v7 = vmov %v14148_v59  ;;  %v14152_v50 = vld [vmem:[#allocation24_spill] sm:$0xff] }
 0x61a   : > { %v12705_v42 = vsel %vm1252_vm2, %v14149_v26, %v14148_v59  ;;  %v12713_v38 = vsel %vm1252_vm2, %v14151_v7, %v14150_v57  ;;  %6510 = vmatmul.mubr.bf16.gmra.mxu0 %v14152_v50  ;;  %v14154_v7 = vld [vmem:[#allocation53_spill] sm:$0xff]  ;;  %v14156_v26 = vld [vmem:[#allocation62_spill] sm:$0xff]  ;;  %v14157_v57 = vld [vmem:[#allocation60_spill] sm:$0xff] }
 0x61b   : > { %6519 = vmatprep.mubr.bf16.mxu0 %v14111_v32  ;;  %v14155_v59 = vpack.c.bf16 %v14153_v25, %v14154_v7  ;;  %v14158_v2 = vpack.c.bf16 %v14156_v26, %v14157_v57  ;;  %6323 = vmatpush1.bf16.msra.mxu1 %v8529_v18  ;;  %v8537_v16 = vld [vmem:[%s13671_s15 + $0x214] ss:$8 sps:$4 sm:$0xff]   ;;  %v14159_v50 = vld [vmem:[#allocation25_spill] sm:$0xff]  ;;  %v8535_v25 = vld [vmem:[%s13671_s15 + $0x210] ss:$8 sps:$4 sm:$0xff]  }
 0x61c   : > { %6324 = vmatprep.subr.bf16.mxu1 %v8534_v58  ;;  %v14160_v18 = vld [vmem:[#allocation61_spill] sm:$0xff]  ;;  %v14161_v58 = vld [vmem:[#allocation59_spill] sm:$0xff] }
 0x61d   : > { %v14162_v7 = vpack.c.bf16 %v14160_v18, %v14161_v58  ;;  %v14164_v26 = vld [vmem:[#allocation65_spill] sm:$0xff]  ;;  %v8541_v18 = vld [vmem:[%s13671_s15 + $0x2f0] ss:$8 sps:$4 sm:$0xff]   ;;  %v14167_v58 = vld [vmem:[#allocation66_spill] sm:$0xff] }
 0x61e   : > { %6061 = vmatmul.mubr.bf16.gmra.mxu1 %v14155_v59  ;;  %v14163_v59 = vld [vmem:[#allocation68_spill] sm:$0xff] }
 0x61f   : > { %6070 = vmatprep.mubr.bf16.mxu1 %v14158_v2  ;;  %6325 = vmatpush1.bf16.msra.mxu1 %v8532_v6  ;;  %v8540_v2 = vld [vmem:[%s13671_s15 + $0x204] ss:$8 sps:$4 sm:$0xff]   ;;  %v14165_v57 = vpack.c.bf16 %v14163_v59, %v14164_v26  ;;  %v8538_v6 = vld [vmem:[%s13671_s15 + $0x200] ss:$8 sps:$4 sm:$0xff]   ;;  %v14171_v26 = vld [vmem:[#allocation71_spill] sm:$0xff] }
 0x620   : > { %6326 = vmatprep.subr.bf16.mxu1 %v8537_v16  ;;  %v8543_v16 = vld [vmem:[%s13671_s15 + $0x2f4] ss:$8 sps:$4 sm:$0xff]   ;;  %v14170_v59 = vld [vmem:[#allocation73_spill] sm:$0xff] }
 0x622   : > { %6520 = vmatmul.mubr.bf16.gmra.mxu0 %v14159_v50  ;;  %v14166_v50 = vld [vmem:[#allocation26_spill] sm:$0xff] }
 0x623   : > { %6529 = vmatprep.mubr.bf16.mxu0 %v14111_v32  ;;  %6327 = vmatpush1.bf16.msra.mxu1 %v8535_v25  ;;  %v8546_v25 = vld [vmem:[%s13671_s15 + $0x2e4] ss:$8 sps:$4 sm:$0xff]  }
 0x624   : > { %6328 = vmatprep.subr.bf16.mxu1 %v8540_v2  ;;  %v14168_v2 = vld [vmem:[#allocation64_spill] sm:$0xff] }
 0x626   : > { %6071 = vmatmul.mubr.bf16.gmra.mxu1 %v14162_v7  ;;  %v14169_v7 = vpack.c.bf16 %v14167_v58, %v14168_v2  ;;  %v8547_v58 = vld [vmem:[%s13671_s15 + $0x2d0] ss:$8 sps:$4 sm:$0xff]  }
 0x627   : > { %6080 = vmatprep.mubr.bf16.mxu1 %v14165_v57  ;;  %6329 = vmatpush1.bf16.msra.mxu1 %v8538_v6  ;;  %v14172_v57 = vpack.c.bf16 %v14170_v59, %v14171_v26  ;;  %v8544_v6 = vld [vmem:[%s13671_s15 + $0x2e0] ss:$8 sps:$4 sm:$0xff]   ;;  %v14174_v2 = vld [vmem:[#allocation72_spill] sm:$0xff]  ;;  %v14177_v59 = vld [vmem:[#allocation79_spill] sm:$0xff] }
 0x628   : > { %6330 = vmatprep.subr.bf16.mxu1 %v8543_v16  ;;  %v8549_v16 = vld [vmem:[%s13671_s15 + $0x2d4] ss:$8 sps:$4 sm:$0xff]  }
 0x629   : > { %v14178_v26 = vld [vmem:[#allocation76_spill] sm:$0xff] }
 0x62a   : > { %6530 = vmatmul.mubr.bf16.gmra.mxu0 %v14166_v50  ;;  %v14173_v50 = vld [vmem:[#allocation27_spill] sm:$0xff] }
 0x62b   : > { %6539 = vmatprep.mubr.bf16.mxu0 %v14111_v32  ;;  %6331 = vmatpush2.bf16.msra.mxu1 %v8541_v18  ;;  %v8552_v18 = vld [vmem:[%s13671_s15 + $0x2c4] ss:$8 sps:$4 sm:$0xff]  }
 0x62c   : > { %6332 = vmatprep.subr.bf16.mxu1 %v8546_v25  ;;  %v14175_v25 = vld [vmem:[#allocation69_spill] sm:$0xff] }
 0x62e   : > { %6081 = vmatmul.mubr.bf16.gmra.mxu1 %v14169_v7  ;;  %v14176_v7 = vpack.c.bf16 %v14174_v2, %v14175_v25  ;;  %v8553_v2 = vld [vmem:[%s13671_s15 + $0x2b0] ss:$8 sps:$4 sm:$0xff]   ;;  %v14181_v25 = vld [vmem:[#allocation77_spill] sm:$0xff] }
 0x62f   : > { %6090 = vmatprep.mubr.bf16.mxu1 %v14172_v57  ;;  %6333 = vmatpush2.bf16.msra.mxu1 %v8544_v6  ;;  %v14179_v57 = vpack.c.bf16 %v14177_v59, %v14178_v26  ;;  %v8550_v6 = vld [vmem:[%s13671_s15 + $0x2c0] ss:$8 sps:$4 sm:$0xff]   ;;  %v14184_v59 = vld [vmem:[#allocation84_spill] sm:$0xff] }
 0x630   : > { %6334 = vmatprep.subr.bf16.mxu1 %v8549_v16  ;;  %v8555_v16 = vld [vmem:[%s13671_s15 + $0x2b4] ss:$8 sps:$4 sm:$0xff]   ;;  %v14185_v26 = vld [vmem:[#allocation82_spill] sm:$0xff] }
 0x632   : > { %6540 = vmatmul.mubr.bf16.gmra.mxu0 %v14173_v50  ;;  %v14180_v50 = vld [vmem:[#allocation29_spill] sm:$0xff] }
 0x633   : > { %6549 = vmatprep.mubr.bf16.mxu0 %v14111_v32  ;;  %6335 = vmatpush2.bf16.msra.mxu1 %v8547_v58  ;;  %v8558_v58 = vld [vmem:[%s13671_s15 + $0x2a4] ss:$8 sps:$4 sm:$0xff]  }
 0x634   : > { %6336 = vmatprep.subr.bf16.mxu1 %v8552_v18  ;;  %v14182_v18 = vld [vmem:[#allocation74_spill] sm:$0xff] }
 0x636   : > { %6091 = vmatmul.mubr.bf16.gmra.mxu1 %v14176_v7  ;;  %v14183_v7 = vpack.c.bf16 %v14181_v25, %v14182_v18  ;;  %v8559_v25 = vld [vmem:[%s13671_s15 + $0x290] ss:$8 sps:$4 sm:$0xff]  }
 0x637   : > { %6100 = vmatprep.mubr.bf16.mxu1 %v14179_v57  ;;  %6337 = vmatpush2.bf16.msra.mxu1 %v8550_v6  ;;  %v14186_v57 = vpack.c.bf16 %v14184_v59, %v14185_v26  ;;  %v8556_v6 = vld [vmem:[%s13671_s15 + $0x2a0] ss:$8 sps:$4 sm:$0xff]   ;;  %v14188_v18 = vld [vmem:[#allocation83_spill] sm:$0xff]  ;;  %v14191_v59 = vld [vmem:[#allocation88_spill] sm:$0xff] }
 0x638   : > { %6338 = vmatprep.subr.bf16.mxu1 %v8555_v16  ;;  %v8561_v16 = vld [vmem:[%s13671_s15 + $0x294] ss:$8 sps:$4 sm:$0xff]   ;;  %v14192_v26 = vld [vmem:[#allocation86_spill] sm:$0xff] }
 0x63a   : > { %6550 = vmatmul.mubr.bf16.gmra.mxu0 %v14180_v50  ;;  %v14187_v50 = vld [vmem:[#allocation30_spill] sm:$0xff] }
 0x63b   : > { %6559 = vmatprep.mubr.bf16.mxu0 %v14111_v32  ;;  %6339 = vmatpush2.bf16.msra.mxu1 %v8553_v2  ;;  %v8564_v2 = vld [vmem:[%s13671_s15 + $0x284] ss:$8 sps:$4 sm:$0xff]  }
 0x63c   : > { %6340 = vmatprep.subr.bf16.mxu1 %v8558_v58  ;;  %v14189_v58 = vld [vmem:[#allocation81_spill] sm:$0xff] }
 0x63e   : > { %6101 = vmatmul.mubr.bf16.gmra.mxu1 %v14183_v7  ;;  %v14190_v7 = vpack.c.bf16 %v14188_v18, %v14189_v58  ;;  %v14198_v18 = vpack.c.bf16 %v12295_v49, %v12272_v27  ;;  %v14199_v58 = vld [vmem:[#allocation34_spill] sm:$0xff]  ;;  %v14203_v27 = vpack.c.bf16 %v12339_v39, %v12308_v34  ;;  %v14204_v49 = vpack.c.bf16 %v12453_v56, %v12388_v48  ;;  %v14211_v34 = vld [vmem:[#allocation48_spill] sm:$0xff]  ;;  %v14214_v48 = vld [vmem:[#allocation67_spill] sm:$0xff] }
 0x63f   : > { %6110 = vmatprep.mubr.bf16.mxu1 %v14186_v57  ;;  %6341 = vmatpush2.bf16.msra.mxu1 %v8556_v6  ;;  %v14193_v57 = vpack.c.bf16 %v14191_v59, %v14192_v26  ;;  %v8562_v6 = vld [vmem:[%s13671_s15 + $0x280] ss:$8 sps:$4 sm:$0xff]  }
 0x640   : > { %6342 = vmatprep.subr.bf16.mxu1 %v8561_v16  ;;  %v14195_v16 = vld [vmem:[#allocation87_spill] sm:$0xff]  ;;  %v14212_v39 = vld [vmem:[#allocation22_spill] sm:$0xff] }
 0x641   : > { %v14197_v19 = vpack.c.bf16 %v14195_v16, %v14196_v11  ;;  %v14210_v11 = vld [vmem:[#allocation9_spill] sm:$0xff]  ;;  %v14213_v59 = vpack.c.bf16 %v14211_v34, %v14212_v39  ;;  %v14215_v56 = vld [vmem:[#allocation70_spill] sm:$0xff]  ;;  %v14228_v39 = vld [vmem:[#allocation63_spill] sm:$0xff] }
 0x642   : > { %6560 = vmatmul.mubr.bf16.gmra.mxu0 %v14187_v50  ;;  %v14194_v50 = vld [vmem:[#allocation32_spill] sm:$0xff]  ;;  %v14216_v26 = vpack.c.bf16 %v14214_v48, %v14215_v56  ;;  %v14220_v16 = vld [vmem:[#allocation89_spill] sm:$0xff] }
 0x643   : > { %6569 = vmatprep.mubr.bf16.mxu0 %v14111_v32  ;;  %6343 = vmatpush2.bf16.msra.mxu1 %v8559_v25  ;;  %v14200_v25 = vpack.c.bf16 %v12283_v24, %v12253_v61  ;;  %v14206_v24 = vpack.c.bf16 %v12417_v40, %v12370_v33  ;;  %v14207_v61 = vld [vmem:[#allocation54_spill] sm:$0xff]  ;;  %v14217_v33 = vld [vmem:[#allocation75_spill] sm:$0xff] }
 0x644   : > { %6344 = vmatprep.subr.bf16.mxu1 %v8564_v2  ;;  %v14201_v2 = vpack.c.bf16 %v12356_v31, %v12328_v35  ;;  %v14208_v35 = vld [vmem:[#allocation57_spill] sm:$0xff]  ;;  %v14218_v40 = vld [vmem:[#allocation78_spill] sm:$0xff] }
 0x645   : > { %v14209_v31 = vpack.c.bf16 %v14207_v61, %v14208_v35 }
 0x646   : > { %6111 = vmatmul.mubr.bf16.gmra.mxu1 %v14190_v7  ;;  %v14202_v7 = vld [vmem:[#allocation35_spill] sm:$0xff] }
 0x647   : > { %6120 = vmatprep.mubr.bf16.mxu1 %v14193_v57  ;;  %6345 = vmatpush2.bf16.msra.mxu1 %v8562_v6  ;;  %v14219_v6 = vpack.c.bf16 %v14217_v33, %v14218_v40  ;;  %v14232_v40 = vpack.c.bf16 %v12534_v51, %v12538_v1 }
 0x64a   : > { %6570 = vmatmul.mubr.bf16.gmra.mxu0 %v14194_v50 }
 0x64b   : > { %6579 = vmatprep.mubr.bf16.mxu0 %v14111_v32 }
 0x64e   : > { %6121 = vmatmul.mubr.bf16.gmra.mxu1 %v14197_v19  ;;  %v14205_v19 = vld [vmem:[#allocation20_spill] sm:$0xff] }
 0x64f   : > { %6130 = vmatprep.mubr.bf16.mxu1 %v14198_v18  ;;  %v14221_v18 = vld [vmem:[#allocation90_spill] sm:$0xff] }
 0x652   : > { %6580 = vmatmul.mubr.bf16.gmra.mxu0 %v14199_v58  ;;  %v14222_v58 = vpack.c.bf16 %v14220_v16, %v14221_v18  ;;  %v14240_v18 = vpack.c.bf16 %v12558_v45, %v12570_v53 }
 0x653   : > { %6589 = vmatprep.mubr.bf16.mxu0 %v14111_v32 }
 0x656   : > { %6131 = vmatmul.mubr.bf16.gmra.mxu1 %v14200_v25 }
 0x657   : > { %6140 = vmatprep.mubr.bf16.mxu1 %v14201_v2 }
 0x65a   : > { %6590 = vmatmul.mubr.bf16.gmra.mxu0 %v14202_v7 }
 0x65b   : > { %6599 = vmatprep.mubr.bf16.mxu0 %v14111_v32 }
 0x65e   : > { %6141 = vmatmul.mubr.bf16.gmra.mxu1 %v14203_v27  ;;  %v14223_v27 = vpack.c.bf16 %v12316_v4, %v12347_v20  ;;  %v14227_v4 = vpack.c.bf16 %v12466_v44, %v12470_v47 }
 0x65f   : > { %6150 = vmatprep.mubr.bf16.mxu1 %v14204_v49 }
 0x662   : > { %6600 = vmatmul.mubr.bf16.gmra.mxu0 %v14205_v19  ;;  %v14224_v19 = vpack.c.bf16 %v12395_v37, %v12401_v14 }
 0x663   : > { %6609 = vmatprep.mubr.bf16.mxu0 %v14111_v32 }
 0x666   : > { %6151 = vmatmul.mubr.bf16.gmra.mxu1 %v14206_v24 }
 0x667   : > { %6346 = vmatprep.mubr.bf16.mxu1 %v14209_v31  ;;  %v14225_v31 = vld [vmem:[#allocation91_spill] sm:$0xff] }
 0x66a   : > { %6610 = vmatmul.mubr.bf16.gmra.mxu0 %v14210_v11  ;;  %v14226_v11 = vpack.c.bf16 %v12380_v43, %v14225_v31 }
 0x66b   : > { %v12873_v57 = vpop.f32.mrf.mxu0 }
 0x66d   : > { %v12875_v32 = vpop.f32.mrf.mxu0 }
 0x66e   : > { %6347 = vmatmul.mubr.bf16.vlgmr.msra.gmra.mxu1 %v14213_v59  ;;  %v14229_v59 = vld [vmem:[#allocation92_spill] sm:$0xff] }
 0x66f   : > { %6356 = vmatprep.mubr.bf16.mxu1 %v14216_v26  ;;  %v12880_v50 = vpop.f32.mrf.mxu0  ;;  %v14230_v48 = vpack.c.bf16 %v14228_v39, %v14229_v59  ;;  %v14231_v26 = vpack.c.bf16 %v12489_v41, %v12497_v10  ;;  %v14236_v41 = vpack.c.bf16 %v12562_v8, %v12550_v5 }
 0x671   : > { %v12885_v25 = vpop.f32.mrf.mxu0 }
 0x673   : > { %v12887_v2 = vpop.f32.mrf.mxu0 }
 0x675   : > { %v12889_v7 = vpop.f32.mrf.mxu0 }
 0x676   : > { %6357 = vmatmul.mubr.bf16.gmra.mxu1 %v14219_v6 }
 0x677   : > { %6366 = vmatprep.mubr.bf16.mxu1 %v14222_v58  ;;  %v12894_v49 = vpop.f32.mrf.mxu0 }
 0x679   : > { %v12899_v24 = vpop.f32.mrf.mxu0 }
 0x67b   : > { %v12901_v61 = vpop.f32.mrf.mxu0 }
 0x67d   : > { %v12903_v35 = vpop.f32.mrf.mxu0 }
 0x67e   : > { %6367 = vmatmul.mubr.bf16.gmra.mxu1 %v14223_v27  ;;  %v14243_v27 = vpack.c.bf16 %v12584_v3, %v12592_v21  ;;  %v14249_v3 = vpack.c.bf16 %v12674_v28, %v12678_v0 }
 0x67f   : > { %6376 = vmatprep.mubr.bf16.mxu1 %v14224_v19  ;;  %v12908_v34 = vpop.f32.mrf.mxu0 }
 0x681   : > { %v12913_v20 = vpop.f32.mrf.mxu0 }
 0x683   : > { %v12915_v37 = vpop.f32.mrf.mxu0 }
 0x685   : > { %v12917_v14 = vpop.f32.mrf.mxu0 }
 0x686   : > { %6377 = vmatmul.mubr.bf16.gmra.mxu1 %v14226_v11 }
 0x687   : > { %6386 = vmatprep.mubr.bf16.mxu1 %v14227_v4  ;;  %v12922_v56 = vpop.f32.mrf.mxu0  ;;  %v14259_v4 = vpack.c.bf16 %v12713_v38, %v12705_v42 }
 0x689   : > { %v12927_v43 = vpop.f32.mrf.mxu0 }
 0x68c   : > { %v12929_v44 = vpop.f32.mrf.mxu0 }
 0x68e   : > { %6387 = vmatmul.mubr.bf16.gmra.mxu1 %v14230_v48  ;;  %v12931_v47 = vpop.f32.mrf.mxu0  ;;  %v14264_v48 = vsub.s32 1, %v13899_v36 }
 0x68f   : > { %6396 = vmatprep.mubr.bf16.mxu1 %v5287_v30  ;;  %v14234_v30 = vpack.c.bf16 %v12507_v22, %v12521_v54  ;;  %v14242_v22 = vpack.c.bf16 %v12600_v62, %v12604_v63  ;;  %v14247_v63 = vpack.c.bf16 %v12622_v17, %v12630_v55  ;;  %v14255_v17 = vpack.c.bf16 %v12695_v15, %v12689_v23 }
 0x690   : > { %v12936_v33 = vpop.f32.mrf.mxu0  ;;  %v14262_v23 = vsub.s32 0, %v13899_v36 }
 0x692   : > { %v12941_v6 = vpop.f32.mrf.mxu0 }
 0x694   : > { %v12943_v12 = vpop.f32.mrf.mxu0 }
 0x696   : > { %6397 = vmatmul.mubr.bf16.gmra.mxu1 %v14231_v26  ;;  %v12945_v13 = vpop.f32.mrf.mxu0 }
 0x697   : > { %6406 = vmatprep.mubr.bf16.mxu1 %v14232_v40  ;;  %14233 = vst [vmem:[#allocation21_spill] sm:$0xff] %v12945_v13 }
 0x698   : > { %v12950_v16 = vpop.f32.mrf.mxu0 }
 0x699   : > { %14235 = vst [vmem:[#allocation47_spill] sm:$0xff] %v12950_v16 }
 0x69a   : > { %v12955_v10 = vpop.f32.mrf.mxu0 }
 0x69b   : > { %14237 = vst [vmem:[#allocation52_spill] sm:$0xff] %v12955_v10 }
 0x69c   : > { %v12957_v51 = vpop.f32.mrf.mxu0 }
 0x69d   : > { %14238 = vst [vmem:[#allocation50_spill] sm:$0xff] %v12957_v51 }
 0x69e   : > { %6407 = vmatmul.mubr.bf16.gmra.mxu1 %v14234_v30  ;;  %v12959_v1 = vpop.f32.mrf.mxu0 }
 0x69f   : > { %6416 = vmatprep.mubr.bf16.mxu1 %v14236_v41  ;;  %14239 = vst [vmem:[#allocation80_spill] sm:$0xff] %v12959_v1 }
 0x6a0   : > { %v12964_v58 = vpop.f32.mrf.mxu0 }
 0x6a1   : > { %14241 = vst [vmem:[#allocation23_spill] sm:$0xff] %v12964_v58 }
 0x6a2   : > { %v12969_v54 = vpop.f32.mrf.mxu0 }
 0x6a4   : > { %v12971_v5 = vpop.f32.mrf.mxu0 }
 0x6a6   : > { %6417 = vmatmul.mubr.bf16.gmra.mxu1 %v14240_v18  ;;  %v12973_v8 = vpop.f32.mrf.mxu0 }
 0x6a7   : > { %6426 = vmatprep.mubr.bf16.mxu1 %v14242_v22 }
 0x6a8   : > { %v12978_v19 = vpop.f32.mrf.mxu0 }
 0x6aa   : > { %v12983_v45 = vpop.f32.mrf.mxu0 }
 0x6ab   : > { %14244 = vst [vmem:[#allocation51_spill] sm:$0xff] %v12983_v45 }
 0x6ad   : > { %v12985_v53 = vpop.f32.mrf.mxu0 }
 0x6ae   : > { %6427 = vmatmul.mubr.bf16.gmra.mxu1 %v14243_v27  ;;  %14245 = vst [vmem:[#allocation49_spill] sm:$0xff] %v12985_v53 }
 0x6af   : > { %6436 = vmatprep.mubr.bf16.mxu1 %v5311_v52  ;;  %v12987_v62 = vpop.f32.mrf.mxu0  ;;  %v14253_v52 = vpack.c.bf16 %v12653_v46, %v12661_v9  ;;  %v5436_v46 = vld [vmem:[%s13672_s16] sm:$0x3] }
 0x6b0   : > { %14246 = vst [vmem:[#allocation58_spill] sm:$0xff] %v12987_v62  ;;  %v13029_v15 = vrot.slane %v5436_v46, %v14262_v23  ;;  %v13035_v26 = vrot.slane %v5436_v46, %v14264_v48 }
 0x6b1   : > { %v12992_v31 = vpop.f32.mrf.mxu0 }
 0x6b2   : > { %14248 = vst [vmem:[#allocation55_spill] sm:$0xff] %v12992_v31 }
 0x6b3   : > { %v12997_v21 = vpop.f32.mrf.mxu0 }
 0x6b4   : > { %14250 = vst [vmem:[#allocation24_spill] sm:$0xff] %v12997_v21 }
 0x6b5   : > { %v12999_v60 = vpop.f32.mrf.mxu0 }
 0x6b6   : > { %6437 = vmatmul.mubr.bf16.gmra.mxu1 %v14247_v63  ;;  %14251 = vst [vmem:[#allocation56_spill] sm:$0xff] %v12999_v60 }
 0x6b7   : > { %6446 = vmatprep.mubr.bf16.mxu1 %v14249_v3  ;;  %v13001_v29 = vpop.f32.mrf.mxu0 }
 0x6b8   : > { %14252 = vst [vmem:[#allocation53_spill] sm:$0xff] %v13001_v29 }
 0x6b9   : > { %v13006_v11 = vpop.f32.mrf.mxu0 }
 0x6ba   : > { %14254 = vst [vmem:[#allocation62_spill] sm:$0xff] %v13006_v11 }
 0x6bb   : > { %v13011_v55 = vpop.f32.mrf.mxu0 }
 0x6bc   : > { %14256 = vst [vmem:[#allocation60_spill] sm:$0xff] %v13011_v55 }
 0x6bd   : > { %v13013_v28 = vpop.f32.mrf.mxu0 }
 0x6be   : > { %6447 = vmatmul.mubr.bf16.gmra.mxu1 %v14253_v52  ;;  %14257 = vst [vmem:[#allocation25_spill] sm:$0xff] %v13013_v28 }
 0x6bf   : > { %6456 = vmatprep.mubr.bf16.mxu1 %v14255_v17  ;;  %v13015_v0 = vpop.f32.mrf.mxu0 }
 0x6c0   : > { %14258 = vst [vmem:[#allocation61_spill] sm:$0xff] %v13015_v0 }
 0x6c1   : > { %v13020_v39 = vpop.f32.mrf.mxu0 }
 0x6c2   : > { %14260 = vst [vmem:[#allocation59_spill] sm:$0xff] %v13020_v39 }
 0x6c3   : > { %v13025_v9 = vpop.f32.mrf.mxu0 }
 0x6c4   : > { %14261 = vst [vmem:[#allocation68_spill] sm:$0xff] %v13025_v9 }
 0x6c5   : > { %v13031_v59 = vpop.f32.mrf.mxu0 }
 0x6c6   : > { %6457 = vmatmul.mubr.bf16.gmra.mxu1 %v14259_v4  ;;  %14263 = vst [vmem:[#allocation65_spill] sm:$0xff] %v13031_v59 }
 0x6c7   : > { %v13037_v42 = vpop.f32.mrf.mxu0 }
 0x6c8   : > { %14265 = vst [vmem:[#allocation26_spill] sm:$0xff] %v13037_v42 }
 0x6c9   : > { %v6042_v38 = vpop.f32.mrf.mxu1  ;;  %v13042_v30 = vpop.f32.mrf.mxu0 }
 0x6ca   : > { %v13040_v40 = vadd.f32 %v6042_v38, %v13029_v15  ;;  %14266 = vst [vmem:[#allocation66_spill] sm:$0xff] %v13042_v30 }
 0x6cb   : > { %v6044_v41 = vpop.f32.mrf.mxu1  ;;  %v13047_v22 = vpop.f32.mrf.mxu0 }
 0x6cc   : > { %v13045_v18 = vadd.f32 %v6044_v41, %v13035_v26  ;;  %14267 = vst [vmem:[#allocation64_spill] sm:$0xff] %v13047_v22 }
 0x6cd   : > { %v6046_v27 = vpop.f32.mrf.mxu1 }
 0x6ce   : > { %v13050_v63 = vadd.f32 %v6046_v27, %v13029_v15 }
 0x6cf   : > { %v6048_v3 = vpop.f32.mrf.mxu1 }
 0x6d0   : > { %v13055_v52 = vadd.f32 %v6048_v3, %v13035_v26 }
 0x6d1   : > { %v13052_v36 = vpop.f32.mrf.mxu0 }
 0x6d2   : > { %14268 = vst [vmem:[#allocation73_spill] sm:$0xff] %v13052_v36 }
 0x6d3   : > { %v13057_v17 = vpop.f32.mrf.mxu0 }
 0x6d4   : > { %14269 = vst [vmem:[#allocation71_spill] sm:$0xff] %v13057_v17 }
 0x6d5   : > { %v13065_v38 = vpop.f32.mrf.mxu0 }
 0x6d6   : > { %v6052_v4 = vpop.f32.mrf.mxu1  ;;  %14270 = vst [vmem:[#allocation27_spill] sm:$0xff] %v13065_v38 }
 0x6d7   : > { %v13060_v46 = vadd.f32 %v6052_v4, %v13029_v15  ;;  %v13073_v30 = vpop.f32.mrf.mxu0 }
 0x6d8   : > { %v6054_v23 = vpop.f32.mrf.mxu1  ;;  %14271 = vst [vmem:[#allocation72_spill] sm:$0xff] %v13073_v30 }
 0x6d9   : > { %v13063_v48 = vadd.f32 %v6054_v23, %v13035_v26 }
 0x6da   : > { %v6056_v41 = vpop.f32.mrf.mxu1  ;;  %v13081_v36 = vpop.f32.mrf.mxu0 }
 0x6db   : > { %v13068_v27 = vadd.f32 %v6056_v41, %v13029_v15  ;;  %14272 = vst [vmem:[#allocation69_spill] sm:$0xff] %v13081_v36 }
 0x6dc   : > { %v6058_v22 = vpop.f32.mrf.mxu1  ;;  %v13089_v9 = vpop.f32.mrf.mxu0 }
 0x6dd   : > { %v13071_v3 = vadd.f32 %v6058_v22, %v13035_v26  ;;  %14273 = vst [vmem:[#allocation79_spill] sm:$0xff] %v13089_v9 }
 0x6de   : > { %v6062_v17 = vpop.f32.mrf.mxu1  ;;  %v13097_v0 = vpop.f32.mrf.mxu0 }
 0x6df   : > { %v13076_v4 = vadd.f32 %v6062_v17, %v13029_v15  ;;  %14274 = vst [vmem:[#allocation76_spill] sm:$0xff] %v13097_v0 }
 0x6e0   : > { %v6064_v42 = vpop.f32.mrf.mxu1  ;;  %v13105_v55 = vpop.f32.mrf.mxu0 }
 0x6e1   : > { %v13079_v23 = vadd.f32 %v6064_v42, %v13035_v26  ;;  %14275 = vst [vmem:[#allocation29_spill] sm:$0xff] %v13105_v55 }
 0x6e2   : > { %v6066_v38 = vpop.f32.mrf.mxu1  ;;  %v13113_v29 = vpop.f32.mrf.mxu0 }
 0x6e3   : > { %v13084_v41 = vadd.f32 %v6066_v38, %v13029_v15  ;;  %14276 = vst [vmem:[#allocation77_spill] sm:$0xff] %v13113_v29 }
 0x6e4   : > { %v6068_v59 = vpop.f32.mrf.mxu1  ;;  %v13121_v21 = vpop.f32.mrf.mxu0 }
 0x6e5   : > { %v13087_v22 = vadd.f32 %v6068_v59, %v13035_v26  ;;  %14277 = vst [vmem:[#allocation74_spill] sm:$0xff] %v13121_v21 }
 0x6e6   : > { %v6072_v30 = vpop.f32.mrf.mxu1  ;;  %v13129_v62 = vpop.f32.mrf.mxu0 }
 0x6e7   : > { %v13092_v17 = vadd.f32 %v6072_v30, %v13029_v15  ;;  %14279 = vst [vmem:[#allocation82_spill] sm:$0xff] %v13129_v62 }
 0x6e8   : > { %v6074_v39 = vpop.f32.mrf.mxu1  ;;  %v13137_v51 = vpop.f32.mrf.mxu0 }
 0x6e9   : > { %v13095_v42 = vadd.f32 %v6074_v39, %v13035_v26  ;;  %14282 = vst [vmem:[#allocation81_spill] sm:$0xff] %v13137_v51 }
 0x6ea   : > { %v6076_v36 = vpop.f32.mrf.mxu1  ;;  %v13145_v45 = vpop.f32.mrf.mxu0 }
 0x6eb   : > { %v13100_v38 = vadd.f32 %v6076_v36, %v13029_v15  ;;  %14285 = vst [vmem:[#allocation32_spill] sm:$0xff] %v13145_v45 }
 0x6ec   : > { %v6078_v28 = vpop.f32.mrf.mxu1 }
 0x6ed   : > { %v13103_v59 = vadd.f32 %v6078_v28, %v13035_v26 }
 0x6ee   : > { %v6082_v9 = vpop.f32.mrf.mxu1 }
 0x6ef   : > { %v13108_v30 = vadd.f32 %v6082_v9, %v13029_v15 }
 0x6f0   : > { %v6084_v11 = vpop.f32.mrf.mxu1 }
 0x6f1   : > { %v13111_v39 = vadd.f32 %v6084_v11, %v13035_v26 }
 0x6f2   : > { %v6086_v0 = vpop.f32.mrf.mxu1 }
 0x6f3   : > { %v13116_v36 = vadd.f32 %v6086_v0, %v13029_v15 }
 0x6f4   : > { %v6088_v60 = vpop.f32.mrf.mxu1 }
 0x6f5   : > { %v13119_v28 = vadd.f32 %v6088_v60, %v13035_v26 }
 0x6f6   : > { %v6092_v55 = vpop.f32.mrf.mxu1 }
 0x6f7   : > { %v13124_v9 = vadd.f32 %v6092_v55, %v13029_v15 }
 0x6f8   : > { %v6094_v31 = vpop.f32.mrf.mxu1 }
 0x6f9   : > { %v13127_v11 = vadd.f32 %v6094_v31, %v13035_v26 }
 0x6fa   : > { %v6096_v29 = vpop.f32.mrf.mxu1 }
 0x6fb   : > { %14278 = vst [vmem:[#allocation84_spill] sm:$0xff] %v13127_v11  ;;  %v13132_v0 = vadd.f32 %v6096_v29, %v13029_v15 }
 0x6fc   : > { %v6098_v53 = vpop.f32.mrf.mxu1 }
 0x6fd   : > { %14280 = vst [vmem:[#allocation30_spill] sm:$0xff] %v13132_v0  ;;  %v13135_v60 = vadd.f32 %v6098_v53, %v13035_v26 }
 0x6fe   : > { %v6102_v21 = vpop.f32.mrf.mxu1 }
 0x6ff   : > { %14281 = vst [vmem:[#allocation83_spill] sm:$0xff] %v13135_v60  ;;  %v13140_v55 = vadd.f32 %v6102_v21, %v13029_v15  ;;  %v13153_v60 = vpop.f32.mrf.mxu0 }
 0x700   : > { %v6104_v10 = vpop.f32.mrf.mxu1  ;;  %14287 = vst [vmem:[#allocation85_spill] sm:$0xff] %v13153_v60 }
 0x701   : > { %14283 = vst [vmem:[#allocation88_spill] sm:$0xff] %v13140_v55  ;;  %v13143_v31 = vadd.f32 %v6104_v10, %v13035_v26 }
 0x702   : > { %v6106_v62 = vpop.f32.mrf.mxu1 }
 0x703   : > { %14284 = vst [vmem:[#allocation86_spill] sm:$0xff] %v13143_v31  ;;  %v13148_v29 = vadd.f32 %v6106_v62, %v13029_v15  ;;  %v13161_v31 = vpop.f32.mrf.mxu0 }
 0x704   : > { %v6108_v1 = vpop.f32.mrf.mxu1  ;;  %14288 = vst [vmem:[#allocation34_spill] sm:$0xff] %v13161_v31 }
 0x705   : > { %14286 = vst [vmem:[#allocation87_spill] sm:$0xff] %v13148_v29  ;;  %v13151_v53 = vadd.f32 %v6108_v1, %v13035_v26  ;;  %v13169_v29 = vpop.f32.mrf.mxu0 }
 0x706   : > { %v6112_v51 = vpop.f32.mrf.mxu1  ;;  %14290 = vst [vmem:[#allocation20_spill] sm:$0xff] %v13169_v29 }
 0x707   : > { %v13156_v21 = vadd.f32 %v6112_v51, %v13029_v15  ;;  %v13177_v0 = vpop.f32.mrf.mxu0 }
 0x708   : > { %v6114_v55 = vpop.f32.mrf.mxu1  ;;  %14293 = vst [vmem:[#allocation9_spill] sm:$0xff] %v13177_v0 }
 0x709   : > { %v13159_v10 = vadd.f32 %v6114_v55, %v13035_v26 }
 0x70a   : > { %v6116_v45 = vpop.f32.mrf.mxu1 }
 0x70b   : > { %v13164_v62 = vadd.f32 %v6116_v45, %v13029_v15 }
 0x70c   : > { %v6118_v58 = vpop.f32.mrf.mxu1 }
 0x70d   : > { %v13167_v1 = vadd.f32 %v6118_v58, %v13035_v26 }
 0x70e   : > { %v6122_v60 = vpop.f32.mrf.mxu1 }
 0x70f   : > { %14289 = vst [vmem:[#allocation35_spill] sm:$0xff] %v13167_v1  ;;  %v13172_v51 = vadd.f32 %v6122_v60, %v13029_v15  ;;  %v13185_v1 = vpop.f32.mrf.mxu0 }
 0x710   : > { %v6124_v16 = vpop.f32.mrf.mxu1  ;;  %14296 = vst [vmem:[#allocation67_spill] sm:$0xff] %v13185_v1 }
 0x711   : > { %14291 = vst [vmem:[#allocation54_spill] sm:$0xff] %v13172_v51  ;;  %v13175_v55 = vadd.f32 %v6124_v16, %v13035_v26 }
 0x712   : > { %v6126_v31 = vpop.f32.mrf.mxu1 }
 0x713   : > { %14292 = vst [vmem:[#allocation57_spill] sm:$0xff] %v13175_v55  ;;  %v13180_v45 = vadd.f32 %v6126_v31, %v13029_v15  ;;  %v13193_v55 = vpop.f32.mrf.mxu0 }
 0x714   : > { %v6128_v13 = vpop.f32.mrf.mxu1  ;;  %14299 = vst [vmem:[#allocation78_spill] sm:$0xff] %v13193_v55 }
 0x715   : > { %14294 = vst [vmem:[#allocation48_spill] sm:$0xff] %v13180_v45  ;;  %v13183_v58 = vadd.f32 %v6128_v13, %v13035_v26 }
 0x716   : > { %v6132_v29 = vpop.f32.mrf.mxu1 }
 0x717   : > { %14295 = vst [vmem:[#allocation22_spill] sm:$0xff] %v13183_v58  ;;  %v13188_v60 = vadd.f32 %v6132_v29, %v13029_v15  ;;  %v13201_v58 = vpop.f32.mrf.mxu0 }
 0x718   : > { %v6134_v51 = vpop.f32.mrf.mxu1  ;;  %14302 = vst [vmem:[#allocation91_spill] sm:$0xff] %v13201_v58 }
 0x719   : > { %14297 = vst [vmem:[#allocation70_spill] sm:$0xff] %v13188_v60  ;;  %v13191_v16 = vadd.f32 %v6134_v51, %v13035_v26 }
 0x71a   : > { %v6136_v0 = vpop.f32.mrf.mxu1 }
 0x71b   : > { %14298 = vst [vmem:[#allocation75_spill] sm:$0xff] %v13191_v16  ;;  %v13196_v31 = vadd.f32 %v6136_v0, %v13029_v15  ;;  %v13209_v16 = vpop.f32.mrf.mxu0 }
 0x71c   : > { %v6138_v45 = vpop.f32.mrf.mxu1  ;;  %14305 = vst [vmem:[#allocation93_spill] sm:$0xff] %v13209_v16 }
 0x71d   : > { %14300 = vst [vmem:[#allocation89_spill] sm:$0xff] %v13196_v31  ;;  %v13199_v13 = vadd.f32 %v6138_v45, %v13035_v26  ;;  %v6717_v45 = vld [vmem:[%s14307_s3 + $0x8] sm:$0xff] }
 0x71e   : > { %v6142_v1 = vpop.f32.mrf.mxu1  ;;  %7341 = vmatprep.mubr.msk.f32.mxu1 %vm6718_vm6, %v6717_v45  ;;  %v6196_v45 = vadd.f32 %v12873_v57, %v13040_v40  ;;  %v6202_v57 = vadd.f32 %v12885_v25, %v13055_v52  ;;  %v6210_v25 = vadd.f32 %v12894_v49, %v13068_v27  ;;  %v6218_v49 = vadd.f32 %v12903_v35, %v13079_v23 }
 0x71f   : > { %14301 = vst [vmem:[#allocation90_spill] sm:$0xff] %v13199_v13  ;;  %v13204_v29 = vadd.f32 %v6142_v1, %v13029_v15  ;;  %v13220_v1 = vpop.f32.mrf.mxu0 }
 0x720   : > { %v6144_v60 = vpop.f32.mrf.mxu1  ;;  %14309 = vst [vmem:[#allocation96_spill] sm:$0xff] %v13220_v1 }
 0x721   : > { %14303 = vst [vmem:[#allocation63_spill] sm:$0xff] %v13204_v29  ;;  %v13207_v51 = vadd.f32 %v6144_v60, %v13035_v26 }
 0x722   : > { %v6146_v55 = vpop.f32.mrf.mxu1 }
 0x723   : > { %14304 = vst [vmem:[#allocation92_spill] sm:$0xff] %v13207_v51  ;;  %v13212_v0 = vadd.f32 %v6146_v55, %v13029_v15 }
 0x724   : > { %v6148_v31 = vpop.f32.mrf.mxu1 }
 0x725   : > { %14306 = vst [vmem:[#allocation94_spill] sm:$0xff] %v13212_v0  ;;  %v13218_v13 = vadd.f32 %v6148_v31, %v13035_v26  ;;  %v13228_v0 = vpop.f32.mrf.mxu0 }
 0x726   : > { %v6152_v60 = vpop.f32.mrf.mxu1 }
 0x727   : > { %14308 = vst [vmem:[#allocation95_spill] sm:$0xff] %v13218_v13  ;;  %v13223_v51 = vadd.f32 %v6152_v60, %v13029_v15  ;;  %v13238_v13 = vpop.f32.mrf.mxu0 }
 0x728   : > { %v6154_v29 = vpop.f32.mrf.mxu1 }
 0x729   : > { %14310 = vst [vmem:[#allocation97_spill] sm:$0xff] %v13223_v51  ;;  %v13226_v55 = vadd.f32 %v6154_v29, %v13035_v26  ;;  %v6198_v29 = vadd.f32 %v12875_v32, %v13045_v18  ;;  %v6206_v32 = vadd.f32 %v12887_v2, %v13060_v46  ;;  %v6212_v2 = vadd.f32 %v12899_v24, %v13071_v3 }
 0x72a   : > { %v6156_v58 = vpop.f32.mrf.mxu1 }
 0x72b   : > { %14311 = vst [vmem:[#allocation98_spill] sm:$0xff] %v13226_v55  ;;  %v13231_v16 = vadd.f32 %v6156_v58, %v13029_v15  ;;  %v6200_v15 = vadd.f32 %v12880_v50, %v13050_v63  ;;  %v13248_v58 = vpop.f32.mrf.mxu0  ;;  %v6208_v50 = vadd.f32 %v12889_v7, %v13063_v48  ;;  %v6216_v7 = vadd.f32 %v12901_v61, %v13076_v4 }
 0x72c   : > { %v6158_v11 = vpop.f32.mrf.mxu1 }
 0x72d   : > { %14312 = vst [vmem:[#allocation99_spill] sm:$0xff] %v13231_v16  ;;  %v13234_v31 = vadd.f32 %v6158_v11, %v13035_v26  ;;  %v13258_v18 = vpop.f32.mrf.mxu0 }
 0x72e   : > { %v6348_v60 = vpop.f32.mrf.mxu1 }
 0x72f   : > { %14313 = vst [vmem:[#allocation100_spill] sm:$0xff] %v13234_v31  ;;  %v13240_v51 = vadd.f32 %v6348_v60, %v6196_v45  ;;  %v13268_v52 = vpop.f32.mrf.mxu0 }
 0x730   : > { %v6350_v55 = vpop.f32.mrf.mxu1 }
 0x731   : > { %14314 = vst [vmem:[#allocation101_spill] sm:$0xff] %v13240_v51  ;;  %v13244_v1 = vadd.f32 %v6350_v55, %v6198_v29  ;;  %v13278_v48 = vpop.f32.mrf.mxu0 }
 0x732   : > { %v6352_v26 = vpop.f32.mrf.mxu1 }
 0x733   : > { %14315 = vst [vmem:[#allocation102_spill] sm:$0xff] %v13244_v1  ;;  %v13250_v11 = vadd.f32 %v6352_v26, %v6200_v15 }
 0x734   : > { %v6354_v40 = vpop.f32.mrf.mxu1 }
 0x735   : > { %14316 = vst [vmem:[#allocation103_spill] sm:$0xff] %v13250_v11  ;;  %v13254_v45 = vadd.f32 %v6354_v40, %v6202_v57 }
 0x736   : > { %v6358_v55 = vpop.f32.mrf.mxu1 }
 0x737   : > { %14317 = vst [vmem:[#allocation104_spill] sm:$0xff] %v13254_v45  ;;  %v13260_v60 = vadd.f32 %v6358_v55, %v6206_v32 }
 0x738   : > { %v6360_v63 = vpop.f32.mrf.mxu1 }
 0x739   : > { %14318 = vst [vmem:[#allocation105_spill] sm:$0xff] %v13260_v60  ;;  %v13264_v29 = vadd.f32 %v6360_v63, %v6208_v50  ;;  %v13286_v50 = vpop.f32.mrf.mxu0 }
 0x73a   : > { %v6362_v15 = vpop.f32.mrf.mxu1 }
 0x73b   : > { %14319 = vst [vmem:[#allocation106_spill] sm:$0xff] %v13264_v29  ;;  %v13270_v26 = vadd.f32 %v6362_v15, %v6210_v25  ;;  %v6573_v63 = vpop.f32.mrf.mxu0 }
 0x73c   : > { %v6364_v46 = vpop.f32.mrf.mxu1 }
 0x73d   : > { %14320 = vst [vmem:[#allocation107_spill] sm:$0xff] %v13270_v26  ;;  %v13274_v57 = vadd.f32 %v6364_v46, %v6212_v2  ;;  %v6575_v4 = vpop.f32.mrf.mxu0 }
 0x73e   : > { %v6368_v40 = vpop.f32.mrf.mxu1 }
 0x73f   : > { %14321 = vst [vmem:[#allocation108_spill] sm:$0xff] %v13274_v57  ;;  %v13280_v32 = vadd.f32 %v6368_v40, %v6216_v7  ;;  %v13300_v35 = vpop.f32.mrf.mxu0 }
 0x740   : > { %v6370_v27 = vpop.f32.mrf.mxu1 }
 0x741   : > { %14322 = vst [vmem:[#allocation109_spill] sm:$0xff] %v13280_v32  ;;  %v13284_v55 = vadd.f32 %v6370_v27, %v6218_v49  ;;  %v13306_v7 = vpop.f32.mrf.mxu0 }
 0x742   : > { %v13288_v24 = vpop.f32.mrf.mxu1  ;;  %14326 = vst [vmem:[#allocation113_spill] sm:$0xff] %v13306_v7 }
 0x743   : > { %14323 = vst [vmem:[#allocation110_spill] sm:$0xff] %v13284_v55  ;;  %14324 = vst [vmem:[#allocation111_spill] sm:$0xff] %v13288_v24  ;;  %v13312_v27 = vpop.f32.mrf.mxu0  ;;  %v13332_v55 = vadd.f32 %v12913_v20, %v13087_v22  ;;  %v13352_v20 = vadd.f32 %v12929_v44, %v13108_v30  ;;  %v6246_v44 = vadd.f32 %v12943_v12, %v13124_v9  ;;  %v14338_v30 = vld [vmem:[#allocation47_spill] sm:$0xff]  ;;  %v14341_v9 = vld [vmem:[#allocation86_spill] sm:$0xff] }
 0x744   : > { %v13290_v3 = vpop.f32.mrf.mxu1  ;;  %14327 = vst [vmem:[#allocation114_spill] sm:$0xff] %v13312_v27  ;;  %v13328_v27 = vadd.f32 %v12908_v34, %v13084_v41  ;;  %v13348_v34 = vadd.f32 %v12927_v43, %v13103_v59  ;;  %v6240_v41 = vadd.f32 %v12936_v33, %v13116_v36  ;;  %v6266_v43 = vadd.f32 %v12971_v5, %v13156_v21  ;;  %v14335_v33 = vld [vmem:[#allocation84_spill] sm:$0xff]  ;;  %v14339_v5 = vld [vmem:[#allocation87_spill] sm:$0xff] }
 0x745   : > { %14325 = vst [vmem:[#allocation112_spill] sm:$0xff] %v13290_v3  ;;  %v13318_v16 = vpop.f32.mrf.mxu0  ;;  %14333 = vst [vmem:[#allocation120_spill] sm:$0xff] %v13332_v55  ;;  %v14340_v36 = vld [vmem:[#allocation23_spill] sm:$0xff]  ;;  %v14346_v24 = vld [vmem:[#allocation52_spill] sm:$0xff] }
 0x746   : > { %v13292_v25 = vpop.f32.mrf.mxu1  ;;  %14328 = vst [vmem:[#allocation115_spill] sm:$0xff] %v13318_v16  ;;  %14332 = vst [vmem:[#allocation119_spill] sm:$0xff] %v13328_v27  ;;  %v13336_v16 = vadd.f32 %v12915_v37, %v13092_v17  ;;  %v6268_v37 = vadd.f32 %v12973_v8, %v13159_v10  ;;  %v6262_v17 = vadd.f32 %v12969_v54, %v13151_v53  ;;  %v14342_v10 = vld [vmem:[#allocation80_spill] sm:$0xff]  ;;  %v14349_v55 = vld [vmem:[#allocation54_spill] sm:$0xff] }
 0x747   : > { %v13320_v1 = vpop.f32.mrf.mxu0  ;;  %v6258_v54 = vadd.f32 %v14342_v10, %v14341_v9 }
 0x748   : > { %v13294_v61 = vpop.f32.mrf.mxu1  ;;  %14329 = vst [vmem:[#allocation116_spill] sm:$0xff] %v13320_v1  ;;  %v13340_v1 = vadd.f32 %v12917_v14, %v13095_v42  ;;  %v6238_v14 = vadd.f32 %v12931_v47, %v13111_v39  ;;  %v6270_v47 = vadd.f32 %v12978_v19, %v13164_v62  ;;  %v14344_v19 = vld [vmem:[#allocation51_spill] sm:$0xff] }
 0x749   : > { %v13322_v29 = vpop.f32.mrf.mxu0 }
 0x74a   : > { %v13296_v15 = vpop.f32.mrf.mxu1  ;;  %14330 = vst [vmem:[#allocation117_spill] sm:$0xff] %v13322_v29 }
 0x74b   : > { %v13324_v32 = vpop.f32.mrf.mxu0 }
 0x74c   : > { %v13298_v2 = vpop.f32.mrf.mxu1  ;;  %14331 = vst [vmem:[#allocation118_spill] sm:$0xff] %v13324_v32  ;;  %v13344_v32 = vadd.f32 %v12922_v56, %v13100_v38  ;;  %v6242_v56 = vadd.f32 %v12941_v6, %v13119_v28  ;;  %v14336_v38 = vld [vmem:[#allocation21_spill] sm:$0xff]  ;;  %v14337_v6 = vld [vmem:[#allocation30_spill] sm:$0xff]  ;;  %v6260_v28 = vadd.f32 %v14340_v36, %v14339_v5 }
 0x74d   : > { %v13370_v42 = vpop.f32.mrf.mxu0  ;;  %v6248_v59 = vadd.f32 %v14336_v38, %v14335_v33  ;;  %v6250_v39 = vadd.f32 %v14338_v30, %v14337_v6  ;;  %v14347_v33 = vld [vmem:[#allocation88_spill] sm:$0xff]  ;;  %v14348_v38 = vld [vmem:[#allocation50_spill] sm:$0xff]  ;;  %v14350_v5 = vld [vmem:[#allocation49_spill] sm:$0xff] }
 0x74e   : > { %v13302_v23 = vpop.f32.mrf.mxu1  ;;  %14334 = vst [vmem:[#allocation121_spill] sm:$0xff] %v13370_v42  ;;  %v14345_v42 = vld [vmem:[#allocation83_spill] sm:$0xff]  ;;  %v6256_v3 = vadd.f32 %v14348_v38, %v14347_v33 }
 0x74f   : > { %v6252_v27 = vadd.f32 %v14346_v24, %v14345_v42  ;;  %v14352_v24 = vld [vmem:[#allocation57_spill] sm:$0xff]  ;;  %v14353_v42 = vld [vmem:[#allocation58_spill] sm:$0xff] }
 0x750   : > { %v13304_v46 = vpop.f32.mrf.mxu1 }
 0x752   : > { %v13308_v40 = vpop.f32.mrf.mxu1 }
 0x754   : > { %v13310_v49 = vpop.f32.mrf.mxu1 }
 0x756   : > { %v13314_v31 = vpop.f32.mrf.mxu1 }
 0x757   : > { %v6399_v38 = vadd.f32 %v13314_v31, %v6246_v44 }
 0x758   : > { %v13316_v11 = vpop.f32.mrf.mxu1 }
 0x75a   : > { %v6402_v45 = vpop.f32.mrf.mxu1 }
 0x75c   : > { %v6404_v60 = vpop.f32.mrf.mxu1 }
 0x75e   : > { %v6408_v51 = vpop.f32.mrf.mxu1 }
 0x760   : > { %v6410_v26 = vpop.f32.mrf.mxu1 }
 0x762   : > { %v6412_v7 = vpop.f32.mrf.mxu1 }
 0x763   : > { %v6413_v6 = vadd.f32 %v6412_v7, %v6260_v28  ;;  %v14354_v7 = vld [vmem:[#allocation48_spill] sm:$0xff]  ;;  %v14355_v28 = vld [vmem:[#allocation55_spill] sm:$0xff] }
 0x764   : > { %v6414_v57 = vpop.f32.mrf.mxu1 }
 0x765   : > { %v6415_v53 = vadd.f32 %v6414_v57, %v6262_v17  ;;  %v13390_v17 = vpop.f32.mrf.mxu0 }
 0x766   : > { %v6418_v29 = vpop.f32.mrf.mxu1 }
 0x767   : > { %v6419_v21 = vadd.f32 %v6418_v29, %v6266_v43  ;;  %v13388_v29 = vadd.f32 %v14350_v5, %v14349_v55  ;;  %v6411_v43 = vadd.f32 %v6410_v26, %v6258_v54  ;;  %v6405_v55 = vadd.f32 %v6404_v60, %v6252_v27 }
 0x768   : > { %v6420_v22 = vpop.f32.mrf.mxu1  ;;  %v6568_v26 = vadd.f32 %v13278_v48, %v6415_v53  ;;  %v6401_v60 = vadd.f32 %v13316_v11, %v6248_v59  ;;  %v13418_v53 = vpop.f32.mrf.mxu0  ;;  %v14362_v59 = vld [vmem:[#allocation40_spill] sm:$0xff] }
 0x769   : > { %v6421_v8 = vadd.f32 %v6420_v22, %v6268_v37  ;;  %v14343_v22 = vld [vmem:[#allocation35_spill] sm:$0xff]  ;;  %v6564_v48 = vadd.f32 %v13258_v18, %v6411_v43  ;;  %v6558_v11 = vadd.f32 %v13238_v13, %v6405_v55 }
 0x76a   : > { %v6422_v12 = vpop.f32.mrf.mxu1  ;;  %v6272_v62 = vadd.f32 %v14344_v19, %v14343_v22  ;;  %v13397_v22 = vadd.f32 %v14353_v42, %v14352_v24  ;;  %v13401_v19 = vadd.f32 %v14355_v28, %v14354_v7  ;;  %v6647_v18 = vmax.f32 %v6568_v26, 0.0 }
 0x76b   : > { %v6423_v37 = vadd.f32 %v6422_v12, %v6270_v47  ;;  %v6574_v36 = vadd.f32 %v6573_v63, %v6421_v8  ;;  %v6409_v47 = vadd.f32 %v6408_v51, %v6256_v3  ;;  %v6572_v12 = vadd.f32 %v13286_v50, %v6419_v21  ;;  %v14357_v8 = vld [vmem:[#allocation24_spill] sm:$0xff] }
 0x76c   : > { %v6424_v30 = vpop.f32.mrf.mxu1  ;;  %v6403_v50 = vadd.f32 %v6402_v45, %v6250_v39  ;;  %v6566_v3 = vadd.f32 %v13268_v52, %v6413_v6  ;;  %v14360_v6 = vld [vmem:[#allocation75_spill] sm:$0xff]  ;;  %v6645_v42 = vmax.f32 %v6564_v48, 0.0 }
 0x76d   : > { %v6576_v9 = vadd.f32 %v6575_v4, %v6423_v37  ;;  %v6425_v57 = vadd.f32 %v6424_v30, %v6272_v62  ;;  %v14356_v4 = vld [vmem:[#allocation22_spill] sm:$0xff]  ;;  %v14359_v62 = vld [vmem:[#allocation56_spill] sm:$0xff]  ;;  %v6649_v27 = vmax.f32 %v6574_v36, 0.0  ;;  %v6562_v45 = vadd.f32 %v13248_v58, %v6409_v47  ;;  %v14361_v30 = vld [vmem:[#allocation53_spill] sm:$0xff] }
 0x76e   : > { %v13393_v10 = vpop.f32.mrf.mxu1  ;;  %v13407_v51 = vadd.f32 %v14357_v8, %v14356_v4  ;;  %v14358_v37 = vld [vmem:[#allocation70_spill] sm:$0xff]  ;;  %v6648_v52 = vmax.f32 %v6572_v12, 0.0  ;;  %v13426_v5 = vadd.f32 %v14361_v30, %v14360_v6  ;;  %v6393_v36 = vadd.f32 %v13308_v40, %v6240_v41  ;;  %v14363_v12 = vld [vmem:[#allocation96_spill] sm:$0xff]  ;;  %v14365_v41 = vld [vmem:[#allocation93_spill] sm:$0xff] }
 0x76f   : > { %14351 = vst [vmem:[#allocation84_spill] sm:$0xff] %v13393_v10  ;;  %v6578_v63 = vadd.f32 %v13300_v35, %v6425_v57  ;;  %v6650_v21 = vmax.f32 %v6576_v9, 0.0  ;;  %v13414_v33 = vadd.f32 %v14359_v62, %v14358_v37  ;;  %v6395_v9 = vadd.f32 %v13310_v49, %v6242_v56  ;;  %v14364_v49 = vld [vmem:[#allocation13_spill] sm:$0xff]  ;;  %v13439_v56 = vpop.f32.mrf.mxu0  ;;  %v14367_v4 = vld [vmem:[#allocation14_spill] sm:$0xff]  ;;  %v14370_v48 = vld [vmem:[#allocation11_spill] sm:$0xff] }
 0x770   : > { %v13410_v54 = vpop.f32.mrf.mxu1  ;;  %v6556_v31 = vadd.f32 %v13228_v0, %v6403_v50  ;;  %v6646_v44 = vmax.f32 %v6566_v3, 0.0  ;;  %v6391_v47 = vadd.f32 %v13304_v46, %v6238_v14  ;;  %v6554_v24 = vadd.f32 %v14363_v12, %v6401_v60  ;;  %v14366_v14 = vld [vmem:[#allocation91_spill] sm:$0xff] }
 0x771   : > { %v6651_v35 = vmax.f32 %v6578_v63, 0.0  ;;  %v6698_v58 = vmul.f32 %v6650_v21, %v14362_v59  ;;  %v6697_v13 = vmul.f32 %v6649_v27, %v14364_v49  ;;  %v6389_v40 = vadd.f32 %v13302_v23, %v13352_v20  ;;  %v14368_v20 = vld [vmem:[#allocation78_spill] sm:$0xff] }
 0x772   : > { %v13422_v39 = vpop.f32.mrf.mxu1  ;;  %v6552_v0 = vadd.f32 %v14365_v41, %v6399_v38  ;;  %v6644_v7 = vmax.f32 %v6562_v45, 0.0  ;;  %v6696_v28 = vmul.f32 %v6648_v52, %v14364_v49  ;;  %v6385_v46 = vadd.f32 %v13298_v2, %v13348_v34  ;;  %v14369_v34 = vld [vmem:[#allocation67_spill] sm:$0xff] }
 0x773   : > { %v6699_v43 = vmul.f32 %v6651_v35, %v14362_v59  ;;  %v6548_v26 = vadd.f32 %v14366_v14, %v6395_v9  ;;  %v6643_v63 = vmax.f32 %v6558_v11, 0.0  ;;  %v6695_v8 = vmul.f32 %v6647_v18, %v14367_v4  ;;  %v13461_v35 = vpop.f32.mrf.mxu0  ;;  %v14374_v9 = vld [vmem:[#allocation20_spill] sm:$0xff]  ;;  %v14375_v59 = vld [vmem:[#allocation39_spill] sm:$0xff] }
 0x774   : > { %v13434_v57 = vpop.f32.mrf.mxu1  ;;  %v6383_v23 = vadd.f32 %v13296_v15, %v13344_v32  ;;  %v6546_v50 = vadd.f32 %v14368_v20, %v6393_v36  ;;  %v6642_v3 = vmax.f32 %v6556_v31, 0.0  ;;  %v6694_v21 = vmul.f32 %v6646_v44, %v14367_v4  ;;  %v14371_v15 = vld [vmem:[#allocation9_spill] sm:$0xff]  ;;  %v14376_v36 = vld [vmem:[#allocation119_spill] sm:$0xff]  ;;  %v14384_v4 = vld [vmem:[#allocation90_spill] sm:$0xff] }
 0x775   : > { %6722 = vmatprep.subr.mxu1 %v6699_v43  ;;  %v6381_v2 = vadd.f32 %v13294_v61, %v13340_v1  ;;  %v6544_v62 = vadd.f32 %v14369_v34, %v6391_v47  ;;  %v6641_v60 = vmax.f32 %v6554_v24, 0.0  ;;  %v6693_v27 = vmul.f32 %v6645_v42, %v14370_v48  ;;  %v14372_v1 = vld [vmem:[#allocation120_spill] sm:$0xff]  ;;  %v14377_v31 = vld [vmem:[#allocation111_spill] sm:$0xff]  ;;  %v14379_v24 = vld [vmem:[#allocation85_spill] sm:$0xff] }
 0x776   : > { %v13445_v55 = vpop.f32.mrf.mxu1  ;;  %6723 = vmatpush1.msra.mxu1 %v6698_v58  ;;  %v6379_v32 = vadd.f32 %v13292_v25, %v13336_v16  ;;  %v6542_v38 = vadd.f32 %v14371_v15, %v6389_v40  ;;  %v6640_v45 = vmax.f32 %v6552_v0, 0.0  ;;  %v6692_v52 = vmul.f32 %v6644_v7, %v14370_v48  ;;  %v14373_v61 = vld [vmem:[#allocation112_spill] sm:$0xff]  ;;  %v14378_v25 = vld [vmem:[#allocation34_spill] sm:$0xff]  ;;  %v14388_v34 = vld [vmem:[#allocation25_spill] sm:$0xff] }
 0x777   : > { %6724 = vmatprep.subr.mxu1 %v6697_v13  ;;  %v6375_v30 = vadd.f32 %v14373_v61, %v14372_v1  ;;  %v6538_v11 = vadd.f32 %v14374_v9, %v6385_v46  ;;  %v6639_v18 = vmax.f32 %v6548_v26, 0.0  ;;  %v6691_v43 = vmul.f32 %v6643_v63, %v14375_v59  ;;  %v14380_v13 = vld [vmem:[#allocation89_spill] sm:$0xff]  ;;  %v14381_v40 = vld [vmem:[#allocation62_spill] sm:$0xff]  ;;  %v14383_v46 = vld [vmem:[#allocation32_spill] sm:$0xff] }
 0x778   : > { %v13455_v37 = vpop.f32.mrf.mxu1  ;;  %6725 = vmatpush1.msra.mxu1 %v6696_v28  ;;  %v6373_v16 = vadd.f32 %v14377_v31, %v14376_v36  ;;  %v6536_v44 = vadd.f32 %v14378_v25, %v6383_v23  ;;  %v6638_v58 = vmax.f32 %v6546_v50, 0.0  ;;  %v6690_v47 = vmul.f32 %v6642_v3, %v14375_v59  ;;  %v14382_v0 = vld [vmem:[#allocation10_spill] sm:$0xff]  ;;  %v13485_v28 = vpop.f32.mrf.mxu0  ;;  %v14386_v50 = vld [vmem:[#allocation81_spill] sm:$0xff]  ;;  %v14396_v36 = vld [vmem:[#allocation59_spill] sm:$0xff] }
 0x779   : > { %6726 = vmatprep.subr.mxu1 %v6695_v8  ;;  %v6534_v42 = vadd.f32 %v14379_v24, %v6381_v2  ;;  %v6637_v49 = vmax.f32 %v6544_v62, 0.0  ;;  %v13482_v41 = vadd.f32 %v14381_v40, %v14380_v13  ;;  %v6689_v7 = vmul.f32 %v6641_v60, %v14382_v0  ;;  %v14385_v8 = vld [vmem:[#allocation60_spill] sm:$0xff]  ;;  %v14387_v2 = vld [vmem:[#allocation63_spill] sm:$0xff]  ;;  %v14389_v60 = vld [vmem:[#allocation37_spill] sm:$0xff] }
 0x77a   : > { %v13467_v6 = vpop.f32.mrf.mxu1  ;;  %6727 = vmatpush1.msra.mxu1 %v6694_v21  ;;  %v6532_v14 = vadd.f32 %v14383_v46, %v6379_v32  ;;  %v6636_v26 = vmax.f32 %v6542_v38, 0.0  ;;  %v6688_v63 = vmul.f32 %v6640_v45, %v14382_v0  ;;  %v13491_v23 = vadd.f32 %v14385_v8, %v14384_v4  ;;  %v14391_v45 = vld [vmem:[#allocation92_spill] sm:$0xff]  ;;  %v14394_v9 = vld [vmem:[#allocation74_spill] sm:$0xff]  ;;  %v14397_v31 = vld [vmem:[#allocation45_spill] sm:$0xff]  ;;  %v13514_v25 = vpop.f32.mrf.mxu0 }
 0x77b   : > { %6728 = vmatprep.subr.mxu1 %v6693_v27  ;;  %v6528_v3 = vadd.f32 %v14386_v50, %v6375_v30  ;;  %v6635_v21 = vmax.f32 %v6538_v11, 0.0  ;;  %v13498_v62 = vadd.f32 %v14388_v34, %v14387_v2  ;;  %v6687_v48 = vmul.f32 %v6639_v18, %v14389_v60  ;;  %v14390_v27 = vld [vmem:[#allocation82_spill] sm:$0xff]  ;;  %v14400_v0 = vld [vmem:[#allocation95_spill] sm:$0xff]  ;;  %v14405_v2 = vld [vmem:[#allocation97_spill] sm:$0xff] }
 0x77c   : > { %v13477_v12 = vpop.f32.mrf.mxu1  ;;  %6729 = vmatpush1.msra.mxu1 %v6692_v52  ;;  %v6526_v32 = vadd.f32 %v14390_v27, %v6373_v16  ;;  %v6634_v15 = vmax.f32 %v6536_v44, 0.0  ;;  %v6686_v38 = vmul.f32 %v6638_v58, %v14389_v60  ;;  %v14392_v52 = vld [vmem:[#allocation61_spill] sm:$0xff]  ;;  %v14393_v30 = vld [vmem:[#allocation110_spill] sm:$0xff]  ;;  %v6633_v59 = vmax.f32 %v6534_v42, 0.0  ;;  %v14402_v42 = vld [vmem:[#allocation108_spill] sm:$0xff] }
 0x77d   : > { %6730 = vmatprep.subr.mxu1 %v6691_v43  ;;  %v13505_v1 = vadd.f32 %v14392_v52, %v14391_v45  ;;  %v6524_v11 = vadd.f32 %v14394_v9, %v14393_v30  ;;  %v14395_v43 = vld [vmem:[#allocation94_spill] sm:$0xff]  ;;  %v6685_v16 = vmul.f32 %v6637_v49, %v14397_v31  ;;  %v14398_v44 = vld [vmem:[#allocation109_spill] sm:$0xff]  ;;  %v6632_v24 = vmax.f32 %v6532_v14, 0.0  ;;  %v14408_v27 = vld [vmem:[#allocation79_spill] sm:$0xff] }
 0x77e   : > { %v13493_v20 = vpop.f32.mrf.mxu1  ;;  %6731 = vmatpush1.msra.mxu1 %v6690_v47  ;;  %v6300_v18 = vadd.f32 %v14396_v36, %v14395_v43  ;;  %v14399_v58 = vld [vmem:[#allocation77_spill] sm:$0xff]  ;;  %v6684_v13 = vmul.f32 %v6636_v26, %v14397_v31  ;;  %v6631_v8 = vmax.f32 %v6528_v3, 0.0  ;;  %v14404_v50 = vld [vmem:[#allocation46_spill] sm:$0xff]  ;;  %v14409_v45 = vld [vmem:[#allocation107_spill] sm:$0xff] }
 0x77f   : > { %6732 = vmatprep.subr.mxu1 %v6689_v7  ;;  %v6522_v47 = vadd.f32 %v14399_v58, %v14398_v44  ;;  %v14401_v7 = vld [vmem:[#allocation68_spill] sm:$0xff]  ;;  %v6683_v49 = vmul.f32 %v6635_v21, %v14404_v50  ;;  %v14406_v34 = vld [vmem:[#allocation65_spill] sm:$0xff]  ;;  %v6682_v30 = vmul.f32 %v6634_v15, %v14404_v50  ;;  %v6629_v31 = vmax.f32 %v6524_v11, 0.0  ;;  %v14413_v21 = vld [vmem:[#allocation43_spill] sm:$0xff] }
 0x780   : > { %v13507_v61 = vpop.f32.mrf.mxu1  ;;  %6733 = vmatpush1.msra.mxu1 %v6688_v63  ;;  %v6302_v46 = vadd.f32 %v14401_v7, %v14400_v0  ;;  %v14403_v63 = vld [vmem:[#allocation29_spill] sm:$0xff]  ;;  %v6306_v60 = vadd.f32 %v14406_v34, %v14405_v2  ;;  %v14410_v26 = vld [vmem:[#allocation76_spill] sm:$0xff]  ;;  %v14414_v44 = vld [vmem:[#allocation98_spill] sm:$0xff]  ;;  %v6613_v7 = vpop.f32.mrf.mxu0 }
 0x781   : > { %6734 = vmatprep.subr.mxu1 %v6687_v48  ;;  %v6518_v4 = vadd.f32 %v14403_v63, %v14402_v42  ;;  %v14407_v48 = vld [vmem:[#allocation106_spill] sm:$0xff]  ;;  %v6516_v52 = vadd.f32 %v14410_v26, %v14409_v45  ;;  %v14411_v43 = vld [vmem:[#allocation101_spill] sm:$0xff]  ;;  %v14417_v63 = vld [vmem:[#allocation71_spill] sm:$0xff]  ;;  %v6628_v50 = vmax.f32 %v6522_v47, 0.0 }
 0x782   : > { %v6452_v40 = vpop.f32.mrf.mxu1  ;;  %6735 = vmatpush1.msra.mxu1 %v6686_v38  ;;  %v6514_v14 = vadd.f32 %v14408_v27, %v14407_v48  ;;  %v6630_v38 = vmax.f32 %v6526_v32, 0.0  ;;  %v14412_v36 = vld [vmem:[#allocation73_spill] sm:$0xff]  ;;  %v14415_v58 = vld [vmem:[#allocation26_spill] sm:$0xff]  ;;  %v14420_v27 = vld [vmem:[#allocation104_spill] sm:$0xff] }
 0x783   : > { %6736 = vmatprep.subr.mxu1 %v6685_v16  ;;  %v13533_v3 = vadd.f32 %v14412_v36, %v14411_v43  ;;  %v6681_v16 = vmul.f32 %v6633_v59, %v14413_v21  ;;  %v6308_v0 = vadd.f32 %v14415_v58, %v14414_v44  ;;  %v14416_v42 = vld [vmem:[#allocation102_spill] sm:$0xff]  ;;  %v14418_v32 = vld [vmem:[#allocation105_spill] sm:$0xff]  ;;  %v14421_v11 = vld [vmem:[#allocation72_spill] sm:$0xff]  ;;  %v6627_v45 = vmax.f32 %v6518_v4, 0.0 }
 0x784   : > { %v6454_v9 = vpop.f32.mrf.mxu1  ;;  %6737 = vmatpush1.msra.mxu1 %v6684_v13  ;;  %v6504_v2 = vadd.f32 %v14417_v63, %v14416_v42  ;;  %v14419_v34 = vld [vmem:[#allocation69_spill] sm:$0xff]  ;;  %v6680_v13 = vmul.f32 %v6632_v24, %v14413_v21  ;;  %v14422_v59 = vld [vmem:[#allocation44_spill] sm:$0xff]  ;;  %v14423_v43 = vld [vmem:[#allocation99_spill] sm:$0xff]  ;;  %v6625_v10 = vmax.f32 %v6514_v14, 0.0 }
 0x785   : > { %6738 = vmatprep.subr.mxu1 %v6683_v49  ;;  %v6512_v15 = vadd.f32 %v14419_v34, %v14418_v32  ;;  %v6508_v49 = vadd.f32 %v14421_v11, %v14420_v27  ;;  %v6679_v26 = vmul.f32 %v6631_v8, %v14422_v59  ;;  %v14424_v36 = vld [vmem:[#allocation66_spill] sm:$0xff]  ;;  %v14425_v58 = vld [vmem:[#allocation103_spill] sm:$0xff]  ;;  %v6626_v32 = vmax.f32 %v6516_v52, 0.0  ;;  %v14428_v34 = vld [vmem:[#allocation100_spill] sm:$0xff]  ;;  %v6615_v11 = vpop.f32.mrf.mxu0 }
 0x786   : > { %v6458_v48 = vpop.f32.mrf.mxu1  ;;  %6739 = vmatpush1.msra.mxu1 %v6682_v30  ;;  %v6310_v44 = vadd.f32 %v14424_v36, %v14423_v43  ;;  %v14426_v42 = vld [vmem:[#allocation27_spill] sm:$0xff]  ;;  %v6678_v47 = vmul.f32 %v6630_v38, %v14422_v59  ;;  %v6620_v30 = vmax.f32 %v13533_v3, 0.0  ;;  %v14427_v4 = vld [vmem:[#allocation38_spill] sm:$0xff]  ;;  %v14429_v8 = vld [vmem:[#allocation64_spill] sm:$0xff]  ;;  %v6621_v43 = vmax.f32 %v6504_v2, 0.0 }
 0x787   : > { %6740 = vmatprep.subr.mxu1 %v6681_v16  ;;  %v6506_v63 = vadd.f32 %v14426_v42, %v14425_v58  ;;  %v6677_v16 = vmul.f32 %v6629_v31, %v14427_v4  ;;  %v6312_v27 = vadd.f32 %v14429_v8, %v14428_v34  ;;  %v6624_v36 = vmax.f32 %v6512_v15, 0.0  ;;  %v14430_v3 = vld [vmem:[#allocation41_spill] sm:$0xff] }
 0x788   : > { %v6460_v24 = vpop.f32.mrf.mxu1  ;;  %6741 = vmatpush1.msra.mxu1 %v6680_v13  ;;  %v6676_v58 = vmul.f32 %v6628_v50, %v14427_v4  ;;  %v6459_v14 = vadd.f32 %v6458_v48, %v6306_v60  ;;  %v6623_v38 = vmax.f32 %v6508_v49, 0.0  ;;  %v6455_v59 = vadd.f32 %v6454_v9, %v6302_v46  ;;  %v14431_v34 = vld [vmem:[#allocation33_spill] sm:$0xff]  ;;  %v6617_v46 = vpop.f32.mrf.mxu0 }
 0x789   : > { %v6461_v21 = vadd.f32 %v6460_v24, %v6308_v0  ;;  %6742 = vmatprep.subr.mxu1 %v6679_v26  ;;  %v6675_v0 = vmul.f32 %v6627_v45, %v14430_v3  ;;  %v6622_v26 = vmax.f32 %v6506_v63, 0.0  ;;  %v6674_v31 = vmul.f32 %v6626_v32, %v14430_v3 }
 0x78a   : > { %v6462_v52 = vpop.f32.mrf.mxu1  ;;  %6743 = vmatpush1.msra.mxu1 %v6678_v47  ;;  %v6453_v42 = vadd.f32 %v6452_v40, %v6300_v18  ;;  %v6673_v2 = vmul.f32 %v6625_v10, %v14431_v34  ;;  %v6451_v15 = vadd.f32 %v13507_v61, %v13505_v1  ;;  %v6672_v9 = vmul.f32 %v6624_v36, %v14431_v34  ;;  %v14432_v18 = vld [vmem:[#allocation31_spill] sm:$0xff] }
 0x78b   : > { %v6463_v13 = vadd.f32 %v6462_v52, %v6310_v44  ;;  %6744 = vmatprep.subr.mxu1 %v6677_v16  ;;  %v6614_v60 = vadd.f32 %v6613_v7, %v6461_v21  ;;  %v6449_v49 = vadd.f32 %v13493_v20, %v13498_v62  ;;  %v6612_v45 = vadd.f32 %v13514_v25, %v6459_v14  ;;  %v14433_v7 = vld [vmem:[#allocation36_spill] sm:$0xff] }
 0x78c   : > { %v6464_v24 = vpop.f32.mrf.mxu1  ;;  %6745 = vmatpush1.msra.mxu1 %v6676_v58  ;;  %v6669_v40 = vmul.f32 %v6621_v43, %v14432_v18  ;;  %v6445_v10 = vadd.f32 %v13477_v12, %v13491_v23  ;;  %v6608_v1 = vadd.f32 %v13485_v28, %v6455_v59  ;;  %v6671_v44 = vmul.f32 %v6623_v38, %v14433_v7  ;;  %v14438_v43 = vld [vmem:[#allocation84_spill] sm:$0xff]  ;;  %v14439_v58 = vld [vmem:[#allocation117_spill] sm:$0xff] }
 0x78d   : > { %v6616_v50 = vadd.f32 %v6615_v11, %v6463_v13  ;;  %v6465_v48 = vadd.f32 %v6464_v24, %v6312_v27  ;;  %6746 = vmatprep.subr.mxu1 %v6675_v0  ;;  %v6670_v63 = vmul.f32 %v6622_v26, %v14433_v7  ;;  %v6443_v32 = vadd.f32 %v13467_v6, %v13482_v41  ;;  %v14440_v52 = vld [vmem:[#allocation116_spill] sm:$0xff]  ;;  %v14442_v13 = vld [vmem:[#allocation115_spill] sm:$0xff] }
 0x78e   : > { %6747 = vmatpush1.msra.mxu1 %v6674_v31  ;;  %v6606_v20 = vadd.f32 %v13461_v35, %v6453_v42  ;;  %v6441_v25 = vadd.f32 %v13455_v37, %v13426_v5  ;;  %v6604_v12 = vadd.f32 %v13439_v56, %v6451_v15  ;;  %v6665_v23 = vmax.f32 %v6614_v60, 0.0  ;;  %v14434_v56 = vld [vmem:[#allocation28_spill] sm:$0xff]  ;;  %v14443_v31 = vld [vmem:[#allocation114_spill] sm:$0xff]  ;;  %v14448_v7 = vld [vmem:[#allocation15_spill] sm:$0xff] }
 0x78f   : > { %v6618_v61 = vadd.f32 %v6617_v46, %v6465_v48  ;;  %6748 = vmatprep.subr.mxu1 %v6673_v2  ;;  %v6666_v62 = vmax.f32 %v6616_v50, 0.0  ;;  %v6668_v47 = vmul.f32 %v6620_v30, %v14432_v18  ;;  %v6439_v21 = vadd.f32 %v13445_v55, %v13414_v33  ;;  %v14435_v30 = vld [vmem:[#allocation121_spill] sm:$0xff]  ;;  %v14436_v55 = vld [vmem:[#allocation118_spill] sm:$0xff]  ;;  %v14444_v24 = vld [vmem:[#allocation16_spill] sm:$0xff] }
 0x790   : > { %6749 = vmatpush1.msra.mxu1 %v6672_v9  ;;  %v6602_v4 = vadd.f32 %v13418_v53, %v6449_v49  ;;  %v6664_v6 = vmax.f32 %v6612_v45, 0.0  ;;  %v6435_v35 = vadd.f32 %v13434_v57, %v13407_v51  ;;  %v6598_v41 = vadd.f32 %v13390_v17, %v6445_v10  ;;  %v14437_v17 = vld [vmem:[#allocation18_spill] sm:$0xff]  ;;  %v14445_v2 = vld [vmem:[#allocation113_spill] sm:$0xff] }
 0x791   : > { %v6667_v28 = vmax.f32 %v6618_v61, 0.0  ;;  %6750 = vmatprep.subr.mxu1 %v6671_v44  ;;  %v6663_v5 = vmax.f32 %v6608_v1, 0.0  ;;  %v6433_v16 = vadd.f32 %v13422_v39, %v13401_v19  ;;  %v6596_v8 = vadd.f32 %v14435_v30, %v6443_v32  ;;  %v14446_v46 = vld [vmem:[#allocation17_spill] sm:$0xff]  ;;  %v14449_v32 = vld [vmem:[#allocation12_spill] sm:$0xff] }
 0x792   : > { %6751 = vmatpush1.msra.mxu1 %v6670_v63  ;;  %v6662_v27 = vmax.f32 %v6606_v20, 0.0  ;;  %v6714_v33 = vmul.f32 %v6666_v62, %v14434_v56  ;;  %v6431_v53 = vadd.f32 %v13410_v54, %v13397_v22  ;;  %v6594_v51 = vadd.f32 %v14436_v55, %v6441_v25  ;;  %v14441_v22 = vld [vmem:[#allocation19_spill] sm:$0xff]  ;;  %v6716_v25 = vld [vmem:[%s14307_s3] sm:$0xff] }
 0x793   : > { %6752 = vmatprep.subr.mxu1 %v6669_v40  ;;  %v6715_v37 = vmul.f32 %v6667_v28, %v14434_v56  ;;  %v6661_v57 = vmax.f32 %v6604_v12, 0.0  ;;  %v6713_v11 = vmul.f32 %v6665_v23, %v14437_v17  ;;  %v6429_v36 = vadd.f32 %v14438_v43, %v13388_v29  ;;  %v14447_v40 = vld [vmem:[#allocation42_spill] sm:$0xff] }
 0x794   : > { %6753 = vmatpush1.msra.mxu1 %v6668_v47  ;;  %v6592_v19 = vadd.f32 %v14439_v58, %v6439_v21  ;;  %v6660_v39 = vmax.f32 %v6602_v4, 0.0  ;;  %v6712_v14 = vmul.f32 %v6664_v6, %v14437_v17  ;;  %v6588_v38 = vadd.f32 %v14440_v52, %v6435_v35 }
 0x795   : > { %6770 = vmatprep.subr.mxu1 %v6715_v37  ;;  %v6659_v59 = vmax.f32 %v6598_v41, 0.0  ;;  %v6711_v54 = vmul.f32 %v6663_v5, %v14441_v22  ;;  %v6586_v3 = vadd.f32 %v14442_v13, %v6433_v16  ;;  %v6658_v0 = vmax.f32 %v6596_v8, 0.0 }
 0x796   : > { %6771 = vmatpush2.msra.mxu1 %v6714_v33  ;;  %v6710_v26 = vmul.f32 %v6662_v27, %v14441_v22  ;;  %v6584_v29 = vadd.f32 %v14443_v31, %v6431_v53  ;;  %v6657_v42 = vmax.f32 %v6594_v51, 0.0  ;;  %v6709_v34 = vmul.f32 %v6661_v57, %v14444_v24 }
 0x797   : > { %6772 = vmatprep.subr.mxu1 %v6713_v11  ;;  %v6582_v15 = vadd.f32 %v14445_v2, %v6429_v36  ;;  %v6656_v60 = vmax.f32 %v6592_v19, 0.0  ;;  %v6708_v50 = vmul.f32 %v6660_v39, %v14444_v24  ;;  %v6655_v48 = vmax.f32 %v6588_v38, 0.0 }
 0x798   : > { %6773 = vmatpush2.msra.mxu1 %v6712_v14  ;;  %v6707_v9 = vmul.f32 %v6659_v59, %v14446_v46  ;;  %v6654_v49 = vmax.f32 %v6586_v3, 0.0  ;;  %v6706_v45 = vmul.f32 %v6658_v0, %v14446_v46  ;;  %v6653_v18 = vmax.f32 %v6584_v29, 0.0 }
 0x799   : > { %6774 = vmatprep.subr.mxu1 %v6711_v54  ;;  %v6705_v10 = vmul.f32 %v6657_v42, %v14447_v40  ;;  %v6652_v1 = vmax.f32 %v6582_v15, 0.0  ;;  %v6704_v61 = vmul.f32 %v6656_v60, %v14447_v40  ;;  %v6703_v44 = vmul.f32 %v6655_v48, %v14448_v7 }
 0x79a   : > { %6775 = vmatpush2.msra.mxu1 %v6710_v26  ;;  %v6702_v63 = vmul.f32 %v6654_v49, %v14448_v7  ;;  %v6701_v20 = vmul.f32 %v6653_v18, %v14449_v32 }
 0x79b   : > { %6776 = vmatprep.subr.mxu1 %v6709_v34  ;;  %v6700_v62 = vmul.f32 %v6652_v1, %v14449_v32 }
 0x79c   : > { %6777 = vmatpush2.msra.mxu1 %v6708_v50 }
 0x79d   : > { %6778 = vmatprep.subr.mxu1 %v6707_v9 }
 0x79e   : > { %6779 = vmatpush2.msra.mxu1 %v6706_v45 }
 0x79f   : > { %6780 = vmatprep.subr.mxu1 %v6705_v10 }
 0x7a0   : > { %6781 = vmatpush2.msra.mxu1 %v6704_v61 }
 0x7a1   : > { %6782 = vmatprep.subr.mxu1 %v6703_v44 }
 0x7a2   : > { %6783 = vmatpush2.msra.mxu1 %v6702_v63 }
 0x7a3   : > { %6784 = vmatprep.subr.mxu1 %v6701_v20 }
 0x7a4   : > { %6785 = vmatpush2.msra.mxu1 %v6700_v62 }
 0x7a5   : > { %6787 = vmatmul.mubr.f32.vlgmr.msra.gmra.mxu1 %v6716_v25 }
 0x865   : > { %v6788_v12 = vpop.f32.mrf.mxu1 }
 0x866   : > { %6793 = vst [vmem:[%s558_s19] sm:$0xff] %v6788_v12 }
 0x867   : > { %v6790_v23 = vpop.f32.mrf.mxu1 }
 0x868   : > { %6794 = vst [vmem:[%s558_s19 + $0x8] sm:$0xff] %v6790_v23 }
 0x869   : > { %8578 = shalt.err (!%p8575_p3)
}
 0x86a   : > { %s8579_s18 = scalar_lea.hbm %s6808_s22, 256  ;;  %s8583_s0 = scalar_lea.hbm %s13673_s17, 512 }
 0x86b   : > { %p8580_p4 = scmp.ne.s32.totalorder %s6808_s22, %s8579_s18  ;;  %p8584_p9 = scmp.lt.s32.totalorder %s6808_s22, %s13673_s17 }
 0x86c   : > { %p8585_p10 = scmp.lt.s32.totalorder %s8583_s0, %s8579_s18 }
 0x86d   : > { %p8581_p7 = pnand %p8580_p4, %p8757_p5 }
 0x86e   : > { %p8586_p11 = por %p8585_p10, %p8584_p9 }
 0x86f   : > { %p8582_p8 = pneg %p8581_p7 }
 0x871   : > { %p8587_p12 = pnand %p8586_p11, %p8582_p8 }
 0x873   : > { %8590 = shalt.err (!%p8587_p12)
}
 0x874   : > { %8150 = dma.vmem_to_hbm [thread:$0]  (%p8757_p5), %s13618_s23, 256, %s6808_s22, %s6796_s26  }
 0x875 PF: > { %p8156_p13 = scmp.ge.s32.totalorder %s8625_s27, 2  ;;  %s6822_s20 = sand.u32 1, %s8613_s24  }
 0x876   : > { %s6823_s28 = scalar_lea.sflag [#allocation3], %s6822_s20 }
 0x877   : > { %p8153_p0 = pnand %p8156_p13, %p8761_p6 }
 0x879   : > { %p8154_p1 = pneg %p8153_p0 }
 0x87b   : > { %8608 = dma.done.wait (%p8154_p1), %s6823_s28, 256  }
 0x87c   : > { %8610 = vsyncadd (%p8154_p1), %s6823_s28, 4294967040  ;;  %s14451_s27 = sld [smem:[#allocation6_spill]]  ;;  %s14454_s24 = smov %s8617_s25 }
 0x87d   : > { %s14452_s3 = sld [smem:[#allocation5_spill]] }
 0x87e   : > { %s14453_s26 = sld [smem:[#allocation7_spill]] }
 0x882   : > { %p27_p2 = scmp.ge.s32.totalorder %s14451_s27, 4  }
 0x883   : > { %s14455_s25 = smov %s14452_s3 }
 0x884   :  { %29 = sbr.rel (!%p27_p2) target bundleno = 8 (0x8), region = 130 }
 0x889   :  { %6828 = vsyncpa [#allocation3], 1 }
 0x88a   :  { %6830 = vsyncpa [#allocation3 + $0x1], 1 }

</bundles_post_ra>
